<compile_context>
chip_gen: v7x
topology: tpu7x:2x2x1
jax: 0.10.0
libtpu: 0.0.40
codegen_flags: <defaults>
</compile_context>

<pallas_src>
import functools
import math

import jax
import jax.numpy as jnp
import numpy as np
from jax.experimental import pallas as pl
from jax.experimental.pallas import tpu as pltpu


def _unet_up_kernel(x_ref, w_ref, s_ref, skip_ref, out_ref, v_scr,
                    *, Bt, K, C_out, HW, eps):
    """Fused ConvTranspose2d + InstanceNorm2d + ReLU + concat for Bt batch elements.

    Block shapes:
      x_ref   : (Bt, C_in, HW)          input, spatial flattened onto lanes
      w_ref   : (K*K*C_out, C_in)       weight rows (t*C_out + co), VMEM-resident
      s_ref   : (K*K*HW, HO*WO) bf16    precomputed 0/1 scatter matrix, VMEM-resident
      skip_ref: (Bt, C_skip, HO*WO)
      out_ref : (Bt, C_out + C_skip, HO*WO)
      v_scr   : (Bt*C_out, K*K*HW) f32  scratch holding per-tap activations
    """
    KK = K * K
    C_skip = skip_ref.shape[1]

    # ---- Stage 1: channel mix per tap on the MXU (M = K*K*C_out rows). ----
    # v_all[t*C_out + co, hw] = sum_ci W[ci, co, t] * x[b, ci, hw]
    for b in range(Bt):
        v_all = jnp.dot(w_ref[...], x_ref[b],
                        preferred_element_type=jnp.float32)      # (K*K*C_out, HW)
        # Re-lay per-tap rows onto the lane axis: (C_out rows) x (lane block t*HW).
        # All offsets are sublane (x8) / lane (x128) aligned static slices.
        for t in range(KK):
            v_scr[b * C_out:(b + 1) * C_out, t * HW:(t + 1) * HW] = (
                v_all[t * C_out:(t + 1) * C_out, :])

    # ---- Stage 2: one long-contraction scatter matmul (bf16 in, f32 accumulate). ----
    # acc[b*C_out+co, (oh,ow)] = sum_{t,hw} v[b,co,t,hw] * S_big[(t,hw),(oh,ow)]
    acc = jnp.dot(v_scr[...].astype(jnp.bfloat16), s_ref[...],
                  preferred_element_type=jnp.float32)            # (Bt*C_out, HO*WO)

    # ---- InstanceNorm2d (affine=False, biased variance) + ReLU, per (b, channel). ----
    mean = jnp.mean(acc, axis=1, keepdims=True)
    cen = acc - mean
    var = jnp.mean(cen * cen, axis=1, keepdims=True)
    y = jnp.maximum(cen * jax.lax.rsqrt(var + jnp.float32(eps)), jnp.float32(0.0))

    # ---- torch.cat((conv_out, skip), dim=1): lane-dense channel-slab stores. ----
    for b in range(Bt):
        out_ref[b, 0:C_out, :] = y[b * C_out:(b + 1) * C_out, :].astype(out_ref.dtype)
        out_ref[b, C_out:C_out + C_skip, :] = skip_ref[b].astype(out_ref.dtype)


def _pick_block_batch(B, C_out):
    """Batch elems per grid step: target ~128 MXU rows, but keep >= 2 grid steps
    when B allows (v7x: 2 TensorCores), and divide B exactly."""
    bt = min(B, max(1, 128 // max(C_out, 1)))
    while bt > 1 and B // bt < 2:
        bt -= 1
    while B % bt != 0:
        bt -= 1
    return bt


def _build_scatter_matrix(H, W, HO, WO, K, stride, padding):
    """S_big[(kh*K+kw)*HW + ih*W + iw, oh*WO + ow] = 1  where
       oh = stride*ih - padding + kh, ow = stride*iw - padding + kw (in range)."""
    HW, HOWO = H * W, HO * WO
    s = np.zeros((K * K * HW, HOWO), np.float32)
    ih = np.arange(HW, dtype=np.int64) // W
    iw = np.arange(HW, dtype=np.int64) % W
    rows_base = np.arange(HW, dtype=np.int64)
    for kh in range(K):
        for kw in range(K):
            t = kh * K + kw
            oh = stride * ih - padding + kh
            ow = stride * iw - padding + kw
            valid = (oh >= 0) & (oh < HO) & (ow >= 0) & (ow < WO)
            s[t * HW + rows_base[valid], (oh * WO + ow)[valid]] = 1.0
    return s


@functools.partial(jax.jit, static_argnames=("stride", "padding", "eps"))
def unet_up_forward(x, w, skip, *, stride=2, padding=1, eps=1e-5):
    """x: (B, C_in, H, W); w: (C_in, C_out, K, K); skip: (B, C_skip, HO, WO)."""
    B, C_in, H, W = x.shape
    wc_in, C_out, K, K2 = w.shape
    assert wc_in == C_in and K == K2
    HO = (H - 1) * stride - 2 * padding + K
    WO = (W - 1) * stride - 2 * padding + K
    Bs, C_skip, HOs, WOs = skip.shape
    assert (Bs, HOs, WOs) == (B, HO, WO)
    C_total = C_out + C_skip
    HW, HOWO = H * W, HO * WO

    Bt = _pick_block_batch(B, C_out)
    G = B // Bt

    # Layout-preserving (free) reshapes: spatial flattened onto the lane axis.
    x2 = x.reshape(B, C_in, HW)
    skip2 = skip.reshape(B, C_skip, HOWO)
    # Weight rows per tap: row t*C_out + co holds W[:, co, kh, kw] with t = kh*K + kw.
    w_taps = jnp.transpose(w, (2, 3, 1, 0)).reshape(K * K * C_out, C_in)
    # Precomputed 0/1 scatter matrix (bf16 is lossless for 0/1), VMEM-resident.
    s_big = jnp.asarray(_build_scatter_matrix(H, W, HO, WO, K, stride, padding),
                        dtype=jnp.bfloat16)

    kernel = functools.partial(_unet_up_kernel, Bt=Bt, K=K, C_out=C_out,
                               HW=HW, eps=eps)

    out2 = pl.pallas_call(
        kernel,
        out_shape=jax.ShapeDtypeStruct((B, C_total, HOWO), x.dtype),
        grid_spec=pltpu.PrefetchScalarGridSpec(
            num_scalar_prefetch=0,
            grid=(G,),
            in_specs=[
                pl.BlockSpec((Bt, C_in, HW), lambda g: (g, 0, 0)),          # x slab
                pl.BlockSpec((K * K * C_out, C_in), lambda g: (0, 0)),      # weights (resident)
                pl.BlockSpec((K * K * HW, HOWO), lambda g: (0, 0)),         # S_big (resident)
                pl.BlockSpec((Bt, C_skip, HOWO), lambda g: (g, 0, 0)),      # skip slab
            ],
            out_specs=pl.BlockSpec((Bt, C_total, HOWO), lambda g: (g, 0, 0)),
            scratch_shapes=[pltpu.VMEM((Bt * C_out, K * K * HW), jnp.float32)],
        ),
        compiler_params=pltpu.CompilerParams(
            dimension_semantics=("parallel",),       # batch blocks independent
            vmem_limit_bytes=48 * 1024 * 1024,       # resident bf16 S fits v7x's 64 MiB
        ),
    )(x2, w_taps, s_big, skip2)

    # Free reshape back to NCHW.
    return out2.reshape(B, C_total, HO, WO)


def _reference_forward(x, w, skip, *, stride=2, padding=1, eps=1e-5):
    """Pure-JAX reference mirroring the PyTorch eval-mode forward."""
    K = w.shape[2]
    # ConvTranspose2d == fractionally-strided conv with flipped, in/out-swapped kernel.
    w_conv = jnp.transpose(jnp.flip(w, (2, 3)), (1, 0, 2, 3))   # (C_out, C_in, K, K)
    pad = K - 1 - padding
    y = jax.lax.conv_general_dilated(
        x, w_conv,
        window_strides=(1, 1),
        padding=((pad, pad), (pad, pad)),
        lhs_dilation=(stride, stride),
        dimension_numbers=("NCHW", "OIHW", "NCHW"),
        precision=jax.lax.Precision.HIGHEST)
    mean = jnp.mean(y, axis=(2, 3), keepdims=True)
    var = jnp.mean(jnp.square(y - mean), axis=(2, 3), keepdims=True)
    y = jnp.maximum((y - mean) * jax.lax.rsqrt(var + eps), 0.0)
    return jnp.concatenate([y, skip], axis=1)


if __name__ == "__main__":
    # Small shapes consistent with the module: UNetUp(in_size=4, out_size=8),
    # x (B, in_size, 16, 16), skip (B, out_size, 32, 32).
    batch, in_size, out_size, H, W = 2, 4, 8, 16, 16
    kernel_size, stride, padding = 4, 2, 1
    HO, WO = 2 * H, 2 * W

    key = jax.random.PRNGKey(0)
    kx, kw, ks = jax.random.split(key, 3)
    x = jax.random.normal(kx, (batch, in_size, H, W), jnp.float32)
    bound = 1.0 / math.sqrt(in_size * kernel_size * kernel_size)
    w = jax.random.uniform(kw, (in_size, out_size, kernel_size, kernel_size),
                           jnp.float32, -bound, bound)
    skip = jax.random.normal(ks, (batch, out_size, HO, WO), jnp.float32)

    out = unet_up_forward(x, w, skip)
    jax.block_until_ready(out)

    ref = _reference_forward(x, w, skip)
    assert out.shape == (batch, out_size + out_size, HO, WO)
    max_err = float(jnp.max(jnp.abs(out - ref)))
    # bf16 scatter-matmul operands (f32 accumulate): ~0.2-0.4% relative error on the
    # normalized O(1) outputs.
    assert jnp.allclose(out, ref, atol=2e-2, rtol=2e-2), f"max abs err {max_err}"

    print("KERNEL_OK")
</pallas_src>

<mosaic_0001>
module attributes {stable_mosaic.version = 11 : i64} {
  func.func @_unet_up_kernel(%arg0: i32, %arg1: memref<1x4x256xf32, #tpu.memory_space<vmem>>, %arg2: memref<128x4xf32, #tpu.memory_space<vmem>>, %arg3: memref<4096x1024xbf16, #tpu.memory_space<vmem>>, %arg4: memref<1x8x1024xf32, #tpu.memory_space<vmem>>, %arg5: memref<1x16x1024xf32, #tpu.memory_space<vmem>>, %arg6: memref<8x4096xf32, #tpu.memory_space<vmem>>) attributes {dimension_semantics = [#tpu.dimension_semantics<parallel>], iteration_bounds = array<i64: 2>, scalar_prefetch = 0 : i64, scratch_operands = 1 : i64, tpu.core_type = #tpu.core_type<tc>, window_params = [{transform_indices = @transform_0, window_bounds = array<i64: 1, 4, 256>}, {pipeline_mode = #tpu.pipeline_mode<synchronous>, transform_indices = @transform_1, window_bounds = array<i64: 128, 4>}, {pipeline_mode = #tpu.pipeline_mode<synchronous>, transform_indices = @transform_2, window_bounds = array<i64: 4096, 1024>}, {transform_indices = @transform_3, window_bounds = array<i64: 1, 8, 1024>}, {transform_indices = @transform_4, window_bounds = array<i64: 1, 16, 1024>}]} {
    %c0 = arith.constant 0 : index
    %c0_0 = arith.constant 0 : index
    %0 = vector.load %arg2[%c0, %c0_0] : memref<128x4xf32, #tpu.memory_space<vmem>>, vector<128x4xf32>
    %c0_1 = arith.constant 0 : index
    %c0_2 = arith.constant 0 : index
    %c0_3 = arith.constant 0 : index
    %1 = vector.load %arg1[%c0_1, %c0_2, %c0_3] : memref<1x4x256xf32, #tpu.memory_space<vmem>>, vector<1x4x256xf32>
    %2 = vector.shape_cast %1 : vector<1x4x256xf32> to vector<4x256xf32>
    %cst = arith.constant dense<0.000000e+00> : vector<128x256xf32>
    %3 = tpu.matmul %0, %2, %cst {dimension_numbers = #tpu.dot_dimension_numbers<[1], [0], [0], [1], [0, 0, 1, 1], [], []>} : vector<128x4xf32>, vector<4x256xf32>, vector<128x256xf32> -> vector<128x256xf32>
    %4 = vector.extract_strided_slice %3 {offsets = [0, 0], sizes = [8, 256], strides = [1, 1]} : vector<128x256xf32> to vector<8x256xf32>
    %c0_4 = arith.constant 0 : index
    %c0_5 = arith.constant 0 : index
    %5 = vector.load %arg6[%c0_4, %c0_5] : memref<8x4096xf32, #tpu.memory_space<vmem>>, vector<8x256xf32>
    tpu.vector_store %arg6[%c0_4, %c0_5], %4 {strides = array<i32>} : memref<8x4096xf32, #tpu.memory_space<vmem>>, vector<8x256xf32>,
    %6 = vector.extract_strided_slice %3 {offsets = [8, 0], sizes = [8, 256], strides = [1, 1]} : vector<128x256xf32> to vector<8x256xf32>
    %c0_6 = arith.constant 0 : index
    %c256 = arith.constant 256 : index
    %7 = vector.load %arg6[%c0_6, %c256] : memref<8x4096xf32, #tpu.memory_space<vmem>>, vector<8x256xf32>
    tpu.vector_store %arg6[%c0_6, %c256], %6 {strides = array<i32>} : memref<8x4096xf32, #tpu.memory_space<vmem>>, vector<8x256xf32>,
    %8 = vector.extract_strided_slice %3 {offsets = [16, 0], sizes = [8, 256], strides = [1, 1]} : vector<128x256xf32> to vector<8x256xf32>
    %c0_7 = arith.constant 0 : index
    %c512 = arith.constant 512 : index
    %9 = vector.load %arg6[%c0_7, %c512] : memref<8x4096xf32, #tpu.memory_space<vmem>>, vector<8x256xf32>
    tpu.vector_store %arg6[%c0_7, %c512], %8 {strides = array<i32>} : memref<8x4096xf32, #tpu.memory_space<vmem>>, vector<8x256xf32>,
    %10 = vector.extract_strided_slice %3 {offsets = [24, 0], sizes = [8, 256], strides = [1, 1]} : vector<128x256xf32> to vector<8x256xf32>
    %c0_8 = arith.constant 0 : index
    %c768 = arith.constant 768 : index
    %11 = vector.load %arg6[%c0_8, %c768] : memref<8x4096xf32, #tpu.memory_space<vmem>>, vector<8x256xf32>
    tpu.vector_store %arg6[%c0_8, %c768], %10 {strides = array<i32>} : memref<8x4096xf32, #tpu.memory_space<vmem>>, vector<8x256xf32>,
    %12 = vector.extract_strided_slice %3 {offsets = [32, 0], sizes = [8, 256], strides = [1, 1]} : vector<128x256xf32> to vector<8x256xf32>
    %c0_9 = arith.constant 0 : index
    %c1024 = arith.constant 1024 : index
    %13 = vector.load %arg6[%c0_9, %c1024] : memref<8x4096xf32, #tpu.memory_space<vmem>>, vector<8x256xf32>
    tpu.vector_store %arg6[%c0_9, %c1024], %12 {strides = array<i32>} : memref<8x4096xf32, #tpu.memory_space<vmem>>, vector<8x256xf32>,
    %14 = vector.extract_strided_slice %3 {offsets = [40, 0], sizes = [8, 256], strides = [1, 1]} : vector<128x256xf32> to vector<8x256xf32>
    %c0_10 = arith.constant 0 : index
    %c1280 = arith.constant 1280 : index
    %15 = vector.load %arg6[%c0_10, %c1280] : memref<8x4096xf32, #tpu.memory_space<vmem>>, vector<8x256xf32>
    tpu.vector_store %arg6[%c0_10, %c1280], %14 {strides = array<i32>} : memref<8x4096xf32, #tpu.memory_space<vmem>>, vector<8x256xf32>,
    %16 = vector.extract_strided_slice %3 {offsets = [48, 0], sizes = [8, 256], strides = [1, 1]} : vector<128x256xf32> to vector<8x256xf32>
    %c0_11 = arith.constant 0 : index
    %c1536 = arith.constant 1536 : index
    %17 = vector.load %arg6[%c0_11, %c1536] : memref<8x4096xf32, #tpu.memory_space<vmem>>, vector<8x256xf32>
    tpu.vector_store %arg6[%c0_11, %c1536], %16 {strides = array<i32>} : memref<8x4096xf32, #tpu.memory_space<vmem>>, vector<8x256xf32>,
    %18 = vector.extract_strided_slice %3 {offsets = [56, 0], sizes = [8, 256], strides = [1, 1]} : vector<128x256xf32> to vector<8x256xf32>
    %c0_12 = arith.constant 0 : index
    %c1792 = arith.constant 1792 : index
    %19 = vector.load %arg6[%c0_12, %c1792] : memref<8x4096xf32, #tpu.memory_space<vmem>>, vector<8x256xf32>
    tpu.vector_store %arg6[%c0_12, %c1792], %18 {strides = array<i32>} : memref<8x4096xf32, #tpu.memory_space<vmem>>, vector<8x256xf32>,
    %20 = vector.extract_strided_slice %3 {offsets = [64, 0], sizes = [8, 256], strides = [1, 1]} : vector<128x256xf32> to vector<8x256xf32>
    %c0_13 = arith.constant 0 : index
    %c2048 = arith.constant 2048 : index
    %21 = vector.load %arg6[%c0_13, %c2048] : memref<8x4096xf32, #tpu.memory_space<vmem>>, vector<8x256xf32>
    tpu.vector_store %arg6[%c0_13, %c2048], %20 {strides = array<i32>} : memref<8x4096xf32, #tpu.memory_space<vmem>>, vector<8x256xf32>,
    %22 = vector.extract_strided_slice %3 {offsets = [72, 0], sizes = [8, 256], strides = [1, 1]} : vector<128x256xf32> to vector<8x256xf32>
    %c0_14 = arith.constant 0 : index
    %c2304 = arith.constant 2304 : index
    %23 = vector.load %arg6[%c0_14, %c2304] : memref<8x4096xf32, #tpu.memory_space<vmem>>, vector<8x256xf32>
    tpu.vector_store %arg6[%c0_14, %c2304], %22 {strides = array<i32>} : memref<8x4096xf32, #tpu.memory_space<vmem>>, vector<8x256xf32>,
    %24 = vector.extract_strided_slice %3 {offsets = [80, 0], sizes = [8, 256], strides = [1, 1]} : vector<128x256xf32> to vector<8x256xf32>
    %c0_15 = arith.constant 0 : index
    %c2560 = arith.constant 2560 : index
    %25 = vector.load %arg6[%c0_15, %c2560] : memref<8x4096xf32, #tpu.memory_space<vmem>>, vector<8x256xf32>
    tpu.vector_store %arg6[%c0_15, %c2560], %24 {strides = array<i32>} : memref<8x4096xf32, #tpu.memory_space<vmem>>, vector<8x256xf32>,
    %26 = vector.extract_strided_slice %3 {offsets = [88, 0], sizes = [8, 256], strides = [1, 1]} : vector<128x256xf32> to vector<8x256xf32>
    %c0_16 = arith.constant 0 : index
    %c2816 = arith.constant 2816 : index
    %27 = vector.load %arg6[%c0_16, %c2816] : memref<8x4096xf32, #tpu.memory_space<vmem>>, vector<8x256xf32>
    tpu.vector_store %arg6[%c0_16, %c2816], %26 {strides = array<i32>} : memref<8x4096xf32, #tpu.memory_space<vmem>>, vector<8x256xf32>,
    %28 = vector.extract_strided_slice %3 {offsets = [96, 0], sizes = [8, 256], strides = [1, 1]} : vector<128x256xf32> to vector<8x256xf32>
    %c0_17 = arith.constant 0 : index
    %c3072 = arith.constant 3072 : index
    %29 = vector.load %arg6[%c0_17, %c3072] : memref<8x4096xf32, #tpu.memory_space<vmem>>, vector<8x256xf32>
    tpu.vector_store %arg6[%c0_17, %c3072], %28 {strides = array<i32>} : memref<8x4096xf32, #tpu.memory_space<vmem>>, vector<8x256xf32>,
    %30 = vector.extract_strided_slice %3 {offsets = [104, 0], sizes = [8, 256], strides = [1, 1]} : vector<128x256xf32> to vector<8x256xf32>
    %c0_18 = arith.constant 0 : index
    %c3328 = arith.constant 3328 : index
    %31 = vector.load %arg6[%c0_18, %c3328] : memref<8x4096xf32, #tpu.memory_space<vmem>>, vector<8x256xf32>
    tpu.vector_store %arg6[%c0_18, %c3328], %30 {strides = array<i32>} : memref<8x4096xf32, #tpu.memory_space<vmem>>, vector<8x256xf32>,
    %32 = vector.extract_strided_slice %3 {offsets = [112, 0], sizes = [8, 256], strides = [1, 1]} : vector<128x256xf32> to vector<8x256xf32>
    %c0_19 = arith.constant 0 : index
    %c3584 = arith.constant 3584 : index
    %33 = vector.load %arg6[%c0_19, %c3584] : memref<8x4096xf32, #tpu.memory_space<vmem>>, vector<8x256xf32>
    tpu.vector_store %arg6[%c0_19, %c3584], %32 {strides = array<i32>} : memref<8x4096xf32, #tpu.memory_space<vmem>>, vector<8x256xf32>,
    %34 = vector.extract_strided_slice %3 {offsets = [120, 0], sizes = [8, 256], strides = [1, 1]} : vector<128x256xf32> to vector<8x256xf32>
    %c0_20 = arith.constant 0 : index
    %c3840 = arith.constant 3840 : index
    %35 = vector.load %arg6[%c0_20, %c3840] : memref<8x4096xf32, #tpu.memory_space<vmem>>, vector<8x256xf32>
    tpu.vector_store %arg6[%c0_20, %c3840], %34 {strides = array<i32>} : memref<8x4096xf32, #tpu.memory_space<vmem>>, vector<8x256xf32>,
    %c0_21 = arith.constant 0 : index
    %c0_22 = arith.constant 0 : index
    %36 = vector.load %arg6[%c0_21, %c0_22] : memref<8x4096xf32, #tpu.memory_space<vmem>>, vector<8x4096xf32>
    %37 = arith.truncf %36 : vector<8x4096xf32> to vector<8x4096xbf16>
    %c0_23 = arith.constant 0 : index
    %c0_24 = arith.constant 0 : index
    %38 = vector.load %arg3[%c0_23, %c0_24] : memref<4096x1024xbf16, #tpu.memory_space<vmem>>, vector<4096x1024xbf16>
    %cst_25 = arith.constant dense<0.000000e+00> : vector<8x1024xf32>
    %39 = tpu.matmul %37, %38, %cst_25 {dimension_numbers = #tpu.dot_dimension_numbers<[1], [0], [0], [1], [0, 0, 1, 1], [], []>} : vector<8x4096xbf16>, vector<4096x1024xbf16>, vector<8x1024xf32> -> vector<8x1024xf32>
    %cst_26 = arith.constant dense<0.000000e+00> : vector<8xf32>
    %40 = vector.multi_reduction <add>, %39, %cst_26 [1] : vector<8x1024xf32> to vector<8xf32>
    %41 = vector.shape_cast %40 : vector<8xf32> to vector<8x1xf32>
    %cst_27 = arith.constant 1.024000e+03 : f32
    %42 = vector.broadcast %cst_27 : f32 to vector<8x1xf32>
    %43 = arith.divf %41, %42 : vector<8x1xf32>
    %44 = vector.broadcast %43 : vector<8x1xf32> to vector<8x1024xf32>
    %45 = arith.subf %39, %44 : vector<8x1024xf32>
    %46 = arith.mulf %45, %45 : vector<8x1024xf32>
    %cst_28 = arith.constant dense<0.000000e+00> : vector<8xf32>
    %47 = vector.multi_reduction <add>, %46, %cst_28 [1] : vector<8x1024xf32> to vector<8xf32>
    %48 = vector.shape_cast %47 : vector<8xf32> to vector<8x1xf32>
    %cst_29 = arith.constant 1.024000e+03 : f32
    %49 = vector.broadcast %cst_29 : f32 to vector<8x1xf32>
    %50 = arith.divf %48, %49 : vector<8x1xf32>
    %cst_30 = arith.constant 9.99999974E-6 : f32
    %51 = vector.broadcast %cst_30 : f32 to vector<8x1xf32>
    %52 = arith.addf %50, %51 : vector<8x1xf32>
    %53 = math.rsqrt %52 : vector<8x1xf32>
    %54 = vector.broadcast %53 : vector<8x1xf32> to vector<8x1024xf32>
    %55 = arith.mulf %45, %54 : vector<8x1024xf32>
    %cst_31 = arith.constant 0.000000e+00 : f32
    %56 = vector.broadcast %cst_31 : f32 to vector<8x1024xf32>
    %57 = arith.maximumf %55, %56 : vector<8x1024xf32>
    %c0_32 = arith.constant 0 : index
    %c0_33 = arith.constant 0 : index
    %c0_34 = arith.constant 0 : index
    %58 = vector.load %arg5[%c0_32, %c0_33, %c0_34] : memref<1x16x1024xf32, #tpu.memory_space<vmem>>, vector<1x8x1024xf32>
    %59 = vector.shape_cast %58 : vector<1x8x1024xf32> to vector<8x1024xf32>
    %60 = vector.shape_cast %57 : vector<8x1024xf32> to vector<1x8x1024xf32>
    tpu.vector_store %arg5[%c0_32, %c0_33, %c0_34], %60 {strides = array<i32>} : memref<1x16x1024xf32, #tpu.memory_space<vmem>>, vector<1x8x1024xf32>,
    %c0_35 = arith.constant 0 : index
    %c0_36 = arith.constant 0 : index
    %c0_37 = arith.constant 0 : index
    %61 = vector.load %arg4[%c0_35, %c0_36, %c0_37] : memref<1x8x1024xf32, #tpu.memory_space<vmem>>, vector<1x8x1024xf32>
    %62 = vector.shape_cast %61 : vector<1x8x1024xf32> to vector<8x1024xf32>
    %c0_38 = arith.constant 0 : index
    %c8 = arith.constant 8 : index
    %c0_39 = arith.constant 0 : index
    %63 = vector.load %arg5[%c0_38, %c8, %c0_39] : memref<1x16x1024xf32, #tpu.memory_space<vmem>>, vector<1x8x1024xf32>
    %64 = vector.shape_cast %63 : vector<1x8x1024xf32> to vector<8x1024xf32>
    %65 = vector.shape_cast %62 : vector<8x1024xf32> to vector<1x8x1024xf32>
    tpu.vector_store %arg5[%c0_38, %c8, %c0_39], %65 {strides = array<i32>} : memref<1x16x1024xf32, #tpu.memory_space<vmem>>, vector<1x8x1024xf32>,
    return
  }
  func.func @transform_0(%arg0: i32) -> (i32, i32, i32) {
    %c0_i32 = arith.constant 0 : i32
    %c0_i32_0 = arith.constant 0 : i32
    %c0_i32_1 = arith.constant 0 : i32
    return %arg0, %c0_i32, %c0_i32_0 : i32, i32, i32
  }
  func.func @transform_1(%arg0: i32) -> (i32, i32) {
    %c0_i32 = arith.constant 0 : i32
    %c0_i32_0 = arith.constant 0 : i32
    %c0_i32_1 = arith.constant 0 : i32
    return %c0_i32, %c0_i32_0 : i32, i32
  }
  func.func @transform_2(%arg0: i32) -> (i32, i32) {
    %c0_i32 = arith.constant 0 : i32
    %c0_i32_0 = arith.constant 0 : i32
    %c0_i32_1 = arith.constant 0 : i32
    return %c0_i32, %c0_i32_0 : i32, i32
  }
  func.func @transform_3(%arg0: i32) -> (i32, i32, i32) {
    %c0_i32 = arith.constant 0 : i32
    %c0_i32_0 = arith.constant 0 : i32
    %c0_i32_1 = arith.constant 0 : i32
    return %arg0, %c0_i32, %c0_i32_0 : i32, i32, i32
  }
  func.func @transform_4(%arg0: i32) -> (i32, i32, i32) {
    %c0_i32 = arith.constant 0 : i32
    %c0_i32_0 = arith.constant 0 : i32
    %c0_i32_1 = arith.constant 0 : i32
    return %arg0, %c0_i32, %c0_i32_0 : i32, i32, i32
  }
}

</mosaic_0001>

<bundles_post_ra>
// kernel: unet_up_forward.1
= control target key start
LH: loop header
LB: loop body
LE: loop exit
PB: predicated region body
PF: predicated region fallthrough
CT: control target
= control target key end

     0   :  { %s17974_s15 = smov 0   ;;  %s24578_s0 = inlined_call_operand.vmem [shape: f32[2,4,256], index: 0, kind: input, shape index: {}]   ;;  %s24579_s1 = inlined_call_operand.vmem [shape: f32[128,4], index: 1, kind: input, shape index: {}]   ;;  %s24580_s2 = inlined_call_operand.vmem [shape: bf16[4096,1024], index: 2, kind: input, shape index: {}]   ;;  %s24581_s3 = inlined_call_operand.vmem [shape: f32[2,8,1024], index: 3, kind: input, shape index: {}]   ;;  %s24582_s4 = inlined_call_operand.vmem [shape: f32[2,16,1024], index: 4, kind: output, shape index: {}]  }
   0x1 LB: > { %s15606_s16 = sadd.s32 4294967295, %s17946_s15   ;;  %p15610_p0 = scmp.ge.s32.totalorder %s17946_s15, 1  ;;  %s17946_s15 = sphi %s17974_s15, %s14_s15  }
   0x2   : > { %p172_p1 = scmp.lt.s32.totalorder %s17946_s15, 3 }
   0x4   : > { %p173_p2 = pnand %p15610_p0, %p172_p1 }
   0x5   : > { %p203_p3 = scmp.lt.s32.totalorder (!%p173_p2), %s15606_s16, 1  ;;  %v17948_v0 = vmov (!%p173_p2), 0.0   ;;  %v548_v1 = vld [vmem:[%s24580_s2] sm:$0xff] (!%p173_p2)  ;;  %v549_v6 = vld [vmem:[%s24580_s2 + $0x8] sm:$0xff] (!%p173_p2)  ;;  %vm286_vm0 = vcmask (!%p173_p2), 1043456   ;;  %vm237_vm1 = vcmask (!%p173_p2), 31744  }
   0x6   : > { %176 = sbr.rel (%p173_p2) target bundleno = 2768 (0xad0), region = 36  ;;  %355 = vmatprep.mubr.f32.mxu0 (!%p173_p2), %v17948_v0  ;;  %v552_v2 = vld [vmem:[%s24580_s2 + $0x20] sm:$0xff] (!%p173_p2)  ;;  %v553_v7 = vld [vmem:[%s24580_s2 + $0x28] sm:$0xff] (!%p173_p2)  ;;  %v220_v47 = vld [vmem:[%s24579_s1 + $0x10] sm:$0xff] (!%p173_p2) }
   0x7   : > { %v15636_v3 = vcombine.high (!%p173_p2), %v548_v1, %v552_v2  ;;  %v15635_v4 = vcombine.low (!%p173_p2), %v548_v1, %v552_v2  ;;  %v556_v5 = vld [vmem:[%s24580_s2 + $0x40] sm:$0xff] (!%p173_p2)  ;;  %v18008_v10 = vld [vmem:[%s24580_s2 + $0x48] sm:$0xff] (!%p173_p2)  ;;  %v15638_v26 = vcombine.high (!%p173_p2), %v549_v6, %v553_v7  ;;  %v15637_v30 = vcombine.low (!%p173_p2), %v549_v6, %v553_v7  ;;  %v221_v57 = vld [vmem:[%s24579_s1 + $0x18] sm:$0xff] (!%p173_p2) }
   0x8   : > { %v560_v8 = vld [vmem:[%s24580_s2 + $0x60] sm:$0xff] (!%p173_p2)  ;;  %v561_v13 = vld [vmem:[%s24580_s2 + $0x68] sm:$0xff] (!%p173_p2) }
   0x9   : > { %12836 = vmatprep.subr.bf16.mxu1 (!%p173_p2), %v15636_v3  ;;  %v15644_v9 = vcombine.high (!%p173_p2), %v556_v5, %v560_v8  ;;  %v564_v11 = vld [vmem:[%s24580_s2 + $0x80] sm:$0xff] (!%p173_p2)  ;;  %v15643_v14 = vcombine.low (!%p173_p2), %v556_v5, %v560_v8  ;;  %v15646_v31 = vcombine.high (!%p173_p2), %v18008_v10, %v561_v13  ;;  %v565_v33 = vld [vmem:[%s24580_s2 + $0x88] sm:$0xff] (!%p173_p2)  ;;  %v15645_v39 = vcombine.low (!%p173_p2), %v18008_v10, %v561_v13 }
   0xa   : > { %v568_v12 = vld [vmem:[%s24580_s2 + $0xa0] sm:$0xff] (!%p173_p2)  ;;  %12837 = vmatpush1.bf16.msra.mxu1 (!%p173_p2), %v15635_v4  ;;  %v569_v34 = vld [vmem:[%s24580_s2 + $0xa8] sm:$0xff] (!%p173_p2) }
   0xb   : > { %v18028_v15 = vld [vmem:[%s24580_s2 + $0xc0] sm:$0xff] (!%p173_p2)  ;;  %12838 = vmatprep.subr.bf16.mxu1 (!%p173_p2), %v15644_v9  ;;  %v15652_v21 = vcombine.high (!%p173_p2), %v564_v11, %v568_v12  ;;  %v15651_v32 = vcombine.low (!%p173_p2), %v564_v11, %v568_v12  ;;  %v219_v38 = vld [vmem:[%s24579_s1 + $0x8] sm:$0xff] (!%p173_p2)  ;;  %v15654_v40 = vcombine.high (!%p173_p2), %v565_v33, %v569_v34  ;;  %v15653_v48 = vcombine.low (!%p173_p2), %v565_v33, %v569_v34 }
   0xc   : > { %v576_v16 = vld [vmem:[%s24580_s2 + $0xe0] sm:$0xff] (!%p173_p2)  ;;  %v573_v42 = vld [vmem:[%s24580_s2 + $0xc8] sm:$0xff] (!%p173_p2) }
   0xd   : > { %s24584_s16 = smov (!%p203_p3, %s15606_s16), 1  ;;  %v218_v20 = vld [vmem:[%s24579_s1] sm:$0xff]  ;;  %v15660_v35 = vcombine.high %v18028_v15, %v576_v16  ;;  %v15659_v41 = vcombine.low %v18028_v15, %v576_v16  ;;  %v577_v43 = vld [vmem:[%s24580_s2 + $0xe8] sm:$0xff] }
   0xe   : > { %s17685_s29 = sshll.u32 %s24584_s16, 3  ;;  %s17686_s30 = sshll.u32 %s24584_s16, 6  ;;  %12839 = vmatpush1.bf16.msra.mxu1 %v15643_v14  ;;  %v580_v36 = vld [vmem:[%s24580_s2 + $0x100] sm:$0xff]  ;;  %v15662_v49 = vcombine.high %v573_v42, %v577_v43  ;;  %v581_v51 = vld [vmem:[%s24580_s2 + $0x108] sm:$0xff]  ;;  %v15661_v56 = vcombine.low %v573_v42, %v577_v43 }
   0xf   : > { %s207_s13 = scalar_lea.vmem %s24578_s0, %s17685_s29  ;;  %s212_s18 = scalar_lea.vmem %s24581_s3, %s17686_s30  ;;  %12840 = vmatprep.subr.bf16.mxu1 %v15652_v21  ;;  %v584_v37 = vld [vmem:[%s24580_s2 + $0x120] sm:$0xff]  ;;  %v585_v52 = vld [vmem:[%s24580_s2 + $0x128] sm:$0xff]  ;;  %v224_v21 = vld [vmem:[%s24579_s1 + $0x30] sm:$0xff] }
  0x10   : > { %s17687_s25 = sshll.u32 %s24584_s16, 7  ;;  %v234_v17 = vld [vmem:[%s207_s13] sm:$0xff]  ;;  %v15524_v19 = vld [vmem:[%s212_s18 + $0x8] sm:$0xff]  ;;  %v15525_v23 = vld [vmem:[%s212_s18 + $0x10] sm:$0xff]  ;;  %v15668_v44 = vcombine.high %v580_v36, %v584_v37  ;;  %v15667_v50 = vcombine.low %v580_v36, %v584_v37  ;;  %v15670_v58 = vcombine.high %v581_v51, %v585_v52  ;;  %v15669_v2 = vcombine.low %v581_v51, %v585_v52 }
  0x11   : > { %v15523_v18 = vld [vmem:[%s212_s18] sm:$0xff]  ;;  %s18040_s30 = scalar_lea.vmem %s24582_s4, %s17687_s25  ;;  %v236_v22 = vcombine.high %v234_v17, %v234_v17  ;;  %v15526_v24 = vld [vmem:[%s212_s18 + $0x18] sm:$0xff]  ;;  %v15528_v27 = vld [vmem:[%s212_s18 + $0x28] sm:$0xff] }
  0x12   : > { %v15527_v25 = vld [vmem:[%s212_s18 + $0x20] sm:$0xff]  ;;  %v15529_v28 = vld [vmem:[%s212_s18 + $0x30] sm:$0xff]  ;;  %v15530_v29 = vld [vmem:[%s212_s18 + $0x38] sm:$0xff]  ;;  %15531 = vst [vmem:[%s18040_s30 + $0x40] sm:$0xff] %v15523_v18  ;;  %12841 = vmatpush1.bf16.msra.mxu1 %v15651_v32 }
  0x13   : > { %15532 = vst [vmem:[%s18040_s30 + $0x48] sm:$0xff] %v15524_v19  ;;  %15533 = vst [vmem:[%s18040_s30 + $0x50] sm:$0xff] %v15525_v23  ;;  %15617 = vmatprep.subr.msk.mxu0 %vm286_vm0, %v236_v22  ;;  %12842 = vmatprep.subr.bf16.mxu1 %v15660_v35  ;;  %v588_v45 = vld [vmem:[%s24580_s2 + $0x140] sm:$0xff]  ;;  %v589_v60 = vld [vmem:[%s24580_s2 + $0x148] sm:$0xff] }
  0x14   : > { %15534 = vst [vmem:[%s18040_s30 + $0x58] sm:$0xff] %v15526_v24  ;;  %15535 = vst [vmem:[%s18040_s30 + $0x60] sm:$0xff] %v15527_v25  ;;  %15618 = vmatpush1.msk.msra.mxu0 %vm286_vm0, %v234_v17  ;;  %v592_v46 = vld [vmem:[%s24580_s2 + $0x160] sm:$0xff]  ;;  %v593_v61 = vld [vmem:[%s24580_s2 + $0x168] sm:$0xff] }
  0x15   : > { %15536 = vst [vmem:[%s18040_s30 + $0x68] sm:$0xff] %v15528_v27  ;;  %15537 = vst [vmem:[%s18040_s30 + $0x70] sm:$0xff] %v15529_v28  ;;  %15619 = vmatmul.mubr.msk.f32.vlgmr.msra.gmra.mrb[0].mxu0 %vm237_vm1, %v218_v20  ;;  %13492 = vmatprep.subr.bf16.mxu0 %v15638_v26  ;;  %v15676_v53 = vcombine.high %v588_v45, %v592_v46  ;;  %v596_v54 = vld [vmem:[%s24580_s2 + $0x180] sm:$0xff]  ;;  %v15675_v59 = vcombine.low %v588_v45, %v592_v46  ;;  %v597_v6 = vld [vmem:[%s24580_s2 + $0x188] sm:$0xff] }
  0x16   : > { %15538 = vst [vmem:[%s18040_s30 + $0x78] sm:$0xff] %v15530_v29  ;;  %361 = vmatprep.mubr.f32.mxu0 %v17948_v0  ;;  %13493 = vmatpush1.bf16.msra.mxu0 %v15637_v30  ;;  %v600_v55 = vld [vmem:[%s24580_s2 + $0x1a0] sm:$0xff]  ;;  %v15678_v4 = vcombine.high %v589_v60, %v593_v61  ;;  %v601_v7 = vld [vmem:[%s24580_s2 + $0x1a8] sm:$0xff]  ;;  %v15677_v11 = vcombine.low %v589_v60, %v593_v61  ;;  %v225_v30 = vld [vmem:[%s24579_s1 + $0x38] sm:$0xff] }
  0x17   : > { %13494 = vmatprep.subr.bf16.mxu0 %v15646_v31  ;;  %12843 = vmatpush1.bf16.msra.mxu1 %v15659_v41  ;;  %v15684_v62 = vcombine.high %v596_v54, %v600_v55  ;;  %v604_v63 = vld [vmem:[%s24580_s2 + $0x1c0] sm:$0xff]  ;;  %v15683_v5 = vcombine.low %v596_v54, %v600_v55  ;;  %v223_v12 = vld [vmem:[%s24579_s1 + $0x28] sm:$0xff]  ;;  %v15686_v13 = vcombine.high %v597_v6, %v601_v7 }
  0x18   : > { %12844 = vmatprep.subr.bf16.mxu1 %v15668_v44  ;;  %v608_v1 = vld [vmem:[%s24580_s2 + $0x1e0] sm:$0xff]  ;;  %v605_v15 = vld [vmem:[%s24580_s2 + $0x1c8] sm:$0xff]  ;;  %v15685_v20 = vcombine.low %v597_v6, %v601_v7 }
  0x19   : > { %15620 = vmatmul.mubr.msk.f32.gmra.mrb[2].mxu0 %vm237_vm1, %v219_v38  ;;  %v222_v3 = vld [vmem:[%s24579_s1 + $0x20] sm:$0xff]  ;;  %v15692_v8 = vcombine.high %v604_v63, %v608_v1  ;;  %v15691_v14 = vcombine.low %v604_v63, %v608_v1  ;;  %v609_v16 = vld [vmem:[%s24580_s2 + $0x1e8] sm:$0xff] }
  0x1a   : > { %367 = vmatprep.mubr.f32.mxu0 %v17948_v0  ;;  %13495 = vmatpush1.bf16.msra.mxu0 %v15645_v39  ;;  %v612_v9 = vld [vmem:[%s24580_s2 + $0x200] sm:$0xff]  ;;  %v15694_v22 = vcombine.high %v605_v15, %v609_v16  ;;  %v613_v24 = vld [vmem:[%s24580_s2 + $0x208] sm:$0xff]  ;;  %v15693_v29 = vcombine.low %v605_v15, %v609_v16 }
  0x1b   : > { %13496 = vmatprep.subr.bf16.mxu0 %v15654_v40  ;;  %12845 = vmatpush1.bf16.msra.mxu1 %v15667_v50  ;;  %v616_v10 = vld [vmem:[%s24580_s2 + $0x220] sm:$0xff]  ;;  %v617_v25 = vld [vmem:[%s24580_s2 + $0x228] sm:$0xff] }
  0x1c   : > { %12846 = vmatprep.subr.bf16.mxu1 %v15676_v53  ;;  %v15700_v17 = vcombine.high %v612_v9, %v616_v10  ;;  %v620_v18 = vld [vmem:[%s24580_s2 + $0x240] sm:$0xff]  ;;  %v15699_v23 = vcombine.low %v612_v9, %v616_v10  ;;  %v15702_v31 = vcombine.high %v613_v24, %v617_v25  ;;  %v621_v33 = vld [vmem:[%s24580_s2 + $0x248] sm:$0xff]  ;;  %v15701_v38 = vcombine.low %v613_v24, %v617_v25 }
  0x1d   : > { %15621 = vmatmul.mubr.msk.f32.gmra.mrb[4].mxu0 %vm237_vm1, %v220_v47  ;;  %v624_v19 = vld [vmem:[%s24580_s2 + $0x260] sm:$0xff]  ;;  %v625_v34 = vld [vmem:[%s24580_s2 + $0x268] sm:$0xff] }
  0x1e   : > { %13497 = vmatpush1.bf16.msra.mxu0 %v15653_v48  ;;  %373 = vmatprep.mubr.f32.mxu0 %v17948_v0  ;;  %v15708_v26 = vcombine.high %v620_v18, %v624_v19  ;;  %v628_v27 = vld [vmem:[%s24580_s2 + $0x280] sm:$0xff]  ;;  %v15707_v32 = vcombine.low %v620_v18, %v624_v19  ;;  %v15710_v40 = vcombine.high %v621_v33, %v625_v34  ;;  %v629_v42 = vld [vmem:[%s24580_s2 + $0x288] sm:$0xff]  ;;  %v232_v19 = vld [vmem:[%s24579_s1 + $0x70] sm:$0xff] }
  0x1f   : > { %13498 = vmatprep.subr.bf16.mxu0 %v15662_v49  ;;  %12847 = vmatpush1.bf16.msra.mxu1 %v15675_v59  ;;  %v632_v28 = vld [vmem:[%s24580_s2 + $0x2a0] sm:$0xff]  ;;  %v633_v43 = vld [vmem:[%s24580_s2 + $0x2a8] sm:$0xff]  ;;  %v15709_v47 = vcombine.low %v621_v33, %v625_v34 }
  0x20   : > { %12848 = vmatprep.subr.bf16.mxu1 %v15684_v62  ;;  %v15716_v35 = vcombine.high %v628_v27, %v632_v28  ;;  %v636_v36 = vld [vmem:[%s24580_s2 + $0x2c0] sm:$0xff]  ;;  %v15715_v41 = vcombine.low %v628_v27, %v632_v28  ;;  %v227_v48 = vld [vmem:[%s24579_s1 + $0x48] sm:$0xff]  ;;  %v15718_v49 = vcombine.high %v629_v42, %v633_v43  ;;  %v233_v27 = vld [vmem:[%s24579_s1 + $0x78] sm:$0xff] }
  0x21   : > { %15622 = vmatmul.mubr.msk.f32.gmra.mrb[6].mxu0 %vm237_vm1, %v221_v57  ;;  %v640_v37 = vld [vmem:[%s24580_s2 + $0x2e0] sm:$0xff]  ;;  %v637_v51 = vld [vmem:[%s24580_s2 + $0x2c8] sm:$0xff]  ;;  %v228_v57 = vld [vmem:[%s24579_s1 + $0x50] sm:$0xff] }
  0x22   : > { %13499 = vmatpush1.bf16.msra.mxu0 %v15661_v56  ;;  %379 = vmatprep.mubr.f32.mxu0 %v17948_v0  ;;  %v226_v39 = vld [vmem:[%s24579_s1 + $0x40] sm:$0xff]  ;;  %v15724_v44 = vcombine.high %v636_v36, %v640_v37  ;;  %v15723_v50 = vcombine.low %v636_v36, %v640_v37  ;;  %v641_v52 = vld [vmem:[%s24580_s2 + $0x2e8] sm:$0xff]  ;;  %v15717_v56 = vcombine.low %v629_v42, %v633_v43 }
  0x23   : > { %13500 = vmatprep.subr.bf16.mxu0 %v15670_v58  ;;  %12849 = vmatpush1.bf16.msra.mxu1 %v15683_v5  ;;  %v644_v45 = vld [vmem:[%s24580_s2 + $0x300] sm:$0xff]  ;;  %v15726_v58 = vcombine.high %v637_v51, %v641_v52  ;;  %v645_v60 = vld [vmem:[%s24580_s2 + $0x308] sm:$0xff] }
  0x24   : > { %12850 = vmatprep.subr.bf16.mxu1 %v15692_v8  ;;  %v648_v46 = vld [vmem:[%s24580_s2 + $0x320] sm:$0xff]  ;;  %v649_v61 = vld [vmem:[%s24580_s2 + $0x328] sm:$0xff] }
  0x25   : > { %15623 = vmatmul.mubr.msk.f32.gmra.mrb[8].mxu0 %vm237_vm1, %v222_v3  ;;  %v15732_v53 = vcombine.high %v644_v45, %v648_v46  ;;  %v652_v54 = vld [vmem:[%s24580_s2 + $0x340] sm:$0xff]  ;;  %v15731_v59 = vcombine.low %v644_v45, %v648_v46  ;;  %v229_v3 = vld [vmem:[%s24579_s1 + $0x58] sm:$0xff]  ;;  %v653_v6 = vld [vmem:[%s24580_s2 + $0x348] sm:$0xff]  ;;  %v15733_v9 = vcombine.low %v645_v60, %v649_v61 }
  0x26   : > { %13501 = vmatpush1.bf16.msra.mxu0 %v15669_v2  ;;  %385 = vmatprep.mubr.f32.mxu0 %v17948_v0  ;;  %v656_v55 = vld [vmem:[%s24580_s2 + $0x360] sm:$0xff]  ;;  %v15725_v2 = vcombine.low %v637_v51, %v641_v52  ;;  %v657_v7 = vld [vmem:[%s24580_s2 + $0x368] sm:$0xff] }
  0x27   : > { %13502 = vmatprep.subr.bf16.mxu0 %v15678_v4  ;;  %12851 = vmatpush1.bf16.msra.mxu1 %v15691_v14  ;;  %v15740_v62 = vcombine.high %v652_v54, %v656_v55  ;;  %v660_v63 = vld [vmem:[%s24580_s2 + $0x380] sm:$0xff]  ;;  %v15734_v4 = vcombine.high %v645_v60, %v649_v61  ;;  %v15739_v5 = vcombine.low %v652_v54, %v656_v55  ;;  %v665_v14 = vld [vmem:[%s24580_s2 + $0x3a8] sm:$0xff] }
  0x28   : > { %12852 = vmatprep.subr.bf16.mxu1 %v15700_v17  ;;  %v664_v1 = vld [vmem:[%s24580_s2 + $0x3a0] sm:$0xff]  ;;  %v15741_v15 = vcombine.low %v653_v6, %v657_v7  ;;  %v231_v16 = vld [vmem:[%s24579_s1 + $0x68] sm:$0xff] }
  0x29   : > { %15624 = vmatmul.mubr.msk.f32.gmra.mrb[10].mxu0 %vm237_vm1, %v223_v12  ;;  %v15748_v8 = vcombine.high %v660_v63, %v664_v1  ;;  %v230_v10 = vld [vmem:[%s24579_s1 + $0x60] sm:$0xff]  ;;  %v15747_v12 = vcombine.low %v660_v63, %v664_v1  ;;  %v673_v24 = vld [vmem:[%s24580_s2 + $0x3e8] sm:$0xff] }
  0x2a   : > { %13503 = vmatpush1.bf16.msra.mxu0 %v15677_v11  ;;  %391 = vmatprep.mubr.f32.mxu0 %v17948_v0  ;;  %v15742_v11 = vcombine.high %v653_v6, %v657_v7  ;;  %v676_v28 = vld [vmem:[%s24580_s2 + $0x400] sm:$0xff]  ;;  %v705_v60 = vld [vmem:[%s24580_s2 + $0x4e8] sm:$0xff] }
  0x2b   : > { %13504 = vmatprep.subr.bf16.mxu0 %v15686_v13  ;;  %12853 = vmatpush1.bf16.msra.mxu1 %v15699_v23  ;;  %v661_v13 = vld [vmem:[%s24580_s2 + $0x388] sm:$0xff]  ;;  %v684_v36 = vld [vmem:[%s24580_s2 + $0x440] sm:$0xff] }
  0x2c   : > { %12854 = vmatprep.subr.bf16.mxu1 %v15708_v26  ;;  %v15750_v17 = vcombine.high %v661_v13, %v665_v14  ;;  %v15749_v18 = vcombine.low %v661_v13, %v665_v14  ;;  %v692_v46 = vld [vmem:[%s24580_s2 + $0x480] sm:$0xff]  ;;  %v709_v6 = vld [vmem:[%s24580_s2 + $0x508] sm:$0xff] }
  0x2d   : > { %15625 = vmatmul.mubr.msk.f32.gmra.mrb[12].mxu0 %vm237_vm1, %v224_v21  ;;  %v672_v21 = vld [vmem:[%s24580_s2 + $0x3e0] sm:$0xff]  ;;  %v713_v7 = vld [vmem:[%s24580_s2 + $0x528] sm:$0xff] }
  0x2e   : > { %13505 = vmatpush1.bf16.msra.mxu0 %v15685_v20  ;;  %397 = vmatprep.mubr.f32.mxu0 %v17948_v0  ;;  %v668_v20 = vld [vmem:[%s24580_s2 + $0x3c0] sm:$0xff]  ;;  %v717_v14 = vld [vmem:[%s24580_s2 + $0x548] sm:$0xff] }
  0x2f   : > { %13506 = vmatprep.subr.bf16.mxu0 %v15694_v22  ;;  %12855 = vmatpush1.bf16.msra.mxu1 %v15707_v32  ;;  %v669_v22 = vld [vmem:[%s24580_s2 + $0x3c8] sm:$0xff]  ;;  %v15756_v23 = vcombine.high %v668_v20, %v672_v21  ;;  %v720_v13 = vld [vmem:[%s24580_s2 + $0x560] sm:$0xff] }
  0x30   : > { %12856 = vmatprep.subr.bf16.mxu1 %v15716_v35  ;;  %v15757_v25 = vcombine.low %v669_v22, %v673_v24  ;;  %v15758_v26 = vcombine.high %v669_v22, %v673_v24  ;;  %v681_v32 = vld [vmem:[%s24580_s2 + $0x428] sm:$0xff] }
  0x31   : > { %15626 = vmatmul.mubr.msk.f32.gmra.mrb[14].mxu0 %vm237_vm1, %v225_v30  ;;  %v677_v30 = vld [vmem:[%s24580_s2 + $0x408] sm:$0xff] }
  0x32   : > { %13507 = vmatpush1.bf16.msra.mxu0 %v15693_v29  ;;  %403 = vmatprep.mubr.f32.mxu0 %v17948_v0  ;;  %v680_v29 = vld [vmem:[%s24580_s2 + $0x420] sm:$0xff]  ;;  %v15765_v34 = vcombine.low %v677_v30, %v681_v32  ;;  %v15766_v35 = vcombine.high %v677_v30, %v681_v32  ;;  %v725_v22 = vld [vmem:[%s24580_s2 + $0x588] sm:$0xff] }
  0x33   : > { %13508 = vmatprep.subr.bf16.mxu0 %v15702_v31  ;;  %12857 = vmatpush1.bf16.msra.mxu1 %v15715_v41  ;;  %v15764_v31 = vcombine.high %v676_v28, %v680_v29  ;;  %v15763_v33 = vcombine.low %v676_v28, %v680_v29  ;;  %v736_v28 = vld [vmem:[%s24580_s2 + $0x5e0] sm:$0xff]  ;;  %v733_v29 = vld [vmem:[%s24580_s2 + $0x5c8] sm:$0xff] }
  0x34   : > { %12858 = vmatprep.subr.bf16.mxu1 %v15724_v44  ;;  %v737_v30 = vld [vmem:[%s24580_s2 + $0x5e8] sm:$0xff] }
  0x35   : > { %15627 = vmatmul.mubr.msk.f32.gmra.mrb[16].mxu0 %vm237_vm1, %v226_v39  ;;  %v685_v39 = vld [vmem:[%s24580_s2 + $0x448] sm:$0xff] }
  0x36   : > { %13509 = vmatpush1.bf16.msra.mxu0 %v15701_v38  ;;  %409 = vmatprep.mubr.f32.mxu0 %v17948_v0  ;;  %v688_v38 = vld [vmem:[%s24580_s2 + $0x460] sm:$0xff] }
  0x37   : > { %13510 = vmatprep.subr.bf16.mxu0 %v15710_v40  ;;  %12859 = vmatpush1.bf16.msra.mxu1 %v15723_v50  ;;  %v689_v40 = vld [vmem:[%s24580_s2 + $0x468] sm:$0xff]  ;;  %v15772_v44 = vcombine.high %v684_v36, %v688_v38  ;;  %v15771_v52 = vcombine.low %v684_v36, %v688_v38  ;;  %v744_v36 = vld [vmem:[%s24580_s2 + $0x620] sm:$0xff] }
  0x38   : > { %12860 = vmatprep.subr.bf16.mxu1 %v15732_v53  ;;  %v15774_v45 = vcombine.high %v685_v39, %v689_v40  ;;  %v15773_v53 = vcombine.low %v685_v39, %v689_v40  ;;  %v745_v38 = vld [vmem:[%s24580_s2 + $0x628] sm:$0xff]  ;;  %v15821_v40 = vcombine.low %v733_v29, %v737_v30 }
  0x39   : > { %15628 = vmatmul.mubr.msk.f32.gmra.mrb[18].mxu0 %vm237_vm1, %v227_v48  ;;  %v693_v48 = vld [vmem:[%s24580_s2 + $0x488] sm:$0xff] }
  0x3a   : > { %13511 = vmatpush1.bf16.msra.mxu0 %v15709_v47  ;;  %415 = vmatprep.mubr.f32.mxu0 %v17948_v0  ;;  %v696_v47 = vld [vmem:[%s24580_s2 + $0x4a0] sm:$0xff] }
  0x3b   : > { %13512 = vmatprep.subr.bf16.mxu0 %v15718_v49  ;;  %12861 = vmatpush1.bf16.msra.mxu1 %v15731_v59  ;;  %v697_v49 = vld [vmem:[%s24580_s2 + $0x4a8] sm:$0xff]  ;;  %v15780_v55 = vcombine.high %v692_v46, %v696_v47  ;;  %v15779_v63 = vcombine.low %v692_v46, %v696_v47  ;;  %v752_v46 = vld [vmem:[%s24580_s2 + $0x660] sm:$0xff] }
  0x3c   : > { %12862 = vmatprep.subr.bf16.mxu1 %v15740_v62  ;;  %v701_v59 = vld [vmem:[%s24580_s2 + $0x4c8] sm:$0xff]  ;;  %v15781_v1 = vcombine.low %v693_v48, %v697_v49 }
  0x3d   : > { %15629 = vmatmul.mubr.msk.f32.gmra.mrb[20].mxu0 %vm237_vm1, %v228_v57  ;;  %v700_v57 = vld [vmem:[%s24580_s2 + $0x4c0] sm:$0xff]  ;;  %v749_v47 = vld [vmem:[%s24580_s2 + $0x648] sm:$0xff] }
  0x3e   : > { %13513 = vmatpush1.bf16.msra.mxu0 %v15717_v56  ;;  %421 = vmatprep.mubr.f32.mxu0 %v17948_v0  ;;  %v15782_v56 = vcombine.high %v693_v48, %v697_v49  ;;  %v753_v48 = vld [vmem:[%s24580_s2 + $0x668] sm:$0xff] }
  0x3f   : > { %13514 = vmatprep.subr.bf16.mxu0 %v15726_v58  ;;  %12863 = vmatpush1.bf16.msra.mxu1 %v15739_v5  ;;  %v704_v58 = vld [vmem:[%s24580_s2 + $0x4e0] sm:$0xff] }
  0x40   : > { %12864 = vmatprep.subr.bf16.mxu1 %v15748_v8  ;;  %v712_v5 = vld [vmem:[%s24580_s2 + $0x520] sm:$0xff]  ;;  %v15787_v8 = vcombine.low %v700_v57, %v704_v58 }
  0x41   : > { %15630 = vmatmul.mubr.msk.f32.gmra.mrb[22].mxu0 %vm237_vm1, %v229_v3  ;;  %v15790_v3 = vcombine.high %v701_v59, %v705_v60 }
  0x42   : > { %13515 = vmatpush1.bf16.msra.mxu0 %v15725_v2  ;;  %427 = vmatprep.mubr.f32.mxu0 %v17948_v0  ;;  %v15788_v2 = vcombine.high %v700_v57, %v704_v58  ;;  %v757_v57 = vld [vmem:[%s24580_s2 + $0x688] sm:$0xff] }
  0x43   : > { %13516 = vmatprep.subr.bf16.mxu0 %v15734_v4  ;;  %12865 = vmatpush1.bf16.msra.mxu1 %v15747_v12  ;;  %v708_v4 = vld [vmem:[%s24580_s2 + $0x500] sm:$0xff]  ;;  %v761_v58 = vld [vmem:[%s24580_s2 + $0x6a8] sm:$0xff] }
  0x44   : > { %12866 = vmatprep.subr.bf16.mxu1 %v15756_v23  ;;  %v716_v12 = vld [vmem:[%s24580_s2 + $0x540] sm:$0xff]  ;;  %v729_v23 = vld [vmem:[%s24580_s2 + $0x5a8] sm:$0xff] }
  0x45   : > { %15631 = vmatmul.mubr.msk.f32.gmra.mrb[24].mxu0 %vm237_vm1, %v230_v10  ;;  %v15796_v10 = vcombine.high %v708_v4, %v712_v5  ;;  %v15803_v24 = vcombine.low %v716_v12, %v720_v13  ;;  %v15813_v32 = vcombine.low %v725_v22, %v729_v23 }
  0x46   : > { %13517 = vmatpush1.bf16.msra.mxu0 %v15733_v9  ;;  %433 = vmatprep.mubr.f32.mxu0 %v17948_v0  ;;  %v15789_v9 = vcombine.low %v701_v59, %v705_v60  ;;  %v15837_v60 = vcombine.low %v749_v47, %v753_v48 }
  0x47   : > { %13518 = vmatprep.subr.bf16.mxu0 %v15742_v11  ;;  %v15798_v11 = vcombine.high %v709_v6, %v713_v7 }
  0x49   : > { %15632 = vmatmul.mubr.msk.f32.gmra.mrb[26].mxu0 %vm237_vm1, %v231_v16  ;;  %v15795_v16 = vcombine.low %v708_v4, %v712_v5  ;;  %v768_v5 = vld [vmem:[%s24580_s2 + $0x6e0] sm:$0xff] }
  0x4a   : > { %13519 = vmatpush1.bf16.msra.mxu0 %v15741_v15  ;;  %439 = vmatprep.mubr.f32.mxu0 %v17948_v0  ;;  %v721_v15 = vld [vmem:[%s24580_s2 + $0x568] sm:$0xff] }
  0x4b   : > { %13520 = vmatprep.subr.bf16.mxu0 %v15750_v17  ;;  %v15797_v17 = vcombine.low %v709_v6, %v713_v7  ;;  %v765_v6 = vld [vmem:[%s24580_s2 + $0x6c8] sm:$0xff] }
  0x4c   : > { %v769_v7 = vld [vmem:[%s24580_s2 + $0x6e8] sm:$0xff] }
  0x4d   : > { %15633 = vmatmul.mubr.msk.f32.gmra.mrb[28].mxu0 %vm237_vm1, %v232_v19  ;;  %v15806_v19 = vcombine.high %v717_v14, %v721_v15 }
  0x4e   : > { %13521 = vmatpush1.bf16.msra.mxu0 %v15749_v18  ;;  %445 = vmatprep.mubr.f32.mxu0 %v17948_v0  ;;  %v15755_v0 = vcombine.low %v668_v20, %v672_v21  ;;  %v15804_v18 = vcombine.high %v716_v12, %v720_v13  ;;  %v724_v20 = vld [vmem:[%s24580_s2 + $0x580] sm:$0xff]  ;;  %v15854_v12 = vcombine.high %v765_v6, %v769_v7 }
  0x4f   : > { %13522 = vmatprep.subr.bf16.mxu0 %v15758_v26  ;;  %v728_v21 = vld [vmem:[%s24580_s2 + $0x5a0] sm:$0xff] }
  0x50   : > { %12867 = vmatpush1.bf16.msra.mxu1 %v15755_v0  ;;  %v15812_v26 = vcombine.high %v724_v20, %v728_v21  ;;  %v15814_v0 = vcombine.high %v725_v22, %v729_v23  ;;  %v772_v13 = vld [vmem:[%s24580_s2 + $0x700] sm:$0xff] }
  0x51   : > { %15634 = vmatmul.mubr.msk.f32.gmra.mrb[30].mxu0 %vm237_vm1, %v233_v27  ;;  %12877 = vmatprep.subr.bf16.mxu1 %v15764_v31  ;;  %v732_v27 = vld [vmem:[%s24580_s2 + $0x5c0] sm:$0xff]  ;;  %v15811_v31 = vcombine.low %v724_v20, %v728_v21 }
  0x52   : > { %13523 = vmatpush1.bf16.msra.mxu0 %v15757_v25  ;;  %v15805_v25 = vcombine.low %v717_v14, %v721_v15  ;;  %v15819_v39 = vcombine.low %v732_v27, %v736_v28  ;;  %v776_v15 = vld [vmem:[%s24580_s2 + $0x720] sm:$0xff] }
  0x53   : > { %13533 = vmatprep.subr.bf16.mxu0 %v15766_v35  ;;  %v740_v35 = vld [vmem:[%s24580_s2 + $0x600] sm:$0xff]  ;;  %v15860_v21 = vcombine.high %v772_v13, %v776_v15 }
  0x54   : > { %v15827_v49 = vcombine.low %v740_v35, %v744_v36  ;;  %v780_v23 = vld [vmem:[%s24580_s2 + $0x740] sm:$0xff] }
  0xe8   : > { %v357_v37 = vpop.f32.mrb[0].mxu0 }
  0xe9   : > { %v359_v41 = vpop.f32.mrb[1].mxu0  ;;  %v18314_v43 = vpack.c.bf16 %v357_v37, %v357_v37  ;;  %v741_v37 = vld [vmem:[%s24580_s2 + $0x608] sm:$0xff] }
  0xea   : > { %v18312_v42 = vpack.c.bf16 %v359_v41, %v359_v41  ;;  %v15828_v41 = vcombine.high %v740_v35, %v744_v36  ;;  %v789_v35 = vld [vmem:[%s24580_s2 + $0x788] sm:$0xff] }
  0xeb   : > { %v793_v36 = vld [vmem:[%s24580_s2 + $0x7a8] sm:$0xff] }
  0xec   : > { %12868 = vmatprep.mubr.bf16.mxu1 %v18312_v42  ;;  %13524 = vmatprep.mubr.bf16.mxu0 %v18312_v42  ;;  %v18330_v50 = vpop.f32.mrb[2].mxu0 }
  0xed   : > { %12869 = vmatmul.mubr.bf16.vlgmr.msra.gmra.mrb[0].mxu1 %v18314_v43  ;;  %13525 = vmatmul.mubr.bf16.vlgmr.msra.gmra.mrb[32].mxu0 %v18314_v43  ;;  %v365_v51 = vpop.f32.mrb[3].mxu0 }
  0xee   : > { %12878 = vmatpush1.bf16.msra.mxu1 %v15763_v33  ;;  %13534 = vmatpush1.bf16.msra.mxu0 %v15765_v34  ;;  %v18334_v54 = vpack.c.bf16 %v365_v51, %v365_v51  ;;  %v15820_v33 = vcombine.high %v732_v27, %v736_v28  ;;  %v15822_v34 = vcombine.high %v733_v29, %v737_v30 }
  0xef   : > { %12879 = vmatprep.subr.bf16.mxu1 %v15772_v44  ;;  %13535 = vmatprep.subr.bf16.mxu0 %v15774_v45  ;;  %v15830_v44 = vcombine.high %v741_v37, %v745_v38  ;;  %v748_v45 = vld [vmem:[%s24580_s2 + $0x640] sm:$0xff]  ;;  %v15829_v51 = vcombine.low %v741_v37, %v745_v38  ;;  %v15859_v27 = vcombine.low %v772_v13, %v776_v15 }
  0xf0   : > { %12909 = vmatprep.mubr.bf16.mxu1 %v18334_v54  ;;  %13565 = vmatprep.mubr.bf16.mxu0 %v18334_v54  ;;  %v18350_v61 = vpop.f32.mrb[4].mxu0  ;;  %v15835_v59 = vcombine.low %v748_v45, %v752_v46  ;;  %v18552_v13 = vpack.c.bf16 %v18330_v50, %v18330_v50  ;;  %v824_v50 = vld [vmem:[%s24580_s2 + $0x8a0] sm:$0xff] }
  0xf1   : > { %v18352_v62 = vpop.f32.mrb[5].mxu0 }
  0xf2   : > { %12880 = vmatpush1.bf16.msra.mxu1 %v15771_v52  ;;  %13536 = vmatpush1.bf16.msra.mxu0 %v15773_v53  ;;  %v15836_v52 = vcombine.high %v748_v45, %v752_v46  ;;  %v15838_v53 = vcombine.high %v749_v47, %v753_v48  ;;  %v800_v46 = vld [vmem:[%s24580_s2 + $0x7e0] sm:$0xff]  ;;  %v797_v47 = vld [vmem:[%s24580_s2 + $0x7c8] sm:$0xff] }
  0xf3   : > { %12881 = vmatprep.subr.bf16.mxu1 %v15780_v55  ;;  %13537 = vmatprep.subr.bf16.mxu0 %v15782_v56  ;;  %v756_v55 = vld [vmem:[%s24580_s2 + $0x680] sm:$0xff]  ;;  %v801_v48 = vld [vmem:[%s24580_s2 + $0x7e8] sm:$0xff] }
  0xf4   : > { %v760_v56 = vld [vmem:[%s24580_s2 + $0x6a0] sm:$0xff] }
  0xf6   : > { %12882 = vmatpush1.bf16.msra.mxu1 %v15779_v63  ;;  %13538 = vmatpush1.bf16.msra.mxu0 %v15781_v1  ;;  %v18438_v63 = vpop.f32.mrb[6].mxu0  ;;  %v15844_v1 = vcombine.high %v756_v55, %v760_v56 }
  0xf7   : > { %12883 = vmatprep.subr.bf16.mxu1 %v15788_v2  ;;  %13539 = vmatprep.subr.bf16.mxu0 %v15790_v3  ;;  %v15846_v2 = vcombine.high %v757_v57, %v761_v58  ;;  %v764_v3 = vld [vmem:[%s24580_s2 + $0x6c0] sm:$0xff]  ;;  %v18443_v4 = vpop.f32.mrb[7].mxu0 }
  0xfa   : > { %12884 = vmatpush1.bf16.msra.mxu1 %v15787_v8  ;;  %13540 = vmatpush1.bf16.msra.mxu0 %v15789_v9  ;;  %v15843_v8 = vcombine.low %v756_v55, %v760_v56  ;;  %v15845_v9 = vcombine.low %v757_v57, %v761_v58  ;;  %v15886_v55 = vcombine.high %v797_v47, %v801_v48  ;;  %v804_v56 = vld [vmem:[%s24580_s2 + $0x800] sm:$0xff] }
  0xfb   : > { %12885 = vmatprep.subr.bf16.mxu1 %v15796_v10  ;;  %13541 = vmatprep.subr.bf16.mxu0 %v15798_v11  ;;  %v18454_v10 = vpop.f32.mrb[8].mxu0  ;;  %v15852_v11 = vcombine.high %v764_v3, %v768_v5  ;;  %v808_v58 = vld [vmem:[%s24580_s2 + $0x820] sm:$0xff] }
  0xfc   : > { %v18459_v14 = vpop.f32.mrb[9].mxu0  ;;  %v15891_v15 = vcombine.low %v804_v56, %v808_v58 }
  0xfd   : > { %v18470_v20 = vpop.f32.mrb[10].mxu0 }
  0xfe   : > { %12886 = vmatpush1.bf16.msra.mxu1 %v15795_v16  ;;  %13542 = vmatpush1.bf16.msra.mxu0 %v15797_v17  ;;  %v773_v16 = vld [vmem:[%s24580_s2 + $0x708] sm:$0xff] }
  0xff   : > { %12887 = vmatprep.subr.bf16.mxu1 %v15804_v18  ;;  %13543 = vmatprep.subr.bf16.mxu0 %v15806_v19  ;;  %v777_v17 = vld [vmem:[%s24580_s2 + $0x728] sm:$0xff]  ;;  %v15851_v18 = vcombine.low %v764_v3, %v768_v5  ;;  %v15853_v19 = vcombine.low %v765_v6, %v769_v7  ;;  %v15892_v5 = vcombine.high %v804_v56, %v808_v58  ;;  %v812_v7 = vld [vmem:[%s24580_s2 + $0x840] sm:$0xff] }
 0x100   : > { %v15862_v22 = vcombine.high %v773_v16, %v777_v17  ;;  %v15861_v28 = vcombine.low %v773_v16, %v777_v17 }
 0x102   : > { %12888 = vmatpush1.bf16.msra.mxu1 %v15803_v24  ;;  %13544 = vmatpush1.bf16.msra.mxu0 %v15805_v25  ;;  %v18475_v24 = vpop.f32.mrb[11].mxu0  ;;  %v784_v25 = vld [vmem:[%s24580_s2 + $0x760] sm:$0xff] }
 0x103   : > { %12889 = vmatprep.subr.bf16.mxu1 %v15812_v26  ;;  %13545 = vmatprep.subr.bf16.mxu0 %v15814_v0  ;;  %v781_v26 = vld [vmem:[%s24580_s2 + $0x748] sm:$0xff]  ;;  %v18486_v29 = vpop.f32.mrb[12].mxu0  ;;  %v15868_v30 = vcombine.high %v780_v23, %v784_v25  ;;  %v15867_v37 = vcombine.low %v780_v23, %v784_v25 }
 0x104   : > { %v785_v0 = vld [vmem:[%s24580_s2 + $0x768] sm:$0xff] }
 0x105   : > { %v15869_v38 = vcombine.low %v781_v26, %v785_v0  ;;  %v821_v23 = vld [vmem:[%s24580_s2 + $0x888] sm:$0xff] }
 0x106   : > { %12890 = vmatpush1.bf16.msra.mxu1 %v15811_v31  ;;  %13546 = vmatpush1.bf16.msra.mxu0 %v15813_v32  ;;  %v15870_v31 = vcombine.high %v781_v26, %v785_v0  ;;  %v788_v32 = vld [vmem:[%s24580_s2 + $0x780] sm:$0xff]  ;;  %v825_v25 = vld [vmem:[%s24580_s2 + $0x8a8] sm:$0xff]  ;;  %v18572_v26 = vpack.c.bf16 %v18352_v62, %v18352_v62 }
 0x107   : > { %12891 = vmatprep.subr.bf16.mxu1 %v15820_v33  ;;  %13547 = vmatprep.subr.bf16.mxu0 %v15822_v34  ;;  %v18491_v33 = vpop.f32.mrb[13].mxu0  ;;  %v792_v34 = vld [vmem:[%s24580_s2 + $0x7a0] sm:$0xff] }
 0x108   : > { %v832_v62 = vld [vmem:[%s24580_s2 + $0x8e0] sm:$0xff] }
 0x10a   : > { %12892 = vmatpush1.bf16.msra.mxu1 %v15819_v39  ;;  %13548 = vmatpush1.bf16.msra.mxu0 %v15821_v40  ;;  %v18502_v39 = vpop.f32.mrb[14].mxu0  ;;  %v15876_v40 = vcombine.high %v788_v32, %v792_v34 }
 0x10b   : > { %12893 = vmatprep.subr.bf16.mxu1 %v15828_v41  ;;  %13549 = vmatprep.subr.bf16.mxu0 %v15830_v44  ;;  %v15878_v41 = vcombine.high %v789_v35, %v793_v36  ;;  %v796_v44 = vld [vmem:[%s24580_s2 + $0x7c0] sm:$0xff]  ;;  %v18507_v45 = vpop.f32.mrb[15].mxu0 }
 0x10e   : > { %12894 = vmatpush1.bf16.msra.mxu1 %v15827_v49  ;;  %13550 = vmatpush1.bf16.msra.mxu0 %v15829_v51  ;;  %v15875_v49 = vcombine.low %v788_v32, %v792_v34  ;;  %v15877_v51 = vcombine.low %v789_v35, %v793_v36  ;;  %v829_v34 = vld [vmem:[%s24580_s2 + $0x8c8] sm:$0xff] }
 0x10f   : > { %12895 = vmatprep.subr.bf16.mxu1 %v15836_v52  ;;  %13551 = vmatprep.subr.bf16.mxu0 %v15838_v53  ;;  %v18518_v52 = vpop.f32.mrb[16].mxu0  ;;  %v15884_v53 = vcombine.high %v796_v44, %v800_v46  ;;  %v833_v35 = vld [vmem:[%s24580_s2 + $0x8e8] sm:$0xff] }
 0x110   : > { %v18523_v57 = vpop.f32.mrb[17].mxu0 }
 0x111   : > { %v18534_v3 = vpop.f32.mrb[18].mxu0 }
 0x112   : > { %12896 = vmatpush1.bf16.msra.mxu1 %v15835_v59  ;;  %13552 = vmatpush1.bf16.msra.mxu0 %v15837_v60  ;;  %v805_v59 = vld [vmem:[%s24580_s2 + $0x808] sm:$0xff] }
 0x113   : > { %12897 = vmatprep.subr.bf16.mxu1 %v15844_v1  ;;  %13553 = vmatprep.subr.bf16.mxu0 %v15846_v2  ;;  %v809_v60 = vld [vmem:[%s24580_s2 + $0x828] sm:$0xff]  ;;  %v15883_v1 = vcombine.low %v796_v44, %v800_v46  ;;  %v15885_v2 = vcombine.low %v797_v47, %v801_v48  ;;  %v836_v44 = vld [vmem:[%s24580_s2 + $0x900] sm:$0xff] }
 0x114   : > { %v15894_v6 = vcombine.high %v805_v59, %v809_v60  ;;  %v15893_v16 = vcombine.low %v805_v59, %v809_v60  ;;  %v840_v47 = vld [vmem:[%s24580_s2 + $0x920] sm:$0xff]  ;;  %v837_v48 = vld [vmem:[%s24580_s2 + $0x908] sm:$0xff] }
 0x115   : > { %v15924_v56 = vcombine.high %v836_v44, %v840_v47  ;;  %v844_v59 = vld [vmem:[%s24580_s2 + $0x940] sm:$0xff] }
 0x116   : > { %12898 = vmatpush1.bf16.msra.mxu1 %v15843_v8  ;;  %13554 = vmatpush1.bf16.msra.mxu0 %v15845_v9  ;;  %v18539_v8 = vpop.f32.mrb[19].mxu0  ;;  %v816_v9 = vld [vmem:[%s24580_s2 + $0x860] sm:$0xff] }
 0x117   : > { %12899 = vmatprep.subr.bf16.mxu1 %v15852_v11  ;;  %13555 = vmatprep.subr.bf16.mxu0 %v15854_v12  ;;  %v813_v11 = vld [vmem:[%s24580_s2 + $0x848] sm:$0xff]  ;;  %v18554_v17 = vpop.f32.mrb[20].mxu0  ;;  %v15899_v0 = vcombine.low %v812_v7, %v816_v9 }
 0x118   : > { %v817_v12 = vld [vmem:[%s24580_s2 + $0x868] sm:$0xff] }
 0x11a   : > { %12900 = vmatpush1.bf16.msra.mxu1 %v15851_v18  ;;  %13556 = vmatpush1.bf16.msra.mxu0 %v15853_v19  ;;  %v15900_v18 = vcombine.high %v812_v7, %v816_v9  ;;  %v15902_v19 = vcombine.high %v813_v11, %v817_v12  ;;  %v15923_v7 = vcombine.low %v836_v44, %v840_v47  ;;  %v868_v44 = vld [vmem:[%s24580_s2 + $0xa00] sm:$0xff] }
 0x11b   : > { %12901 = vmatprep.subr.bf16.mxu1 %v15860_v21  ;;  %13557 = vmatprep.subr.bf16.mxu0 %v15862_v22  ;;  %v820_v21 = vld [vmem:[%s24580_s2 + $0x880] sm:$0xff]  ;;  %v18559_v22 = vpop.f32.mrb[21].mxu0 }
 0x11c   : > { %v18579_v32 = vpop.f32.mrb[22].mxu0  ;;  %v872_v47 = vld [vmem:[%s24580_s2 + $0xa20] sm:$0xff] }
 0x11d   : > { %v18592_v36 = vpop.f32.mrb[23].mxu0 }
 0x11e   : > { %12902 = vmatpush1.bf16.msra.mxu1 %v15859_v27  ;;  %13558 = vmatpush1.bf16.msra.mxu0 %v15861_v28  ;;  %v15901_v27 = vcombine.low %v813_v11, %v817_v12  ;;  %v15908_v28 = vcombine.high %v820_v21, %v824_v50  ;;  %v18597_v46 = vpop.f32.mrb[24].mxu0 }
 0x11f   : > { %12903 = vmatprep.subr.bf16.mxu1 %v15868_v30  ;;  %13559 = vmatprep.subr.bf16.mxu0 %v15870_v31  ;;  %v15910_v30 = vcombine.high %v821_v23, %v825_v25  ;;  %v828_v31 = vld [vmem:[%s24580_s2 + $0x8c0] sm:$0xff] }
 0x122   : > { %12904 = vmatpush1.bf16.msra.mxu1 %v15867_v37  ;;  %13560 = vmatpush1.bf16.msra.mxu0 %v15869_v38  ;;  %v15907_v37 = vcombine.low %v820_v21, %v824_v50  ;;  %v15909_v38 = vcombine.low %v821_v23, %v825_v25  ;;  %v857_v21 = vld [vmem:[%s24580_s2 + $0x9a8] sm:$0xff] }
 0x123   : > { %12905 = vmatprep.subr.bf16.mxu1 %v15876_v40  ;;  %13561 = vmatprep.subr.bf16.mxu0 %v15878_v41  ;;  %v15916_v40 = vcombine.high %v828_v31, %v832_v62  ;;  %v15918_v41 = vcombine.high %v829_v34, %v833_v35 }
 0x126   : > { %12906 = vmatpush1.bf16.msra.mxu1 %v15875_v49  ;;  %13562 = vmatpush1.bf16.msra.mxu0 %v15877_v51  ;;  %v841_v49 = vld [vmem:[%s24580_s2 + $0x928] sm:$0xff]  ;;  %v18608_v51 = vpop.f32.mrb[25].mxu0 }
 0x127   : > { %12907 = vmatprep.subr.bf16.mxu1 %v15884_v53  ;;  %13563 = vmatprep.subr.bf16.mxu0 %v15886_v55  ;;  %v15915_v53 = vcombine.low %v828_v31, %v832_v62  ;;  %v15917_v55 = vcombine.low %v829_v34, %v833_v35  ;;  %v15926_v58 = vcombine.high %v837_v48, %v841_v49  ;;  %v18613_v60 = vpop.f32.mrb[26].mxu0  ;;  %v864_v31 = vld [vmem:[%s24580_s2 + $0x9e0] sm:$0xff]  ;;  %v861_v62 = vld [vmem:[%s24580_s2 + $0x9c8] sm:$0xff] }
 0x128   : > { %v15925_v9 = vcombine.low %v837_v48, %v841_v49  ;;  %v865_v34 = vld [vmem:[%s24580_s2 + $0x9e8] sm:$0xff] }
 0x129   : > { %v869_v48 = vld [vmem:[%s24580_s2 + $0xa08] sm:$0xff] }
 0x12a   : > { %12908 = vmatpush1.bf16.msra.mxu1 %v15883_v1  ;;  %13564 = vmatpush1.bf16.msra.mxu0 %v15885_v2  ;;  %v848_v1 = vld [vmem:[%s24580_s2 + $0x960] sm:$0xff]  ;;  %v845_v2 = vld [vmem:[%s24580_s2 + $0x948] sm:$0xff] }
 0x12b   : > { %12918 = vmatprep.subr.bf16.mxu1 %v15892_v5  ;;  %13574 = vmatprep.subr.bf16.mxu0 %v15894_v6  ;;  %v849_v5 = vld [vmem:[%s24580_s2 + $0x968] sm:$0xff]  ;;  %v18624_v6 = vpop.f32.mrb[27].mxu0  ;;  %v15932_v11 = vcombine.high %v844_v59, %v848_v1  ;;  %v15931_v23 = vcombine.low %v844_v59, %v848_v1  ;;  %v876_v59 = vld [vmem:[%s24580_s2 + $0xa40] sm:$0xff] }
 0x12c   : > { %v15934_v12 = vcombine.high %v845_v2, %v849_v5  ;;  %v15933_v25 = vcombine.low %v845_v2, %v849_v5  ;;  %v873_v49 = vld [vmem:[%s24580_s2 + $0xa28] sm:$0xff]  ;;  %v880_v1 = vld [vmem:[%s24580_s2 + $0xa60] sm:$0xff] }
 0x12d   : > { %12910 = vmatmul.mubr.bf16.vlgmr.msra.gmra.mrb[0].mxu1 %v18552_v13  ;;  %13566 = vmatmul.mubr.bf16.vlgmr.msra.gmra.mrb[32].mxu0 %v18552_v13  ;;  %v877_v2 = vld [vmem:[%s24580_s2 + $0xa48] sm:$0xff] }
 0x12e   : > { %12919 = vmatpush1.bf16.msra.mxu1 %v15891_v15  ;;  %13575 = vmatpush1.bf16.msra.mxu0 %v15893_v16  ;;  %v852_v15 = vld [vmem:[%s24580_s2 + $0x980] sm:$0xff]  ;;  %v18629_v16 = vpop.f32.mrb[28].mxu0  ;;  %v881_v5 = vld [vmem:[%s24580_s2 + $0xa68] sm:$0xff] }
 0x12f   : > { %12920 = vmatprep.subr.bf16.mxu1 %v15900_v18  ;;  %13576 = vmatprep.subr.bf16.mxu0 %v15902_v19  ;;  %v856_v18 = vld [vmem:[%s24580_s2 + $0x9a0] sm:$0xff]  ;;  %v853_v19 = vld [vmem:[%s24580_s2 + $0x988] sm:$0xff]  ;;  %v18640_v50 = vpop.f32.mrb[29].mxu0 }
 0x130   : > { %12950 = vmatprep.mubr.bf16.mxu1 %v18572_v26  ;;  %13606 = vmatprep.mubr.bf16.mxu0 %v18572_v26 }
 0x132   : > { %12921 = vmatpush1.bf16.msra.mxu1 %v15899_v0  ;;  %13577 = vmatpush1.bf16.msra.mxu0 %v15901_v27  ;;  %v15940_v0 = vcombine.high %v852_v15, %v856_v18  ;;  %v15942_v27 = vcombine.high %v853_v19, %v857_v21 }
 0x133   : > { %12922 = vmatprep.subr.bf16.mxu1 %v15908_v28  ;;  %13578 = vmatprep.subr.bf16.mxu0 %v15910_v30  ;;  %v860_v28 = vld [vmem:[%s24580_s2 + $0x9c0] sm:$0xff]  ;;  %v18645_v30 = vpop.f32.mrb[30].mxu0 }
 0x134   : > { %v18656_v35 = vpop.f32.mrb[31].mxu0 }
 0x136   : > { %12923 = vmatpush1.bf16.msra.mxu1 %v15907_v37  ;;  %13579 = vmatpush1.bf16.msra.mxu0 %v15909_v38  ;;  %v15939_v37 = vcombine.low %v852_v15, %v856_v18  ;;  %v15941_v38 = vcombine.low %v853_v19, %v857_v21  ;;  %v884_v15 = vld [vmem:[%s24580_s2 + $0xa80] sm:$0xff]  ;;  %v885_v19 = vld [vmem:[%s24580_s2 + $0xa88] sm:$0xff] }
 0x137   : > { %12924 = vmatprep.subr.bf16.mxu1 %v15916_v40  ;;  %13580 = vmatprep.subr.bf16.mxu0 %v15918_v41  ;;  %v15948_v40 = vcombine.high %v860_v28, %v864_v31  ;;  %v15950_v41 = vcombine.high %v861_v62, %v865_v34  ;;  %v888_v18 = vld [vmem:[%s24580_s2 + $0xaa0] sm:$0xff]  ;;  %v889_v21 = vld [vmem:[%s24580_s2 + $0xaa8] sm:$0xff] }
 0x13a   : > { %12925 = vmatpush1.bf16.msra.mxu1 %v15915_v53  ;;  %13581 = vmatpush1.bf16.msra.mxu0 %v15917_v55  ;;  %v15947_v53 = vcombine.low %v860_v28, %v864_v31  ;;  %v15949_v55 = vcombine.low %v861_v62, %v865_v34  ;;  %v892_v28 = vld [vmem:[%s24580_s2 + $0xac0] sm:$0xff]  ;;  %v893_v62 = vld [vmem:[%s24580_s2 + $0xac8] sm:$0xff] }
 0x13b   : > { %12926 = vmatprep.subr.bf16.mxu1 %v15924_v56  ;;  %13582 = vmatprep.subr.bf16.mxu0 %v15926_v58  ;;  %v15956_v56 = vcombine.high %v868_v44, %v872_v47  ;;  %v15958_v58 = vcombine.high %v869_v48, %v873_v49  ;;  %v896_v31 = vld [vmem:[%s24580_s2 + $0xae0] sm:$0xff]  ;;  %v897_v34 = vld [vmem:[%s24580_s2 + $0xae8] sm:$0xff] }
 0x13e   : > { %12927 = vmatpush1.bf16.msra.mxu1 %v15923_v7  ;;  %13583 = vmatpush1.bf16.msra.mxu0 %v15925_v9  ;;  %v15955_v7 = vcombine.low %v868_v44, %v872_v47  ;;  %v15957_v9 = vcombine.low %v869_v48, %v873_v49  ;;  %v900_v44 = vld [vmem:[%s24580_s2 + $0xb00] sm:$0xff]  ;;  %v901_v48 = vld [vmem:[%s24580_s2 + $0xb08] sm:$0xff] }
 0x13f   : > { %12928 = vmatprep.subr.bf16.mxu1 %v15932_v11  ;;  %13584 = vmatprep.subr.bf16.mxu0 %v15934_v12  ;;  %v15964_v11 = vcombine.high %v876_v59, %v880_v1  ;;  %v15966_v12 = vcombine.high %v877_v2, %v881_v5  ;;  %v904_v47 = vld [vmem:[%s24580_s2 + $0xb20] sm:$0xff]  ;;  %v905_v49 = vld [vmem:[%s24580_s2 + $0xb28] sm:$0xff] }
 0x142   : > { %12929 = vmatpush1.bf16.msra.mxu1 %v15931_v23  ;;  %13585 = vmatpush1.bf16.msra.mxu0 %v15933_v25  ;;  %v15963_v23 = vcombine.low %v876_v59, %v880_v1  ;;  %v15965_v25 = vcombine.low %v877_v2, %v881_v5  ;;  %v908_v59 = vld [vmem:[%s24580_s2 + $0xb40] sm:$0xff]  ;;  %v909_v2 = vld [vmem:[%s24580_s2 + $0xb48] sm:$0xff] }
 0x143   : > { %12930 = vmatprep.subr.bf16.mxu1 %v15940_v0  ;;  %13586 = vmatprep.subr.bf16.mxu0 %v15942_v27  ;;  %v15972_v0 = vcombine.high %v884_v15, %v888_v18  ;;  %v15974_v27 = vcombine.high %v885_v19, %v889_v21  ;;  %v912_v1 = vld [vmem:[%s24580_s2 + $0xb60] sm:$0xff]  ;;  %v913_v5 = vld [vmem:[%s24580_s2 + $0xb68] sm:$0xff] }
 0x146   : > { %12931 = vmatpush1.bf16.msra.mxu1 %v15939_v37  ;;  %13587 = vmatpush1.bf16.msra.mxu0 %v15941_v38  ;;  %v15971_v37 = vcombine.low %v884_v15, %v888_v18  ;;  %v15973_v38 = vcombine.low %v885_v19, %v889_v21  ;;  %v916_v15 = vld [vmem:[%s24580_s2 + $0xb80] sm:$0xff]  ;;  %v917_v19 = vld [vmem:[%s24580_s2 + $0xb88] sm:$0xff] }
 0x147   : > { %12932 = vmatprep.subr.bf16.mxu1 %v15948_v40  ;;  %13588 = vmatprep.subr.bf16.mxu0 %v15950_v41  ;;  %v15980_v40 = vcombine.high %v892_v28, %v896_v31  ;;  %v15982_v41 = vcombine.high %v893_v62, %v897_v34  ;;  %v920_v18 = vld [vmem:[%s24580_s2 + $0xba0] sm:$0xff]  ;;  %v921_v21 = vld [vmem:[%s24580_s2 + $0xba8] sm:$0xff] }
 0x14a   : > { %12933 = vmatpush1.bf16.msra.mxu1 %v15947_v53  ;;  %13589 = vmatpush1.bf16.msra.mxu0 %v15949_v55  ;;  %v15979_v53 = vcombine.low %v892_v28, %v896_v31  ;;  %v15981_v55 = vcombine.low %v893_v62, %v897_v34  ;;  %v924_v28 = vld [vmem:[%s24580_s2 + $0xbc0] sm:$0xff]  ;;  %v925_v62 = vld [vmem:[%s24580_s2 + $0xbc8] sm:$0xff] }
 0x14b   : > { %12934 = vmatprep.subr.bf16.mxu1 %v15956_v56  ;;  %13590 = vmatprep.subr.bf16.mxu0 %v15958_v58  ;;  %v15988_v56 = vcombine.high %v900_v44, %v904_v47  ;;  %v15990_v58 = vcombine.high %v901_v48, %v905_v49  ;;  %v928_v31 = vld [vmem:[%s24580_s2 + $0xbe0] sm:$0xff]  ;;  %v929_v34 = vld [vmem:[%s24580_s2 + $0xbe8] sm:$0xff] }
 0x14e   : > { %12935 = vmatpush1.bf16.msra.mxu1 %v15955_v7  ;;  %13591 = vmatpush1.bf16.msra.mxu0 %v15957_v9  ;;  %v15987_v7 = vcombine.low %v900_v44, %v904_v47  ;;  %v15989_v9 = vcombine.low %v901_v48, %v905_v49  ;;  %v932_v44 = vld [vmem:[%s24580_s2 + $0xc00] sm:$0xff]  ;;  %v933_v48 = vld [vmem:[%s24580_s2 + $0xc08] sm:$0xff] }
 0x14f   : > { %12936 = vmatprep.subr.bf16.mxu1 %v15964_v11  ;;  %13592 = vmatprep.subr.bf16.mxu0 %v15966_v12  ;;  %v15996_v11 = vcombine.high %v908_v59, %v912_v1  ;;  %v15998_v12 = vcombine.high %v909_v2, %v913_v5  ;;  %v936_v47 = vld [vmem:[%s24580_s2 + $0xc20] sm:$0xff]  ;;  %v937_v49 = vld [vmem:[%s24580_s2 + $0xc28] sm:$0xff] }
 0x152   : > { %12937 = vmatpush1.bf16.msra.mxu1 %v15963_v23  ;;  %13593 = vmatpush1.bf16.msra.mxu0 %v15965_v25  ;;  %v15995_v23 = vcombine.low %v908_v59, %v912_v1  ;;  %v15997_v25 = vcombine.low %v909_v2, %v913_v5  ;;  %v940_v59 = vld [vmem:[%s24580_s2 + $0xc40] sm:$0xff]  ;;  %v941_v2 = vld [vmem:[%s24580_s2 + $0xc48] sm:$0xff] }
 0x153   : > { %12938 = vmatprep.subr.bf16.mxu1 %v15972_v0  ;;  %13594 = vmatprep.subr.bf16.mxu0 %v15974_v27  ;;  %v16004_v0 = vcombine.high %v916_v15, %v920_v18  ;;  %v16006_v27 = vcombine.high %v917_v19, %v921_v21  ;;  %v944_v1 = vld [vmem:[%s24580_s2 + $0xc60] sm:$0xff]  ;;  %v945_v5 = vld [vmem:[%s24580_s2 + $0xc68] sm:$0xff] }
 0x156   : > { %12939 = vmatpush1.bf16.msra.mxu1 %v15971_v37  ;;  %13595 = vmatpush1.bf16.msra.mxu0 %v15973_v38  ;;  %v16003_v37 = vcombine.low %v916_v15, %v920_v18  ;;  %v16005_v38 = vcombine.low %v917_v19, %v921_v21  ;;  %v16030_v15 = vcombine.high %v941_v2, %v945_v5  ;;  %v948_v18 = vld [vmem:[%s24580_s2 + $0xc80] sm:$0xff]  ;;  %v953_v21 = vld [vmem:[%s24580_s2 + $0xca8] sm:$0xff] }
 0x157   : > { %12940 = vmatprep.subr.bf16.mxu1 %v15980_v40  ;;  %13596 = vmatprep.subr.bf16.mxu0 %v15982_v41  ;;  %v16012_v40 = vcombine.high %v924_v28, %v928_v31  ;;  %v16014_v41 = vcombine.high %v925_v62, %v929_v34  ;;  %v952_v19 = vld [vmem:[%s24580_s2 + $0xca0] sm:$0xff] }
 0x15a   : > { %12941 = vmatpush1.bf16.msra.mxu1 %v15979_v53  ;;  %13597 = vmatpush1.bf16.msra.mxu0 %v15981_v55  ;;  %v16011_v53 = vcombine.low %v924_v28, %v928_v31  ;;  %v16013_v55 = vcombine.low %v925_v62, %v929_v34  ;;  %v956_v31 = vld [vmem:[%s24580_s2 + $0xcc0] sm:$0xff]  ;;  %v957_v62 = vld [vmem:[%s24580_s2 + $0xcc8] sm:$0xff] }
 0x15b   : > { %12942 = vmatprep.subr.bf16.mxu1 %v15988_v56  ;;  %13598 = vmatprep.subr.bf16.mxu0 %v15990_v58  ;;  %v16020_v56 = vcombine.high %v932_v44, %v936_v47  ;;  %v16022_v58 = vcombine.high %v933_v48, %v937_v49  ;;  %v961_v34 = vld [vmem:[%s24580_s2 + $0xce8] sm:$0xff] }
 0x15e   : > { %12943 = vmatpush1.bf16.msra.mxu1 %v15987_v7  ;;  %13599 = vmatpush1.bf16.msra.mxu0 %v15989_v9  ;;  %v18780_v7 = vpack.c.bf16 %v18350_v61, %v18350_v61  ;;  %v16019_v9 = vcombine.low %v932_v44, %v936_v47  ;;  %v949_v61 = vld [vmem:[%s24580_s2 + $0xc88] sm:$0xff]  ;;  %v964_v44 = vld [vmem:[%s24580_s2 + $0xd00] sm:$0xff] }
 0x15f   : > { %12944 = vmatprep.subr.bf16.mxu1 %v15996_v11  ;;  %13600 = vmatprep.subr.bf16.mxu0 %v15998_v12  ;;  %v16021_v11 = vcombine.low %v933_v48, %v937_v49  ;;  %v16028_v12 = vcombine.high %v940_v59, %v944_v1  ;;  %v16038_v28 = vcombine.high %v949_v61, %v953_v21  ;;  %v968_v47 = vld [vmem:[%s24580_s2 + $0xd20] sm:$0xff]  ;;  %v965_v48 = vld [vmem:[%s24580_s2 + $0xd08] sm:$0xff] }
 0x160   : > { %v969_v49 = vld [vmem:[%s24580_s2 + $0xd28] sm:$0xff] }
 0x162   : > { %12945 = vmatpush1.bf16.msra.mxu1 %v15995_v23  ;;  %13601 = vmatpush1.bf16.msra.mxu0 %v15997_v25  ;;  %v18796_v23 = vpack.c.bf16 %v18443_v4, %v18443_v4  ;;  %v16027_v25 = vcombine.low %v940_v59, %v944_v1  ;;  %v960_v4 = vld [vmem:[%s24580_s2 + $0xce0] sm:$0xff] }
 0x163   : > { %12946 = vmatprep.subr.bf16.mxu1 %v16004_v0  ;;  %13602 = vmatprep.subr.bf16.mxu0 %v16006_v27  ;;  %v16029_v0 = vcombine.low %v941_v2, %v945_v5  ;;  %v16036_v27 = vcombine.high %v948_v18, %v952_v19  ;;  %v972_v59 = vld [vmem:[%s24580_s2 + $0xd40] sm:$0xff]  ;;  %v973_v2 = vld [vmem:[%s24580_s2 + $0xd48] sm:$0xff] }
 0x164   : > { %v976_v1 = vld [vmem:[%s24580_s2 + $0xd60] sm:$0xff]  ;;  %v977_v5 = vld [vmem:[%s24580_s2 + $0xd68] sm:$0xff] }
 0x166   : > { %12947 = vmatpush1.bf16.msra.mxu1 %v16003_v37  ;;  %13603 = vmatpush1.bf16.msra.mxu0 %v16005_v38  ;;  %v16035_v37 = vcombine.low %v948_v18, %v952_v19  ;;  %v16037_v38 = vcombine.low %v949_v61, %v953_v21  ;;  %v980_v18 = vld [vmem:[%s24580_s2 + $0xd80] sm:$0xff]  ;;  %v981_v61 = vld [vmem:[%s24580_s2 + $0xd88] sm:$0xff] }
 0x167   : > { %12948 = vmatprep.subr.bf16.mxu1 %v16012_v40  ;;  %13604 = vmatprep.subr.bf16.mxu0 %v16014_v41  ;;  %v16044_v40 = vcombine.high %v956_v31, %v960_v4  ;;  %v16046_v41 = vcombine.high %v957_v62, %v961_v34  ;;  %v984_v19 = vld [vmem:[%s24580_s2 + $0xda0] sm:$0xff]  ;;  %v985_v21 = vld [vmem:[%s24580_s2 + $0xda8] sm:$0xff] }
 0x16a   : > { %12949 = vmatpush1.bf16.msra.mxu1 %v16011_v53  ;;  %13605 = vmatpush1.bf16.msra.mxu0 %v16013_v55  ;;  %v16043_v53 = vcombine.low %v956_v31, %v960_v4  ;;  %v16045_v55 = vcombine.low %v957_v62, %v961_v34  ;;  %v988_v31 = vld [vmem:[%s24580_s2 + $0xdc0] sm:$0xff]  ;;  %v989_v62 = vld [vmem:[%s24580_s2 + $0xdc8] sm:$0xff] }
 0x16b   : > { %12959 = vmatprep.subr.bf16.mxu1 %v16020_v56  ;;  %13615 = vmatprep.subr.bf16.mxu0 %v16022_v58  ;;  %v16052_v56 = vcombine.high %v964_v44, %v968_v47  ;;  %v16054_v58 = vcombine.high %v965_v48, %v969_v49  ;;  %v992_v4 = vld [vmem:[%s24580_s2 + $0xde0] sm:$0xff]  ;;  %v993_v34 = vld [vmem:[%s24580_s2 + $0xde8] sm:$0xff] }
 0x16d   : > { %12951 = vmatmul.mubr.bf16.vlgmr.msra.gmra.mrb[0].mxu1 %v18780_v7  ;;  %13607 = vmatmul.mubr.bf16.vlgmr.msra.gmra.mrb[32].mxu0 %v18780_v7 }
 0x16e   : > { %12960 = vmatpush1.bf16.msra.mxu1 %v16019_v9  ;;  %13616 = vmatpush1.bf16.msra.mxu0 %v16021_v11  ;;  %v16051_v9 = vcombine.low %v964_v44, %v968_v47  ;;  %v16053_v11 = vcombine.low %v965_v48, %v969_v49  ;;  %v996_v44 = vld [vmem:[%s24580_s2 + $0xe00] sm:$0xff]  ;;  %v997_v48 = vld [vmem:[%s24580_s2 + $0xe08] sm:$0xff] }
 0x16f   : > { %12961 = vmatprep.subr.bf16.mxu1 %v16028_v12  ;;  %13617 = vmatprep.subr.bf16.mxu0 %v16030_v15  ;;  %v16060_v12 = vcombine.high %v972_v59, %v976_v1  ;;  %v16062_v15 = vcombine.high %v973_v2, %v977_v5  ;;  %v1000_v47 = vld [vmem:[%s24580_s2 + $0xe20] sm:$0xff]  ;;  %v1001_v49 = vld [vmem:[%s24580_s2 + $0xe28] sm:$0xff] }
 0x170   : > { %12991 = vmatprep.mubr.bf16.mxu1 %v18796_v23  ;;  %13647 = vmatprep.mubr.bf16.mxu0 %v18796_v23 }
 0x172   : > { %12962 = vmatpush1.bf16.msra.mxu1 %v16027_v25  ;;  %13618 = vmatpush1.bf16.msra.mxu0 %v16029_v0  ;;  %v16059_v25 = vcombine.low %v972_v59, %v976_v1  ;;  %v16061_v0 = vcombine.low %v973_v2, %v977_v5  ;;  %v1004_v59 = vld [vmem:[%s24580_s2 + $0xe40] sm:$0xff]  ;;  %v1005_v2 = vld [vmem:[%s24580_s2 + $0xe48] sm:$0xff] }
 0x173   : > { %12963 = vmatprep.subr.bf16.mxu1 %v16036_v27  ;;  %13619 = vmatprep.subr.bf16.mxu0 %v16038_v28  ;;  %v16068_v27 = vcombine.high %v980_v18, %v984_v19  ;;  %v16070_v28 = vcombine.high %v981_v61, %v985_v21  ;;  %v1008_v1 = vld [vmem:[%s24580_s2 + $0xe60] sm:$0xff]  ;;  %v1009_v5 = vld [vmem:[%s24580_s2 + $0xe68] sm:$0xff] }
 0x176   : > { %12964 = vmatpush1.bf16.msra.mxu1 %v16035_v37  ;;  %13620 = vmatpush1.bf16.msra.mxu0 %v16037_v38  ;;  %v16067_v37 = vcombine.low %v980_v18, %v984_v19  ;;  %v16069_v38 = vcombine.low %v981_v61, %v985_v21  ;;  %v1012_v18 = vld [vmem:[%s24580_s2 + $0xe80] sm:$0xff]  ;;  %v1013_v61 = vld [vmem:[%s24580_s2 + $0xe88] sm:$0xff] }
 0x177   : > { %12965 = vmatprep.subr.bf16.mxu1 %v16044_v40  ;;  %13621 = vmatprep.subr.bf16.mxu0 %v16046_v41  ;;  %v16076_v40 = vcombine.high %v988_v31, %v992_v4  ;;  %v16078_v41 = vcombine.high %v989_v62, %v993_v34  ;;  %v1016_v19 = vld [vmem:[%s24580_s2 + $0xea0] sm:$0xff]  ;;  %v1017_v21 = vld [vmem:[%s24580_s2 + $0xea8] sm:$0xff] }
 0x17a   : > { %12966 = vmatpush1.bf16.msra.mxu1 %v16043_v53  ;;  %13622 = vmatpush1.bf16.msra.mxu0 %v16045_v55  ;;  %v16075_v53 = vcombine.low %v988_v31, %v992_v4  ;;  %v16077_v55 = vcombine.low %v989_v62, %v993_v34  ;;  %v1020_v31 = vld [vmem:[%s24580_s2 + $0xec0] sm:$0xff]  ;;  %v1021_v62 = vld [vmem:[%s24580_s2 + $0xec8] sm:$0xff] }
 0x17b   : > { %12967 = vmatprep.subr.bf16.mxu1 %v16052_v56  ;;  %13623 = vmatprep.subr.bf16.mxu0 %v16054_v58  ;;  %v16084_v56 = vcombine.high %v996_v44, %v1000_v47  ;;  %v16086_v58 = vcombine.high %v997_v48, %v1001_v49  ;;  %v1024_v4 = vld [vmem:[%s24580_s2 + $0xee0] sm:$0xff]  ;;  %v1025_v34 = vld [vmem:[%s24580_s2 + $0xee8] sm:$0xff] }
 0x17e   : > { %12968 = vmatpush1.bf16.msra.mxu1 %v16051_v9  ;;  %13624 = vmatpush1.bf16.msra.mxu0 %v16053_v11  ;;  %v16083_v9 = vcombine.low %v996_v44, %v1000_v47  ;;  %v16085_v11 = vcombine.low %v997_v48, %v1001_v49  ;;  %v1028_v44 = vld [vmem:[%s24580_s2 + $0xf00] sm:$0xff]  ;;  %v1029_v48 = vld [vmem:[%s24580_s2 + $0xf08] sm:$0xff] }
 0x17f   : > { %12969 = vmatprep.subr.bf16.mxu1 %v16060_v12  ;;  %13625 = vmatprep.subr.bf16.mxu0 %v16062_v15  ;;  %v16092_v12 = vcombine.high %v1004_v59, %v1008_v1  ;;  %v16094_v15 = vcombine.high %v1005_v2, %v1009_v5  ;;  %v1032_v47 = vld [vmem:[%s24580_s2 + $0xf20] sm:$0xff]  ;;  %v1033_v49 = vld [vmem:[%s24580_s2 + $0xf28] sm:$0xff] }
 0x182   : > { %12970 = vmatpush1.bf16.msra.mxu1 %v16059_v25  ;;  %13626 = vmatpush1.bf16.msra.mxu0 %v16061_v0  ;;  %v16091_v25 = vcombine.low %v1004_v59, %v1008_v1  ;;  %v16093_v0 = vcombine.low %v1005_v2, %v1009_v5  ;;  %v1036_v59 = vld [vmem:[%s24580_s2 + $0xf40] sm:$0xff]  ;;  %v1037_v2 = vld [vmem:[%s24580_s2 + $0xf48] sm:$0xff] }
 0x183   : > { %12971 = vmatprep.subr.bf16.mxu1 %v16068_v27  ;;  %13627 = vmatprep.subr.bf16.mxu0 %v16070_v28  ;;  %v16100_v27 = vcombine.high %v1012_v18, %v1016_v19  ;;  %v16102_v28 = vcombine.high %v1013_v61, %v1017_v21  ;;  %v1040_v1 = vld [vmem:[%s24580_s2 + $0xf60] sm:$0xff]  ;;  %v1041_v5 = vld [vmem:[%s24580_s2 + $0xf68] sm:$0xff] }
 0x186   : > { %12972 = vmatpush1.bf16.msra.mxu1 %v16067_v37  ;;  %13628 = vmatpush1.bf16.msra.mxu0 %v16069_v38  ;;  %v16099_v37 = vcombine.low %v1012_v18, %v1016_v19  ;;  %v16101_v38 = vcombine.low %v1013_v61, %v1017_v21  ;;  %v1044_v18 = vld [vmem:[%s24580_s2 + $0xf80] sm:$0xff]  ;;  %v1045_v61 = vld [vmem:[%s24580_s2 + $0xf88] sm:$0xff] }
 0x187   : > { %12973 = vmatprep.subr.bf16.mxu1 %v16076_v40  ;;  %13629 = vmatprep.subr.bf16.mxu0 %v16078_v41  ;;  %v16108_v40 = vcombine.high %v1020_v31, %v1024_v4  ;;  %v16110_v41 = vcombine.high %v1021_v62, %v1025_v34  ;;  %v1048_v19 = vld [vmem:[%s24580_s2 + $0xfa0] sm:$0xff]  ;;  %v1049_v21 = vld [vmem:[%s24580_s2 + $0xfa8] sm:$0xff] }
 0x18a   : > { %12974 = vmatpush1.bf16.msra.mxu1 %v16075_v53  ;;  %13630 = vmatpush1.bf16.msra.mxu0 %v16077_v55  ;;  %v16107_v53 = vcombine.low %v1020_v31, %v1024_v4  ;;  %v16109_v55 = vcombine.low %v1021_v62, %v1025_v34  ;;  %v1052_v31 = vld [vmem:[%s24580_s2 + $0xfc0] sm:$0xff]  ;;  %v1053_v62 = vld [vmem:[%s24580_s2 + $0xfc8] sm:$0xff] }
 0x18b   : > { %12975 = vmatprep.subr.bf16.mxu1 %v16084_v56  ;;  %13631 = vmatprep.subr.bf16.mxu0 %v16086_v58  ;;  %v16116_v56 = vcombine.high %v1028_v44, %v1032_v47  ;;  %v16118_v58 = vcombine.high %v1029_v48, %v1033_v49  ;;  %v1056_v4 = vld [vmem:[%s24580_s2 + $0xfe0] sm:$0xff]  ;;  %v1057_v34 = vld [vmem:[%s24580_s2 + $0xfe8] sm:$0xff] }
 0x18e   : > { %12976 = vmatpush1.bf16.msra.mxu1 %v16083_v9  ;;  %13632 = vmatpush1.bf16.msra.mxu0 %v16085_v11  ;;  %v16115_v9 = vcombine.low %v1028_v44, %v1032_v47  ;;  %v16117_v11 = vcombine.low %v1029_v48, %v1033_v49  ;;  %v1060_v44 = vld [vmem:[%s24580_s2 + $0x1000] sm:$0xff]  ;;  %v1061_v48 = vld [vmem:[%s24580_s2 + $0x1008] sm:$0xff] }
 0x18f   : > { %12977 = vmatprep.subr.bf16.mxu1 %v16092_v12  ;;  %13633 = vmatprep.subr.bf16.mxu0 %v16094_v15  ;;  %v16124_v12 = vcombine.high %v1036_v59, %v1040_v1  ;;  %v16126_v15 = vcombine.high %v1037_v2, %v1041_v5  ;;  %v1064_v47 = vld [vmem:[%s24580_s2 + $0x1020] sm:$0xff]  ;;  %v1065_v49 = vld [vmem:[%s24580_s2 + $0x1028] sm:$0xff] }
 0x192   : > { %12978 = vmatpush1.bf16.msra.mxu1 %v16091_v25  ;;  %13634 = vmatpush1.bf16.msra.mxu0 %v16093_v0  ;;  %v16123_v25 = vcombine.low %v1036_v59, %v1040_v1  ;;  %v16125_v0 = vcombine.low %v1037_v2, %v1041_v5  ;;  %v1068_v59 = vld [vmem:[%s24580_s2 + $0x1040] sm:$0xff]  ;;  %v1069_v2 = vld [vmem:[%s24580_s2 + $0x1048] sm:$0xff] }
 0x193   : > { %12979 = vmatprep.subr.bf16.mxu1 %v16100_v27  ;;  %13635 = vmatprep.subr.bf16.mxu0 %v16102_v28  ;;  %v16132_v27 = vcombine.high %v1044_v18, %v1048_v19  ;;  %v16134_v28 = vcombine.high %v1045_v61, %v1049_v21  ;;  %v1072_v1 = vld [vmem:[%s24580_s2 + $0x1060] sm:$0xff]  ;;  %v1073_v5 = vld [vmem:[%s24580_s2 + $0x1068] sm:$0xff] }
 0x196   : > { %12980 = vmatpush1.bf16.msra.mxu1 %v16099_v37  ;;  %13636 = vmatpush1.bf16.msra.mxu0 %v16101_v38  ;;  %v16131_v37 = vcombine.low %v1044_v18, %v1048_v19  ;;  %v16133_v38 = vcombine.low %v1045_v61, %v1049_v21  ;;  %v16156_v18 = vcombine.high %v1068_v59, %v1072_v1  ;;  %v1076_v61 = vld [vmem:[%s24580_s2 + $0x1080] sm:$0xff] }
 0x197   : > { %12981 = vmatprep.subr.bf16.mxu1 %v16108_v40  ;;  %13637 = vmatprep.subr.bf16.mxu0 %v16110_v41  ;;  %v16140_v40 = vcombine.high %v1052_v31, %v1056_v4  ;;  %v16142_v41 = vcombine.high %v1053_v62, %v1057_v34  ;;  %v16158_v19 = vcombine.high %v1069_v2, %v1073_v5  ;;  %v1080_v21 = vld [vmem:[%s24580_s2 + $0x10a0] sm:$0xff] }
 0x19a   : > { %12982 = vmatpush1.bf16.msra.mxu1 %v16107_v53  ;;  %13638 = vmatpush1.bf16.msra.mxu0 %v16109_v55  ;;  %v16139_v53 = vcombine.low %v1052_v31, %v1056_v4  ;;  %v16141_v55 = vcombine.low %v1053_v62, %v1057_v34  ;;  %v1084_v31 = vld [vmem:[%s24580_s2 + $0x10c0] sm:$0xff]  ;;  %v1085_v62 = vld [vmem:[%s24580_s2 + $0x10c8] sm:$0xff] }
 0x19b   : > { %12983 = vmatprep.subr.bf16.mxu1 %v16116_v56  ;;  %13639 = vmatprep.subr.bf16.mxu0 %v16118_v58  ;;  %v16148_v56 = vcombine.high %v1060_v44, %v1064_v47  ;;  %v16150_v58 = vcombine.high %v1061_v48, %v1065_v49  ;;  %v1088_v4 = vld [vmem:[%s24580_s2 + $0x10e0] sm:$0xff]  ;;  %v1089_v34 = vld [vmem:[%s24580_s2 + $0x10e8] sm:$0xff] }
 0x19e   : > { %12984 = vmatpush1.bf16.msra.mxu1 %v16115_v9  ;;  %13640 = vmatpush1.bf16.msra.mxu0 %v16117_v11  ;;  %v16147_v9 = vcombine.low %v1060_v44, %v1064_v47  ;;  %v18984_v11 = vpack.c.bf16 %v18438_v63, %v18438_v63  ;;  %v1077_v63 = vld [vmem:[%s24580_s2 + $0x1088] sm:$0xff]  ;;  %v1092_v44 = vld [vmem:[%s24580_s2 + $0x1100] sm:$0xff] }
 0x19f   : > { %12985 = vmatprep.subr.bf16.mxu1 %v16124_v12  ;;  %13641 = vmatprep.subr.bf16.mxu0 %v16126_v15  ;;  %v16149_v12 = vcombine.low %v1061_v48, %v1065_v49  ;;  %v18988_v15 = vpack.c.bf16 %v18459_v14, %v18459_v14  ;;  %v1081_v14 = vld [vmem:[%s24580_s2 + $0x10a8] sm:$0xff]  ;;  %v1096_v47 = vld [vmem:[%s24580_s2 + $0x1120] sm:$0xff] }
 0x1a0   : > { %v1093_v48 = vld [vmem:[%s24580_s2 + $0x1108] sm:$0xff] }
 0x1a1   : > { %v1097_v49 = vld [vmem:[%s24580_s2 + $0x1128] sm:$0xff] }
 0x1a2   : > { %12986 = vmatpush1.bf16.msra.mxu1 %v16123_v25  ;;  %13642 = vmatpush1.bf16.msra.mxu0 %v16125_v0  ;;  %v16155_v25 = vcombine.low %v1068_v59, %v1072_v1  ;;  %v16157_v0 = vcombine.low %v1069_v2, %v1073_v5  ;;  %v1100_v59 = vld [vmem:[%s24580_s2 + $0x1140] sm:$0xff]  ;;  %v1101_v2 = vld [vmem:[%s24580_s2 + $0x1148] sm:$0xff] }
 0x1a3   : > { %12987 = vmatprep.subr.bf16.mxu1 %v16132_v27  ;;  %13643 = vmatprep.subr.bf16.mxu0 %v16134_v28  ;;  %v16164_v27 = vcombine.high %v1076_v61, %v1080_v21  ;;  %v16166_v28 = vcombine.high %v1077_v63, %v1081_v14  ;;  %v1104_v1 = vld [vmem:[%s24580_s2 + $0x1160] sm:$0xff]  ;;  %v1105_v5 = vld [vmem:[%s24580_s2 + $0x1168] sm:$0xff] }
 0x1a6   : > { %12988 = vmatpush1.bf16.msra.mxu1 %v16131_v37  ;;  %13644 = vmatpush1.bf16.msra.mxu0 %v16133_v38  ;;  %v16163_v37 = vcombine.low %v1076_v61, %v1080_v21  ;;  %v16165_v38 = vcombine.low %v1077_v63, %v1081_v14  ;;  %v1108_v61 = vld [vmem:[%s24580_s2 + $0x1180] sm:$0xff]  ;;  %v1109_v63 = vld [vmem:[%s24580_s2 + $0x1188] sm:$0xff] }
 0x1a7   : > { %12989 = vmatprep.subr.bf16.mxu1 %v16140_v40  ;;  %13645 = vmatprep.subr.bf16.mxu0 %v16142_v41  ;;  %v16172_v40 = vcombine.high %v1084_v31, %v1088_v4  ;;  %v16174_v41 = vcombine.high %v1085_v62, %v1089_v34  ;;  %v1112_v21 = vld [vmem:[%s24580_s2 + $0x11a0] sm:$0xff]  ;;  %v1113_v14 = vld [vmem:[%s24580_s2 + $0x11a8] sm:$0xff] }
 0x1aa   : > { %12990 = vmatpush1.bf16.msra.mxu1 %v16139_v53  ;;  %13646 = vmatpush1.bf16.msra.mxu0 %v16141_v55  ;;  %v16171_v53 = vcombine.low %v1084_v31, %v1088_v4  ;;  %v16173_v55 = vcombine.low %v1085_v62, %v1089_v34  ;;  %v1116_v31 = vld [vmem:[%s24580_s2 + $0x11c0] sm:$0xff]  ;;  %v1117_v62 = vld [vmem:[%s24580_s2 + $0x11c8] sm:$0xff] }
 0x1ab   : > { %13000 = vmatprep.subr.bf16.mxu1 %v16148_v56  ;;  %13656 = vmatprep.subr.bf16.mxu0 %v16150_v58  ;;  %v16180_v56 = vcombine.high %v1092_v44, %v1096_v47  ;;  %v16182_v58 = vcombine.high %v1093_v48, %v1097_v49  ;;  %v1120_v4 = vld [vmem:[%s24580_s2 + $0x11e0] sm:$0xff]  ;;  %v1121_v34 = vld [vmem:[%s24580_s2 + $0x11e8] sm:$0xff] }
 0x1ad   : > { %12992 = vmatmul.mubr.bf16.vlgmr.msra.gmra.mrb[0].mxu1 %v18984_v11  ;;  %13648 = vmatmul.mubr.bf16.vlgmr.msra.gmra.mrb[32].mxu0 %v18984_v11 }
 0x1ae   : > { %13001 = vmatpush1.bf16.msra.mxu1 %v16147_v9  ;;  %13032 = vmatprep.mubr.bf16.mxu1 %v18988_v15  ;;  %v16179_v9 = vcombine.low %v1092_v44, %v1096_v47  ;;  %v1124_v44 = vld [vmem:[%s24580_s2 + $0x1200] sm:$0xff] }
 0x1af   : > { %13657 = vmatpush1.bf16.msra.mxu0 %v16149_v12  ;;  %13688 = vmatprep.mubr.bf16.mxu0 %v18988_v15  ;;  %v16181_v12 = vcombine.low %v1093_v48, %v1097_v49  ;;  %v1128_v47 = vld [vmem:[%s24580_s2 + $0x1220] sm:$0xff]  ;;  %v1125_v48 = vld [vmem:[%s24580_s2 + $0x1208] sm:$0xff] }
 0x1b0   : > { %13002 = vmatprep.subr.bf16.mxu1 %v16156_v18  ;;  %13658 = vmatprep.subr.bf16.mxu0 %v16158_v19  ;;  %v16188_v18 = vcombine.high %v1100_v59, %v1104_v1  ;;  %v16190_v19 = vcombine.high %v1101_v2, %v1105_v5  ;;  %v1129_v49 = vld [vmem:[%s24580_s2 + $0x1228] sm:$0xff] }
 0x1b2   : > { %13003 = vmatpush1.bf16.msra.mxu1 %v16155_v25  ;;  %v16187_v25 = vcombine.low %v1100_v59, %v1104_v1  ;;  %v1132_v59 = vld [vmem:[%s24580_s2 + $0x1240] sm:$0xff] }
 0x1b3   : > { %13659 = vmatpush1.bf16.msra.mxu0 %v16157_v0  ;;  %13004 = vmatprep.subr.bf16.mxu1 %v16164_v27  ;;  %v16189_v0 = vcombine.low %v1101_v2, %v1105_v5  ;;  %v16196_v27 = vcombine.high %v1108_v61, %v1112_v21  ;;  %v1136_v1 = vld [vmem:[%s24580_s2 + $0x1260] sm:$0xff]  ;;  %v1133_v2 = vld [vmem:[%s24580_s2 + $0x1248] sm:$0xff] }
 0x1b4   : > { %13660 = vmatprep.subr.bf16.mxu0 %v16166_v28  ;;  %v16198_v28 = vcombine.high %v1109_v63, %v1113_v14  ;;  %v1137_v5 = vld [vmem:[%s24580_s2 + $0x1268] sm:$0xff] }
 0x1b6   : > { %13005 = vmatpush1.bf16.msra.mxu1 %v16163_v37  ;;  %v16195_v37 = vcombine.low %v1108_v61, %v1112_v21  ;;  %v1140_v61 = vld [vmem:[%s24580_s2 + $0x1280] sm:$0xff] }
 0x1b7   : > { %13661 = vmatpush1.bf16.msra.mxu0 %v16165_v38  ;;  %13006 = vmatprep.subr.bf16.mxu1 %v16172_v40  ;;  %v16197_v38 = vcombine.low %v1109_v63, %v1113_v14  ;;  %v16204_v40 = vcombine.high %v1116_v31, %v1120_v4  ;;  %v1144_v21 = vld [vmem:[%s24580_s2 + $0x12a0] sm:$0xff]  ;;  %v1141_v63 = vld [vmem:[%s24580_s2 + $0x1288] sm:$0xff] }
 0x1b8   : > { %13662 = vmatprep.subr.bf16.mxu0 %v16174_v41  ;;  %v16206_v41 = vcombine.high %v1117_v62, %v1121_v34  ;;  %v1145_v14 = vld [vmem:[%s24580_s2 + $0x12a8] sm:$0xff] }
 0x1ba   : > { %13007 = vmatpush1.bf16.msra.mxu1 %v16171_v53  ;;  %v16203_v53 = vcombine.low %v1116_v31, %v1120_v4  ;;  %v1148_v31 = vld [vmem:[%s24580_s2 + $0x12c0] sm:$0xff] }
 0x1bb   : > { %13663 = vmatpush1.bf16.msra.mxu0 %v16173_v55  ;;  %13008 = vmatprep.subr.bf16.mxu1 %v16180_v56  ;;  %v16205_v55 = vcombine.low %v1117_v62, %v1121_v34  ;;  %v16212_v56 = vcombine.high %v1124_v44, %v1128_v47  ;;  %v1152_v4 = vld [vmem:[%s24580_s2 + $0x12e0] sm:$0xff]  ;;  %v1149_v62 = vld [vmem:[%s24580_s2 + $0x12c8] sm:$0xff] }
 0x1bc   : > { %13664 = vmatprep.subr.bf16.mxu0 %v16182_v58  ;;  %v16214_v58 = vcombine.high %v1125_v48, %v1129_v49  ;;  %v1153_v34 = vld [vmem:[%s24580_s2 + $0x12e8] sm:$0xff] }
 0x1be   : > { %13009 = vmatpush1.bf16.msra.mxu1 %v16179_v9  ;;  %v16211_v9 = vcombine.low %v1124_v44, %v1128_v47  ;;  %v1156_v44 = vld [vmem:[%s24580_s2 + $0x1300] sm:$0xff] }
 0x1bf   : > { %13665 = vmatpush1.bf16.msra.mxu0 %v16181_v12  ;;  %13010 = vmatprep.subr.bf16.mxu1 %v16188_v18  ;;  %v16213_v12 = vcombine.low %v1125_v48, %v1129_v49  ;;  %v16220_v18 = vcombine.high %v1132_v59, %v1136_v1  ;;  %v1160_v47 = vld [vmem:[%s24580_s2 + $0x1320] sm:$0xff]  ;;  %v1157_v48 = vld [vmem:[%s24580_s2 + $0x1308] sm:$0xff] }
 0x1c0   : > { %13666 = vmatprep.subr.bf16.mxu0 %v16190_v19  ;;  %v16222_v19 = vcombine.high %v1133_v2, %v1137_v5  ;;  %v1161_v49 = vld [vmem:[%s24580_s2 + $0x1328] sm:$0xff] }
 0x1c2   : > { %13011 = vmatpush1.bf16.msra.mxu1 %v16187_v25  ;;  %v16219_v25 = vcombine.low %v1132_v59, %v1136_v1  ;;  %v1164_v59 = vld [vmem:[%s24580_s2 + $0x1340] sm:$0xff] }
 0x1c3   : > { %13667 = vmatpush1.bf16.msra.mxu0 %v16189_v0  ;;  %13012 = vmatprep.subr.bf16.mxu1 %v16196_v27  ;;  %v16221_v0 = vcombine.low %v1133_v2, %v1137_v5  ;;  %v16228_v27 = vcombine.high %v1140_v61, %v1144_v21  ;;  %v1168_v1 = vld [vmem:[%s24580_s2 + $0x1360] sm:$0xff]  ;;  %v1165_v2 = vld [vmem:[%s24580_s2 + $0x1348] sm:$0xff] }
 0x1c4   : > { %13668 = vmatprep.subr.bf16.mxu0 %v16198_v28  ;;  %v16230_v28 = vcombine.high %v1141_v63, %v1145_v14  ;;  %v1169_v5 = vld [vmem:[%s24580_s2 + $0x1368] sm:$0xff] }
 0x1c6   : > { %13013 = vmatpush1.bf16.msra.mxu1 %v16195_v37  ;;  %v16227_v37 = vcombine.low %v1140_v61, %v1144_v21  ;;  %v1172_v61 = vld [vmem:[%s24580_s2 + $0x1380] sm:$0xff] }
 0x1c7   : > { %13669 = vmatpush1.bf16.msra.mxu0 %v16197_v38  ;;  %13014 = vmatprep.subr.bf16.mxu1 %v16204_v40  ;;  %v16229_v38 = vcombine.low %v1141_v63, %v1145_v14  ;;  %v16236_v40 = vcombine.high %v1148_v31, %v1152_v4  ;;  %v1176_v21 = vld [vmem:[%s24580_s2 + $0x13a0] sm:$0xff]  ;;  %v1173_v63 = vld [vmem:[%s24580_s2 + $0x1388] sm:$0xff] }
 0x1c8   : > { %13670 = vmatprep.subr.bf16.mxu0 %v16206_v41  ;;  %v16238_v41 = vcombine.high %v1149_v62, %v1153_v34  ;;  %v1177_v14 = vld [vmem:[%s24580_s2 + $0x13a8] sm:$0xff] }
 0x1ca   : > { %13015 = vmatpush1.bf16.msra.mxu1 %v16203_v53  ;;  %v16235_v53 = vcombine.low %v1148_v31, %v1152_v4  ;;  %v1180_v31 = vld [vmem:[%s24580_s2 + $0x13c0] sm:$0xff] }
 0x1cb   : > { %13671 = vmatpush1.bf16.msra.mxu0 %v16205_v55  ;;  %13016 = vmatprep.subr.bf16.mxu1 %v16212_v56  ;;  %v16237_v55 = vcombine.low %v1149_v62, %v1153_v34  ;;  %v16244_v56 = vcombine.high %v1156_v44, %v1160_v47  ;;  %v1184_v4 = vld [vmem:[%s24580_s2 + $0x13e0] sm:$0xff]  ;;  %v1181_v62 = vld [vmem:[%s24580_s2 + $0x13c8] sm:$0xff] }
 0x1cc   : > { %13672 = vmatprep.subr.bf16.mxu0 %v16214_v58  ;;  %v16246_v58 = vcombine.high %v1157_v48, %v1161_v49  ;;  %v1185_v34 = vld [vmem:[%s24580_s2 + $0x13e8] sm:$0xff] }
 0x1ce   : > { %13017 = vmatpush1.bf16.msra.mxu1 %v16211_v9  ;;  %v16243_v9 = vcombine.low %v1156_v44, %v1160_v47  ;;  %v1188_v44 = vld [vmem:[%s24580_s2 + $0x1400] sm:$0xff] }
 0x1cf   : > { %13673 = vmatpush1.bf16.msra.mxu0 %v16213_v12  ;;  %13018 = vmatprep.subr.bf16.mxu1 %v16220_v18  ;;  %v16245_v12 = vcombine.low %v1157_v48, %v1161_v49  ;;  %v16252_v18 = vcombine.high %v1164_v59, %v1168_v1  ;;  %v1192_v47 = vld [vmem:[%s24580_s2 + $0x1420] sm:$0xff]  ;;  %v1189_v48 = vld [vmem:[%s24580_s2 + $0x1408] sm:$0xff] }
 0x1d0   : > { %13674 = vmatprep.subr.bf16.mxu0 %v16222_v19  ;;  %v16254_v19 = vcombine.high %v1165_v2, %v1169_v5  ;;  %v1193_v49 = vld [vmem:[%s24580_s2 + $0x1428] sm:$0xff] }
 0x1d2   : > { %13019 = vmatpush1.bf16.msra.mxu1 %v16219_v25  ;;  %v16251_v25 = vcombine.low %v1164_v59, %v1168_v1  ;;  %v1196_v59 = vld [vmem:[%s24580_s2 + $0x1440] sm:$0xff] }
 0x1d3   : > { %13675 = vmatpush1.bf16.msra.mxu0 %v16221_v0  ;;  %13020 = vmatprep.subr.bf16.mxu1 %v16228_v27  ;;  %v16253_v0 = vcombine.low %v1165_v2, %v1169_v5  ;;  %v16260_v27 = vcombine.high %v1172_v61, %v1176_v21  ;;  %v1200_v1 = vld [vmem:[%s24580_s2 + $0x1460] sm:$0xff]  ;;  %v16275_v2 = vcombine.low %v1188_v44, %v1192_v47  ;;  %v1197_v5 = vld [vmem:[%s24580_s2 + $0x1448] sm:$0xff] }
 0x1d4   : > { %13676 = vmatprep.subr.bf16.mxu0 %v16230_v28  ;;  %v16262_v28 = vcombine.high %v1173_v63, %v1177_v14 }
 0x1d6   : > { %13021 = vmatpush1.bf16.msra.mxu1 %v16227_v37  ;;  %v16259_v37 = vcombine.low %v1172_v61, %v1176_v21  ;;  %v1204_v61 = vld [vmem:[%s24580_s2 + $0x1480] sm:$0xff] }
 0x1d7   : > { %13677 = vmatpush1.bf16.msra.mxu0 %v16229_v38  ;;  %13022 = vmatprep.subr.bf16.mxu1 %v16236_v40  ;;  %v16261_v38 = vcombine.low %v1173_v63, %v1177_v14  ;;  %v16268_v40 = vcombine.high %v1180_v31, %v1184_v4  ;;  %v1208_v21 = vld [vmem:[%s24580_s2 + $0x14a0] sm:$0xff]  ;;  %v19198_v63 = vpack.c.bf16 %v18475_v24, %v18475_v24  ;;  %v1205_v14 = vld [vmem:[%s24580_s2 + $0x1488] sm:$0xff] }
 0x1d8   : > { %13678 = vmatprep.subr.bf16.mxu0 %v16238_v41  ;;  %v16270_v41 = vcombine.high %v1181_v62, %v1185_v34 }
 0x1da   : > { %13023 = vmatpush1.bf16.msra.mxu1 %v16235_v53  ;;  %v16267_v53 = vcombine.low %v1180_v31, %v1184_v4  ;;  %v1212_v31 = vld [vmem:[%s24580_s2 + $0x14c0] sm:$0xff] }
 0x1db   : > { %13679 = vmatpush1.bf16.msra.mxu0 %v16237_v55  ;;  %13024 = vmatprep.subr.bf16.mxu1 %v16244_v56  ;;  %v16269_v55 = vcombine.low %v1181_v62, %v1185_v34  ;;  %v16276_v56 = vcombine.high %v1188_v44, %v1192_v47  ;;  %v1216_v4 = vld [vmem:[%s24580_s2 + $0x14e0] sm:$0xff]  ;;  %v1213_v62 = vld [vmem:[%s24580_s2 + $0x14c8] sm:$0xff] }
 0x1dc   : > { %13680 = vmatprep.subr.bf16.mxu0 %v16246_v58  ;;  %v16278_v58 = vcombine.high %v1189_v48, %v1193_v49  ;;  %v1217_v34 = vld [vmem:[%s24580_s2 + $0x14e8] sm:$0xff]  ;;  %v1220_v44 = vld [vmem:[%s24580_s2 + $0x1500] sm:$0xff] }
 0x1dd   : > { %v1224_v47 = vld [vmem:[%s24580_s2 + $0x1520] sm:$0xff] }
 0x1de   : > { %13025 = vmatpush1.bf16.msra.mxu1 %v16243_v9  ;;  %v1201_v9 = vld [vmem:[%s24580_s2 + $0x1468] sm:$0xff] }
 0x1df   : > { %13681 = vmatpush1.bf16.msra.mxu0 %v16245_v12  ;;  %13026 = vmatprep.subr.bf16.mxu1 %v16252_v18  ;;  %v19188_v12 = vpack.c.bf16 %v18454_v10, %v18454_v10  ;;  %v16277_v18 = vcombine.low %v1189_v48, %v1193_v49  ;;  %v16286_v10 = vcombine.high %v1197_v5, %v1201_v9  ;;  %v1221_v48 = vld [vmem:[%s24580_s2 + $0x1508] sm:$0xff] }
 0x1e0   : > { %13682 = vmatprep.subr.bf16.mxu0 %v16254_v19  ;;  %v16284_v19 = vcombine.high %v1196_v59, %v1200_v1  ;;  %v16285_v24 = vcombine.low %v1197_v5, %v1201_v9  ;;  %v1225_v49 = vld [vmem:[%s24580_s2 + $0x1528] sm:$0xff]  ;;  %v16307_v9 = vcombine.low %v1220_v44, %v1224_v47 }
 0x1e1   : > { %v1233_v5 = vld [vmem:[%s24580_s2 + $0x1568] sm:$0xff] }
 0x1e2   : > { %13027 = vmatpush1.bf16.msra.mxu1 %v16251_v25  ;;  %v1209_v25 = vld [vmem:[%s24580_s2 + $0x14a8] sm:$0xff] }
 0x1e3   : > { %13683 = vmatpush1.bf16.msra.mxu0 %v16253_v0  ;;  %13028 = vmatprep.subr.bf16.mxu1 %v16260_v27  ;;  %v16283_v0 = vcombine.low %v1196_v59, %v1200_v1  ;;  %v16292_v27 = vcombine.high %v1204_v61, %v1208_v21  ;;  %v1228_v59 = vld [vmem:[%s24580_s2 + $0x1540] sm:$0xff] }
 0x1e4   : > { %13684 = vmatprep.subr.bf16.mxu0 %v16262_v28  ;;  %v16294_v28 = vcombine.high %v1205_v14, %v1209_v25  ;;  %v1232_v1 = vld [vmem:[%s24580_s2 + $0x1560] sm:$0xff] }
 0x1e6   : > { %13029 = vmatpush1.bf16.msra.mxu1 %v16259_v37  ;;  %v16291_v37 = vcombine.low %v1204_v61, %v1208_v21  ;;  %v1236_v21 = vld [vmem:[%s24580_s2 + $0x1580] sm:$0xff] }
 0x1e7   : > { %13685 = vmatpush1.bf16.msra.mxu0 %v16261_v38  ;;  %13030 = vmatprep.subr.bf16.mxu1 %v16268_v40  ;;  %v16293_v38 = vcombine.low %v1205_v14, %v1209_v25  ;;  %v16300_v40 = vcombine.high %v1212_v31, %v1216_v4  ;;  %v1237_v14 = vld [vmem:[%s24580_s2 + $0x1588] sm:$0xff] }
 0x1e8   : > { %13686 = vmatprep.subr.bf16.mxu0 %v16270_v41  ;;  %v16302_v41 = vcombine.high %v1213_v62, %v1217_v34  ;;  %v1241_v25 = vld [vmem:[%s24580_s2 + $0x15a8] sm:$0xff] }
 0x1ea   : > { %13031 = vmatpush1.bf16.msra.mxu1 %v16267_v53  ;;  %v16299_v53 = vcombine.low %v1212_v31, %v1216_v4  ;;  %v1244_v31 = vld [vmem:[%s24580_s2 + $0x15c0] sm:$0xff] }
 0x1eb   : > { %13687 = vmatpush1.bf16.msra.mxu0 %v16269_v55  ;;  %13041 = vmatprep.subr.bf16.mxu1 %v16276_v56  ;;  %v16301_v55 = vcombine.low %v1213_v62, %v1217_v34  ;;  %v16308_v56 = vcombine.high %v1220_v44, %v1224_v47  ;;  %v1248_v4 = vld [vmem:[%s24580_s2 + $0x15e0] sm:$0xff]  ;;  %v1245_v62 = vld [vmem:[%s24580_s2 + $0x15c8] sm:$0xff] }
 0x1ec   : > { %13697 = vmatprep.subr.bf16.mxu0 %v16278_v58  ;;  %v16310_v58 = vcombine.high %v1221_v48, %v1225_v49  ;;  %v1249_v34 = vld [vmem:[%s24580_s2 + $0x15e8] sm:$0xff]  ;;  %v1252_v44 = vld [vmem:[%s24580_s2 + $0x1600] sm:$0xff] }
 0x1ed   : > { %13033 = vmatmul.mubr.bf16.vlgmr.msra.gmra.mrb[0].mxu1 %v19188_v12  ;;  %v1256_v47 = vld [vmem:[%s24580_s2 + $0x1620] sm:$0xff] }
 0x1ee   : > { %13689 = vmatmul.mubr.bf16.vlgmr.msra.gmra.mrb[32].mxu0 %v19188_v12  ;;  %13042 = vmatpush1.bf16.msra.mxu1 %v16275_v2  ;;  %v1229_v2 = vld [vmem:[%s24580_s2 + $0x1548] sm:$0xff] }
 0x1ef   : > { %13073 = vmatprep.mubr.bf16.mxu1 %v19198_v63  ;;  %13698 = vmatpush1.bf16.msra.mxu0 %v16277_v18  ;;  %v16309_v18 = vcombine.low %v1221_v48, %v1225_v49  ;;  %v16318_v61 = vcombine.high %v1229_v2, %v1233_v5  ;;  %v1253_v48 = vld [vmem:[%s24580_s2 + $0x1608] sm:$0xff] }
 0x1f0   : > { %13729 = vmatprep.mubr.bf16.mxu0 %v19198_v63  ;;  %13043 = vmatprep.subr.bf16.mxu1 %v16284_v19  ;;  %v16316_v19 = vcombine.high %v1228_v59, %v1232_v1  ;;  %v1257_v49 = vld [vmem:[%s24580_s2 + $0x1628] sm:$0xff] }
 0x1f1   : > { %13699 = vmatprep.subr.bf16.mxu0 %v16286_v10  ;;  %v1240_v10 = vld [vmem:[%s24580_s2 + $0x15a0] sm:$0xff] }
 0x1f2   : > { %13044 = vmatpush1.bf16.msra.mxu1 %v16283_v0  ;;  %v16315_v0 = vcombine.low %v1228_v59, %v1232_v1  ;;  %v1260_v59 = vld [vmem:[%s24580_s2 + $0x1640] sm:$0xff] }
 0x1f3   : > { %13700 = vmatpush1.bf16.msra.mxu0 %v16285_v24  ;;  %13045 = vmatprep.subr.bf16.mxu1 %v16292_v27  ;;  %v16317_v24 = vcombine.low %v1229_v2, %v1233_v5  ;;  %v16324_v27 = vcombine.high %v1236_v21, %v1240_v10  ;;  %v1264_v1 = vld [vmem:[%s24580_s2 + $0x1660] sm:$0xff]  ;;  %v1261_v2 = vld [vmem:[%s24580_s2 + $0x1648] sm:$0xff] }
 0x1f4   : > { %13701 = vmatprep.subr.bf16.mxu0 %v16294_v28  ;;  %v16326_v28 = vcombine.high %v1237_v14, %v1241_v25  ;;  %v1265_v5 = vld [vmem:[%s24580_s2 + $0x1668] sm:$0xff] }
 0x1f6   : > { %13046 = vmatpush1.bf16.msra.mxu1 %v16291_v37  ;;  %v16323_v37 = vcombine.low %v1236_v21, %v1240_v10  ;;  %v1268_v21 = vld [vmem:[%s24580_s2 + $0x1680] sm:$0xff] }
 0x1f7   : > { %13702 = vmatpush1.bf16.msra.mxu0 %v16293_v38  ;;  %13047 = vmatprep.subr.bf16.mxu1 %v16300_v40  ;;  %v16325_v38 = vcombine.low %v1237_v14, %v1241_v25  ;;  %v16332_v40 = vcombine.high %v1244_v31, %v1248_v4  ;;  %v1272_v10 = vld [vmem:[%s24580_s2 + $0x16a0] sm:$0xff]  ;;  %v1269_v14 = vld [vmem:[%s24580_s2 + $0x1688] sm:$0xff] }
 0x1f8   : > { %13703 = vmatprep.subr.bf16.mxu0 %v16302_v41  ;;  %v16334_v41 = vcombine.high %v1245_v62, %v1249_v34  ;;  %v1273_v25 = vld [vmem:[%s24580_s2 + $0x16a8] sm:$0xff] }
 0x1fa   : > { %13048 = vmatpush1.bf16.msra.mxu1 %v16299_v53  ;;  %v16331_v53 = vcombine.low %v1244_v31, %v1248_v4  ;;  %v1276_v31 = vld [vmem:[%s24580_s2 + $0x16c0] sm:$0xff] }
 0x1fb   : > { %13704 = vmatpush1.bf16.msra.mxu0 %v16301_v55  ;;  %13049 = vmatprep.subr.bf16.mxu1 %v16308_v56  ;;  %v16333_v55 = vcombine.low %v1245_v62, %v1249_v34  ;;  %v16340_v56 = vcombine.high %v1252_v44, %v1256_v47  ;;  %v1280_v4 = vld [vmem:[%s24580_s2 + $0x16e0] sm:$0xff]  ;;  %v1277_v62 = vld [vmem:[%s24580_s2 + $0x16c8] sm:$0xff] }
 0x1fc   : > { %13705 = vmatprep.subr.bf16.mxu0 %v16310_v58  ;;  %v16342_v58 = vcombine.high %v1253_v48, %v1257_v49  ;;  %v1281_v34 = vld [vmem:[%s24580_s2 + $0x16e8] sm:$0xff] }
 0x1fe   : > { %13050 = vmatpush1.bf16.msra.mxu1 %v16307_v9  ;;  %v16339_v9 = vcombine.low %v1252_v44, %v1256_v47  ;;  %v1284_v44 = vld [vmem:[%s24580_s2 + $0x1700] sm:$0xff] }
 0x1ff   : > { %13706 = vmatpush1.bf16.msra.mxu0 %v16309_v18  ;;  %13051 = vmatprep.subr.bf16.mxu1 %v16316_v19  ;;  %v16341_v18 = vcombine.low %v1253_v48, %v1257_v49  ;;  %v16348_v19 = vcombine.high %v1260_v59, %v1264_v1  ;;  %v1288_v47 = vld [vmem:[%s24580_s2 + $0x1720] sm:$0xff]  ;;  %v1285_v48 = vld [vmem:[%s24580_s2 + $0x1708] sm:$0xff] }
 0x200   : > { %13707 = vmatprep.subr.bf16.mxu0 %v16318_v61  ;;  %v16350_v61 = vcombine.high %v1261_v2, %v1265_v5  ;;  %v1289_v49 = vld [vmem:[%s24580_s2 + $0x1728] sm:$0xff] }
 0x202   : > { %13052 = vmatpush1.bf16.msra.mxu1 %v16315_v0  ;;  %v16347_v0 = vcombine.low %v1260_v59, %v1264_v1  ;;  %v1292_v59 = vld [vmem:[%s24580_s2 + $0x1740] sm:$0xff] }
 0x203   : > { %13708 = vmatpush1.bf16.msra.mxu0 %v16317_v24  ;;  %13053 = vmatprep.subr.bf16.mxu1 %v16324_v27  ;;  %v16349_v24 = vcombine.low %v1261_v2, %v1265_v5  ;;  %v16356_v27 = vcombine.high %v1268_v21, %v1272_v10  ;;  %v1296_v1 = vld [vmem:[%s24580_s2 + $0x1760] sm:$0xff]  ;;  %v1293_v2 = vld [vmem:[%s24580_s2 + $0x1748] sm:$0xff] }
 0x204   : > { %13709 = vmatprep.subr.bf16.mxu0 %v16326_v28  ;;  %v16358_v28 = vcombine.high %v1269_v14, %v1273_v25  ;;  %v1297_v5 = vld [vmem:[%s24580_s2 + $0x1768] sm:$0xff] }
 0x206   : > { %13054 = vmatpush1.bf16.msra.mxu1 %v16323_v37  ;;  %v16355_v37 = vcombine.low %v1268_v21, %v1272_v10  ;;  %v1300_v21 = vld [vmem:[%s24580_s2 + $0x1780] sm:$0xff] }
 0x207   : > { %13710 = vmatpush1.bf16.msra.mxu0 %v16325_v38  ;;  %13055 = vmatprep.subr.bf16.mxu1 %v16332_v40  ;;  %v16357_v38 = vcombine.low %v1269_v14, %v1273_v25  ;;  %v16364_v40 = vcombine.high %v1276_v31, %v1280_v4  ;;  %v1304_v10 = vld [vmem:[%s24580_s2 + $0x17a0] sm:$0xff]  ;;  %v1301_v14 = vld [vmem:[%s24580_s2 + $0x1788] sm:$0xff] }
 0x208   : > { %13711 = vmatprep.subr.bf16.mxu0 %v16334_v41  ;;  %v16366_v41 = vcombine.high %v1277_v62, %v1281_v34  ;;  %v1305_v25 = vld [vmem:[%s24580_s2 + $0x17a8] sm:$0xff] }
 0x20a   : > { %13056 = vmatpush1.bf16.msra.mxu1 %v16331_v53  ;;  %v16363_v53 = vcombine.low %v1276_v31, %v1280_v4  ;;  %v1308_v31 = vld [vmem:[%s24580_s2 + $0x17c0] sm:$0xff] }
 0x20b   : > { %13712 = vmatpush1.bf16.msra.mxu0 %v16333_v55  ;;  %13057 = vmatprep.subr.bf16.mxu1 %v16340_v56  ;;  %v16365_v55 = vcombine.low %v1277_v62, %v1281_v34  ;;  %v16372_v56 = vcombine.high %v1284_v44, %v1288_v47  ;;  %v1312_v4 = vld [vmem:[%s24580_s2 + $0x17e0] sm:$0xff]  ;;  %v1309_v62 = vld [vmem:[%s24580_s2 + $0x17c8] sm:$0xff] }
 0x20c   : > { %13713 = vmatprep.subr.bf16.mxu0 %v16342_v58  ;;  %v16374_v58 = vcombine.high %v1285_v48, %v1289_v49  ;;  %v1313_v34 = vld [vmem:[%s24580_s2 + $0x17e8] sm:$0xff] }
 0x20e   : > { %13058 = vmatpush1.bf16.msra.mxu1 %v16339_v9  ;;  %v16371_v9 = vcombine.low %v1284_v44, %v1288_v47  ;;  %v1316_v44 = vld [vmem:[%s24580_s2 + $0x1800] sm:$0xff] }
 0x20f   : > { %13714 = vmatpush1.bf16.msra.mxu0 %v16341_v18  ;;  %13059 = vmatprep.subr.bf16.mxu1 %v16348_v19  ;;  %v16373_v18 = vcombine.low %v1285_v48, %v1289_v49  ;;  %v16380_v19 = vcombine.high %v1292_v59, %v1296_v1  ;;  %v1320_v47 = vld [vmem:[%s24580_s2 + $0x1820] sm:$0xff]  ;;  %v1317_v48 = vld [vmem:[%s24580_s2 + $0x1808] sm:$0xff] }
 0x210   : > { %13715 = vmatprep.subr.bf16.mxu0 %v16350_v61  ;;  %v16382_v61 = vcombine.high %v1293_v2, %v1297_v5  ;;  %v1321_v49 = vld [vmem:[%s24580_s2 + $0x1828] sm:$0xff] }
 0x212   : > { %13060 = vmatpush1.bf16.msra.mxu1 %v16347_v0  ;;  %v16379_v0 = vcombine.low %v1292_v59, %v1296_v1  ;;  %v1324_v59 = vld [vmem:[%s24580_s2 + $0x1840] sm:$0xff] }
 0x213   : > { %13716 = vmatpush1.bf16.msra.mxu0 %v16349_v24  ;;  %13061 = vmatprep.subr.bf16.mxu1 %v16356_v27  ;;  %v16381_v24 = vcombine.low %v1293_v2, %v1297_v5  ;;  %v16388_v27 = vcombine.high %v1300_v21, %v1304_v10  ;;  %v1328_v1 = vld [vmem:[%s24580_s2 + $0x1860] sm:$0xff]  ;;  %v16403_v2 = vcombine.low %v1316_v44, %v1320_v47  ;;  %v1325_v5 = vld [vmem:[%s24580_s2 + $0x1848] sm:$0xff] }
 0x214   : > { %13717 = vmatprep.subr.bf16.mxu0 %v16358_v28  ;;  %v16390_v28 = vcombine.high %v1301_v14, %v1305_v25 }
 0x216   : > { %13062 = vmatpush1.bf16.msra.mxu1 %v16355_v37  ;;  %v16387_v37 = vcombine.low %v1300_v21, %v1304_v10  ;;  %v1332_v21 = vld [vmem:[%s24580_s2 + $0x1880] sm:$0xff] }
 0x217   : > { %13718 = vmatpush1.bf16.msra.mxu0 %v16357_v38  ;;  %13063 = vmatprep.subr.bf16.mxu1 %v16364_v40  ;;  %v16389_v38 = vcombine.low %v1301_v14, %v1305_v25  ;;  %v16396_v40 = vcombine.high %v1308_v31, %v1312_v4  ;;  %v1336_v10 = vld [vmem:[%s24580_s2 + $0x18a0] sm:$0xff]  ;;  %v19402_v14 = vpack.c.bf16 %v18491_v33, %v18491_v33  ;;  %v1333_v25 = vld [vmem:[%s24580_s2 + $0x1888] sm:$0xff] }
 0x218   : > { %13719 = vmatprep.subr.bf16.mxu0 %v16366_v41  ;;  %v16398_v41 = vcombine.high %v1309_v62, %v1313_v34 }
 0x21a   : > { %13064 = vmatpush1.bf16.msra.mxu1 %v16363_v53  ;;  %v16395_v53 = vcombine.low %v1308_v31, %v1312_v4  ;;  %v1340_v31 = vld [vmem:[%s24580_s2 + $0x18c0] sm:$0xff] }
 0x21b   : > { %13720 = vmatpush1.bf16.msra.mxu0 %v16365_v55  ;;  %13065 = vmatprep.subr.bf16.mxu1 %v16372_v56  ;;  %v16397_v55 = vcombine.low %v1309_v62, %v1313_v34  ;;  %v16404_v56 = vcombine.high %v1316_v44, %v1320_v47  ;;  %v1344_v4 = vld [vmem:[%s24580_s2 + $0x18e0] sm:$0xff]  ;;  %v1341_v62 = vld [vmem:[%s24580_s2 + $0x18c8] sm:$0xff] }
 0x21c   : > { %13721 = vmatprep.subr.bf16.mxu0 %v16374_v58  ;;  %v16406_v58 = vcombine.high %v1317_v48, %v1321_v49  ;;  %v1345_v34 = vld [vmem:[%s24580_s2 + $0x18e8] sm:$0xff]  ;;  %v1348_v44 = vld [vmem:[%s24580_s2 + $0x1900] sm:$0xff] }
 0x21d   : > { %v1352_v47 = vld [vmem:[%s24580_s2 + $0x1920] sm:$0xff] }
 0x21e   : > { %13066 = vmatpush1.bf16.msra.mxu1 %v16371_v9  ;;  %v1329_v9 = vld [vmem:[%s24580_s2 + $0x1868] sm:$0xff] }
 0x21f   : > { %13722 = vmatpush1.bf16.msra.mxu0 %v16373_v18  ;;  %13067 = vmatprep.subr.bf16.mxu1 %v16380_v19  ;;  %v19392_v18 = vpack.c.bf16 %v18470_v20, %v18470_v20  ;;  %v16405_v19 = vcombine.low %v1317_v48, %v1321_v49  ;;  %v16414_v20 = vcombine.high %v1325_v5, %v1329_v9  ;;  %v1349_v48 = vld [vmem:[%s24580_s2 + $0x1908] sm:$0xff] }
 0x220   : > { %13723 = vmatprep.subr.bf16.mxu0 %v16382_v61  ;;  %v16412_v61 = vcombine.high %v1324_v59, %v1328_v1  ;;  %v16413_v33 = vcombine.low %v1325_v5, %v1329_v9  ;;  %v1353_v49 = vld [vmem:[%s24580_s2 + $0x1928] sm:$0xff]  ;;  %v16435_v9 = vcombine.low %v1348_v44, %v1352_v47 }
 0x221   : > { %v1361_v5 = vld [vmem:[%s24580_s2 + $0x1968] sm:$0xff] }
 0x222   : > { %13068 = vmatpush1.bf16.msra.mxu1 %v16379_v0  ;;  %v1337_v0 = vld [vmem:[%s24580_s2 + $0x18a8] sm:$0xff] }
 0x223   : > { %13724 = vmatpush1.bf16.msra.mxu0 %v16381_v24  ;;  %13069 = vmatprep.subr.bf16.mxu1 %v16388_v27  ;;  %v16411_v24 = vcombine.low %v1324_v59, %v1328_v1  ;;  %v16420_v27 = vcombine.high %v1332_v21, %v1336_v10  ;;  %v1356_v59 = vld [vmem:[%s24580_s2 + $0x1940] sm:$0xff] }
 0x224   : > { %13725 = vmatprep.subr.bf16.mxu0 %v16390_v28  ;;  %v16422_v28 = vcombine.high %v1333_v25, %v1337_v0  ;;  %v1360_v1 = vld [vmem:[%s24580_s2 + $0x1960] sm:$0xff] }
 0x226   : > { %13070 = vmatpush1.bf16.msra.mxu1 %v16387_v37  ;;  %v16419_v37 = vcombine.low %v1332_v21, %v1336_v10  ;;  %v1364_v10 = vld [vmem:[%s24580_s2 + $0x1980] sm:$0xff] }
 0x227   : > { %13726 = vmatpush1.bf16.msra.mxu0 %v16389_v38  ;;  %13071 = vmatprep.subr.bf16.mxu1 %v16396_v40  ;;  %v16421_v38 = vcombine.low %v1333_v25, %v1337_v0  ;;  %v16428_v40 = vcombine.high %v1340_v31, %v1344_v4  ;;  %v1365_v25 = vld [vmem:[%s24580_s2 + $0x1988] sm:$0xff] }
 0x228   : > { %13727 = vmatprep.subr.bf16.mxu0 %v16398_v41  ;;  %v16430_v41 = vcombine.high %v1341_v62, %v1345_v34  ;;  %v1369_v0 = vld [vmem:[%s24580_s2 + $0x19a8] sm:$0xff] }
 0x22a   : > { %13072 = vmatpush1.bf16.msra.mxu1 %v16395_v53  ;;  %v16427_v53 = vcombine.low %v1340_v31, %v1344_v4  ;;  %v1372_v31 = vld [vmem:[%s24580_s2 + $0x19c0] sm:$0xff] }
 0x22b   : > { %13728 = vmatpush1.bf16.msra.mxu0 %v16397_v55  ;;  %13082 = vmatprep.subr.bf16.mxu1 %v16404_v56  ;;  %v16429_v55 = vcombine.low %v1341_v62, %v1345_v34  ;;  %v16436_v56 = vcombine.high %v1348_v44, %v1352_v47  ;;  %v1376_v4 = vld [vmem:[%s24580_s2 + $0x19e0] sm:$0xff]  ;;  %v1373_v62 = vld [vmem:[%s24580_s2 + $0x19c8] sm:$0xff] }
 0x22c   : > { %13738 = vmatprep.subr.bf16.mxu0 %v16406_v58  ;;  %v16438_v58 = vcombine.high %v1349_v48, %v1353_v49  ;;  %v1377_v34 = vld [vmem:[%s24580_s2 + $0x19e8] sm:$0xff]  ;;  %v1380_v44 = vld [vmem:[%s24580_s2 + $0x1a00] sm:$0xff] }
 0x22d   : > { %13074 = vmatmul.mubr.bf16.vlgmr.msra.gmra.mrb[0].mxu1 %v19392_v18  ;;  %v1384_v47 = vld [vmem:[%s24580_s2 + $0x1a20] sm:$0xff] }
 0x22e   : > { %13730 = vmatmul.mubr.bf16.vlgmr.msra.gmra.mrb[32].mxu0 %v19392_v18  ;;  %13083 = vmatpush1.bf16.msra.mxu1 %v16403_v2  ;;  %v1357_v2 = vld [vmem:[%s24580_s2 + $0x1948] sm:$0xff] }
 0x22f   : > { %13114 = vmatprep.mubr.bf16.mxu1 %v19402_v14  ;;  %13739 = vmatpush1.bf16.msra.mxu0 %v16405_v19  ;;  %v16437_v19 = vcombine.low %v1349_v48, %v1353_v49  ;;  %v16446_v21 = vcombine.high %v1357_v2, %v1361_v5  ;;  %v1381_v48 = vld [vmem:[%s24580_s2 + $0x1a08] sm:$0xff] }
 0x230   : > { %13770 = vmatprep.mubr.bf16.mxu0 %v19402_v14  ;;  %13084 = vmatprep.subr.bf16.mxu1 %v16412_v61  ;;  %v16444_v61 = vcombine.high %v1356_v59, %v1360_v1  ;;  %v1385_v49 = vld [vmem:[%s24580_s2 + $0x1a28] sm:$0xff] }
 0x231   : > { %13740 = vmatprep.subr.bf16.mxu0 %v16414_v20  ;;  %v1368_v20 = vld [vmem:[%s24580_s2 + $0x19a0] sm:$0xff] }
 0x232   : > { %13085 = vmatpush1.bf16.msra.mxu1 %v16411_v24  ;;  %v16443_v24 = vcombine.low %v1356_v59, %v1360_v1  ;;  %v1388_v59 = vld [vmem:[%s24580_s2 + $0x1a40] sm:$0xff] }
 0x233   : > { %13741 = vmatpush1.bf16.msra.mxu0 %v16413_v33  ;;  %13086 = vmatprep.subr.bf16.mxu1 %v16420_v27  ;;  %v16445_v33 = vcombine.low %v1357_v2, %v1361_v5  ;;  %v16452_v27 = vcombine.high %v1364_v10, %v1368_v20  ;;  %v1392_v1 = vld [vmem:[%s24580_s2 + $0x1a60] sm:$0xff]  ;;  %v1389_v2 = vld [vmem:[%s24580_s2 + $0x1a48] sm:$0xff] }
 0x234   : > { %13742 = vmatprep.subr.bf16.mxu0 %v16422_v28  ;;  %v16454_v28 = vcombine.high %v1365_v25, %v1369_v0  ;;  %v1393_v5 = vld [vmem:[%s24580_s2 + $0x1a68] sm:$0xff] }
 0x236   : > { %13087 = vmatpush1.bf16.msra.mxu1 %v16419_v37  ;;  %v16451_v37 = vcombine.low %v1364_v10, %v1368_v20  ;;  %v1396_v10 = vld [vmem:[%s24580_s2 + $0x1a80] sm:$0xff] }
 0x237   : > { %13743 = vmatpush1.bf16.msra.mxu0 %v16421_v38  ;;  %13088 = vmatprep.subr.bf16.mxu1 %v16428_v40  ;;  %v16453_v38 = vcombine.low %v1365_v25, %v1369_v0  ;;  %v16460_v40 = vcombine.high %v1372_v31, %v1376_v4  ;;  %v1400_v20 = vld [vmem:[%s24580_s2 + $0x1aa0] sm:$0xff]  ;;  %v1397_v25 = vld [vmem:[%s24580_s2 + $0x1a88] sm:$0xff] }
 0x238   : > { %13744 = vmatprep.subr.bf16.mxu0 %v16430_v41  ;;  %v16462_v41 = vcombine.high %v1373_v62, %v1377_v34  ;;  %v1401_v0 = vld [vmem:[%s24580_s2 + $0x1aa8] sm:$0xff] }
 0x23a   : > { %13089 = vmatpush1.bf16.msra.mxu1 %v16427_v53  ;;  %v16459_v53 = vcombine.low %v1372_v31, %v1376_v4  ;;  %v1404_v31 = vld [vmem:[%s24580_s2 + $0x1ac0] sm:$0xff] }
 0x23b   : > { %13745 = vmatpush1.bf16.msra.mxu0 %v16429_v55  ;;  %13090 = vmatprep.subr.bf16.mxu1 %v16436_v56  ;;  %v16461_v55 = vcombine.low %v1373_v62, %v1377_v34  ;;  %v16468_v56 = vcombine.high %v1380_v44, %v1384_v47  ;;  %v1408_v4 = vld [vmem:[%s24580_s2 + $0x1ae0] sm:$0xff]  ;;  %v1405_v62 = vld [vmem:[%s24580_s2 + $0x1ac8] sm:$0xff] }
 0x23c   : > { %13746 = vmatprep.subr.bf16.mxu0 %v16438_v58  ;;  %v16470_v58 = vcombine.high %v1381_v48, %v1385_v49  ;;  %v1409_v34 = vld [vmem:[%s24580_s2 + $0x1ae8] sm:$0xff] }
 0x23e   : > { %13091 = vmatpush1.bf16.msra.mxu1 %v16435_v9  ;;  %v16467_v9 = vcombine.low %v1380_v44, %v1384_v47  ;;  %v1412_v44 = vld [vmem:[%s24580_s2 + $0x1b00] sm:$0xff] }
 0x23f   : > { %13747 = vmatpush1.bf16.msra.mxu0 %v16437_v19  ;;  %13092 = vmatprep.subr.bf16.mxu1 %v16444_v61  ;;  %v16469_v19 = vcombine.low %v1381_v48, %v1385_v49  ;;  %v16476_v61 = vcombine.high %v1388_v59, %v1392_v1  ;;  %v1416_v47 = vld [vmem:[%s24580_s2 + $0x1b20] sm:$0xff]  ;;  %v1413_v48 = vld [vmem:[%s24580_s2 + $0x1b08] sm:$0xff] }
 0x240   : > { %13748 = vmatprep.subr.bf16.mxu0 %v16446_v21  ;;  %v16478_v21 = vcombine.high %v1389_v2, %v1393_v5  ;;  %v1417_v49 = vld [vmem:[%s24580_s2 + $0x1b28] sm:$0xff] }
 0x242   : > { %13093 = vmatpush1.bf16.msra.mxu1 %v16443_v24  ;;  %v16475_v24 = vcombine.low %v1388_v59, %v1392_v1  ;;  %v1420_v59 = vld [vmem:[%s24580_s2 + $0x1b40] sm:$0xff] }
 0x243   : > { %13749 = vmatpush1.bf16.msra.mxu0 %v16445_v33  ;;  %13094 = vmatprep.subr.bf16.mxu1 %v16452_v27  ;;  %v16477_v33 = vcombine.low %v1389_v2, %v1393_v5  ;;  %v16484_v27 = vcombine.high %v1396_v10, %v1400_v20  ;;  %v1424_v1 = vld [vmem:[%s24580_s2 + $0x1b60] sm:$0xff]  ;;  %v1421_v2 = vld [vmem:[%s24580_s2 + $0x1b48] sm:$0xff] }
 0x244   : > { %13750 = vmatprep.subr.bf16.mxu0 %v16454_v28  ;;  %v16486_v28 = vcombine.high %v1397_v25, %v1401_v0  ;;  %v1425_v5 = vld [vmem:[%s24580_s2 + $0x1b68] sm:$0xff] }
 0x246   : > { %13095 = vmatpush1.bf16.msra.mxu1 %v16451_v37  ;;  %v16483_v37 = vcombine.low %v1396_v10, %v1400_v20  ;;  %v1428_v10 = vld [vmem:[%s24580_s2 + $0x1b80] sm:$0xff] }
 0x247   : > { %13751 = vmatpush1.bf16.msra.mxu0 %v16453_v38  ;;  %13096 = vmatprep.subr.bf16.mxu1 %v16460_v40  ;;  %v16485_v38 = vcombine.low %v1397_v25, %v1401_v0  ;;  %v16492_v40 = vcombine.high %v1404_v31, %v1408_v4  ;;  %v1432_v20 = vld [vmem:[%s24580_s2 + $0x1ba0] sm:$0xff]  ;;  %v1429_v25 = vld [vmem:[%s24580_s2 + $0x1b88] sm:$0xff] }
 0x248   : > { %13752 = vmatprep.subr.bf16.mxu0 %v16462_v41  ;;  %v16494_v41 = vcombine.high %v1405_v62, %v1409_v34  ;;  %v1433_v0 = vld [vmem:[%s24580_s2 + $0x1ba8] sm:$0xff] }
 0x24a   : > { %13097 = vmatpush1.bf16.msra.mxu1 %v16459_v53  ;;  %v16491_v53 = vcombine.low %v1404_v31, %v1408_v4  ;;  %v1436_v31 = vld [vmem:[%s24580_s2 + $0x1bc0] sm:$0xff] }
 0x24b   : > { %13753 = vmatpush1.bf16.msra.mxu0 %v16461_v55  ;;  %13098 = vmatprep.subr.bf16.mxu1 %v16468_v56  ;;  %v16493_v55 = vcombine.low %v1405_v62, %v1409_v34  ;;  %v16500_v56 = vcombine.high %v1412_v44, %v1416_v47  ;;  %v1440_v4 = vld [vmem:[%s24580_s2 + $0x1be0] sm:$0xff]  ;;  %v1437_v62 = vld [vmem:[%s24580_s2 + $0x1bc8] sm:$0xff] }
 0x24c   : > { %13754 = vmatprep.subr.bf16.mxu0 %v16470_v58  ;;  %v16502_v58 = vcombine.high %v1413_v48, %v1417_v49  ;;  %v1441_v34 = vld [vmem:[%s24580_s2 + $0x1be8] sm:$0xff] }
 0x24e   : > { %13099 = vmatpush1.bf16.msra.mxu1 %v16467_v9  ;;  %v16499_v9 = vcombine.low %v1412_v44, %v1416_v47  ;;  %v1444_v44 = vld [vmem:[%s24580_s2 + $0x1c00] sm:$0xff] }
 0x24f   : > { %13755 = vmatpush1.bf16.msra.mxu0 %v16469_v19  ;;  %13100 = vmatprep.subr.bf16.mxu1 %v16476_v61  ;;  %v16501_v19 = vcombine.low %v1413_v48, %v1417_v49  ;;  %v16508_v61 = vcombine.high %v1420_v59, %v1424_v1  ;;  %v1448_v47 = vld [vmem:[%s24580_s2 + $0x1c20] sm:$0xff]  ;;  %v1445_v48 = vld [vmem:[%s24580_s2 + $0x1c08] sm:$0xff] }
 0x250   : > { %13756 = vmatprep.subr.bf16.mxu0 %v16478_v21  ;;  %v16510_v21 = vcombine.high %v1421_v2, %v1425_v5  ;;  %v1449_v49 = vld [vmem:[%s24580_s2 + $0x1c28] sm:$0xff] }
 0x252   : > { %13101 = vmatpush1.bf16.msra.mxu1 %v16475_v24  ;;  %v16507_v24 = vcombine.low %v1420_v59, %v1424_v1  ;;  %v1452_v59 = vld [vmem:[%s24580_s2 + $0x1c40] sm:$0xff] }
 0x253   : > { %13757 = vmatpush1.bf16.msra.mxu0 %v16477_v33  ;;  %13102 = vmatprep.subr.bf16.mxu1 %v16484_v27  ;;  %v16509_v33 = vcombine.low %v1421_v2, %v1425_v5  ;;  %v16516_v27 = vcombine.high %v1428_v10, %v1432_v20  ;;  %v1456_v1 = vld [vmem:[%s24580_s2 + $0x1c60] sm:$0xff]  ;;  %v16531_v2 = vcombine.low %v1444_v44, %v1448_v47  ;;  %v1453_v5 = vld [vmem:[%s24580_s2 + $0x1c48] sm:$0xff] }
 0x254   : > { %13758 = vmatprep.subr.bf16.mxu0 %v16486_v28  ;;  %v16518_v28 = vcombine.high %v1429_v25, %v1433_v0 }
 0x256   : > { %13103 = vmatpush1.bf16.msra.mxu1 %v16483_v37  ;;  %v16515_v37 = vcombine.low %v1428_v10, %v1432_v20  ;;  %v1460_v10 = vld [vmem:[%s24580_s2 + $0x1c80] sm:$0xff] }
 0x257   : > { %13759 = vmatpush1.bf16.msra.mxu0 %v16485_v38  ;;  %13104 = vmatprep.subr.bf16.mxu1 %v16492_v40  ;;  %v16517_v38 = vcombine.low %v1429_v25, %v1433_v0  ;;  %v16524_v40 = vcombine.high %v1436_v31, %v1440_v4  ;;  %v1464_v20 = vld [vmem:[%s24580_s2 + $0x1ca0] sm:$0xff]  ;;  %v19606_v25 = vpack.c.bf16 %v18507_v45, %v18507_v45  ;;  %v1461_v0 = vld [vmem:[%s24580_s2 + $0x1c88] sm:$0xff] }
 0x258   : > { %13760 = vmatprep.subr.bf16.mxu0 %v16494_v41  ;;  %v16526_v41 = vcombine.high %v1437_v62, %v1441_v34 }
 0x25a   : > { %13105 = vmatpush1.bf16.msra.mxu1 %v16491_v53  ;;  %v16523_v53 = vcombine.low %v1436_v31, %v1440_v4  ;;  %v1468_v31 = vld [vmem:[%s24580_s2 + $0x1cc0] sm:$0xff] }
 0x25b   : > { %13761 = vmatpush1.bf16.msra.mxu0 %v16493_v55  ;;  %13106 = vmatprep.subr.bf16.mxu1 %v16500_v56  ;;  %v16525_v55 = vcombine.low %v1437_v62, %v1441_v34  ;;  %v16532_v56 = vcombine.high %v1444_v44, %v1448_v47  ;;  %v1472_v4 = vld [vmem:[%s24580_s2 + $0x1ce0] sm:$0xff]  ;;  %v1469_v62 = vld [vmem:[%s24580_s2 + $0x1cc8] sm:$0xff] }
 0x25c   : > { %13762 = vmatprep.subr.bf16.mxu0 %v16502_v58  ;;  %v16534_v58 = vcombine.high %v1445_v48, %v1449_v49  ;;  %v1473_v34 = vld [vmem:[%s24580_s2 + $0x1ce8] sm:$0xff]  ;;  %v1476_v44 = vld [vmem:[%s24580_s2 + $0x1d00] sm:$0xff] }
 0x25d   : > { %v1480_v47 = vld [vmem:[%s24580_s2 + $0x1d20] sm:$0xff] }
 0x25e   : > { %13107 = vmatpush1.bf16.msra.mxu1 %v16499_v9  ;;  %v1457_v9 = vld [vmem:[%s24580_s2 + $0x1c68] sm:$0xff] }
 0x25f   : > { %13763 = vmatpush1.bf16.msra.mxu0 %v16501_v19  ;;  %13108 = vmatprep.subr.bf16.mxu1 %v16508_v61  ;;  %v19596_v19 = vpack.c.bf16 %v18486_v29, %v18486_v29  ;;  %v16533_v61 = vcombine.low %v1445_v48, %v1449_v49  ;;  %v16542_v29 = vcombine.high %v1453_v5, %v1457_v9  ;;  %v1477_v48 = vld [vmem:[%s24580_s2 + $0x1d08] sm:$0xff] }
 0x260   : > { %13764 = vmatprep.subr.bf16.mxu0 %v16510_v21  ;;  %v16540_v21 = vcombine.high %v1452_v59, %v1456_v1  ;;  %v16541_v45 = vcombine.low %v1453_v5, %v1457_v9  ;;  %v1481_v49 = vld [vmem:[%s24580_s2 + $0x1d28] sm:$0xff]  ;;  %v16563_v9 = vcombine.low %v1476_v44, %v1480_v47 }
 0x261   : > { %v1489_v5 = vld [vmem:[%s24580_s2 + $0x1d68] sm:$0xff] }
 0x262   : > { %13109 = vmatpush1.bf16.msra.mxu1 %v16507_v24  ;;  %v1465_v24 = vld [vmem:[%s24580_s2 + $0x1ca8] sm:$0xff] }
 0x263   : > { %13765 = vmatpush1.bf16.msra.mxu0 %v16509_v33  ;;  %13110 = vmatprep.subr.bf16.mxu1 %v16516_v27  ;;  %v16539_v33 = vcombine.low %v1452_v59, %v1456_v1  ;;  %v16548_v27 = vcombine.high %v1460_v10, %v1464_v20  ;;  %v1484_v59 = vld [vmem:[%s24580_s2 + $0x1d40] sm:$0xff] }
 0x264   : > { %13766 = vmatprep.subr.bf16.mxu0 %v16518_v28  ;;  %v16550_v28 = vcombine.high %v1461_v0, %v1465_v24  ;;  %v1488_v1 = vld [vmem:[%s24580_s2 + $0x1d60] sm:$0xff] }
 0x266   : > { %13111 = vmatpush1.bf16.msra.mxu1 %v16515_v37  ;;  %v16547_v37 = vcombine.low %v1460_v10, %v1464_v20  ;;  %v1492_v20 = vld [vmem:[%s24580_s2 + $0x1d80] sm:$0xff] }
 0x267   : > { %13767 = vmatpush1.bf16.msra.mxu0 %v16517_v38  ;;  %13112 = vmatprep.subr.bf16.mxu1 %v16524_v40  ;;  %v16549_v38 = vcombine.low %v1461_v0, %v1465_v24  ;;  %v16556_v40 = vcombine.high %v1468_v31, %v1472_v4  ;;  %v1493_v0 = vld [vmem:[%s24580_s2 + $0x1d88] sm:$0xff] }
 0x268   : > { %13768 = vmatprep.subr.bf16.mxu0 %v16526_v41  ;;  %v16558_v41 = vcombine.high %v1469_v62, %v1473_v34  ;;  %v1497_v24 = vld [vmem:[%s24580_s2 + $0x1da8] sm:$0xff] }
 0x26a   : > { %13113 = vmatpush1.bf16.msra.mxu1 %v16523_v53  ;;  %v16555_v53 = vcombine.low %v1468_v31, %v1472_v4  ;;  %v1500_v31 = vld [vmem:[%s24580_s2 + $0x1dc0] sm:$0xff] }
 0x26b   : > { %13769 = vmatpush1.bf16.msra.mxu0 %v16525_v55  ;;  %13123 = vmatprep.subr.bf16.mxu1 %v16532_v56  ;;  %v16557_v55 = vcombine.low %v1469_v62, %v1473_v34  ;;  %v16564_v56 = vcombine.high %v1476_v44, %v1480_v47  ;;  %v1504_v4 = vld [vmem:[%s24580_s2 + $0x1de0] sm:$0xff]  ;;  %v1501_v62 = vld [vmem:[%s24580_s2 + $0x1dc8] sm:$0xff] }
 0x26c   : > { %13779 = vmatprep.subr.bf16.mxu0 %v16534_v58  ;;  %v16566_v58 = vcombine.high %v1477_v48, %v1481_v49  ;;  %v1505_v34 = vld [vmem:[%s24580_s2 + $0x1de8] sm:$0xff]  ;;  %v1508_v44 = vld [vmem:[%s24580_s2 + $0x1e00] sm:$0xff] }
 0x26d   : > { %13115 = vmatmul.mubr.bf16.vlgmr.msra.gmra.mrb[0].mxu1 %v19596_v19  ;;  %v1512_v47 = vld [vmem:[%s24580_s2 + $0x1e20] sm:$0xff] }
 0x26e   : > { %13771 = vmatmul.mubr.bf16.vlgmr.msra.gmra.mrb[32].mxu0 %v19596_v19  ;;  %13124 = vmatpush1.bf16.msra.mxu1 %v16531_v2  ;;  %v1485_v2 = vld [vmem:[%s24580_s2 + $0x1d48] sm:$0xff] }
 0x26f   : > { %13155 = vmatprep.mubr.bf16.mxu1 %v19606_v25  ;;  %13780 = vmatpush1.bf16.msra.mxu0 %v16533_v61  ;;  %v16565_v61 = vcombine.low %v1477_v48, %v1481_v49  ;;  %v16574_v10 = vcombine.high %v1485_v2, %v1489_v5  ;;  %v1509_v48 = vld [vmem:[%s24580_s2 + $0x1e08] sm:$0xff] }
 0x270   : > { %13811 = vmatprep.mubr.bf16.mxu0 %v19606_v25  ;;  %13125 = vmatprep.subr.bf16.mxu1 %v16540_v21  ;;  %v16572_v21 = vcombine.high %v1484_v59, %v1488_v1  ;;  %v1513_v49 = vld [vmem:[%s24580_s2 + $0x1e28] sm:$0xff] }
 0x271   : > { %13781 = vmatprep.subr.bf16.mxu0 %v16542_v29  ;;  %v1496_v29 = vld [vmem:[%s24580_s2 + $0x1da0] sm:$0xff] }
 0x272   : > { %13126 = vmatpush1.bf16.msra.mxu1 %v16539_v33  ;;  %v16571_v33 = vcombine.low %v1484_v59, %v1488_v1  ;;  %v1516_v59 = vld [vmem:[%s24580_s2 + $0x1e40] sm:$0xff] }
 0x273   : > { %13782 = vmatpush1.bf16.msra.mxu0 %v16541_v45  ;;  %13127 = vmatprep.subr.bf16.mxu1 %v16548_v27  ;;  %v16573_v45 = vcombine.low %v1485_v2, %v1489_v5  ;;  %v16580_v27 = vcombine.high %v1492_v20, %v1496_v29  ;;  %v1520_v1 = vld [vmem:[%s24580_s2 + $0x1e60] sm:$0xff]  ;;  %v1517_v2 = vld [vmem:[%s24580_s2 + $0x1e48] sm:$0xff] }
 0x274   : > { %13783 = vmatprep.subr.bf16.mxu0 %v16550_v28  ;;  %v16582_v28 = vcombine.high %v1493_v0, %v1497_v24  ;;  %v1521_v5 = vld [vmem:[%s24580_s2 + $0x1e68] sm:$0xff] }
 0x276   : > { %13128 = vmatpush1.bf16.msra.mxu1 %v16547_v37  ;;  %v16579_v37 = vcombine.low %v1492_v20, %v1496_v29  ;;  %v1524_v20 = vld [vmem:[%s24580_s2 + $0x1e80] sm:$0xff] }
 0x277   : > { %13784 = vmatpush1.bf16.msra.mxu0 %v16549_v38  ;;  %13129 = vmatprep.subr.bf16.mxu1 %v16556_v40  ;;  %v16581_v38 = vcombine.low %v1493_v0, %v1497_v24  ;;  %v16588_v40 = vcombine.high %v1500_v31, %v1504_v4  ;;  %v1528_v29 = vld [vmem:[%s24580_s2 + $0x1ea0] sm:$0xff]  ;;  %v1525_v0 = vld [vmem:[%s24580_s2 + $0x1e88] sm:$0xff] }
 0x278   : > { %13785 = vmatprep.subr.bf16.mxu0 %v16558_v41  ;;  %v16590_v41 = vcombine.high %v1501_v62, %v1505_v34  ;;  %v1529_v24 = vld [vmem:[%s24580_s2 + $0x1ea8] sm:$0xff] }
 0x27a   : > { %13130 = vmatpush1.bf16.msra.mxu1 %v16555_v53  ;;  %v16587_v53 = vcombine.low %v1500_v31, %v1504_v4  ;;  %v1532_v31 = vld [vmem:[%s24580_s2 + $0x1ec0] sm:$0xff] }
 0x27b   : > { %13786 = vmatpush1.bf16.msra.mxu0 %v16557_v55  ;;  %13131 = vmatprep.subr.bf16.mxu1 %v16564_v56  ;;  %v16589_v55 = vcombine.low %v1501_v62, %v1505_v34  ;;  %v16596_v56 = vcombine.high %v1508_v44, %v1512_v47  ;;  %v1536_v4 = vld [vmem:[%s24580_s2 + $0x1ee0] sm:$0xff]  ;;  %v1533_v62 = vld [vmem:[%s24580_s2 + $0x1ec8] sm:$0xff] }
 0x27c   : > { %13787 = vmatprep.subr.bf16.mxu0 %v16566_v58  ;;  %v16598_v58 = vcombine.high %v1509_v48, %v1513_v49  ;;  %v1537_v34 = vld [vmem:[%s24580_s2 + $0x1ee8] sm:$0xff] }
 0x27e   : > { %13132 = vmatpush1.bf16.msra.mxu1 %v16563_v9  ;;  %v16595_v9 = vcombine.low %v1508_v44, %v1512_v47  ;;  %v1540_v44 = vld [vmem:[%s24580_s2 + $0x1f00] sm:$0xff] }
 0x27f   : > { %13788 = vmatpush1.bf16.msra.mxu0 %v16565_v61  ;;  %13133 = vmatprep.subr.bf16.mxu1 %v16572_v21  ;;  %v16597_v61 = vcombine.low %v1509_v48, %v1513_v49  ;;  %v16604_v21 = vcombine.high %v1516_v59, %v1520_v1  ;;  %v1544_v47 = vld [vmem:[%s24580_s2 + $0x1f20] sm:$0xff]  ;;  %v1541_v48 = vld [vmem:[%s24580_s2 + $0x1f08] sm:$0xff] }
 0x280   : > { %13789 = vmatprep.subr.bf16.mxu0 %v16574_v10  ;;  %v16606_v10 = vcombine.high %v1517_v2, %v1521_v5  ;;  %v1545_v49 = vld [vmem:[%s24580_s2 + $0x1f28] sm:$0xff] }
 0x282   : > { %13134 = vmatpush1.bf16.msra.mxu1 %v16571_v33  ;;  %v16603_v33 = vcombine.low %v1516_v59, %v1520_v1  ;;  %v1548_v59 = vld [vmem:[%s24580_s2 + $0x1f40] sm:$0xff] }
 0x283   : > { %13790 = vmatpush1.bf16.msra.mxu0 %v16573_v45  ;;  %13135 = vmatprep.subr.bf16.mxu1 %v16580_v27  ;;  %v16605_v45 = vcombine.low %v1517_v2, %v1521_v5  ;;  %v16612_v27 = vcombine.high %v1524_v20, %v1528_v29  ;;  %v1552_v1 = vld [vmem:[%s24580_s2 + $0x1f60] sm:$0xff]  ;;  %v1549_v2 = vld [vmem:[%s24580_s2 + $0x1f48] sm:$0xff] }
 0x284   : > { %13791 = vmatprep.subr.bf16.mxu0 %v16582_v28  ;;  %v16614_v28 = vcombine.high %v1525_v0, %v1529_v24  ;;  %v1553_v5 = vld [vmem:[%s24580_s2 + $0x1f68] sm:$0xff] }
 0x286   : > { %13136 = vmatpush1.bf16.msra.mxu1 %v16579_v37  ;;  %v16611_v37 = vcombine.low %v1524_v20, %v1528_v29  ;;  %v1556_v20 = vld [vmem:[%s24580_s2 + $0x1f80] sm:$0xff] }
 0x287   : > { %13792 = vmatpush1.bf16.msra.mxu0 %v16581_v38  ;;  %13137 = vmatprep.subr.bf16.mxu1 %v16588_v40  ;;  %v16613_v38 = vcombine.low %v1525_v0, %v1529_v24  ;;  %v16620_v40 = vcombine.high %v1532_v31, %v1536_v4  ;;  %v1560_v29 = vld [vmem:[%s24580_s2 + $0x1fa0] sm:$0xff]  ;;  %v1557_v0 = vld [vmem:[%s24580_s2 + $0x1f88] sm:$0xff] }
 0x288   : > { %13793 = vmatprep.subr.bf16.mxu0 %v16590_v41  ;;  %v16622_v41 = vcombine.high %v1533_v62, %v1537_v34  ;;  %v1561_v24 = vld [vmem:[%s24580_s2 + $0x1fa8] sm:$0xff] }
 0x28a   : > { %13138 = vmatpush1.bf16.msra.mxu1 %v16587_v53  ;;  %v16619_v53 = vcombine.low %v1532_v31, %v1536_v4  ;;  %v1564_v31 = vld [vmem:[%s24580_s2 + $0x1fc0] sm:$0xff] }
 0x28b   : > { %13794 = vmatpush1.bf16.msra.mxu0 %v16589_v55  ;;  %13139 = vmatprep.subr.bf16.mxu1 %v16596_v56  ;;  %v16621_v55 = vcombine.low %v1533_v62, %v1537_v34  ;;  %v16628_v56 = vcombine.high %v1540_v44, %v1544_v47  ;;  %v1568_v4 = vld [vmem:[%s24580_s2 + $0x1fe0] sm:$0xff]  ;;  %v1565_v62 = vld [vmem:[%s24580_s2 + $0x1fc8] sm:$0xff] }
 0x28c   : > { %13795 = vmatprep.subr.bf16.mxu0 %v16598_v58  ;;  %v16630_v58 = vcombine.high %v1541_v48, %v1545_v49  ;;  %v1569_v34 = vld [vmem:[%s24580_s2 + $0x1fe8] sm:$0xff] }
 0x28e   : > { %13140 = vmatpush1.bf16.msra.mxu1 %v16595_v9  ;;  %v16627_v9 = vcombine.low %v1540_v44, %v1544_v47  ;;  %v1572_v44 = vld [vmem:[%s24580_s2 + $0x2000] sm:$0xff] }
 0x28f   : > { %13796 = vmatpush1.bf16.msra.mxu0 %v16597_v61  ;;  %13141 = vmatprep.subr.bf16.mxu1 %v16604_v21  ;;  %v16629_v61 = vcombine.low %v1541_v48, %v1545_v49  ;;  %v16636_v21 = vcombine.high %v1548_v59, %v1552_v1  ;;  %v1576_v47 = vld [vmem:[%s24580_s2 + $0x2020] sm:$0xff]  ;;  %v1573_v48 = vld [vmem:[%s24580_s2 + $0x2008] sm:$0xff] }
 0x290   : > { %13797 = vmatprep.subr.bf16.mxu0 %v16606_v10  ;;  %v16638_v10 = vcombine.high %v1549_v2, %v1553_v5  ;;  %v1577_v49 = vld [vmem:[%s24580_s2 + $0x2028] sm:$0xff] }
 0x292   : > { %13142 = vmatpush1.bf16.msra.mxu1 %v16603_v33  ;;  %v16635_v33 = vcombine.low %v1548_v59, %v1552_v1  ;;  %v1580_v59 = vld [vmem:[%s24580_s2 + $0x2040] sm:$0xff] }
 0x293   : > { %13798 = vmatpush1.bf16.msra.mxu0 %v16605_v45  ;;  %13143 = vmatprep.subr.bf16.mxu1 %v16612_v27  ;;  %v16637_v45 = vcombine.low %v1549_v2, %v1553_v5  ;;  %v16644_v27 = vcombine.high %v1556_v20, %v1560_v29  ;;  %v1584_v1 = vld [vmem:[%s24580_s2 + $0x2060] sm:$0xff]  ;;  %v16659_v2 = vcombine.low %v1572_v44, %v1576_v47  ;;  %v1581_v5 = vld [vmem:[%s24580_s2 + $0x2048] sm:$0xff] }
 0x294   : > { %13799 = vmatprep.subr.bf16.mxu0 %v16614_v28  ;;  %v16646_v28 = vcombine.high %v1557_v0, %v1561_v24 }
 0x296   : > { %13144 = vmatpush1.bf16.msra.mxu1 %v16611_v37  ;;  %v16643_v37 = vcombine.low %v1556_v20, %v1560_v29  ;;  %v1588_v20 = vld [vmem:[%s24580_s2 + $0x2080] sm:$0xff] }
 0x297   : > { %13800 = vmatpush1.bf16.msra.mxu0 %v16613_v38  ;;  %13145 = vmatprep.subr.bf16.mxu1 %v16620_v40  ;;  %v16645_v38 = vcombine.low %v1557_v0, %v1561_v24  ;;  %v16652_v40 = vcombine.high %v1564_v31, %v1568_v4  ;;  %v1592_v29 = vld [vmem:[%s24580_s2 + $0x20a0] sm:$0xff]  ;;  %v19810_v0 = vpack.c.bf16 %v18523_v57, %v18523_v57  ;;  %v1589_v24 = vld [vmem:[%s24580_s2 + $0x2088] sm:$0xff] }
 0x298   : > { %13801 = vmatprep.subr.bf16.mxu0 %v16622_v41  ;;  %v16654_v41 = vcombine.high %v1565_v62, %v1569_v34 }
 0x29a   : > { %13146 = vmatpush1.bf16.msra.mxu1 %v16619_v53  ;;  %v16651_v53 = vcombine.low %v1564_v31, %v1568_v4  ;;  %v1596_v31 = vld [vmem:[%s24580_s2 + $0x20c0] sm:$0xff] }
 0x29b   : > { %13802 = vmatpush1.bf16.msra.mxu0 %v16621_v55  ;;  %13147 = vmatprep.subr.bf16.mxu1 %v16628_v56  ;;  %v16653_v55 = vcombine.low %v1565_v62, %v1569_v34  ;;  %v16660_v56 = vcombine.high %v1572_v44, %v1576_v47  ;;  %v1600_v4 = vld [vmem:[%s24580_s2 + $0x20e0] sm:$0xff]  ;;  %v1597_v62 = vld [vmem:[%s24580_s2 + $0x20c8] sm:$0xff] }
 0x29c   : > { %13803 = vmatprep.subr.bf16.mxu0 %v16630_v58  ;;  %v16662_v58 = vcombine.high %v1573_v48, %v1577_v49  ;;  %v1601_v34 = vld [vmem:[%s24580_s2 + $0x20e8] sm:$0xff]  ;;  %v1604_v44 = vld [vmem:[%s24580_s2 + $0x2100] sm:$0xff] }
 0x29d   : > { %v1608_v47 = vld [vmem:[%s24580_s2 + $0x2120] sm:$0xff] }
 0x29e   : > { %13148 = vmatpush1.bf16.msra.mxu1 %v16627_v9  ;;  %v1585_v9 = vld [vmem:[%s24580_s2 + $0x2068] sm:$0xff] }
 0x29f   : > { %13804 = vmatpush1.bf16.msra.mxu0 %v16629_v61  ;;  %13149 = vmatprep.subr.bf16.mxu1 %v16636_v21  ;;  %v19800_v61 = vpack.c.bf16 %v18502_v39, %v18502_v39  ;;  %v16661_v21 = vcombine.low %v1573_v48, %v1577_v49  ;;  %v16670_v39 = vcombine.high %v1581_v5, %v1585_v9  ;;  %v1605_v48 = vld [vmem:[%s24580_s2 + $0x2108] sm:$0xff] }
 0x2a0   : > { %13805 = vmatprep.subr.bf16.mxu0 %v16638_v10  ;;  %v16668_v10 = vcombine.high %v1580_v59, %v1584_v1  ;;  %v16669_v57 = vcombine.low %v1581_v5, %v1585_v9  ;;  %v1609_v49 = vld [vmem:[%s24580_s2 + $0x2128] sm:$0xff]  ;;  %v16691_v9 = vcombine.low %v1604_v44, %v1608_v47 }
 0x2a1   : > { %v1617_v5 = vld [vmem:[%s24580_s2 + $0x2168] sm:$0xff] }
 0x2a2   : > { %13150 = vmatpush1.bf16.msra.mxu1 %v16635_v33  ;;  %v1593_v33 = vld [vmem:[%s24580_s2 + $0x20a8] sm:$0xff] }
 0x2a3   : > { %13806 = vmatpush1.bf16.msra.mxu0 %v16637_v45  ;;  %13151 = vmatprep.subr.bf16.mxu1 %v16644_v27  ;;  %v16667_v45 = vcombine.low %v1580_v59, %v1584_v1  ;;  %v16676_v27 = vcombine.high %v1588_v20, %v1592_v29  ;;  %v1612_v59 = vld [vmem:[%s24580_s2 + $0x2140] sm:$0xff] }
 0x2a4   : > { %13807 = vmatprep.subr.bf16.mxu0 %v16646_v28  ;;  %v16678_v28 = vcombine.high %v1589_v24, %v1593_v33  ;;  %v1616_v1 = vld [vmem:[%s24580_s2 + $0x2160] sm:$0xff] }
 0x2a6   : > { %13152 = vmatpush1.bf16.msra.mxu1 %v16643_v37  ;;  %v16675_v37 = vcombine.low %v1588_v20, %v1592_v29  ;;  %v1620_v29 = vld [vmem:[%s24580_s2 + $0x2180] sm:$0xff] }
 0x2a7   : > { %13808 = vmatpush1.bf16.msra.mxu0 %v16645_v38  ;;  %13153 = vmatprep.subr.bf16.mxu1 %v16652_v40  ;;  %v16677_v38 = vcombine.low %v1589_v24, %v1593_v33  ;;  %v16684_v40 = vcombine.high %v1596_v31, %v1600_v4  ;;  %v1621_v24 = vld [vmem:[%s24580_s2 + $0x2188] sm:$0xff] }
 0x2a8   : > { %13809 = vmatprep.subr.bf16.mxu0 %v16654_v41  ;;  %v16686_v41 = vcombine.high %v1597_v62, %v1601_v34  ;;  %v1625_v33 = vld [vmem:[%s24580_s2 + $0x21a8] sm:$0xff] }
 0x2aa   : > { %13154 = vmatpush1.bf16.msra.mxu1 %v16651_v53  ;;  %v16683_v53 = vcombine.low %v1596_v31, %v1600_v4  ;;  %v1628_v31 = vld [vmem:[%s24580_s2 + $0x21c0] sm:$0xff] }
 0x2ab   : > { %13810 = vmatpush1.bf16.msra.mxu0 %v16653_v55  ;;  %13164 = vmatprep.subr.bf16.mxu1 %v16660_v56  ;;  %v16685_v55 = vcombine.low %v1597_v62, %v1601_v34  ;;  %v16692_v56 = vcombine.high %v1604_v44, %v1608_v47  ;;  %v1632_v4 = vld [vmem:[%s24580_s2 + $0x21e0] sm:$0xff]  ;;  %v1629_v62 = vld [vmem:[%s24580_s2 + $0x21c8] sm:$0xff] }
 0x2ac   : > { %13820 = vmatprep.subr.bf16.mxu0 %v16662_v58  ;;  %v16694_v58 = vcombine.high %v1605_v48, %v1609_v49  ;;  %v1633_v34 = vld [vmem:[%s24580_s2 + $0x21e8] sm:$0xff]  ;;  %v1636_v44 = vld [vmem:[%s24580_s2 + $0x2200] sm:$0xff] }
 0x2ad   : > { %13156 = vmatmul.mubr.bf16.vlgmr.msra.gmra.mrb[0].mxu1 %v19800_v61  ;;  %v1640_v47 = vld [vmem:[%s24580_s2 + $0x2220] sm:$0xff] }
 0x2ae   : > { %13812 = vmatmul.mubr.bf16.vlgmr.msra.gmra.mrb[32].mxu0 %v19800_v61  ;;  %13165 = vmatpush1.bf16.msra.mxu1 %v16659_v2  ;;  %v1613_v2 = vld [vmem:[%s24580_s2 + $0x2148] sm:$0xff] }
 0x2af   : > { %13196 = vmatprep.mubr.bf16.mxu1 %v19810_v0  ;;  %13821 = vmatpush1.bf16.msra.mxu0 %v16661_v21  ;;  %v16693_v21 = vcombine.low %v1605_v48, %v1609_v49  ;;  %v16702_v20 = vcombine.high %v1613_v2, %v1617_v5  ;;  %v1637_v48 = vld [vmem:[%s24580_s2 + $0x2208] sm:$0xff] }
 0x2b0   : > { %13852 = vmatprep.mubr.bf16.mxu0 %v19810_v0  ;;  %13166 = vmatprep.subr.bf16.mxu1 %v16668_v10  ;;  %v16700_v10 = vcombine.high %v1612_v59, %v1616_v1  ;;  %v1641_v49 = vld [vmem:[%s24580_s2 + $0x2228] sm:$0xff] }
 0x2b1   : > { %13822 = vmatprep.subr.bf16.mxu0 %v16670_v39  ;;  %v1624_v39 = vld [vmem:[%s24580_s2 + $0x21a0] sm:$0xff] }
 0x2b2   : > { %13167 = vmatpush1.bf16.msra.mxu1 %v16667_v45  ;;  %v16699_v45 = vcombine.low %v1612_v59, %v1616_v1  ;;  %v1644_v59 = vld [vmem:[%s24580_s2 + $0x2240] sm:$0xff] }
 0x2b3   : > { %13823 = vmatpush1.bf16.msra.mxu0 %v16669_v57  ;;  %13168 = vmatprep.subr.bf16.mxu1 %v16676_v27  ;;  %v16701_v57 = vcombine.low %v1613_v2, %v1617_v5  ;;  %v16708_v27 = vcombine.high %v1620_v29, %v1624_v39  ;;  %v1648_v1 = vld [vmem:[%s24580_s2 + $0x2260] sm:$0xff]  ;;  %v1645_v2 = vld [vmem:[%s24580_s2 + $0x2248] sm:$0xff] }
 0x2b4   : > { %13824 = vmatprep.subr.bf16.mxu0 %v16678_v28  ;;  %v16710_v28 = vcombine.high %v1621_v24, %v1625_v33  ;;  %v1649_v5 = vld [vmem:[%s24580_s2 + $0x2268] sm:$0xff] }
 0x2b6   : > { %13169 = vmatpush1.bf16.msra.mxu1 %v16675_v37  ;;  %v16707_v37 = vcombine.low %v1620_v29, %v1624_v39  ;;  %v1652_v29 = vld [vmem:[%s24580_s2 + $0x2280] sm:$0xff] }
 0x2b7   : > { %13825 = vmatpush1.bf16.msra.mxu0 %v16677_v38  ;;  %13170 = vmatprep.subr.bf16.mxu1 %v16684_v40  ;;  %v16709_v38 = vcombine.low %v1621_v24, %v1625_v33  ;;  %v16716_v40 = vcombine.high %v1628_v31, %v1632_v4  ;;  %v1656_v39 = vld [vmem:[%s24580_s2 + $0x22a0] sm:$0xff]  ;;  %v1653_v24 = vld [vmem:[%s24580_s2 + $0x2288] sm:$0xff] }
 0x2b8   : > { %13826 = vmatprep.subr.bf16.mxu0 %v16686_v41  ;;  %v16718_v41 = vcombine.high %v1629_v62, %v1633_v34  ;;  %v1657_v33 = vld [vmem:[%s24580_s2 + $0x22a8] sm:$0xff] }
 0x2ba   : > { %13171 = vmatpush1.bf16.msra.mxu1 %v16683_v53  ;;  %v16715_v53 = vcombine.low %v1628_v31, %v1632_v4  ;;  %v1660_v31 = vld [vmem:[%s24580_s2 + $0x22c0] sm:$0xff] }
 0x2bb   : > { %13827 = vmatpush1.bf16.msra.mxu0 %v16685_v55  ;;  %13172 = vmatprep.subr.bf16.mxu1 %v16692_v56  ;;  %v16717_v55 = vcombine.low %v1629_v62, %v1633_v34  ;;  %v16724_v56 = vcombine.high %v1636_v44, %v1640_v47  ;;  %v1664_v4 = vld [vmem:[%s24580_s2 + $0x22e0] sm:$0xff]  ;;  %v1661_v62 = vld [vmem:[%s24580_s2 + $0x22c8] sm:$0xff] }
 0x2bc   : > { %13828 = vmatprep.subr.bf16.mxu0 %v16694_v58  ;;  %v16726_v58 = vcombine.high %v1637_v48, %v1641_v49  ;;  %v1665_v34 = vld [vmem:[%s24580_s2 + $0x22e8] sm:$0xff] }
 0x2be   : > { %13173 = vmatpush1.bf16.msra.mxu1 %v16691_v9  ;;  %v16723_v9 = vcombine.low %v1636_v44, %v1640_v47  ;;  %v1668_v44 = vld [vmem:[%s24580_s2 + $0x2300] sm:$0xff] }
 0x2bf   : > { %13829 = vmatpush1.bf16.msra.mxu0 %v16693_v21  ;;  %13174 = vmatprep.subr.bf16.mxu1 %v16700_v10  ;;  %v16725_v21 = vcombine.low %v1637_v48, %v1641_v49  ;;  %v16732_v10 = vcombine.high %v1644_v59, %v1648_v1  ;;  %v1672_v47 = vld [vmem:[%s24580_s2 + $0x2320] sm:$0xff]  ;;  %v1669_v48 = vld [vmem:[%s24580_s2 + $0x2308] sm:$0xff] }
 0x2c0   : > { %13830 = vmatprep.subr.bf16.mxu0 %v16702_v20  ;;  %v16734_v20 = vcombine.high %v1645_v2, %v1649_v5  ;;  %v1673_v49 = vld [vmem:[%s24580_s2 + $0x2328] sm:$0xff] }
 0x2c2   : > { %13175 = vmatpush1.bf16.msra.mxu1 %v16699_v45  ;;  %v16731_v45 = vcombine.low %v1644_v59, %v1648_v1  ;;  %v1676_v59 = vld [vmem:[%s24580_s2 + $0x2340] sm:$0xff] }
 0x2c3   : > { %13831 = vmatpush1.bf16.msra.mxu0 %v16701_v57  ;;  %13176 = vmatprep.subr.bf16.mxu1 %v16708_v27  ;;  %v16733_v57 = vcombine.low %v1645_v2, %v1649_v5  ;;  %v16740_v27 = vcombine.high %v1652_v29, %v1656_v39  ;;  %v1680_v1 = vld [vmem:[%s24580_s2 + $0x2360] sm:$0xff]  ;;  %v1677_v2 = vld [vmem:[%s24580_s2 + $0x2348] sm:$0xff] }
 0x2c4   : > { %13832 = vmatprep.subr.bf16.mxu0 %v16710_v28  ;;  %v16742_v28 = vcombine.high %v1653_v24, %v1657_v33  ;;  %v1681_v5 = vld [vmem:[%s24580_s2 + $0x2368] sm:$0xff] }
 0x2c6   : > { %13177 = vmatpush1.bf16.msra.mxu1 %v16707_v37  ;;  %v16739_v37 = vcombine.low %v1652_v29, %v1656_v39  ;;  %v1684_v29 = vld [vmem:[%s24580_s2 + $0x2380] sm:$0xff] }
 0x2c7   : > { %13833 = vmatpush1.bf16.msra.mxu0 %v16709_v38  ;;  %13178 = vmatprep.subr.bf16.mxu1 %v16716_v40  ;;  %v16741_v38 = vcombine.low %v1653_v24, %v1657_v33  ;;  %v16748_v40 = vcombine.high %v1660_v31, %v1664_v4  ;;  %v1688_v39 = vld [vmem:[%s24580_s2 + $0x23a0] sm:$0xff]  ;;  %v1685_v24 = vld [vmem:[%s24580_s2 + $0x2388] sm:$0xff] }
 0x2c8   : > { %13834 = vmatprep.subr.bf16.mxu0 %v16718_v41  ;;  %v16750_v41 = vcombine.high %v1661_v62, %v1665_v34  ;;  %v1689_v33 = vld [vmem:[%s24580_s2 + $0x23a8] sm:$0xff] }
 0x2ca   : > { %13179 = vmatpush1.bf16.msra.mxu1 %v16715_v53  ;;  %v16747_v53 = vcombine.low %v1660_v31, %v1664_v4  ;;  %v1692_v31 = vld [vmem:[%s24580_s2 + $0x23c0] sm:$0xff] }
 0x2cb   : > { %13835 = vmatpush1.bf16.msra.mxu0 %v16717_v55  ;;  %13180 = vmatprep.subr.bf16.mxu1 %v16724_v56  ;;  %v16749_v55 = vcombine.low %v1661_v62, %v1665_v34  ;;  %v16756_v56 = vcombine.high %v1668_v44, %v1672_v47  ;;  %v1696_v4 = vld [vmem:[%s24580_s2 + $0x23e0] sm:$0xff]  ;;  %v1693_v62 = vld [vmem:[%s24580_s2 + $0x23c8] sm:$0xff] }
 0x2cc   : > { %13836 = vmatprep.subr.bf16.mxu0 %v16726_v58  ;;  %v16758_v58 = vcombine.high %v1669_v48, %v1673_v49  ;;  %v1697_v34 = vld [vmem:[%s24580_s2 + $0x23e8] sm:$0xff] }
 0x2ce   : > { %13181 = vmatpush1.bf16.msra.mxu1 %v16723_v9  ;;  %v16755_v9 = vcombine.low %v1668_v44, %v1672_v47  ;;  %v1700_v44 = vld [vmem:[%s24580_s2 + $0x2400] sm:$0xff] }
 0x2cf   : > { %13837 = vmatpush1.bf16.msra.mxu0 %v16725_v21  ;;  %13182 = vmatprep.subr.bf16.mxu1 %v16732_v10  ;;  %v16757_v21 = vcombine.low %v1669_v48, %v1673_v49  ;;  %v16764_v10 = vcombine.high %v1676_v59, %v1680_v1  ;;  %v1704_v47 = vld [vmem:[%s24580_s2 + $0x2420] sm:$0xff]  ;;  %v1701_v48 = vld [vmem:[%s24580_s2 + $0x2408] sm:$0xff] }
 0x2d0   : > { %13838 = vmatprep.subr.bf16.mxu0 %v16734_v20  ;;  %v16766_v20 = vcombine.high %v1677_v2, %v1681_v5  ;;  %v1705_v49 = vld [vmem:[%s24580_s2 + $0x2428] sm:$0xff] }
 0x2d2   : > { %13183 = vmatpush1.bf16.msra.mxu1 %v16731_v45  ;;  %v16763_v45 = vcombine.low %v1676_v59, %v1680_v1  ;;  %v1708_v59 = vld [vmem:[%s24580_s2 + $0x2440] sm:$0xff] }
 0x2d3   : > { %13839 = vmatpush1.bf16.msra.mxu0 %v16733_v57  ;;  %13184 = vmatprep.subr.bf16.mxu1 %v16740_v27  ;;  %v16765_v57 = vcombine.low %v1677_v2, %v1681_v5  ;;  %v16772_v27 = vcombine.high %v1684_v29, %v1688_v39  ;;  %v1712_v1 = vld [vmem:[%s24580_s2 + $0x2460] sm:$0xff]  ;;  %v16787_v2 = vcombine.low %v1700_v44, %v1704_v47  ;;  %v1709_v5 = vld [vmem:[%s24580_s2 + $0x2448] sm:$0xff] }
 0x2d4   : > { %13840 = vmatprep.subr.bf16.mxu0 %v16742_v28  ;;  %v16774_v28 = vcombine.high %v1685_v24, %v1689_v33 }
 0x2d6   : > { %13185 = vmatpush1.bf16.msra.mxu1 %v16739_v37  ;;  %v16771_v37 = vcombine.low %v1684_v29, %v1688_v39  ;;  %v1716_v29 = vld [vmem:[%s24580_s2 + $0x2480] sm:$0xff] }
 0x2d7   : > { %13841 = vmatpush1.bf16.msra.mxu0 %v16741_v38  ;;  %13186 = vmatprep.subr.bf16.mxu1 %v16748_v40  ;;  %v16773_v38 = vcombine.low %v1685_v24, %v1689_v33  ;;  %v16780_v40 = vcombine.high %v1692_v31, %v1696_v4  ;;  %v1720_v39 = vld [vmem:[%s24580_s2 + $0x24a0] sm:$0xff]  ;;  %v20014_v24 = vpack.c.bf16 %v18539_v8, %v18539_v8  ;;  %v1717_v33 = vld [vmem:[%s24580_s2 + $0x2488] sm:$0xff] }
 0x2d8   : > { %13842 = vmatprep.subr.bf16.mxu0 %v16750_v41  ;;  %v16782_v41 = vcombine.high %v1693_v62, %v1697_v34 }
 0x2da   : > { %13187 = vmatpush1.bf16.msra.mxu1 %v16747_v53  ;;  %v16779_v53 = vcombine.low %v1692_v31, %v1696_v4  ;;  %v1724_v31 = vld [vmem:[%s24580_s2 + $0x24c0] sm:$0xff] }
 0x2db   : > { %13843 = vmatpush1.bf16.msra.mxu0 %v16749_v55  ;;  %13188 = vmatprep.subr.bf16.mxu1 %v16756_v56  ;;  %v16781_v55 = vcombine.low %v1693_v62, %v1697_v34  ;;  %v16788_v56 = vcombine.high %v1700_v44, %v1704_v47  ;;  %v1728_v4 = vld [vmem:[%s24580_s2 + $0x24e0] sm:$0xff]  ;;  %v1725_v62 = vld [vmem:[%s24580_s2 + $0x24c8] sm:$0xff] }
 0x2dc   : > { %13844 = vmatprep.subr.bf16.mxu0 %v16758_v58  ;;  %v16790_v58 = vcombine.high %v1701_v48, %v1705_v49  ;;  %v1729_v34 = vld [vmem:[%s24580_s2 + $0x24e8] sm:$0xff]  ;;  %v1732_v44 = vld [vmem:[%s24580_s2 + $0x2500] sm:$0xff] }
 0x2dd   : > { %v1736_v47 = vld [vmem:[%s24580_s2 + $0x2520] sm:$0xff] }
 0x2de   : > { %13189 = vmatpush1.bf16.msra.mxu1 %v16755_v9  ;;  %v1713_v9 = vld [vmem:[%s24580_s2 + $0x2468] sm:$0xff] }
 0x2df   : > { %13845 = vmatpush1.bf16.msra.mxu0 %v16757_v21  ;;  %13190 = vmatprep.subr.bf16.mxu1 %v16764_v10  ;;  %v20004_v21 = vpack.c.bf16 %v18518_v52, %v18518_v52  ;;  %v16789_v10 = vcombine.low %v1701_v48, %v1705_v49  ;;  %v16798_v52 = vcombine.high %v1709_v5, %v1713_v9  ;;  %v1733_v48 = vld [vmem:[%s24580_s2 + $0x2508] sm:$0xff] }
 0x2e0   : > { %13846 = vmatprep.subr.bf16.mxu0 %v16766_v20  ;;  %v16796_v20 = vcombine.high %v1708_v59, %v1712_v1  ;;  %v16797_v8 = vcombine.low %v1709_v5, %v1713_v9  ;;  %v1737_v49 = vld [vmem:[%s24580_s2 + $0x2528] sm:$0xff]  ;;  %v16819_v9 = vcombine.low %v1732_v44, %v1736_v47 }
 0x2e1   : > { %v1745_v5 = vld [vmem:[%s24580_s2 + $0x2568] sm:$0xff] }
 0x2e2   : > { %13191 = vmatpush1.bf16.msra.mxu1 %v16763_v45  ;;  %v1721_v45 = vld [vmem:[%s24580_s2 + $0x24a8] sm:$0xff] }
 0x2e3   : > { %13847 = vmatpush1.bf16.msra.mxu0 %v16765_v57  ;;  %13192 = vmatprep.subr.bf16.mxu1 %v16772_v27  ;;  %v16795_v57 = vcombine.low %v1708_v59, %v1712_v1  ;;  %v16804_v27 = vcombine.high %v1716_v29, %v1720_v39  ;;  %v1740_v59 = vld [vmem:[%s24580_s2 + $0x2540] sm:$0xff] }
 0x2e4   : > { %13848 = vmatprep.subr.bf16.mxu0 %v16774_v28  ;;  %v16806_v28 = vcombine.high %v1717_v33, %v1721_v45  ;;  %v1744_v1 = vld [vmem:[%s24580_s2 + $0x2560] sm:$0xff] }
 0x2e6   : > { %13193 = vmatpush1.bf16.msra.mxu1 %v16771_v37  ;;  %v16803_v37 = vcombine.low %v1716_v29, %v1720_v39  ;;  %v1748_v39 = vld [vmem:[%s24580_s2 + $0x2580] sm:$0xff] }
 0x2e7   : > { %13849 = vmatpush1.bf16.msra.mxu0 %v16773_v38  ;;  %13194 = vmatprep.subr.bf16.mxu1 %v16780_v40  ;;  %v16805_v38 = vcombine.low %v1717_v33, %v1721_v45  ;;  %v16812_v40 = vcombine.high %v1724_v31, %v1728_v4  ;;  %v1749_v33 = vld [vmem:[%s24580_s2 + $0x2588] sm:$0xff] }
 0x2e8   : > { %13850 = vmatprep.subr.bf16.mxu0 %v16782_v41  ;;  %v16814_v41 = vcombine.high %v1725_v62, %v1729_v34  ;;  %v1753_v45 = vld [vmem:[%s24580_s2 + $0x25a8] sm:$0xff] }
 0x2ea   : > { %13195 = vmatpush1.bf16.msra.mxu1 %v16779_v53  ;;  %v16811_v53 = vcombine.low %v1724_v31, %v1728_v4  ;;  %v1756_v31 = vld [vmem:[%s24580_s2 + $0x25c0] sm:$0xff] }
 0x2eb   : > { %13851 = vmatpush1.bf16.msra.mxu0 %v16781_v55  ;;  %13205 = vmatprep.subr.bf16.mxu1 %v16788_v56  ;;  %v16813_v55 = vcombine.low %v1725_v62, %v1729_v34  ;;  %v16820_v56 = vcombine.high %v1732_v44, %v1736_v47  ;;  %v1760_v4 = vld [vmem:[%s24580_s2 + $0x25e0] sm:$0xff]  ;;  %v1757_v62 = vld [vmem:[%s24580_s2 + $0x25c8] sm:$0xff] }
 0x2ec   : > { %13861 = vmatprep.subr.bf16.mxu0 %v16790_v58  ;;  %v16822_v58 = vcombine.high %v1733_v48, %v1737_v49  ;;  %v1761_v34 = vld [vmem:[%s24580_s2 + $0x25e8] sm:$0xff]  ;;  %v1764_v44 = vld [vmem:[%s24580_s2 + $0x2600] sm:$0xff] }
 0x2ed   : > { %13197 = vmatmul.mubr.bf16.vlgmr.msra.gmra.mrb[0].mxu1 %v20004_v21  ;;  %v1768_v47 = vld [vmem:[%s24580_s2 + $0x2620] sm:$0xff] }
 0x2ee   : > { %13853 = vmatmul.mubr.bf16.vlgmr.msra.gmra.mrb[32].mxu0 %v20004_v21  ;;  %13206 = vmatpush1.bf16.msra.mxu1 %v16787_v2  ;;  %v1741_v2 = vld [vmem:[%s24580_s2 + $0x2548] sm:$0xff] }
 0x2ef   : > { %13237 = vmatprep.mubr.bf16.mxu1 %v20014_v24  ;;  %13862 = vmatpush1.bf16.msra.mxu0 %v16789_v10  ;;  %v16821_v10 = vcombine.low %v1733_v48, %v1737_v49  ;;  %v16830_v29 = vcombine.high %v1741_v2, %v1745_v5  ;;  %v1765_v48 = vld [vmem:[%s24580_s2 + $0x2608] sm:$0xff] }
 0x2f0   : > { %13893 = vmatprep.mubr.bf16.mxu0 %v20014_v24  ;;  %13207 = vmatprep.subr.bf16.mxu1 %v16796_v20  ;;  %v16828_v20 = vcombine.high %v1740_v59, %v1744_v1  ;;  %v1769_v49 = vld [vmem:[%s24580_s2 + $0x2628] sm:$0xff] }
 0x2f1   : > { %13863 = vmatprep.subr.bf16.mxu0 %v16798_v52  ;;  %v1752_v52 = vld [vmem:[%s24580_s2 + $0x25a0] sm:$0xff] }
 0x2f2   : > { %13208 = vmatpush1.bf16.msra.mxu1 %v16795_v57  ;;  %v16827_v57 = vcombine.low %v1740_v59, %v1744_v1  ;;  %v1772_v59 = vld [vmem:[%s24580_s2 + $0x2640] sm:$0xff] }
 0x2f3   : > { %13864 = vmatpush1.bf16.msra.mxu0 %v16797_v8  ;;  %13209 = vmatprep.subr.bf16.mxu1 %v16804_v27  ;;  %v16829_v8 = vcombine.low %v1741_v2, %v1745_v5  ;;  %v16836_v27 = vcombine.high %v1748_v39, %v1752_v52  ;;  %v1776_v1 = vld [vmem:[%s24580_s2 + $0x2660] sm:$0xff]  ;;  %v1773_v2 = vld [vmem:[%s24580_s2 + $0x2648] sm:$0xff] }
 0x2f4   : > { %13865 = vmatprep.subr.bf16.mxu0 %v16806_v28  ;;  %v16838_v28 = vcombine.high %v1749_v33, %v1753_v45  ;;  %v1777_v5 = vld [vmem:[%s24580_s2 + $0x2668] sm:$0xff] }
 0x2f6   : > { %13210 = vmatpush1.bf16.msra.mxu1 %v16803_v37  ;;  %v16835_v37 = vcombine.low %v1748_v39, %v1752_v52  ;;  %v1780_v39 = vld [vmem:[%s24580_s2 + $0x2680] sm:$0xff] }
 0x2f7   : > { %13866 = vmatpush1.bf16.msra.mxu0 %v16805_v38  ;;  %13211 = vmatprep.subr.bf16.mxu1 %v16812_v40  ;;  %v16837_v38 = vcombine.low %v1749_v33, %v1753_v45  ;;  %v16844_v40 = vcombine.high %v1756_v31, %v1760_v4  ;;  %v1784_v52 = vld [vmem:[%s24580_s2 + $0x26a0] sm:$0xff]  ;;  %v1781_v33 = vld [vmem:[%s24580_s2 + $0x2688] sm:$0xff] }
 0x2f8   : > { %13867 = vmatprep.subr.bf16.mxu0 %v16814_v41  ;;  %v16846_v41 = vcombine.high %v1757_v62, %v1761_v34  ;;  %v1785_v45 = vld [vmem:[%s24580_s2 + $0x26a8] sm:$0xff] }
 0x2fa   : > { %13212 = vmatpush1.bf16.msra.mxu1 %v16811_v53  ;;  %v16843_v53 = vcombine.low %v1756_v31, %v1760_v4  ;;  %v1788_v31 = vld [vmem:[%s24580_s2 + $0x26c0] sm:$0xff] }
 0x2fb   : > { %13868 = vmatpush1.bf16.msra.mxu0 %v16813_v55  ;;  %13213 = vmatprep.subr.bf16.mxu1 %v16820_v56  ;;  %v16845_v55 = vcombine.low %v1757_v62, %v1761_v34  ;;  %v16852_v56 = vcombine.high %v1764_v44, %v1768_v47  ;;  %v1792_v4 = vld [vmem:[%s24580_s2 + $0x26e0] sm:$0xff]  ;;  %v1789_v62 = vld [vmem:[%s24580_s2 + $0x26c8] sm:$0xff] }
 0x2fc   : > { %13869 = vmatprep.subr.bf16.mxu0 %v16822_v58  ;;  %v16854_v58 = vcombine.high %v1765_v48, %v1769_v49  ;;  %v1793_v34 = vld [vmem:[%s24580_s2 + $0x26e8] sm:$0xff] }
 0x2fe   : > { %13214 = vmatpush1.bf16.msra.mxu1 %v16819_v9  ;;  %v16851_v9 = vcombine.low %v1764_v44, %v1768_v47  ;;  %v1796_v44 = vld [vmem:[%s24580_s2 + $0x2700] sm:$0xff] }
 0x2ff   : > { %13870 = vmatpush1.bf16.msra.mxu0 %v16821_v10  ;;  %13215 = vmatprep.subr.bf16.mxu1 %v16828_v20  ;;  %v16853_v10 = vcombine.low %v1765_v48, %v1769_v49  ;;  %v16860_v20 = vcombine.high %v1772_v59, %v1776_v1  ;;  %v1800_v47 = vld [vmem:[%s24580_s2 + $0x2720] sm:$0xff]  ;;  %v1797_v48 = vld [vmem:[%s24580_s2 + $0x2708] sm:$0xff] }
 0x300   : > { %13871 = vmatprep.subr.bf16.mxu0 %v16830_v29  ;;  %v16862_v29 = vcombine.high %v1773_v2, %v1777_v5  ;;  %v1801_v49 = vld [vmem:[%s24580_s2 + $0x2728] sm:$0xff] }
 0x302   : > { %13216 = vmatpush1.bf16.msra.mxu1 %v16827_v57  ;;  %v16859_v57 = vcombine.low %v1772_v59, %v1776_v1  ;;  %v1804_v59 = vld [vmem:[%s24580_s2 + $0x2740] sm:$0xff] }
 0x303   : > { %13872 = vmatpush1.bf16.msra.mxu0 %v16829_v8  ;;  %13217 = vmatprep.subr.bf16.mxu1 %v16836_v27  ;;  %v16861_v8 = vcombine.low %v1773_v2, %v1777_v5  ;;  %v16868_v27 = vcombine.high %v1780_v39, %v1784_v52  ;;  %v1808_v1 = vld [vmem:[%s24580_s2 + $0x2760] sm:$0xff]  ;;  %v1805_v2 = vld [vmem:[%s24580_s2 + $0x2748] sm:$0xff] }
 0x304   : > { %13873 = vmatprep.subr.bf16.mxu0 %v16838_v28  ;;  %v16870_v28 = vcombine.high %v1781_v33, %v1785_v45  ;;  %v1809_v5 = vld [vmem:[%s24580_s2 + $0x2768] sm:$0xff] }
 0x306   : > { %13218 = vmatpush1.bf16.msra.mxu1 %v16835_v37  ;;  %v16867_v37 = vcombine.low %v1780_v39, %v1784_v52  ;;  %v1812_v39 = vld [vmem:[%s24580_s2 + $0x2780] sm:$0xff] }
 0x307   : > { %13874 = vmatpush1.bf16.msra.mxu0 %v16837_v38  ;;  %13219 = vmatprep.subr.bf16.mxu1 %v16844_v40  ;;  %v16869_v38 = vcombine.low %v1781_v33, %v1785_v45  ;;  %v16876_v40 = vcombine.high %v1788_v31, %v1792_v4  ;;  %v1816_v52 = vld [vmem:[%s24580_s2 + $0x27a0] sm:$0xff]  ;;  %v1813_v33 = vld [vmem:[%s24580_s2 + $0x2788] sm:$0xff] }
 0x308   : > { %13875 = vmatprep.subr.bf16.mxu0 %v16846_v41  ;;  %v16878_v41 = vcombine.high %v1789_v62, %v1793_v34  ;;  %v1817_v45 = vld [vmem:[%s24580_s2 + $0x27a8] sm:$0xff] }
 0x30a   : > { %13220 = vmatpush1.bf16.msra.mxu1 %v16843_v53  ;;  %v16875_v53 = vcombine.low %v1788_v31, %v1792_v4  ;;  %v1820_v31 = vld [vmem:[%s24580_s2 + $0x27c0] sm:$0xff] }
 0x30b   : > { %13876 = vmatpush1.bf16.msra.mxu0 %v16845_v55  ;;  %13221 = vmatprep.subr.bf16.mxu1 %v16852_v56  ;;  %v16877_v55 = vcombine.low %v1789_v62, %v1793_v34  ;;  %v16884_v56 = vcombine.high %v1796_v44, %v1800_v47  ;;  %v1824_v4 = vld [vmem:[%s24580_s2 + $0x27e0] sm:$0xff]  ;;  %v1821_v62 = vld [vmem:[%s24580_s2 + $0x27c8] sm:$0xff] }
 0x30c   : > { %13877 = vmatprep.subr.bf16.mxu0 %v16854_v58  ;;  %v16886_v58 = vcombine.high %v1797_v48, %v1801_v49  ;;  %v1825_v34 = vld [vmem:[%s24580_s2 + $0x27e8] sm:$0xff] }
 0x30e   : > { %13222 = vmatpush1.bf16.msra.mxu1 %v16851_v9  ;;  %v16883_v9 = vcombine.low %v1796_v44, %v1800_v47  ;;  %v1828_v44 = vld [vmem:[%s24580_s2 + $0x2800] sm:$0xff] }
 0x30f   : > { %13878 = vmatpush1.bf16.msra.mxu0 %v16853_v10  ;;  %13223 = vmatprep.subr.bf16.mxu1 %v16860_v20  ;;  %v16885_v10 = vcombine.low %v1797_v48, %v1801_v49  ;;  %v16892_v20 = vcombine.high %v1804_v59, %v1808_v1  ;;  %v1832_v47 = vld [vmem:[%s24580_s2 + $0x2820] sm:$0xff]  ;;  %v1829_v48 = vld [vmem:[%s24580_s2 + $0x2808] sm:$0xff] }
 0x310   : > { %13879 = vmatprep.subr.bf16.mxu0 %v16862_v29  ;;  %v16894_v29 = vcombine.high %v1805_v2, %v1809_v5  ;;  %v1833_v49 = vld [vmem:[%s24580_s2 + $0x2828] sm:$0xff] }
 0x312   : > { %13224 = vmatpush1.bf16.msra.mxu1 %v16859_v57  ;;  %v16891_v57 = vcombine.low %v1804_v59, %v1808_v1  ;;  %v1836_v59 = vld [vmem:[%s24580_s2 + $0x2840] sm:$0xff] }
 0x313   : > { %13880 = vmatpush1.bf16.msra.mxu0 %v16861_v8  ;;  %13225 = vmatprep.subr.bf16.mxu1 %v16868_v27  ;;  %v16893_v8 = vcombine.low %v1805_v2, %v1809_v5  ;;  %v16900_v27 = vcombine.high %v1812_v39, %v1816_v52  ;;  %v1840_v1 = vld [vmem:[%s24580_s2 + $0x2860] sm:$0xff]  ;;  %v16915_v2 = vcombine.low %v1828_v44, %v1832_v47  ;;  %v1837_v5 = vld [vmem:[%s24580_s2 + $0x2848] sm:$0xff] }
 0x314   : > { %13881 = vmatprep.subr.bf16.mxu0 %v16870_v28  ;;  %v16902_v28 = vcombine.high %v1813_v33, %v1817_v45 }
 0x316   : > { %13226 = vmatpush1.bf16.msra.mxu1 %v16867_v37  ;;  %v16899_v37 = vcombine.low %v1812_v39, %v1816_v52  ;;  %v1844_v39 = vld [vmem:[%s24580_s2 + $0x2880] sm:$0xff] }
 0x317   : > { %13882 = vmatpush1.bf16.msra.mxu0 %v16869_v38  ;;  %13227 = vmatprep.subr.bf16.mxu1 %v16876_v40  ;;  %v16901_v38 = vcombine.low %v1813_v33, %v1817_v45  ;;  %v16908_v40 = vcombine.high %v1820_v31, %v1824_v4  ;;  %v1848_v52 = vld [vmem:[%s24580_s2 + $0x28a0] sm:$0xff]  ;;  %v20218_v33 = vpack.c.bf16 %v18559_v22, %v18559_v22  ;;  %v1845_v45 = vld [vmem:[%s24580_s2 + $0x2888] sm:$0xff] }
 0x318   : > { %13883 = vmatprep.subr.bf16.mxu0 %v16878_v41  ;;  %v16910_v41 = vcombine.high %v1821_v62, %v1825_v34 }
 0x31a   : > { %13228 = vmatpush1.bf16.msra.mxu1 %v16875_v53  ;;  %v16907_v53 = vcombine.low %v1820_v31, %v1824_v4  ;;  %v1852_v31 = vld [vmem:[%s24580_s2 + $0x28c0] sm:$0xff] }
 0x31b   : > { %13884 = vmatpush1.bf16.msra.mxu0 %v16877_v55  ;;  %13229 = vmatprep.subr.bf16.mxu1 %v16884_v56  ;;  %v16909_v55 = vcombine.low %v1821_v62, %v1825_v34  ;;  %v16916_v56 = vcombine.high %v1828_v44, %v1832_v47  ;;  %v1856_v4 = vld [vmem:[%s24580_s2 + $0x28e0] sm:$0xff]  ;;  %v1853_v62 = vld [vmem:[%s24580_s2 + $0x28c8] sm:$0xff] }
 0x31c   : > { %13885 = vmatprep.subr.bf16.mxu0 %v16886_v58  ;;  %v16918_v58 = vcombine.high %v1829_v48, %v1833_v49  ;;  %v1857_v34 = vld [vmem:[%s24580_s2 + $0x28e8] sm:$0xff]  ;;  %v1860_v44 = vld [vmem:[%s24580_s2 + $0x2900] sm:$0xff] }
 0x31d   : > { %v1864_v47 = vld [vmem:[%s24580_s2 + $0x2920] sm:$0xff] }
 0x31e   : > { %13230 = vmatpush1.bf16.msra.mxu1 %v16883_v9  ;;  %v1841_v9 = vld [vmem:[%s24580_s2 + $0x2868] sm:$0xff] }
 0x31f   : > { %13886 = vmatpush1.bf16.msra.mxu0 %v16885_v10  ;;  %13231 = vmatprep.subr.bf16.mxu1 %v16892_v20  ;;  %v20208_v10 = vpack.c.bf16 %v18534_v3, %v18534_v3  ;;  %v16917_v20 = vcombine.low %v1829_v48, %v1833_v49  ;;  %v16926_v3 = vcombine.high %v1837_v5, %v1841_v9  ;;  %v1861_v48 = vld [vmem:[%s24580_s2 + $0x2908] sm:$0xff] }
 0x320   : > { %13887 = vmatprep.subr.bf16.mxu0 %v16894_v29  ;;  %v16924_v29 = vcombine.high %v1836_v59, %v1840_v1  ;;  %v16925_v22 = vcombine.low %v1837_v5, %v1841_v9  ;;  %v1865_v49 = vld [vmem:[%s24580_s2 + $0x2928] sm:$0xff]  ;;  %v16947_v9 = vcombine.low %v1860_v44, %v1864_v47 }
 0x321   : > { %v1873_v5 = vld [vmem:[%s24580_s2 + $0x2968] sm:$0xff] }
 0x322   : > { %13232 = vmatpush1.bf16.msra.mxu1 %v16891_v57  ;;  %v1849_v57 = vld [vmem:[%s24580_s2 + $0x28a8] sm:$0xff] }
 0x323   : > { %13888 = vmatpush1.bf16.msra.mxu0 %v16893_v8  ;;  %13233 = vmatprep.subr.bf16.mxu1 %v16900_v27  ;;  %v16923_v8 = vcombine.low %v1836_v59, %v1840_v1  ;;  %v16932_v27 = vcombine.high %v1844_v39, %v1848_v52  ;;  %v1868_v59 = vld [vmem:[%s24580_s2 + $0x2940] sm:$0xff] }
 0x324   : > { %13889 = vmatprep.subr.bf16.mxu0 %v16902_v28  ;;  %v16934_v28 = vcombine.high %v1845_v45, %v1849_v57  ;;  %v1872_v1 = vld [vmem:[%s24580_s2 + $0x2960] sm:$0xff] }
 0x326   : > { %13234 = vmatpush1.bf16.msra.mxu1 %v16899_v37  ;;  %v16931_v37 = vcombine.low %v1844_v39, %v1848_v52  ;;  %v1876_v52 = vld [vmem:[%s24580_s2 + $0x2980] sm:$0xff] }
 0x327   : > { %13890 = vmatpush1.bf16.msra.mxu0 %v16901_v38  ;;  %13235 = vmatprep.subr.bf16.mxu1 %v16908_v40  ;;  %v16933_v38 = vcombine.low %v1845_v45, %v1849_v57  ;;  %v16940_v40 = vcombine.high %v1852_v31, %v1856_v4  ;;  %v1877_v45 = vld [vmem:[%s24580_s2 + $0x2988] sm:$0xff] }
 0x328   : > { %13891 = vmatprep.subr.bf16.mxu0 %v16910_v41  ;;  %v16942_v41 = vcombine.high %v1853_v62, %v1857_v34  ;;  %v1881_v57 = vld [vmem:[%s24580_s2 + $0x29a8] sm:$0xff] }
 0x32a   : > { %13236 = vmatpush1.bf16.msra.mxu1 %v16907_v53  ;;  %v16939_v53 = vcombine.low %v1852_v31, %v1856_v4  ;;  %v1884_v31 = vld [vmem:[%s24580_s2 + $0x29c0] sm:$0xff] }
 0x32b   : > { %13892 = vmatpush1.bf16.msra.mxu0 %v16909_v55  ;;  %13246 = vmatprep.subr.bf16.mxu1 %v16916_v56  ;;  %v16941_v55 = vcombine.low %v1853_v62, %v1857_v34  ;;  %v16948_v56 = vcombine.high %v1860_v44, %v1864_v47  ;;  %v1888_v4 = vld [vmem:[%s24580_s2 + $0x29e0] sm:$0xff]  ;;  %v1885_v62 = vld [vmem:[%s24580_s2 + $0x29c8] sm:$0xff] }
 0x32c   : > { %13902 = vmatprep.subr.bf16.mxu0 %v16918_v58  ;;  %v16950_v58 = vcombine.high %v1861_v48, %v1865_v49  ;;  %v1889_v34 = vld [vmem:[%s24580_s2 + $0x29e8] sm:$0xff]  ;;  %v1892_v44 = vld [vmem:[%s24580_s2 + $0x2a00] sm:$0xff] }
 0x32d   : > { %13238 = vmatmul.mubr.bf16.vlgmr.msra.gmra.mrb[0].mxu1 %v20208_v10  ;;  %v1896_v47 = vld [vmem:[%s24580_s2 + $0x2a20] sm:$0xff] }
 0x32e   : > { %13894 = vmatmul.mubr.bf16.vlgmr.msra.gmra.mrb[32].mxu0 %v20208_v10  ;;  %13247 = vmatpush1.bf16.msra.mxu1 %v16915_v2  ;;  %v1869_v2 = vld [vmem:[%s24580_s2 + $0x2948] sm:$0xff] }
 0x32f   : > { %13278 = vmatprep.mubr.bf16.mxu1 %v20218_v33  ;;  %13903 = vmatpush1.bf16.msra.mxu0 %v16917_v20  ;;  %v16949_v20 = vcombine.low %v1861_v48, %v1865_v49  ;;  %v16958_v39 = vcombine.high %v1869_v2, %v1873_v5  ;;  %v1893_v48 = vld [vmem:[%s24580_s2 + $0x2a08] sm:$0xff] }
 0x330   : > { %13934 = vmatprep.mubr.bf16.mxu0 %v20218_v33  ;;  %13248 = vmatprep.subr.bf16.mxu1 %v16924_v29  ;;  %v16956_v29 = vcombine.high %v1868_v59, %v1872_v1  ;;  %v1897_v49 = vld [vmem:[%s24580_s2 + $0x2a28] sm:$0xff] }
 0x331   : > { %13904 = vmatprep.subr.bf16.mxu0 %v16926_v3  ;;  %v1880_v3 = vld [vmem:[%s24580_s2 + $0x29a0] sm:$0xff] }
 0x332   : > { %13249 = vmatpush1.bf16.msra.mxu1 %v16923_v8  ;;  %v16955_v8 = vcombine.low %v1868_v59, %v1872_v1  ;;  %v1900_v59 = vld [vmem:[%s24580_s2 + $0x2a40] sm:$0xff] }
 0x333   : > { %13905 = vmatpush1.bf16.msra.mxu0 %v16925_v22  ;;  %13250 = vmatprep.subr.bf16.mxu1 %v16932_v27  ;;  %v16957_v22 = vcombine.low %v1869_v2, %v1873_v5  ;;  %v16964_v27 = vcombine.high %v1876_v52, %v1880_v3  ;;  %v1904_v1 = vld [vmem:[%s24580_s2 + $0x2a60] sm:$0xff]  ;;  %v1901_v2 = vld [vmem:[%s24580_s2 + $0x2a48] sm:$0xff] }
 0x334   : > { %13906 = vmatprep.subr.bf16.mxu0 %v16934_v28  ;;  %v16966_v28 = vcombine.high %v1877_v45, %v1881_v57  ;;  %v1905_v5 = vld [vmem:[%s24580_s2 + $0x2a68] sm:$0xff] }
 0x336   : > { %13251 = vmatpush1.bf16.msra.mxu1 %v16931_v37  ;;  %v16963_v37 = vcombine.low %v1876_v52, %v1880_v3  ;;  %v1908_v52 = vld [vmem:[%s24580_s2 + $0x2a80] sm:$0xff] }
 0x337   : > { %13907 = vmatpush1.bf16.msra.mxu0 %v16933_v38  ;;  %13252 = vmatprep.subr.bf16.mxu1 %v16940_v40  ;;  %v16965_v38 = vcombine.low %v1877_v45, %v1881_v57  ;;  %v16972_v40 = vcombine.high %v1884_v31, %v1888_v4  ;;  %v1912_v3 = vld [vmem:[%s24580_s2 + $0x2aa0] sm:$0xff]  ;;  %v1909_v45 = vld [vmem:[%s24580_s2 + $0x2a88] sm:$0xff] }
 0x338   : > { %13908 = vmatprep.subr.bf16.mxu0 %v16942_v41  ;;  %v16974_v41 = vcombine.high %v1885_v62, %v1889_v34  ;;  %v1913_v57 = vld [vmem:[%s24580_s2 + $0x2aa8] sm:$0xff] }
 0x33a   : > { %13253 = vmatpush1.bf16.msra.mxu1 %v16939_v53  ;;  %v16971_v53 = vcombine.low %v1884_v31, %v1888_v4  ;;  %v1916_v31 = vld [vmem:[%s24580_s2 + $0x2ac0] sm:$0xff] }
 0x33b   : > { %13909 = vmatpush1.bf16.msra.mxu0 %v16941_v55  ;;  %13254 = vmatprep.subr.bf16.mxu1 %v16948_v56  ;;  %v16973_v55 = vcombine.low %v1885_v62, %v1889_v34  ;;  %v16980_v56 = vcombine.high %v1892_v44, %v1896_v47  ;;  %v1920_v4 = vld [vmem:[%s24580_s2 + $0x2ae0] sm:$0xff]  ;;  %v1917_v62 = vld [vmem:[%s24580_s2 + $0x2ac8] sm:$0xff] }
 0x33c   : > { %13910 = vmatprep.subr.bf16.mxu0 %v16950_v58  ;;  %v16982_v58 = vcombine.high %v1893_v48, %v1897_v49  ;;  %v1921_v34 = vld [vmem:[%s24580_s2 + $0x2ae8] sm:$0xff] }
 0x33e   : > { %13255 = vmatpush1.bf16.msra.mxu1 %v16947_v9  ;;  %v16979_v9 = vcombine.low %v1892_v44, %v1896_v47  ;;  %v1924_v44 = vld [vmem:[%s24580_s2 + $0x2b00] sm:$0xff] }
 0x33f   : > { %13911 = vmatpush1.bf16.msra.mxu0 %v16949_v20  ;;  %13256 = vmatprep.subr.bf16.mxu1 %v16956_v29  ;;  %v16981_v20 = vcombine.low %v1893_v48, %v1897_v49  ;;  %v16988_v29 = vcombine.high %v1900_v59, %v1904_v1  ;;  %v1928_v47 = vld [vmem:[%s24580_s2 + $0x2b20] sm:$0xff]  ;;  %v1925_v48 = vld [vmem:[%s24580_s2 + $0x2b08] sm:$0xff] }
 0x340   : > { %13912 = vmatprep.subr.bf16.mxu0 %v16958_v39  ;;  %v16990_v39 = vcombine.high %v1901_v2, %v1905_v5  ;;  %v1929_v49 = vld [vmem:[%s24580_s2 + $0x2b28] sm:$0xff] }
 0x342   : > { %13257 = vmatpush1.bf16.msra.mxu1 %v16955_v8  ;;  %v16987_v8 = vcombine.low %v1900_v59, %v1904_v1  ;;  %v1932_v59 = vld [vmem:[%s24580_s2 + $0x2b40] sm:$0xff] }
 0x343   : > { %13913 = vmatpush1.bf16.msra.mxu0 %v16957_v22  ;;  %13258 = vmatprep.subr.bf16.mxu1 %v16964_v27  ;;  %v16989_v22 = vcombine.low %v1901_v2, %v1905_v5  ;;  %v16996_v27 = vcombine.high %v1908_v52, %v1912_v3  ;;  %v1936_v1 = vld [vmem:[%s24580_s2 + $0x2b60] sm:$0xff]  ;;  %v1933_v2 = vld [vmem:[%s24580_s2 + $0x2b48] sm:$0xff] }
 0x344   : > { %13914 = vmatprep.subr.bf16.mxu0 %v16966_v28  ;;  %v16998_v28 = vcombine.high %v1909_v45, %v1913_v57  ;;  %v1937_v5 = vld [vmem:[%s24580_s2 + $0x2b68] sm:$0xff] }
 0x346   : > { %13259 = vmatpush1.bf16.msra.mxu1 %v16963_v37  ;;  %v16995_v37 = vcombine.low %v1908_v52, %v1912_v3  ;;  %v1940_v52 = vld [vmem:[%s24580_s2 + $0x2b80] sm:$0xff] }
 0x347   : > { %13915 = vmatpush1.bf16.msra.mxu0 %v16965_v38  ;;  %13260 = vmatprep.subr.bf16.mxu1 %v16972_v40  ;;  %v16997_v38 = vcombine.low %v1909_v45, %v1913_v57  ;;  %v17004_v40 = vcombine.high %v1916_v31, %v1920_v4  ;;  %v1944_v3 = vld [vmem:[%s24580_s2 + $0x2ba0] sm:$0xff]  ;;  %v1941_v45 = vld [vmem:[%s24580_s2 + $0x2b88] sm:$0xff] }
 0x348   : > { %13916 = vmatprep.subr.bf16.mxu0 %v16974_v41  ;;  %v17006_v41 = vcombine.high %v1917_v62, %v1921_v34  ;;  %v1945_v57 = vld [vmem:[%s24580_s2 + $0x2ba8] sm:$0xff] }
 0x34a   : > { %13261 = vmatpush1.bf16.msra.mxu1 %v16971_v53  ;;  %v17003_v53 = vcombine.low %v1916_v31, %v1920_v4  ;;  %v1948_v31 = vld [vmem:[%s24580_s2 + $0x2bc0] sm:$0xff] }
 0x34b   : > { %13917 = vmatpush1.bf16.msra.mxu0 %v16973_v55  ;;  %13262 = vmatprep.subr.bf16.mxu1 %v16980_v56  ;;  %v17005_v55 = vcombine.low %v1917_v62, %v1921_v34  ;;  %v17012_v56 = vcombine.high %v1924_v44, %v1928_v47  ;;  %v1952_v4 = vld [vmem:[%s24580_s2 + $0x2be0] sm:$0xff]  ;;  %v1949_v62 = vld [vmem:[%s24580_s2 + $0x2bc8] sm:$0xff] }
 0x34c   : > { %13918 = vmatprep.subr.bf16.mxu0 %v16982_v58  ;;  %v17014_v58 = vcombine.high %v1925_v48, %v1929_v49  ;;  %v1953_v34 = vld [vmem:[%s24580_s2 + $0x2be8] sm:$0xff] }
 0x34e   : > { %13263 = vmatpush1.bf16.msra.mxu1 %v16979_v9  ;;  %v17011_v9 = vcombine.low %v1924_v44, %v1928_v47  ;;  %v1956_v44 = vld [vmem:[%s24580_s2 + $0x2c00] sm:$0xff] }
 0x34f   : > { %13919 = vmatpush1.bf16.msra.mxu0 %v16981_v20  ;;  %13264 = vmatprep.subr.bf16.mxu1 %v16988_v29  ;;  %v17013_v20 = vcombine.low %v1925_v48, %v1929_v49  ;;  %v17020_v29 = vcombine.high %v1932_v59, %v1936_v1  ;;  %v1960_v47 = vld [vmem:[%s24580_s2 + $0x2c20] sm:$0xff]  ;;  %v1957_v48 = vld [vmem:[%s24580_s2 + $0x2c08] sm:$0xff] }
 0x350   : > { %13920 = vmatprep.subr.bf16.mxu0 %v16990_v39  ;;  %v17022_v39 = vcombine.high %v1933_v2, %v1937_v5  ;;  %v1961_v49 = vld [vmem:[%s24580_s2 + $0x2c28] sm:$0xff] }
 0x352   : > { %13265 = vmatpush1.bf16.msra.mxu1 %v16987_v8  ;;  %v17019_v8 = vcombine.low %v1932_v59, %v1936_v1  ;;  %v1964_v59 = vld [vmem:[%s24580_s2 + $0x2c40] sm:$0xff] }
 0x353   : > { %13921 = vmatpush1.bf16.msra.mxu0 %v16989_v22  ;;  %13266 = vmatprep.subr.bf16.mxu1 %v16996_v27  ;;  %v17021_v22 = vcombine.low %v1933_v2, %v1937_v5  ;;  %v17028_v27 = vcombine.high %v1940_v52, %v1944_v3  ;;  %v1968_v1 = vld [vmem:[%s24580_s2 + $0x2c60] sm:$0xff]  ;;  %v17043_v2 = vcombine.low %v1956_v44, %v1960_v47  ;;  %v1965_v5 = vld [vmem:[%s24580_s2 + $0x2c48] sm:$0xff] }
 0x354   : > { %13922 = vmatprep.subr.bf16.mxu0 %v16998_v28  ;;  %v17030_v28 = vcombine.high %v1941_v45, %v1945_v57 }
 0x356   : > { %13267 = vmatpush1.bf16.msra.mxu1 %v16995_v37  ;;  %v17027_v37 = vcombine.low %v1940_v52, %v1944_v3  ;;  %v1972_v52 = vld [vmem:[%s24580_s2 + $0x2c80] sm:$0xff] }
 0x357   : > { %13923 = vmatpush1.bf16.msra.mxu0 %v16997_v38  ;;  %13268 = vmatprep.subr.bf16.mxu1 %v17004_v40  ;;  %v17029_v38 = vcombine.low %v1941_v45, %v1945_v57  ;;  %v17036_v40 = vcombine.high %v1948_v31, %v1952_v4  ;;  %v1976_v3 = vld [vmem:[%s24580_s2 + $0x2ca0] sm:$0xff]  ;;  %v20422_v45 = vpack.c.bf16 %v18592_v36, %v18592_v36  ;;  %v1973_v57 = vld [vmem:[%s24580_s2 + $0x2c88] sm:$0xff] }
 0x358   : > { %13924 = vmatprep.subr.bf16.mxu0 %v17006_v41  ;;  %v17038_v41 = vcombine.high %v1949_v62, %v1953_v34 }
 0x35a   : > { %13269 = vmatpush1.bf16.msra.mxu1 %v17003_v53  ;;  %v17035_v53 = vcombine.low %v1948_v31, %v1952_v4  ;;  %v1980_v31 = vld [vmem:[%s24580_s2 + $0x2cc0] sm:$0xff] }
 0x35b   : > { %13925 = vmatpush1.bf16.msra.mxu0 %v17005_v55  ;;  %13270 = vmatprep.subr.bf16.mxu1 %v17012_v56  ;;  %v17037_v55 = vcombine.low %v1949_v62, %v1953_v34  ;;  %v17044_v56 = vcombine.high %v1956_v44, %v1960_v47  ;;  %v1984_v4 = vld [vmem:[%s24580_s2 + $0x2ce0] sm:$0xff]  ;;  %v1981_v62 = vld [vmem:[%s24580_s2 + $0x2cc8] sm:$0xff] }
 0x35c   : > { %13926 = vmatprep.subr.bf16.mxu0 %v17014_v58  ;;  %v17046_v58 = vcombine.high %v1957_v48, %v1961_v49  ;;  %v1985_v34 = vld [vmem:[%s24580_s2 + $0x2ce8] sm:$0xff]  ;;  %v1988_v44 = vld [vmem:[%s24580_s2 + $0x2d00] sm:$0xff] }
 0x35d   : > { %v1992_v47 = vld [vmem:[%s24580_s2 + $0x2d20] sm:$0xff] }
 0x35e   : > { %13271 = vmatpush1.bf16.msra.mxu1 %v17011_v9  ;;  %v1969_v9 = vld [vmem:[%s24580_s2 + $0x2c68] sm:$0xff] }
 0x35f   : > { %13927 = vmatpush1.bf16.msra.mxu0 %v17013_v20  ;;  %13272 = vmatprep.subr.bf16.mxu1 %v17020_v29  ;;  %v20412_v20 = vpack.c.bf16 %v18554_v17, %v18554_v17  ;;  %v17045_v29 = vcombine.low %v1957_v48, %v1961_v49  ;;  %v17054_v17 = vcombine.high %v1965_v5, %v1969_v9  ;;  %v1989_v48 = vld [vmem:[%s24580_s2 + $0x2d08] sm:$0xff] }
 0x360   : > { %13928 = vmatprep.subr.bf16.mxu0 %v17022_v39  ;;  %v17052_v39 = vcombine.high %v1964_v59, %v1968_v1  ;;  %v17053_v36 = vcombine.low %v1965_v5, %v1969_v9  ;;  %v1993_v49 = vld [vmem:[%s24580_s2 + $0x2d28] sm:$0xff]  ;;  %v17075_v9 = vcombine.low %v1988_v44, %v1992_v47 }
 0x361   : > { %v2001_v5 = vld [vmem:[%s24580_s2 + $0x2d68] sm:$0xff] }
 0x362   : > { %13273 = vmatpush1.bf16.msra.mxu1 %v17019_v8  ;;  %v1977_v8 = vld [vmem:[%s24580_s2 + $0x2ca8] sm:$0xff] }
 0x363   : > { %13929 = vmatpush1.bf16.msra.mxu0 %v17021_v22  ;;  %13274 = vmatprep.subr.bf16.mxu1 %v17028_v27  ;;  %v17051_v22 = vcombine.low %v1964_v59, %v1968_v1  ;;  %v17060_v27 = vcombine.high %v1972_v52, %v1976_v3  ;;  %v1996_v59 = vld [vmem:[%s24580_s2 + $0x2d40] sm:$0xff] }
 0x364   : > { %13930 = vmatprep.subr.bf16.mxu0 %v17030_v28  ;;  %v17062_v28 = vcombine.high %v1973_v57, %v1977_v8  ;;  %v2000_v1 = vld [vmem:[%s24580_s2 + $0x2d60] sm:$0xff] }
 0x366   : > { %13275 = vmatpush1.bf16.msra.mxu1 %v17027_v37  ;;  %v17059_v37 = vcombine.low %v1972_v52, %v1976_v3  ;;  %v2004_v3 = vld [vmem:[%s24580_s2 + $0x2d80] sm:$0xff] }
 0x367   : > { %13931 = vmatpush1.bf16.msra.mxu0 %v17029_v38  ;;  %13276 = vmatprep.subr.bf16.mxu1 %v17036_v40  ;;  %v17061_v38 = vcombine.low %v1973_v57, %v1977_v8  ;;  %v17068_v40 = vcombine.high %v1980_v31, %v1984_v4  ;;  %v2005_v57 = vld [vmem:[%s24580_s2 + $0x2d88] sm:$0xff] }
 0x368   : > { %13932 = vmatprep.subr.bf16.mxu0 %v17038_v41  ;;  %v17070_v41 = vcombine.high %v1981_v62, %v1985_v34  ;;  %v2009_v8 = vld [vmem:[%s24580_s2 + $0x2da8] sm:$0xff] }
 0x36a   : > { %13277 = vmatpush1.bf16.msra.mxu1 %v17035_v53  ;;  %v17067_v53 = vcombine.low %v1980_v31, %v1984_v4  ;;  %v2012_v31 = vld [vmem:[%s24580_s2 + $0x2dc0] sm:$0xff] }
 0x36b   : > { %13933 = vmatpush1.bf16.msra.mxu0 %v17037_v55  ;;  %13287 = vmatprep.subr.bf16.mxu1 %v17044_v56  ;;  %v17069_v55 = vcombine.low %v1981_v62, %v1985_v34  ;;  %v17076_v56 = vcombine.high %v1988_v44, %v1992_v47  ;;  %v2016_v4 = vld [vmem:[%s24580_s2 + $0x2de0] sm:$0xff]  ;;  %v2013_v62 = vld [vmem:[%s24580_s2 + $0x2dc8] sm:$0xff] }
 0x36c   : > { %13943 = vmatprep.subr.bf16.mxu0 %v17046_v58  ;;  %v17078_v58 = vcombine.high %v1989_v48, %v1993_v49  ;;  %v2017_v34 = vld [vmem:[%s24580_s2 + $0x2de8] sm:$0xff]  ;;  %v2020_v44 = vld [vmem:[%s24580_s2 + $0x2e00] sm:$0xff] }
 0x36d   : > { %13279 = vmatmul.mubr.bf16.vlgmr.msra.gmra.mrb[0].mxu1 %v20412_v20  ;;  %v2024_v47 = vld [vmem:[%s24580_s2 + $0x2e20] sm:$0xff] }
 0x36e   : > { %13935 = vmatmul.mubr.bf16.vlgmr.msra.gmra.mrb[32].mxu0 %v20412_v20  ;;  %13288 = vmatpush1.bf16.msra.mxu1 %v17043_v2  ;;  %v1997_v2 = vld [vmem:[%s24580_s2 + $0x2d48] sm:$0xff] }
 0x36f   : > { %13319 = vmatprep.mubr.bf16.mxu1 %v20422_v45  ;;  %13944 = vmatpush1.bf16.msra.mxu0 %v17045_v29  ;;  %v17077_v29 = vcombine.low %v1989_v48, %v1993_v49  ;;  %v17086_v52 = vcombine.high %v1997_v2, %v2001_v5  ;;  %v2021_v48 = vld [vmem:[%s24580_s2 + $0x2e08] sm:$0xff] }
 0x370   : > { %13975 = vmatprep.mubr.bf16.mxu0 %v20422_v45  ;;  %13289 = vmatprep.subr.bf16.mxu1 %v17052_v39  ;;  %v17084_v39 = vcombine.high %v1996_v59, %v2000_v1  ;;  %v2025_v49 = vld [vmem:[%s24580_s2 + $0x2e28] sm:$0xff] }
 0x371   : > { %13945 = vmatprep.subr.bf16.mxu0 %v17054_v17  ;;  %v2008_v17 = vld [vmem:[%s24580_s2 + $0x2da0] sm:$0xff] }
 0x372   : > { %13290 = vmatpush1.bf16.msra.mxu1 %v17051_v22  ;;  %v17083_v22 = vcombine.low %v1996_v59, %v2000_v1  ;;  %v2028_v59 = vld [vmem:[%s24580_s2 + $0x2e40] sm:$0xff] }
 0x373   : > { %13946 = vmatpush1.bf16.msra.mxu0 %v17053_v36  ;;  %13291 = vmatprep.subr.bf16.mxu1 %v17060_v27  ;;  %v17085_v36 = vcombine.low %v1997_v2, %v2001_v5  ;;  %v17092_v27 = vcombine.high %v2004_v3, %v2008_v17  ;;  %v2032_v1 = vld [vmem:[%s24580_s2 + $0x2e60] sm:$0xff]  ;;  %v2029_v2 = vld [vmem:[%s24580_s2 + $0x2e48] sm:$0xff] }
 0x374   : > { %13947 = vmatprep.subr.bf16.mxu0 %v17062_v28  ;;  %v17094_v28 = vcombine.high %v2005_v57, %v2009_v8  ;;  %v2033_v5 = vld [vmem:[%s24580_s2 + $0x2e68] sm:$0xff] }
 0x376   : > { %13292 = vmatpush1.bf16.msra.mxu1 %v17059_v37  ;;  %v17091_v37 = vcombine.low %v2004_v3, %v2008_v17  ;;  %v2036_v3 = vld [vmem:[%s24580_s2 + $0x2e80] sm:$0xff] }
 0x377   : > { %13948 = vmatpush1.bf16.msra.mxu0 %v17061_v38  ;;  %13293 = vmatprep.subr.bf16.mxu1 %v17068_v40  ;;  %v17093_v38 = vcombine.low %v2005_v57, %v2009_v8  ;;  %v17100_v40 = vcombine.high %v2012_v31, %v2016_v4  ;;  %v2040_v17 = vld [vmem:[%s24580_s2 + $0x2ea0] sm:$0xff]  ;;  %v2037_v57 = vld [vmem:[%s24580_s2 + $0x2e88] sm:$0xff] }
 0x378   : > { %13949 = vmatprep.subr.bf16.mxu0 %v17070_v41  ;;  %v17102_v41 = vcombine.high %v2013_v62, %v2017_v34  ;;  %v2041_v8 = vld [vmem:[%s24580_s2 + $0x2ea8] sm:$0xff] }
 0x37a   : > { %13294 = vmatpush1.bf16.msra.mxu1 %v17067_v53  ;;  %v17099_v53 = vcombine.low %v2012_v31, %v2016_v4  ;;  %v2044_v31 = vld [vmem:[%s24580_s2 + $0x2ec0] sm:$0xff] }
 0x37b   : > { %13950 = vmatpush1.bf16.msra.mxu0 %v17069_v55  ;;  %13295 = vmatprep.subr.bf16.mxu1 %v17076_v56  ;;  %v17101_v55 = vcombine.low %v2013_v62, %v2017_v34  ;;  %v17108_v56 = vcombine.high %v2020_v44, %v2024_v47  ;;  %v2048_v4 = vld [vmem:[%s24580_s2 + $0x2ee0] sm:$0xff]  ;;  %v2045_v62 = vld [vmem:[%s24580_s2 + $0x2ec8] sm:$0xff] }
 0x37c   : > { %13951 = vmatprep.subr.bf16.mxu0 %v17078_v58  ;;  %v17110_v58 = vcombine.high %v2021_v48, %v2025_v49  ;;  %v2049_v34 = vld [vmem:[%s24580_s2 + $0x2ee8] sm:$0xff] }
 0x37e   : > { %13296 = vmatpush1.bf16.msra.mxu1 %v17075_v9  ;;  %v17107_v9 = vcombine.low %v2020_v44, %v2024_v47  ;;  %v2052_v44 = vld [vmem:[%s24580_s2 + $0x2f00] sm:$0xff] }
 0x37f   : > { %13952 = vmatpush1.bf16.msra.mxu0 %v17077_v29  ;;  %13297 = vmatprep.subr.bf16.mxu1 %v17084_v39  ;;  %v17109_v29 = vcombine.low %v2021_v48, %v2025_v49  ;;  %v17116_v39 = vcombine.high %v2028_v59, %v2032_v1  ;;  %v2056_v47 = vld [vmem:[%s24580_s2 + $0x2f20] sm:$0xff]  ;;  %v2053_v48 = vld [vmem:[%s24580_s2 + $0x2f08] sm:$0xff] }
 0x380   : > { %13953 = vmatprep.subr.bf16.mxu0 %v17086_v52  ;;  %v17118_v52 = vcombine.high %v2029_v2, %v2033_v5  ;;  %v2057_v49 = vld [vmem:[%s24580_s2 + $0x2f28] sm:$0xff] }
 0x382   : > { %13298 = vmatpush1.bf16.msra.mxu1 %v17083_v22  ;;  %v17115_v22 = vcombine.low %v2028_v59, %v2032_v1  ;;  %v2060_v59 = vld [vmem:[%s24580_s2 + $0x2f40] sm:$0xff] }
 0x383   : > { %13954 = vmatpush1.bf16.msra.mxu0 %v17085_v36  ;;  %13299 = vmatprep.subr.bf16.mxu1 %v17092_v27  ;;  %v17117_v36 = vcombine.low %v2029_v2, %v2033_v5  ;;  %v17124_v27 = vcombine.high %v2036_v3, %v2040_v17  ;;  %v2064_v1 = vld [vmem:[%s24580_s2 + $0x2f60] sm:$0xff]  ;;  %v2061_v2 = vld [vmem:[%s24580_s2 + $0x2f48] sm:$0xff] }
 0x384   : > { %13955 = vmatprep.subr.bf16.mxu0 %v17094_v28  ;;  %v17126_v28 = vcombine.high %v2037_v57, %v2041_v8  ;;  %v2065_v5 = vld [vmem:[%s24580_s2 + $0x2f68] sm:$0xff] }
 0x386   : > { %13300 = vmatpush1.bf16.msra.mxu1 %v17091_v37  ;;  %v17123_v37 = vcombine.low %v2036_v3, %v2040_v17  ;;  %v2068_v3 = vld [vmem:[%s24580_s2 + $0x2f80] sm:$0xff] }
 0x387   : > { %13956 = vmatpush1.bf16.msra.mxu0 %v17093_v38  ;;  %13301 = vmatprep.subr.bf16.mxu1 %v17100_v40  ;;  %v17125_v38 = vcombine.low %v2037_v57, %v2041_v8  ;;  %v17132_v40 = vcombine.high %v2044_v31, %v2048_v4  ;;  %v2072_v17 = vld [vmem:[%s24580_s2 + $0x2fa0] sm:$0xff]  ;;  %v2069_v57 = vld [vmem:[%s24580_s2 + $0x2f88] sm:$0xff] }
 0x388   : > { %13957 = vmatprep.subr.bf16.mxu0 %v17102_v41  ;;  %v17134_v41 = vcombine.high %v2045_v62, %v2049_v34  ;;  %v2073_v8 = vld [vmem:[%s24580_s2 + $0x2fa8] sm:$0xff] }
 0x38a   : > { %13302 = vmatpush1.bf16.msra.mxu1 %v17099_v53  ;;  %v17131_v53 = vcombine.low %v2044_v31, %v2048_v4  ;;  %v2076_v31 = vld [vmem:[%s24580_s2 + $0x2fc0] sm:$0xff] }
 0x38b   : > { %13958 = vmatpush1.bf16.msra.mxu0 %v17101_v55  ;;  %13303 = vmatprep.subr.bf16.mxu1 %v17108_v56  ;;  %v17133_v55 = vcombine.low %v2045_v62, %v2049_v34  ;;  %v17140_v56 = vcombine.high %v2052_v44, %v2056_v47  ;;  %v2080_v4 = vld [vmem:[%s24580_s2 + $0x2fe0] sm:$0xff]  ;;  %v2077_v62 = vld [vmem:[%s24580_s2 + $0x2fc8] sm:$0xff] }
 0x38c   : > { %13959 = vmatprep.subr.bf16.mxu0 %v17110_v58  ;;  %v17142_v58 = vcombine.high %v2053_v48, %v2057_v49  ;;  %v2081_v34 = vld [vmem:[%s24580_s2 + $0x2fe8] sm:$0xff] }
 0x38e   : > { %13304 = vmatpush1.bf16.msra.mxu1 %v17107_v9  ;;  %v17139_v9 = vcombine.low %v2052_v44, %v2056_v47  ;;  %v2084_v44 = vld [vmem:[%s24580_s2 + $0x3000] sm:$0xff] }
 0x38f   : > { %13960 = vmatpush1.bf16.msra.mxu0 %v17109_v29  ;;  %13305 = vmatprep.subr.bf16.mxu1 %v17116_v39  ;;  %v17141_v29 = vcombine.low %v2053_v48, %v2057_v49  ;;  %v17148_v39 = vcombine.high %v2060_v59, %v2064_v1  ;;  %v2088_v47 = vld [vmem:[%s24580_s2 + $0x3020] sm:$0xff]  ;;  %v2085_v48 = vld [vmem:[%s24580_s2 + $0x3008] sm:$0xff] }
 0x390   : > { %13961 = vmatprep.subr.bf16.mxu0 %v17118_v52  ;;  %v17150_v52 = vcombine.high %v2061_v2, %v2065_v5  ;;  %v2089_v49 = vld [vmem:[%s24580_s2 + $0x3028] sm:$0xff] }
 0x392   : > { %13306 = vmatpush1.bf16.msra.mxu1 %v17115_v22  ;;  %v17147_v22 = vcombine.low %v2060_v59, %v2064_v1  ;;  %v2092_v59 = vld [vmem:[%s24580_s2 + $0x3040] sm:$0xff] }
 0x393   : > { %13962 = vmatpush1.bf16.msra.mxu0 %v17117_v36  ;;  %13307 = vmatprep.subr.bf16.mxu1 %v17124_v27  ;;  %v17149_v36 = vcombine.low %v2061_v2, %v2065_v5  ;;  %v17156_v27 = vcombine.high %v2068_v3, %v2072_v17  ;;  %v2096_v1 = vld [vmem:[%s24580_s2 + $0x3060] sm:$0xff]  ;;  %v17171_v2 = vcombine.low %v2084_v44, %v2088_v47  ;;  %v2093_v5 = vld [vmem:[%s24580_s2 + $0x3048] sm:$0xff] }
 0x394   : > { %13963 = vmatprep.subr.bf16.mxu0 %v17126_v28  ;;  %v17158_v28 = vcombine.high %v2069_v57, %v2073_v8 }
 0x396   : > { %13308 = vmatpush1.bf16.msra.mxu1 %v17123_v37  ;;  %v17155_v37 = vcombine.low %v2068_v3, %v2072_v17  ;;  %v2100_v3 = vld [vmem:[%s24580_s2 + $0x3080] sm:$0xff] }
 0x397   : > { %13964 = vmatpush1.bf16.msra.mxu0 %v17125_v38  ;;  %13309 = vmatprep.subr.bf16.mxu1 %v17132_v40  ;;  %v17157_v38 = vcombine.low %v2069_v57, %v2073_v8  ;;  %v17164_v40 = vcombine.high %v2076_v31, %v2080_v4  ;;  %v2104_v17 = vld [vmem:[%s24580_s2 + $0x30a0] sm:$0xff]  ;;  %v20626_v57 = vpack.c.bf16 %v18608_v51, %v18608_v51  ;;  %v2101_v8 = vld [vmem:[%s24580_s2 + $0x3088] sm:$0xff] }
 0x398   : > { %13965 = vmatprep.subr.bf16.mxu0 %v17134_v41  ;;  %v17166_v41 = vcombine.high %v2077_v62, %v2081_v34 }
 0x39a   : > { %13310 = vmatpush1.bf16.msra.mxu1 %v17131_v53  ;;  %v17163_v53 = vcombine.low %v2076_v31, %v2080_v4  ;;  %v2108_v31 = vld [vmem:[%s24580_s2 + $0x30c0] sm:$0xff] }
 0x39b   : > { %13966 = vmatpush1.bf16.msra.mxu0 %v17133_v55  ;;  %13311 = vmatprep.subr.bf16.mxu1 %v17140_v56  ;;  %v17165_v55 = vcombine.low %v2077_v62, %v2081_v34  ;;  %v17172_v56 = vcombine.high %v2084_v44, %v2088_v47  ;;  %v2112_v4 = vld [vmem:[%s24580_s2 + $0x30e0] sm:$0xff]  ;;  %v2109_v62 = vld [vmem:[%s24580_s2 + $0x30c8] sm:$0xff] }
 0x39c   : > { %13967 = vmatprep.subr.bf16.mxu0 %v17142_v58  ;;  %v17174_v58 = vcombine.high %v2085_v48, %v2089_v49  ;;  %v2113_v34 = vld [vmem:[%s24580_s2 + $0x30e8] sm:$0xff]  ;;  %v2116_v44 = vld [vmem:[%s24580_s2 + $0x3100] sm:$0xff] }
 0x39d   : > { %v2120_v47 = vld [vmem:[%s24580_s2 + $0x3120] sm:$0xff] }
 0x39e   : > { %13312 = vmatpush1.bf16.msra.mxu1 %v17139_v9  ;;  %v2097_v9 = vld [vmem:[%s24580_s2 + $0x3068] sm:$0xff] }
 0x39f   : > { %13968 = vmatpush1.bf16.msra.mxu0 %v17141_v29  ;;  %13313 = vmatprep.subr.bf16.mxu1 %v17148_v39  ;;  %v20616_v29 = vpack.c.bf16 %v18579_v32, %v18579_v32  ;;  %v17173_v39 = vcombine.low %v2085_v48, %v2089_v49  ;;  %v17182_v32 = vcombine.high %v2093_v5, %v2097_v9  ;;  %v2117_v48 = vld [vmem:[%s24580_s2 + $0x3108] sm:$0xff] }
 0x3a0   : > { %13969 = vmatprep.subr.bf16.mxu0 %v17150_v52  ;;  %v17180_v52 = vcombine.high %v2092_v59, %v2096_v1  ;;  %v17181_v51 = vcombine.low %v2093_v5, %v2097_v9  ;;  %v2121_v49 = vld [vmem:[%s24580_s2 + $0x3128] sm:$0xff]  ;;  %v17203_v9 = vcombine.low %v2116_v44, %v2120_v47 }
 0x3a1   : > { %v2129_v5 = vld [vmem:[%s24580_s2 + $0x3168] sm:$0xff] }
 0x3a2   : > { %13314 = vmatpush1.bf16.msra.mxu1 %v17147_v22  ;;  %v2105_v22 = vld [vmem:[%s24580_s2 + $0x30a8] sm:$0xff] }
 0x3a3   : > { %13970 = vmatpush1.bf16.msra.mxu0 %v17149_v36  ;;  %13315 = vmatprep.subr.bf16.mxu1 %v17156_v27  ;;  %v17179_v36 = vcombine.low %v2092_v59, %v2096_v1  ;;  %v17188_v27 = vcombine.high %v2100_v3, %v2104_v17  ;;  %v2124_v59 = vld [vmem:[%s24580_s2 + $0x3140] sm:$0xff] }
 0x3a4   : > { %13971 = vmatprep.subr.bf16.mxu0 %v17158_v28  ;;  %v17190_v28 = vcombine.high %v2101_v8, %v2105_v22  ;;  %v2128_v1 = vld [vmem:[%s24580_s2 + $0x3160] sm:$0xff] }
 0x3a6   : > { %13316 = vmatpush1.bf16.msra.mxu1 %v17155_v37  ;;  %v17187_v37 = vcombine.low %v2100_v3, %v2104_v17  ;;  %v2132_v17 = vld [vmem:[%s24580_s2 + $0x3180] sm:$0xff] }
 0x3a7   : > { %13972 = vmatpush1.bf16.msra.mxu0 %v17157_v38  ;;  %13317 = vmatprep.subr.bf16.mxu1 %v17164_v40  ;;  %v17189_v38 = vcombine.low %v2101_v8, %v2105_v22  ;;  %v17196_v40 = vcombine.high %v2108_v31, %v2112_v4  ;;  %v2133_v8 = vld [vmem:[%s24580_s2 + $0x3188] sm:$0xff] }
 0x3a8   : > { %13973 = vmatprep.subr.bf16.mxu0 %v17166_v41  ;;  %v17198_v41 = vcombine.high %v2109_v62, %v2113_v34  ;;  %v2137_v22 = vld [vmem:[%s24580_s2 + $0x31a8] sm:$0xff] }
 0x3aa   : > { %13318 = vmatpush1.bf16.msra.mxu1 %v17163_v53  ;;  %v17195_v53 = vcombine.low %v2108_v31, %v2112_v4  ;;  %v2140_v31 = vld [vmem:[%s24580_s2 + $0x31c0] sm:$0xff] }
 0x3ab   : > { %13974 = vmatpush1.bf16.msra.mxu0 %v17165_v55  ;;  %13328 = vmatprep.subr.bf16.mxu1 %v17172_v56  ;;  %v17197_v55 = vcombine.low %v2109_v62, %v2113_v34  ;;  %v17204_v56 = vcombine.high %v2116_v44, %v2120_v47  ;;  %v2144_v4 = vld [vmem:[%s24580_s2 + $0x31e0] sm:$0xff]  ;;  %v2141_v62 = vld [vmem:[%s24580_s2 + $0x31c8] sm:$0xff] }
 0x3ac   : > { %13984 = vmatprep.subr.bf16.mxu0 %v17174_v58  ;;  %v17206_v58 = vcombine.high %v2117_v48, %v2121_v49  ;;  %v2145_v34 = vld [vmem:[%s24580_s2 + $0x31e8] sm:$0xff]  ;;  %v2148_v44 = vld [vmem:[%s24580_s2 + $0x3200] sm:$0xff] }
 0x3ad   : > { %13320 = vmatmul.mubr.bf16.vlgmr.msra.gmra.mrb[0].mxu1 %v20616_v29  ;;  %v2152_v47 = vld [vmem:[%s24580_s2 + $0x3220] sm:$0xff] }
 0x3ae   : > { %13976 = vmatmul.mubr.bf16.vlgmr.msra.gmra.mrb[32].mxu0 %v20616_v29  ;;  %13329 = vmatpush1.bf16.msra.mxu1 %v17171_v2  ;;  %v2125_v2 = vld [vmem:[%s24580_s2 + $0x3148] sm:$0xff] }
 0x3af   : > { %13360 = vmatprep.mubr.bf16.mxu1 %v20626_v57  ;;  %13985 = vmatpush1.bf16.msra.mxu0 %v17173_v39  ;;  %v17205_v39 = vcombine.low %v2117_v48, %v2121_v49  ;;  %v17214_v3 = vcombine.high %v2125_v2, %v2129_v5  ;;  %v2149_v48 = vld [vmem:[%s24580_s2 + $0x3208] sm:$0xff] }
 0x3b0   : > { %14016 = vmatprep.mubr.bf16.mxu0 %v20626_v57  ;;  %13330 = vmatprep.subr.bf16.mxu1 %v17180_v52  ;;  %v17212_v52 = vcombine.high %v2124_v59, %v2128_v1  ;;  %v2153_v49 = vld [vmem:[%s24580_s2 + $0x3228] sm:$0xff] }
 0x3b1   : > { %13986 = vmatprep.subr.bf16.mxu0 %v17182_v32  ;;  %v2136_v32 = vld [vmem:[%s24580_s2 + $0x31a0] sm:$0xff] }
 0x3b2   : > { %13331 = vmatpush1.bf16.msra.mxu1 %v17179_v36  ;;  %v17211_v36 = vcombine.low %v2124_v59, %v2128_v1  ;;  %v2156_v59 = vld [vmem:[%s24580_s2 + $0x3240] sm:$0xff] }
 0x3b3   : > { %13987 = vmatpush1.bf16.msra.mxu0 %v17181_v51  ;;  %13332 = vmatprep.subr.bf16.mxu1 %v17188_v27  ;;  %v17213_v51 = vcombine.low %v2125_v2, %v2129_v5  ;;  %v17220_v27 = vcombine.high %v2132_v17, %v2136_v32  ;;  %v2160_v1 = vld [vmem:[%s24580_s2 + $0x3260] sm:$0xff]  ;;  %v2157_v2 = vld [vmem:[%s24580_s2 + $0x3248] sm:$0xff] }
 0x3b4   : > { %13988 = vmatprep.subr.bf16.mxu0 %v17190_v28  ;;  %v17222_v28 = vcombine.high %v2133_v8, %v2137_v22  ;;  %v2161_v5 = vld [vmem:[%s24580_s2 + $0x3268] sm:$0xff] }
 0x3b6   : > { %13333 = vmatpush1.bf16.msra.mxu1 %v17187_v37  ;;  %v17219_v37 = vcombine.low %v2132_v17, %v2136_v32  ;;  %v2164_v17 = vld [vmem:[%s24580_s2 + $0x3280] sm:$0xff] }
 0x3b7   : > { %13989 = vmatpush1.bf16.msra.mxu0 %v17189_v38  ;;  %13334 = vmatprep.subr.bf16.mxu1 %v17196_v40  ;;  %v17221_v38 = vcombine.low %v2133_v8, %v2137_v22  ;;  %v17228_v40 = vcombine.high %v2140_v31, %v2144_v4  ;;  %v2168_v32 = vld [vmem:[%s24580_s2 + $0x32a0] sm:$0xff]  ;;  %v2165_v8 = vld [vmem:[%s24580_s2 + $0x3288] sm:$0xff] }
 0x3b8   : > { %13990 = vmatprep.subr.bf16.mxu0 %v17198_v41  ;;  %v17230_v41 = vcombine.high %v2141_v62, %v2145_v34  ;;  %v2169_v22 = vld [vmem:[%s24580_s2 + $0x32a8] sm:$0xff] }
 0x3ba   : > { %13335 = vmatpush1.bf16.msra.mxu1 %v17195_v53  ;;  %v17227_v53 = vcombine.low %v2140_v31, %v2144_v4  ;;  %v2172_v31 = vld [vmem:[%s24580_s2 + $0x32c0] sm:$0xff] }
 0x3bb   : > { %13991 = vmatpush1.bf16.msra.mxu0 %v17197_v55  ;;  %13336 = vmatprep.subr.bf16.mxu1 %v17204_v56  ;;  %v17229_v55 = vcombine.low %v2141_v62, %v2145_v34  ;;  %v17236_v56 = vcombine.high %v2148_v44, %v2152_v47  ;;  %v2176_v4 = vld [vmem:[%s24580_s2 + $0x32e0] sm:$0xff]  ;;  %v2173_v62 = vld [vmem:[%s24580_s2 + $0x32c8] sm:$0xff] }
 0x3bc   : > { %13992 = vmatprep.subr.bf16.mxu0 %v17206_v58  ;;  %v17238_v58 = vcombine.high %v2149_v48, %v2153_v49  ;;  %v2177_v34 = vld [vmem:[%s24580_s2 + $0x32e8] sm:$0xff] }
 0x3be   : > { %13337 = vmatpush1.bf16.msra.mxu1 %v17203_v9  ;;  %v17235_v9 = vcombine.low %v2148_v44, %v2152_v47  ;;  %v2180_v44 = vld [vmem:[%s24580_s2 + $0x3300] sm:$0xff] }
 0x3bf   : > { %13993 = vmatpush1.bf16.msra.mxu0 %v17205_v39  ;;  %13338 = vmatprep.subr.bf16.mxu1 %v17212_v52  ;;  %v17237_v39 = vcombine.low %v2149_v48, %v2153_v49  ;;  %v17244_v52 = vcombine.high %v2156_v59, %v2160_v1  ;;  %v2184_v47 = vld [vmem:[%s24580_s2 + $0x3320] sm:$0xff]  ;;  %v2181_v48 = vld [vmem:[%s24580_s2 + $0x3308] sm:$0xff] }
 0x3c0   : > { %13994 = vmatprep.subr.bf16.mxu0 %v17214_v3  ;;  %v17246_v3 = vcombine.high %v2157_v2, %v2161_v5  ;;  %v2185_v49 = vld [vmem:[%s24580_s2 + $0x3328] sm:$0xff] }
 0x3c2   : > { %13339 = vmatpush1.bf16.msra.mxu1 %v17211_v36  ;;  %v17243_v36 = vcombine.low %v2156_v59, %v2160_v1  ;;  %v2188_v59 = vld [vmem:[%s24580_s2 + $0x3340] sm:$0xff] }
 0x3c3   : > { %13995 = vmatpush1.bf16.msra.mxu0 %v17213_v51  ;;  %13340 = vmatprep.subr.bf16.mxu1 %v17220_v27  ;;  %v17245_v51 = vcombine.low %v2157_v2, %v2161_v5  ;;  %v17252_v27 = vcombine.high %v2164_v17, %v2168_v32  ;;  %v2192_v1 = vld [vmem:[%s24580_s2 + $0x3360] sm:$0xff]  ;;  %v2189_v2 = vld [vmem:[%s24580_s2 + $0x3348] sm:$0xff] }
 0x3c4   : > { %13996 = vmatprep.subr.bf16.mxu0 %v17222_v28  ;;  %v17254_v28 = vcombine.high %v2165_v8, %v2169_v22  ;;  %v2193_v5 = vld [vmem:[%s24580_s2 + $0x3368] sm:$0xff] }
 0x3c6   : > { %13341 = vmatpush1.bf16.msra.mxu1 %v17219_v37  ;;  %v17251_v37 = vcombine.low %v2164_v17, %v2168_v32  ;;  %v2196_v17 = vld [vmem:[%s24580_s2 + $0x3380] sm:$0xff] }
 0x3c7   : > { %13997 = vmatpush1.bf16.msra.mxu0 %v17221_v38  ;;  %13342 = vmatprep.subr.bf16.mxu1 %v17228_v40  ;;  %v17253_v38 = vcombine.low %v2165_v8, %v2169_v22  ;;  %v17260_v40 = vcombine.high %v2172_v31, %v2176_v4  ;;  %v2200_v32 = vld [vmem:[%s24580_s2 + $0x33a0] sm:$0xff]  ;;  %v2197_v8 = vld [vmem:[%s24580_s2 + $0x3388] sm:$0xff] }
 0x3c8   : > { %13998 = vmatprep.subr.bf16.mxu0 %v17230_v41  ;;  %v17262_v41 = vcombine.high %v2173_v62, %v2177_v34  ;;  %v2201_v22 = vld [vmem:[%s24580_s2 + $0x33a8] sm:$0xff] }
 0x3ca   : > { %13343 = vmatpush1.bf16.msra.mxu1 %v17227_v53  ;;  %v17259_v53 = vcombine.low %v2172_v31, %v2176_v4  ;;  %v2204_v31 = vld [vmem:[%s24580_s2 + $0x33c0] sm:$0xff] }
 0x3cb   : > { %13999 = vmatpush1.bf16.msra.mxu0 %v17229_v55  ;;  %13344 = vmatprep.subr.bf16.mxu1 %v17236_v56  ;;  %v17261_v55 = vcombine.low %v2173_v62, %v2177_v34  ;;  %v17268_v56 = vcombine.high %v2180_v44, %v2184_v47  ;;  %v2208_v4 = vld [vmem:[%s24580_s2 + $0x33e0] sm:$0xff]  ;;  %v2205_v62 = vld [vmem:[%s24580_s2 + $0x33c8] sm:$0xff] }
 0x3cc   : > { %14000 = vmatprep.subr.bf16.mxu0 %v17238_v58  ;;  %v17270_v58 = vcombine.high %v2181_v48, %v2185_v49  ;;  %v2209_v34 = vld [vmem:[%s24580_s2 + $0x33e8] sm:$0xff] }
 0x3ce   : > { %13345 = vmatpush1.bf16.msra.mxu1 %v17235_v9  ;;  %v17267_v9 = vcombine.low %v2180_v44, %v2184_v47  ;;  %v2212_v44 = vld [vmem:[%s24580_s2 + $0x3400] sm:$0xff] }
 0x3cf   : > { %14001 = vmatpush1.bf16.msra.mxu0 %v17237_v39  ;;  %13346 = vmatprep.subr.bf16.mxu1 %v17244_v52  ;;  %v17269_v39 = vcombine.low %v2181_v48, %v2185_v49  ;;  %v17276_v52 = vcombine.high %v2188_v59, %v2192_v1  ;;  %v2216_v47 = vld [vmem:[%s24580_s2 + $0x3420] sm:$0xff]  ;;  %v2213_v48 = vld [vmem:[%s24580_s2 + $0x3408] sm:$0xff] }
 0x3d0   : > { %14002 = vmatprep.subr.bf16.mxu0 %v17246_v3  ;;  %v17278_v3 = vcombine.high %v2189_v2, %v2193_v5  ;;  %v2217_v49 = vld [vmem:[%s24580_s2 + $0x3428] sm:$0xff] }
 0x3d2   : > { %13347 = vmatpush1.bf16.msra.mxu1 %v17243_v36  ;;  %v17275_v36 = vcombine.low %v2188_v59, %v2192_v1  ;;  %v2220_v59 = vld [vmem:[%s24580_s2 + $0x3440] sm:$0xff] }
 0x3d3   : > { %14003 = vmatpush1.bf16.msra.mxu0 %v17245_v51  ;;  %13348 = vmatprep.subr.bf16.mxu1 %v17252_v27  ;;  %v17277_v51 = vcombine.low %v2189_v2, %v2193_v5  ;;  %v17284_v27 = vcombine.high %v2196_v17, %v2200_v32  ;;  %v2224_v1 = vld [vmem:[%s24580_s2 + $0x3460] sm:$0xff]  ;;  %v17299_v2 = vcombine.low %v2212_v44, %v2216_v47  ;;  %v2221_v5 = vld [vmem:[%s24580_s2 + $0x3448] sm:$0xff] }
 0x3d4   : > { %14004 = vmatprep.subr.bf16.mxu0 %v17254_v28  ;;  %v17286_v28 = vcombine.high %v2197_v8, %v2201_v22 }
 0x3d6   : > { %13349 = vmatpush1.bf16.msra.mxu1 %v17251_v37  ;;  %v17283_v37 = vcombine.low %v2196_v17, %v2200_v32  ;;  %v2228_v17 = vld [vmem:[%s24580_s2 + $0x3480] sm:$0xff] }
 0x3d7   : > { %14005 = vmatpush1.bf16.msra.mxu0 %v17253_v38  ;;  %13350 = vmatprep.subr.bf16.mxu1 %v17260_v40  ;;  %v17285_v38 = vcombine.low %v2197_v8, %v2201_v22  ;;  %v17292_v40 = vcombine.high %v2204_v31, %v2208_v4  ;;  %v2232_v32 = vld [vmem:[%s24580_s2 + $0x34a0] sm:$0xff]  ;;  %v20830_v8 = vpack.c.bf16 %v18624_v6, %v18624_v6  ;;  %v2229_v22 = vld [vmem:[%s24580_s2 + $0x3488] sm:$0xff] }
 0x3d8   : > { %14006 = vmatprep.subr.bf16.mxu0 %v17262_v41  ;;  %v17294_v41 = vcombine.high %v2205_v62, %v2209_v34 }
 0x3da   : > { %13351 = vmatpush1.bf16.msra.mxu1 %v17259_v53  ;;  %v17291_v53 = vcombine.low %v2204_v31, %v2208_v4  ;;  %v2236_v31 = vld [vmem:[%s24580_s2 + $0x34c0] sm:$0xff] }
 0x3db   : > { %14007 = vmatpush1.bf16.msra.mxu0 %v17261_v55  ;;  %13352 = vmatprep.subr.bf16.mxu1 %v17268_v56  ;;  %v17293_v55 = vcombine.low %v2205_v62, %v2209_v34  ;;  %v17300_v56 = vcombine.high %v2212_v44, %v2216_v47  ;;  %v2240_v4 = vld [vmem:[%s24580_s2 + $0x34e0] sm:$0xff]  ;;  %v2237_v62 = vld [vmem:[%s24580_s2 + $0x34c8] sm:$0xff] }
 0x3dc   : > { %14008 = vmatprep.subr.bf16.mxu0 %v17270_v58  ;;  %v17302_v58 = vcombine.high %v2213_v48, %v2217_v49  ;;  %v2241_v34 = vld [vmem:[%s24580_s2 + $0x34e8] sm:$0xff]  ;;  %v2244_v44 = vld [vmem:[%s24580_s2 + $0x3500] sm:$0xff] }
 0x3dd   : > { %v2248_v47 = vld [vmem:[%s24580_s2 + $0x3520] sm:$0xff] }
 0x3de   : > { %13353 = vmatpush1.bf16.msra.mxu1 %v17267_v9  ;;  %v2225_v9 = vld [vmem:[%s24580_s2 + $0x3468] sm:$0xff] }
 0x3df   : > { %14009 = vmatpush1.bf16.msra.mxu0 %v17269_v39  ;;  %13354 = vmatprep.subr.bf16.mxu1 %v17276_v52  ;;  %v20820_v39 = vpack.c.bf16 %v18597_v46, %v18597_v46  ;;  %v17301_v52 = vcombine.low %v2213_v48, %v2217_v49  ;;  %v17310_v46 = vcombine.high %v2221_v5, %v2225_v9  ;;  %v2245_v48 = vld [vmem:[%s24580_s2 + $0x3508] sm:$0xff] }
 0x3e0   : > { %14010 = vmatprep.subr.bf16.mxu0 %v17278_v3  ;;  %v17308_v3 = vcombine.high %v2220_v59, %v2224_v1  ;;  %v17309_v6 = vcombine.low %v2221_v5, %v2225_v9  ;;  %v2249_v49 = vld [vmem:[%s24580_s2 + $0x3528] sm:$0xff]  ;;  %v17331_v9 = vcombine.low %v2244_v44, %v2248_v47 }
 0x3e1   : > { %v2257_v5 = vld [vmem:[%s24580_s2 + $0x3568] sm:$0xff] }
 0x3e2   : > { %13355 = vmatpush1.bf16.msra.mxu1 %v17275_v36  ;;  %v2233_v36 = vld [vmem:[%s24580_s2 + $0x34a8] sm:$0xff] }
 0x3e3   : > { %14011 = vmatpush1.bf16.msra.mxu0 %v17277_v51  ;;  %13356 = vmatprep.subr.bf16.mxu1 %v17284_v27  ;;  %v17307_v51 = vcombine.low %v2220_v59, %v2224_v1  ;;  %v17316_v27 = vcombine.high %v2228_v17, %v2232_v32  ;;  %v2252_v59 = vld [vmem:[%s24580_s2 + $0x3540] sm:$0xff] }
 0x3e4   : > { %14012 = vmatprep.subr.bf16.mxu0 %v17286_v28  ;;  %v17318_v28 = vcombine.high %v2229_v22, %v2233_v36  ;;  %v2256_v1 = vld [vmem:[%s24580_s2 + $0x3560] sm:$0xff] }
 0x3e6   : > { %13357 = vmatpush1.bf16.msra.mxu1 %v17283_v37  ;;  %v17315_v37 = vcombine.low %v2228_v17, %v2232_v32  ;;  %v2260_v32 = vld [vmem:[%s24580_s2 + $0x3580] sm:$0xff] }
 0x3e7   : > { %14013 = vmatpush1.bf16.msra.mxu0 %v17285_v38  ;;  %13358 = vmatprep.subr.bf16.mxu1 %v17292_v40  ;;  %v17317_v38 = vcombine.low %v2229_v22, %v2233_v36  ;;  %v17324_v40 = vcombine.high %v2236_v31, %v2240_v4  ;;  %v2261_v22 = vld [vmem:[%s24580_s2 + $0x3588] sm:$0xff] }
 0x3e8   : > { %14014 = vmatprep.subr.bf16.mxu0 %v17294_v41  ;;  %v17326_v41 = vcombine.high %v2237_v62, %v2241_v34  ;;  %v2265_v36 = vld [vmem:[%s24580_s2 + $0x35a8] sm:$0xff] }
 0x3ea   : > { %13359 = vmatpush1.bf16.msra.mxu1 %v17291_v53  ;;  %v17323_v53 = vcombine.low %v2236_v31, %v2240_v4  ;;  %v2268_v31 = vld [vmem:[%s24580_s2 + $0x35c0] sm:$0xff] }
 0x3eb   : > { %14015 = vmatpush1.bf16.msra.mxu0 %v17293_v55  ;;  %13369 = vmatprep.subr.bf16.mxu1 %v17300_v56  ;;  %v17325_v55 = vcombine.low %v2237_v62, %v2241_v34  ;;  %v17332_v56 = vcombine.high %v2244_v44, %v2248_v47  ;;  %v2272_v4 = vld [vmem:[%s24580_s2 + $0x35e0] sm:$0xff]  ;;  %v2269_v62 = vld [vmem:[%s24580_s2 + $0x35c8] sm:$0xff] }
 0x3ec   : > { %14025 = vmatprep.subr.bf16.mxu0 %v17302_v58  ;;  %v17334_v58 = vcombine.high %v2245_v48, %v2249_v49  ;;  %v2273_v34 = vld [vmem:[%s24580_s2 + $0x35e8] sm:$0xff]  ;;  %v2276_v44 = vld [vmem:[%s24580_s2 + $0x3600] sm:$0xff] }
 0x3ed   : > { %13361 = vmatmul.mubr.bf16.vlgmr.msra.gmra.mrb[0].mxu1 %v20820_v39  ;;  %v2280_v47 = vld [vmem:[%s24580_s2 + $0x3620] sm:$0xff] }
 0x3ee   : > { %14017 = vmatmul.mubr.bf16.vlgmr.msra.gmra.mrb[32].mxu0 %v20820_v39  ;;  %13370 = vmatpush1.bf16.msra.mxu1 %v17299_v2  ;;  %v2253_v2 = vld [vmem:[%s24580_s2 + $0x3548] sm:$0xff] }
 0x3ef   : > { %13401 = vmatprep.mubr.bf16.mxu1 %v20830_v8  ;;  %14026 = vmatpush1.bf16.msra.mxu0 %v17301_v52  ;;  %v17333_v52 = vcombine.low %v2245_v48, %v2249_v49  ;;  %v17342_v17 = vcombine.high %v2253_v2, %v2257_v5  ;;  %v2277_v48 = vld [vmem:[%s24580_s2 + $0x3608] sm:$0xff] }
 0x3f0   : > { %14057 = vmatprep.mubr.bf16.mxu0 %v20830_v8  ;;  %13371 = vmatprep.subr.bf16.mxu1 %v17308_v3  ;;  %v17340_v3 = vcombine.high %v2252_v59, %v2256_v1  ;;  %v2281_v49 = vld [vmem:[%s24580_s2 + $0x3628] sm:$0xff] }
 0x3f1   : > { %14027 = vmatprep.subr.bf16.mxu0 %v17310_v46  ;;  %v2264_v46 = vld [vmem:[%s24580_s2 + $0x35a0] sm:$0xff] }
 0x3f2   : > { %13372 = vmatpush1.bf16.msra.mxu1 %v17307_v51  ;;  %v17339_v51 = vcombine.low %v2252_v59, %v2256_v1  ;;  %v2284_v59 = vld [vmem:[%s24580_s2 + $0x3640] sm:$0xff] }
 0x3f3   : > { %14028 = vmatpush1.bf16.msra.mxu0 %v17309_v6  ;;  %13373 = vmatprep.subr.bf16.mxu1 %v17316_v27  ;;  %v17341_v6 = vcombine.low %v2253_v2, %v2257_v5  ;;  %v17348_v27 = vcombine.high %v2260_v32, %v2264_v46  ;;  %v2288_v1 = vld [vmem:[%s24580_s2 + $0x3660] sm:$0xff]  ;;  %v2285_v2 = vld [vmem:[%s24580_s2 + $0x3648] sm:$0xff] }
 0x3f4   : > { %14029 = vmatprep.subr.bf16.mxu0 %v17318_v28  ;;  %v17350_v28 = vcombine.high %v2261_v22, %v2265_v36  ;;  %v2289_v5 = vld [vmem:[%s24580_s2 + $0x3668] sm:$0xff] }
 0x3f6   : > { %13374 = vmatpush1.bf16.msra.mxu1 %v17315_v37  ;;  %v17347_v37 = vcombine.low %v2260_v32, %v2264_v46  ;;  %v2292_v32 = vld [vmem:[%s24580_s2 + $0x3680] sm:$0xff] }
 0x3f7   : > { %14030 = vmatpush1.bf16.msra.mxu0 %v17317_v38  ;;  %13375 = vmatprep.subr.bf16.mxu1 %v17324_v40  ;;  %v17349_v38 = vcombine.low %v2261_v22, %v2265_v36  ;;  %v17356_v40 = vcombine.high %v2268_v31, %v2272_v4  ;;  %v2296_v46 = vld [vmem:[%s24580_s2 + $0x36a0] sm:$0xff]  ;;  %v2293_v22 = vld [vmem:[%s24580_s2 + $0x3688] sm:$0xff] }
 0x3f8   : > { %14031 = vmatprep.subr.bf16.mxu0 %v17326_v41  ;;  %v17358_v41 = vcombine.high %v2269_v62, %v2273_v34  ;;  %v2297_v36 = vld [vmem:[%s24580_s2 + $0x36a8] sm:$0xff] }
 0x3fa   : > { %13376 = vmatpush1.bf16.msra.mxu1 %v17323_v53  ;;  %v17355_v53 = vcombine.low %v2268_v31, %v2272_v4  ;;  %v2300_v31 = vld [vmem:[%s24580_s2 + $0x36c0] sm:$0xff] }
 0x3fb   : > { %14032 = vmatpush1.bf16.msra.mxu0 %v17325_v55  ;;  %13377 = vmatprep.subr.bf16.mxu1 %v17332_v56  ;;  %v17357_v55 = vcombine.low %v2269_v62, %v2273_v34  ;;  %v17364_v56 = vcombine.high %v2276_v44, %v2280_v47  ;;  %v2304_v4 = vld [vmem:[%s24580_s2 + $0x36e0] sm:$0xff]  ;;  %v2301_v62 = vld [vmem:[%s24580_s2 + $0x36c8] sm:$0xff] }
 0x3fc   : > { %14033 = vmatprep.subr.bf16.mxu0 %v17334_v58  ;;  %v17366_v58 = vcombine.high %v2277_v48, %v2281_v49  ;;  %v2305_v34 = vld [vmem:[%s24580_s2 + $0x36e8] sm:$0xff] }
 0x3fe   : > { %13378 = vmatpush1.bf16.msra.mxu1 %v17331_v9  ;;  %v17363_v9 = vcombine.low %v2276_v44, %v2280_v47  ;;  %v2308_v44 = vld [vmem:[%s24580_s2 + $0x3700] sm:$0xff] }
 0x3ff   : > { %14034 = vmatpush1.bf16.msra.mxu0 %v17333_v52  ;;  %13379 = vmatprep.subr.bf16.mxu1 %v17340_v3  ;;  %v17365_v52 = vcombine.low %v2277_v48, %v2281_v49  ;;  %v17372_v3 = vcombine.high %v2284_v59, %v2288_v1  ;;  %v2312_v47 = vld [vmem:[%s24580_s2 + $0x3720] sm:$0xff]  ;;  %v2309_v48 = vld [vmem:[%s24580_s2 + $0x3708] sm:$0xff] }
 0x400   : > { %14035 = vmatprep.subr.bf16.mxu0 %v17342_v17  ;;  %v17374_v17 = vcombine.high %v2285_v2, %v2289_v5  ;;  %v2313_v49 = vld [vmem:[%s24580_s2 + $0x3728] sm:$0xff] }
 0x402   : > { %13380 = vmatpush1.bf16.msra.mxu1 %v17339_v51  ;;  %v17371_v51 = vcombine.low %v2284_v59, %v2288_v1  ;;  %v2316_v59 = vld [vmem:[%s24580_s2 + $0x3740] sm:$0xff] }
 0x403   : > { %14036 = vmatpush1.bf16.msra.mxu0 %v17341_v6  ;;  %13381 = vmatprep.subr.bf16.mxu1 %v17348_v27  ;;  %v17373_v6 = vcombine.low %v2285_v2, %v2289_v5  ;;  %v17380_v27 = vcombine.high %v2292_v32, %v2296_v46  ;;  %v2320_v1 = vld [vmem:[%s24580_s2 + $0x3760] sm:$0xff]  ;;  %v2317_v2 = vld [vmem:[%s24580_s2 + $0x3748] sm:$0xff] }
 0x404   : > { %14037 = vmatprep.subr.bf16.mxu0 %v17350_v28  ;;  %v17382_v28 = vcombine.high %v2293_v22, %v2297_v36  ;;  %v2321_v5 = vld [vmem:[%s24580_s2 + $0x3768] sm:$0xff] }
 0x406   : > { %13382 = vmatpush1.bf16.msra.mxu1 %v17347_v37  ;;  %v17379_v37 = vcombine.low %v2292_v32, %v2296_v46  ;;  %v2324_v32 = vld [vmem:[%s24580_s2 + $0x3780] sm:$0xff] }
 0x407   : > { %14038 = vmatpush1.bf16.msra.mxu0 %v17349_v38  ;;  %13383 = vmatprep.subr.bf16.mxu1 %v17356_v40  ;;  %v17381_v38 = vcombine.low %v2293_v22, %v2297_v36  ;;  %v17388_v40 = vcombine.high %v2300_v31, %v2304_v4  ;;  %v2328_v46 = vld [vmem:[%s24580_s2 + $0x37a0] sm:$0xff]  ;;  %v2325_v22 = vld [vmem:[%s24580_s2 + $0x3788] sm:$0xff] }
 0x408   : > { %14039 = vmatprep.subr.bf16.mxu0 %v17358_v41  ;;  %v17390_v41 = vcombine.high %v2301_v62, %v2305_v34  ;;  %v2329_v36 = vld [vmem:[%s24580_s2 + $0x37a8] sm:$0xff] }
 0x40a   : > { %13384 = vmatpush1.bf16.msra.mxu1 %v17355_v53  ;;  %v17387_v53 = vcombine.low %v2300_v31, %v2304_v4  ;;  %v2332_v31 = vld [vmem:[%s24580_s2 + $0x37c0] sm:$0xff] }
 0x40b   : > { %14040 = vmatpush1.bf16.msra.mxu0 %v17357_v55  ;;  %13385 = vmatprep.subr.bf16.mxu1 %v17364_v56  ;;  %v17389_v55 = vcombine.low %v2301_v62, %v2305_v34  ;;  %v17396_v56 = vcombine.high %v2308_v44, %v2312_v47  ;;  %v2336_v4 = vld [vmem:[%s24580_s2 + $0x37e0] sm:$0xff]  ;;  %v2333_v62 = vld [vmem:[%s24580_s2 + $0x37c8] sm:$0xff] }
 0x40c   : > { %14041 = vmatprep.subr.bf16.mxu0 %v17366_v58  ;;  %v17398_v58 = vcombine.high %v2309_v48, %v2313_v49  ;;  %v2337_v34 = vld [vmem:[%s24580_s2 + $0x37e8] sm:$0xff] }
 0x40e   : > { %13386 = vmatpush1.bf16.msra.mxu1 %v17363_v9  ;;  %v17395_v9 = vcombine.low %v2308_v44, %v2312_v47  ;;  %v2340_v44 = vld [vmem:[%s24580_s2 + $0x3800] sm:$0xff] }
 0x40f   : > { %14042 = vmatpush1.bf16.msra.mxu0 %v17365_v52  ;;  %13387 = vmatprep.subr.bf16.mxu1 %v17372_v3  ;;  %v17397_v52 = vcombine.low %v2309_v48, %v2313_v49  ;;  %v17404_v3 = vcombine.high %v2316_v59, %v2320_v1  ;;  %v2344_v47 = vld [vmem:[%s24580_s2 + $0x3820] sm:$0xff]  ;;  %v2341_v48 = vld [vmem:[%s24580_s2 + $0x3808] sm:$0xff] }
 0x410   : > { %14043 = vmatprep.subr.bf16.mxu0 %v17374_v17  ;;  %v17406_v17 = vcombine.high %v2317_v2, %v2321_v5  ;;  %v2345_v49 = vld [vmem:[%s24580_s2 + $0x3828] sm:$0xff] }
 0x412   : > { %13388 = vmatpush1.bf16.msra.mxu1 %v17371_v51  ;;  %v17403_v51 = vcombine.low %v2316_v59, %v2320_v1  ;;  %v2348_v59 = vld [vmem:[%s24580_s2 + $0x3840] sm:$0xff] }
 0x413   : > { %14044 = vmatpush1.bf16.msra.mxu0 %v17373_v6  ;;  %13389 = vmatprep.subr.bf16.mxu1 %v17380_v27  ;;  %v17405_v6 = vcombine.low %v2317_v2, %v2321_v5  ;;  %v17412_v27 = vcombine.high %v2324_v32, %v2328_v46  ;;  %v2352_v1 = vld [vmem:[%s24580_s2 + $0x3860] sm:$0xff]  ;;  %v17427_v2 = vcombine.low %v2340_v44, %v2344_v47  ;;  %v2349_v5 = vld [vmem:[%s24580_s2 + $0x3848] sm:$0xff] }
 0x414   : > { %14045 = vmatprep.subr.bf16.mxu0 %v17382_v28  ;;  %v17414_v28 = vcombine.high %v2325_v22, %v2329_v36 }
 0x416   : > { %13390 = vmatpush1.bf16.msra.mxu1 %v17379_v37  ;;  %v17411_v37 = vcombine.low %v2324_v32, %v2328_v46  ;;  %v2356_v32 = vld [vmem:[%s24580_s2 + $0x3880] sm:$0xff] }
 0x417   : > { %14046 = vmatpush1.bf16.msra.mxu0 %v17381_v38  ;;  %13391 = vmatprep.subr.bf16.mxu1 %v17388_v40  ;;  %v17413_v38 = vcombine.low %v2325_v22, %v2329_v36  ;;  %v17420_v40 = vcombine.high %v2332_v31, %v2336_v4  ;;  %v2360_v46 = vld [vmem:[%s24580_s2 + $0x38a0] sm:$0xff]  ;;  %v21034_v22 = vpack.c.bf16 %v18640_v50, %v18640_v50  ;;  %v2357_v36 = vld [vmem:[%s24580_s2 + $0x3888] sm:$0xff] }
 0x418   : > { %14047 = vmatprep.subr.bf16.mxu0 %v17390_v41  ;;  %v17422_v41 = vcombine.high %v2333_v62, %v2337_v34 }
 0x41a   : > { %13392 = vmatpush1.bf16.msra.mxu1 %v17387_v53  ;;  %v17419_v53 = vcombine.low %v2332_v31, %v2336_v4  ;;  %v2364_v31 = vld [vmem:[%s24580_s2 + $0x38c0] sm:$0xff] }
 0x41b   : > { %14048 = vmatpush1.bf16.msra.mxu0 %v17389_v55  ;;  %13393 = vmatprep.subr.bf16.mxu1 %v17396_v56  ;;  %v17421_v55 = vcombine.low %v2333_v62, %v2337_v34  ;;  %v17428_v56 = vcombine.high %v2340_v44, %v2344_v47  ;;  %v2368_v4 = vld [vmem:[%s24580_s2 + $0x38e0] sm:$0xff]  ;;  %v2365_v62 = vld [vmem:[%s24580_s2 + $0x38c8] sm:$0xff] }
 0x41c   : > { %14049 = vmatprep.subr.bf16.mxu0 %v17398_v58  ;;  %v17430_v58 = vcombine.high %v2341_v48, %v2345_v49  ;;  %v2369_v34 = vld [vmem:[%s24580_s2 + $0x38e8] sm:$0xff]  ;;  %v2372_v44 = vld [vmem:[%s24580_s2 + $0x3900] sm:$0xff] }
 0x41d   : > { %v2376_v47 = vld [vmem:[%s24580_s2 + $0x3920] sm:$0xff] }
 0x41e   : > { %13394 = vmatpush1.bf16.msra.mxu1 %v17395_v9  ;;  %v2353_v9 = vld [vmem:[%s24580_s2 + $0x3868] sm:$0xff] }
 0x41f   : > { %14050 = vmatpush1.bf16.msra.mxu0 %v17397_v52  ;;  %13395 = vmatprep.subr.bf16.mxu1 %v17404_v3  ;;  %v21024_v52 = vpack.c.bf16 %v18613_v60, %v18613_v60  ;;  %v17429_v3 = vcombine.low %v2341_v48, %v2345_v49  ;;  %v17438_v60 = vcombine.high %v2349_v5, %v2353_v9  ;;  %v2373_v48 = vld [vmem:[%s24580_s2 + $0x3908] sm:$0xff] }
 0x420   : > { %14051 = vmatprep.subr.bf16.mxu0 %v17406_v17  ;;  %v17436_v17 = vcombine.high %v2348_v59, %v2352_v1  ;;  %v17437_v50 = vcombine.low %v2349_v5, %v2353_v9  ;;  %v2377_v49 = vld [vmem:[%s24580_s2 + $0x3928] sm:$0xff]  ;;  %v17459_v9 = vcombine.low %v2372_v44, %v2376_v47 }
 0x421   : > { %v2385_v5 = vld [vmem:[%s24580_s2 + $0x3968] sm:$0xff] }
 0x422   : > { %13396 = vmatpush1.bf16.msra.mxu1 %v17403_v51  ;;  %v2361_v51 = vld [vmem:[%s24580_s2 + $0x38a8] sm:$0xff] }
 0x423   : > { %14052 = vmatpush1.bf16.msra.mxu0 %v17405_v6  ;;  %13397 = vmatprep.subr.bf16.mxu1 %v17412_v27  ;;  %v17435_v6 = vcombine.low %v2348_v59, %v2352_v1  ;;  %v17444_v27 = vcombine.high %v2356_v32, %v2360_v46  ;;  %v2380_v59 = vld [vmem:[%s24580_s2 + $0x3940] sm:$0xff] }
 0x424   : > { %14053 = vmatprep.subr.bf16.mxu0 %v17414_v28  ;;  %v17446_v28 = vcombine.high %v2357_v36, %v2361_v51  ;;  %v2384_v1 = vld [vmem:[%s24580_s2 + $0x3960] sm:$0xff] }
 0x426   : > { %13398 = vmatpush1.bf16.msra.mxu1 %v17411_v37  ;;  %v17443_v37 = vcombine.low %v2356_v32, %v2360_v46  ;;  %v2388_v46 = vld [vmem:[%s24580_s2 + $0x3980] sm:$0xff] }
 0x427   : > { %14054 = vmatpush1.bf16.msra.mxu0 %v17413_v38  ;;  %13399 = vmatprep.subr.bf16.mxu1 %v17420_v40  ;;  %v17445_v38 = vcombine.low %v2357_v36, %v2361_v51  ;;  %v17452_v40 = vcombine.high %v2364_v31, %v2368_v4  ;;  %v2389_v36 = vld [vmem:[%s24580_s2 + $0x3988] sm:$0xff] }
 0x428   : > { %14055 = vmatprep.subr.bf16.mxu0 %v17422_v41  ;;  %v17454_v41 = vcombine.high %v2365_v62, %v2369_v34  ;;  %v2393_v51 = vld [vmem:[%s24580_s2 + $0x39a8] sm:$0xff] }
 0x42a   : > { %13400 = vmatpush1.bf16.msra.mxu1 %v17419_v53  ;;  %v17451_v53 = vcombine.low %v2364_v31, %v2368_v4  ;;  %v2396_v31 = vld [vmem:[%s24580_s2 + $0x39c0] sm:$0xff] }
 0x42b   : > { %14056 = vmatpush1.bf16.msra.mxu0 %v17421_v55  ;;  %13410 = vmatprep.subr.bf16.mxu1 %v17428_v56  ;;  %v17453_v55 = vcombine.low %v2365_v62, %v2369_v34  ;;  %v17460_v56 = vcombine.high %v2372_v44, %v2376_v47  ;;  %v2400_v4 = vld [vmem:[%s24580_s2 + $0x39e0] sm:$0xff]  ;;  %v2397_v62 = vld [vmem:[%s24580_s2 + $0x39c8] sm:$0xff] }
 0x42c   : > { %14066 = vmatprep.subr.bf16.mxu0 %v17430_v58  ;;  %v17462_v58 = vcombine.high %v2373_v48, %v2377_v49  ;;  %v2401_v34 = vld [vmem:[%s24580_s2 + $0x39e8] sm:$0xff]  ;;  %v2404_v44 = vld [vmem:[%s24580_s2 + $0x3a00] sm:$0xff] }
 0x42d   : > { %13402 = vmatmul.mubr.bf16.vlgmr.msra.gmra.mrb[0].mxu1 %v21024_v52  ;;  %v2408_v47 = vld [vmem:[%s24580_s2 + $0x3a20] sm:$0xff] }
 0x42e   : > { %14058 = vmatmul.mubr.bf16.vlgmr.msra.gmra.mrb[32].mxu0 %v21024_v52  ;;  %13411 = vmatpush1.bf16.msra.mxu1 %v17427_v2  ;;  %v2381_v2 = vld [vmem:[%s24580_s2 + $0x3948] sm:$0xff] }
 0x42f   : > { %13442 = vmatprep.mubr.bf16.mxu1 %v21034_v22  ;;  %14067 = vmatpush1.bf16.msra.mxu0 %v17429_v3  ;;  %v17461_v3 = vcombine.low %v2373_v48, %v2377_v49  ;;  %v17470_v32 = vcombine.high %v2381_v2, %v2385_v5  ;;  %v2405_v48 = vld [vmem:[%s24580_s2 + $0x3a08] sm:$0xff] }
 0x430   : > { %14098 = vmatprep.mubr.bf16.mxu0 %v21034_v22  ;;  %13412 = vmatprep.subr.bf16.mxu1 %v17436_v17  ;;  %v17468_v17 = vcombine.high %v2380_v59, %v2384_v1  ;;  %v2409_v49 = vld [vmem:[%s24580_s2 + $0x3a28] sm:$0xff] }
 0x431   : > { %14068 = vmatprep.subr.bf16.mxu0 %v17438_v60  ;;  %v2392_v60 = vld [vmem:[%s24580_s2 + $0x39a0] sm:$0xff] }
 0x432   : > { %13413 = vmatpush1.bf16.msra.mxu1 %v17435_v6  ;;  %v17467_v6 = vcombine.low %v2380_v59, %v2384_v1  ;;  %v2412_v59 = vld [vmem:[%s24580_s2 + $0x3a40] sm:$0xff] }
 0x433   : > { %14069 = vmatpush1.bf16.msra.mxu0 %v17437_v50  ;;  %13414 = vmatprep.subr.bf16.mxu1 %v17444_v27  ;;  %v17469_v50 = vcombine.low %v2381_v2, %v2385_v5  ;;  %v17476_v27 = vcombine.high %v2388_v46, %v2392_v60  ;;  %v2416_v1 = vld [vmem:[%s24580_s2 + $0x3a60] sm:$0xff]  ;;  %v2413_v2 = vld [vmem:[%s24580_s2 + $0x3a48] sm:$0xff] }
 0x434   : > { %14070 = vmatprep.subr.bf16.mxu0 %v17446_v28  ;;  %v17478_v28 = vcombine.high %v2389_v36, %v2393_v51  ;;  %v2417_v5 = vld [vmem:[%s24580_s2 + $0x3a68] sm:$0xff] }
 0x436   : > { %13415 = vmatpush1.bf16.msra.mxu1 %v17443_v37  ;;  %v17475_v37 = vcombine.low %v2388_v46, %v2392_v60  ;;  %v2420_v46 = vld [vmem:[%s24580_s2 + $0x3a80] sm:$0xff] }
 0x437   : > { %14071 = vmatpush1.bf16.msra.mxu0 %v17445_v38  ;;  %13416 = vmatprep.subr.bf16.mxu1 %v17452_v40  ;;  %v17477_v38 = vcombine.low %v2389_v36, %v2393_v51  ;;  %v17484_v40 = vcombine.high %v2396_v31, %v2400_v4  ;;  %v2424_v60 = vld [vmem:[%s24580_s2 + $0x3aa0] sm:$0xff]  ;;  %v2421_v36 = vld [vmem:[%s24580_s2 + $0x3a88] sm:$0xff] }
 0x438   : > { %14072 = vmatprep.subr.bf16.mxu0 %v17454_v41  ;;  %v17486_v41 = vcombine.high %v2397_v62, %v2401_v34  ;;  %v2425_v51 = vld [vmem:[%s24580_s2 + $0x3aa8] sm:$0xff] }
 0x43a   : > { %13417 = vmatpush1.bf16.msra.mxu1 %v17451_v53  ;;  %v17483_v53 = vcombine.low %v2396_v31, %v2400_v4  ;;  %v2428_v31 = vld [vmem:[%s24580_s2 + $0x3ac0] sm:$0xff] }
 0x43b   : > { %14073 = vmatpush1.bf16.msra.mxu0 %v17453_v55  ;;  %13418 = vmatprep.subr.bf16.mxu1 %v17460_v56  ;;  %v17485_v55 = vcombine.low %v2397_v62, %v2401_v34  ;;  %v17492_v56 = vcombine.high %v2404_v44, %v2408_v47  ;;  %v2432_v4 = vld [vmem:[%s24580_s2 + $0x3ae0] sm:$0xff]  ;;  %v2429_v62 = vld [vmem:[%s24580_s2 + $0x3ac8] sm:$0xff] }
 0x43c   : > { %14074 = vmatprep.subr.bf16.mxu0 %v17462_v58  ;;  %v17494_v58 = vcombine.high %v2405_v48, %v2409_v49  ;;  %v2433_v34 = vld [vmem:[%s24580_s2 + $0x3ae8] sm:$0xff] }
 0x43e   : > { %13419 = vmatpush1.bf16.msra.mxu1 %v17459_v9  ;;  %v17491_v9 = vcombine.low %v2404_v44, %v2408_v47  ;;  %v2436_v44 = vld [vmem:[%s24580_s2 + $0x3b00] sm:$0xff] }
 0x43f   : > { %14075 = vmatpush1.bf16.msra.mxu0 %v17461_v3  ;;  %13420 = vmatprep.subr.bf16.mxu1 %v17468_v17  ;;  %v17493_v3 = vcombine.low %v2405_v48, %v2409_v49  ;;  %v17500_v17 = vcombine.high %v2412_v59, %v2416_v1  ;;  %v2440_v47 = vld [vmem:[%s24580_s2 + $0x3b20] sm:$0xff]  ;;  %v2437_v48 = vld [vmem:[%s24580_s2 + $0x3b08] sm:$0xff] }
 0x440   : > { %14076 = vmatprep.subr.bf16.mxu0 %v17470_v32  ;;  %v17502_v32 = vcombine.high %v2413_v2, %v2417_v5  ;;  %v2441_v49 = vld [vmem:[%s24580_s2 + $0x3b28] sm:$0xff] }
 0x442   : > { %13421 = vmatpush1.bf16.msra.mxu1 %v17467_v6  ;;  %v17499_v6 = vcombine.low %v2412_v59, %v2416_v1  ;;  %v2444_v59 = vld [vmem:[%s24580_s2 + $0x3b40] sm:$0xff] }
 0x443   : > { %14077 = vmatpush1.bf16.msra.mxu0 %v17469_v50  ;;  %13422 = vmatprep.subr.bf16.mxu1 %v17476_v27  ;;  %v17501_v50 = vcombine.low %v2413_v2, %v2417_v5  ;;  %v17508_v27 = vcombine.high %v2420_v46, %v2424_v60  ;;  %v2448_v1 = vld [vmem:[%s24580_s2 + $0x3b60] sm:$0xff]  ;;  %v2445_v2 = vld [vmem:[%s24580_s2 + $0x3b48] sm:$0xff] }
 0x444   : > { %14078 = vmatprep.subr.bf16.mxu0 %v17478_v28  ;;  %v17510_v28 = vcombine.high %v2421_v36, %v2425_v51  ;;  %v2449_v5 = vld [vmem:[%s24580_s2 + $0x3b68] sm:$0xff] }
 0x446   : > { %13423 = vmatpush1.bf16.msra.mxu1 %v17475_v37  ;;  %v17507_v37 = vcombine.low %v2420_v46, %v2424_v60  ;;  %v2452_v46 = vld [vmem:[%s24580_s2 + $0x3b80] sm:$0xff] }
 0x447   : > { %14079 = vmatpush1.bf16.msra.mxu0 %v17477_v38  ;;  %13424 = vmatprep.subr.bf16.mxu1 %v17484_v40  ;;  %v17509_v38 = vcombine.low %v2421_v36, %v2425_v51  ;;  %v17516_v40 = vcombine.high %v2428_v31, %v2432_v4  ;;  %v2456_v60 = vld [vmem:[%s24580_s2 + $0x3ba0] sm:$0xff]  ;;  %v2453_v36 = vld [vmem:[%s24580_s2 + $0x3b88] sm:$0xff] }
 0x448   : > { %14080 = vmatprep.subr.bf16.mxu0 %v17486_v41  ;;  %v17518_v41 = vcombine.high %v2429_v62, %v2433_v34  ;;  %v2457_v51 = vld [vmem:[%s24580_s2 + $0x3ba8] sm:$0xff] }
 0x44a   : > { %13425 = vmatpush1.bf16.msra.mxu1 %v17483_v53  ;;  %v17515_v53 = vcombine.low %v2428_v31, %v2432_v4  ;;  %v2460_v31 = vld [vmem:[%s24580_s2 + $0x3bc0] sm:$0xff] }
 0x44b   : > { %14081 = vmatpush1.bf16.msra.mxu0 %v17485_v55  ;;  %13426 = vmatprep.subr.bf16.mxu1 %v17492_v56  ;;  %v17517_v55 = vcombine.low %v2429_v62, %v2433_v34  ;;  %v17524_v56 = vcombine.high %v2436_v44, %v2440_v47  ;;  %v2464_v4 = vld [vmem:[%s24580_s2 + $0x3be0] sm:$0xff]  ;;  %v2461_v62 = vld [vmem:[%s24580_s2 + $0x3bc8] sm:$0xff] }
 0x44c   : > { %14082 = vmatprep.subr.bf16.mxu0 %v17494_v58  ;;  %v17526_v58 = vcombine.high %v2437_v48, %v2441_v49  ;;  %v2465_v34 = vld [vmem:[%s24580_s2 + $0x3be8] sm:$0xff] }
 0x44e   : > { %13427 = vmatpush1.bf16.msra.mxu1 %v17491_v9  ;;  %v17523_v9 = vcombine.low %v2436_v44, %v2440_v47  ;;  %v2468_v44 = vld [vmem:[%s24580_s2 + $0x3c00] sm:$0xff] }
 0x44f   : > { %14083 = vmatpush1.bf16.msra.mxu0 %v17493_v3  ;;  %13428 = vmatprep.subr.bf16.mxu1 %v17500_v17  ;;  %v17525_v3 = vcombine.low %v2437_v48, %v2441_v49  ;;  %v17532_v17 = vcombine.high %v2444_v59, %v2448_v1  ;;  %v2472_v47 = vld [vmem:[%s24580_s2 + $0x3c20] sm:$0xff]  ;;  %v2469_v48 = vld [vmem:[%s24580_s2 + $0x3c08] sm:$0xff] }
 0x450   : > { %14084 = vmatprep.subr.bf16.mxu0 %v17502_v32  ;;  %v17534_v32 = vcombine.high %v2445_v2, %v2449_v5  ;;  %v2473_v49 = vld [vmem:[%s24580_s2 + $0x3c28] sm:$0xff] }
 0x452   : > { %13429 = vmatpush1.bf16.msra.mxu1 %v17499_v6  ;;  %v17531_v6 = vcombine.low %v2444_v59, %v2448_v1  ;;  %v2476_v59 = vld [vmem:[%s24580_s2 + $0x3c40] sm:$0xff] }
 0x453   : > { %14085 = vmatpush1.bf16.msra.mxu0 %v17501_v50  ;;  %13430 = vmatprep.subr.bf16.mxu1 %v17508_v27  ;;  %v17533_v50 = vcombine.low %v2445_v2, %v2449_v5  ;;  %v17540_v27 = vcombine.high %v2452_v46, %v2456_v60  ;;  %v2480_v1 = vld [vmem:[%s24580_s2 + $0x3c60] sm:$0xff]  ;;  %v17555_v2 = vcombine.low %v2468_v44, %v2472_v47  ;;  %v2477_v5 = vld [vmem:[%s24580_s2 + $0x3c48] sm:$0xff] }
 0x454   : > { %14086 = vmatprep.subr.bf16.mxu0 %v17510_v28  ;;  %v17542_v28 = vcombine.high %v2453_v36, %v2457_v51 }
 0x456   : > { %13431 = vmatpush1.bf16.msra.mxu1 %v17507_v37  ;;  %v17539_v37 = vcombine.low %v2452_v46, %v2456_v60  ;;  %v2484_v46 = vld [vmem:[%s24580_s2 + $0x3c80] sm:$0xff] }
 0x457   : > { %14087 = vmatpush1.bf16.msra.mxu0 %v17509_v38  ;;  %13432 = vmatprep.subr.bf16.mxu1 %v17516_v40  ;;  %v17541_v38 = vcombine.low %v2453_v36, %v2457_v51  ;;  %v17548_v40 = vcombine.high %v2460_v31, %v2464_v4  ;;  %v2488_v60 = vld [vmem:[%s24580_s2 + $0x3ca0] sm:$0xff]  ;;  %v21238_v36 = vpack.c.bf16 %v18656_v35, %v18656_v35  ;;  %v2485_v51 = vld [vmem:[%s24580_s2 + $0x3c88] sm:$0xff] }
 0x458   : > { %14088 = vmatprep.subr.bf16.mxu0 %v17518_v41  ;;  %v17550_v41 = vcombine.high %v2461_v62, %v2465_v34 }
 0x45a   : > { %13433 = vmatpush1.bf16.msra.mxu1 %v17515_v53  ;;  %v17547_v53 = vcombine.low %v2460_v31, %v2464_v4  ;;  %v2492_v31 = vld [vmem:[%s24580_s2 + $0x3cc0] sm:$0xff] }
 0x45b   : > { %14089 = vmatpush1.bf16.msra.mxu0 %v17517_v55  ;;  %13434 = vmatprep.subr.bf16.mxu1 %v17524_v56  ;;  %v17549_v55 = vcombine.low %v2461_v62, %v2465_v34  ;;  %v17556_v56 = vcombine.high %v2468_v44, %v2472_v47  ;;  %v2496_v4 = vld [vmem:[%s24580_s2 + $0x3ce0] sm:$0xff]  ;;  %v2493_v62 = vld [vmem:[%s24580_s2 + $0x3cc8] sm:$0xff] }
 0x45c   : > { %14090 = vmatprep.subr.bf16.mxu0 %v17526_v58  ;;  %v17558_v58 = vcombine.high %v2469_v48, %v2473_v49  ;;  %v2497_v34 = vld [vmem:[%s24580_s2 + $0x3ce8] sm:$0xff]  ;;  %v2500_v44 = vld [vmem:[%s24580_s2 + $0x3d00] sm:$0xff] }
 0x45d   : > { %v2504_v47 = vld [vmem:[%s24580_s2 + $0x3d20] sm:$0xff] }
 0x45e   : > { %13435 = vmatpush1.bf16.msra.mxu1 %v17523_v9  ;;  %v2481_v9 = vld [vmem:[%s24580_s2 + $0x3c68] sm:$0xff] }
 0x45f   : > { %14091 = vmatpush1.bf16.msra.mxu0 %v17525_v3  ;;  %13436 = vmatprep.subr.bf16.mxu1 %v17532_v17  ;;  %v21228_v3 = vpack.c.bf16 %v18629_v16, %v18629_v16  ;;  %v17557_v17 = vcombine.low %v2469_v48, %v2473_v49  ;;  %v17566_v16 = vcombine.high %v2477_v5, %v2481_v9  ;;  %v2501_v48 = vld [vmem:[%s24580_s2 + $0x3d08] sm:$0xff] }
 0x460   : > { %14092 = vmatprep.subr.bf16.mxu0 %v17534_v32  ;;  %v17564_v32 = vcombine.high %v2476_v59, %v2480_v1  ;;  %v17565_v35 = vcombine.low %v2477_v5, %v2481_v9  ;;  %v2505_v49 = vld [vmem:[%s24580_s2 + $0x3d28] sm:$0xff]  ;;  %v17587_v9 = vcombine.low %v2500_v44, %v2504_v47 }
 0x461   : > { %v2513_v5 = vld [vmem:[%s24580_s2 + $0x3d68] sm:$0xff] }
 0x462   : > { %13437 = vmatpush1.bf16.msra.mxu1 %v17531_v6  ;;  %v2489_v6 = vld [vmem:[%s24580_s2 + $0x3ca8] sm:$0xff] }
 0x463   : > { %14093 = vmatpush1.bf16.msra.mxu0 %v17533_v50  ;;  %13438 = vmatprep.subr.bf16.mxu1 %v17540_v27  ;;  %v17563_v50 = vcombine.low %v2476_v59, %v2480_v1  ;;  %v17572_v27 = vcombine.high %v2484_v46, %v2488_v60  ;;  %v2508_v59 = vld [vmem:[%s24580_s2 + $0x3d40] sm:$0xff] }
 0x464   : > { %14094 = vmatprep.subr.bf16.mxu0 %v17542_v28  ;;  %v17574_v28 = vcombine.high %v2485_v51, %v2489_v6  ;;  %v2512_v1 = vld [vmem:[%s24580_s2 + $0x3d60] sm:$0xff] }
 0x466   : > { %13439 = vmatpush1.bf16.msra.mxu1 %v17539_v37  ;;  %v17571_v37 = vcombine.low %v2484_v46, %v2488_v60  ;;  %v2516_v60 = vld [vmem:[%s24580_s2 + $0x3d80] sm:$0xff] }
 0x467   : > { %14095 = vmatpush1.bf16.msra.mxu0 %v17541_v38  ;;  %13440 = vmatprep.subr.bf16.mxu1 %v17548_v40  ;;  %v17573_v38 = vcombine.low %v2485_v51, %v2489_v6  ;;  %v17580_v40 = vcombine.high %v2492_v31, %v2496_v4  ;;  %v2517_v51 = vld [vmem:[%s24580_s2 + $0x3d88] sm:$0xff] }
 0x468   : > { %14096 = vmatprep.subr.bf16.mxu0 %v17550_v41  ;;  %v17582_v41 = vcombine.high %v2493_v62, %v2497_v34  ;;  %v2521_v6 = vld [vmem:[%s24580_s2 + $0x3da8] sm:$0xff] }
 0x46a   : > { %13441 = vmatpush1.bf16.msra.mxu1 %v17547_v53  ;;  %v17579_v53 = vcombine.low %v2492_v31, %v2496_v4  ;;  %v2524_v31 = vld [vmem:[%s24580_s2 + $0x3dc0] sm:$0xff] }
 0x46b   : > { %14097 = vmatpush1.bf16.msra.mxu0 %v17549_v55  ;;  %13451 = vmatprep.subr.bf16.mxu1 %v17556_v56  ;;  %v17581_v55 = vcombine.low %v2493_v62, %v2497_v34  ;;  %v17588_v56 = vcombine.high %v2500_v44, %v2504_v47  ;;  %v2528_v4 = vld [vmem:[%s24580_s2 + $0x3de0] sm:$0xff]  ;;  %v2525_v62 = vld [vmem:[%s24580_s2 + $0x3dc8] sm:$0xff] }
 0x46c   : > { %14107 = vmatprep.subr.bf16.mxu0 %v17558_v58  ;;  %v17590_v58 = vcombine.high %v2501_v48, %v2505_v49  ;;  %v2529_v34 = vld [vmem:[%s24580_s2 + $0x3de8] sm:$0xff]  ;;  %v2532_v44 = vld [vmem:[%s24580_s2 + $0x3e00] sm:$0xff] }
 0x46d   : > { %13443 = vmatmul.mubr.bf16.vlgmr.msra.gmra.mrb[0].mxu1 %v21228_v3  ;;  %v2536_v47 = vld [vmem:[%s24580_s2 + $0x3e20] sm:$0xff] }
 0x46e   : > { %14099 = vmatmul.mubr.bf16.vlgmr.msra.gmra.mrb[32].mxu0 %v21228_v3  ;;  %13452 = vmatpush1.bf16.msra.mxu1 %v17555_v2  ;;  %v2509_v2 = vld [vmem:[%s24580_s2 + $0x3d48] sm:$0xff] }
 0x46f   : > { %13483 = vmatprep.mubr.bf16.mxu1 %v21238_v36  ;;  %14108 = vmatpush1.bf16.msra.mxu0 %v17557_v17  ;;  %v17589_v17 = vcombine.low %v2501_v48, %v2505_v49  ;;  %v17598_v46 = vcombine.high %v2509_v2, %v2513_v5  ;;  %v2533_v48 = vld [vmem:[%s24580_s2 + $0x3e08] sm:$0xff] }
 0x470   : > { %14139 = vmatprep.mubr.bf16.mxu0 %v21238_v36  ;;  %13453 = vmatprep.subr.bf16.mxu1 %v17564_v32  ;;  %v17596_v32 = vcombine.high %v2508_v59, %v2512_v1  ;;  %v2537_v49 = vld [vmem:[%s24580_s2 + $0x3e28] sm:$0xff] }
 0x471   : > { %14109 = vmatprep.subr.bf16.mxu0 %v17566_v16  ;;  %v2520_v16 = vld [vmem:[%s24580_s2 + $0x3da0] sm:$0xff] }
 0x472   : > { %13454 = vmatpush1.bf16.msra.mxu1 %v17563_v50  ;;  %v17595_v50 = vcombine.low %v2508_v59, %v2512_v1  ;;  %v2540_v59 = vld [vmem:[%s24580_s2 + $0x3e40] sm:$0xff] }
 0x473   : > { %14110 = vmatpush1.bf16.msra.mxu0 %v17565_v35  ;;  %13455 = vmatprep.subr.bf16.mxu1 %v17572_v27  ;;  %v17597_v35 = vcombine.low %v2509_v2, %v2513_v5  ;;  %v17604_v27 = vcombine.high %v2516_v60, %v2520_v16  ;;  %v2544_v1 = vld [vmem:[%s24580_s2 + $0x3e60] sm:$0xff]  ;;  %v2541_v2 = vld [vmem:[%s24580_s2 + $0x3e48] sm:$0xff] }
 0x474   : > { %14111 = vmatprep.subr.bf16.mxu0 %v17574_v28  ;;  %v17606_v28 = vcombine.high %v2517_v51, %v2521_v6  ;;  %v2545_v5 = vld [vmem:[%s24580_s2 + $0x3e68] sm:$0xff] }
 0x476   : > { %13456 = vmatpush1.bf16.msra.mxu1 %v17571_v37  ;;  %v17603_v37 = vcombine.low %v2516_v60, %v2520_v16  ;;  %v2548_v60 = vld [vmem:[%s24580_s2 + $0x3e80] sm:$0xff] }
 0x477   : > { %14112 = vmatpush1.bf16.msra.mxu0 %v17573_v38  ;;  %13457 = vmatprep.subr.bf16.mxu1 %v17580_v40  ;;  %v17605_v38 = vcombine.low %v2517_v51, %v2521_v6  ;;  %v17612_v40 = vcombine.high %v2524_v31, %v2528_v4  ;;  %v2552_v16 = vld [vmem:[%s24580_s2 + $0x3ea0] sm:$0xff]  ;;  %v2549_v51 = vld [vmem:[%s24580_s2 + $0x3e88] sm:$0xff] }
 0x478   : > { %14113 = vmatprep.subr.bf16.mxu0 %v17582_v41  ;;  %v17614_v41 = vcombine.high %v2525_v62, %v2529_v34  ;;  %v2553_v6 = vld [vmem:[%s24580_s2 + $0x3ea8] sm:$0xff] }
 0x47a   : > { %13458 = vmatpush1.bf16.msra.mxu1 %v17579_v53  ;;  %v17611_v53 = vcombine.low %v2524_v31, %v2528_v4  ;;  %v2556_v31 = vld [vmem:[%s24580_s2 + $0x3ec0] sm:$0xff] }
 0x47b   : > { %14114 = vmatpush1.bf16.msra.mxu0 %v17581_v55  ;;  %13459 = vmatprep.subr.bf16.mxu1 %v17588_v56  ;;  %v17613_v55 = vcombine.low %v2525_v62, %v2529_v34  ;;  %v17620_v56 = vcombine.high %v2532_v44, %v2536_v47  ;;  %v2560_v4 = vld [vmem:[%s24580_s2 + $0x3ee0] sm:$0xff]  ;;  %v2557_v62 = vld [vmem:[%s24580_s2 + $0x3ec8] sm:$0xff] }
 0x47c   : > { %14115 = vmatprep.subr.bf16.mxu0 %v17590_v58  ;;  %v17622_v58 = vcombine.high %v2533_v48, %v2537_v49  ;;  %v2561_v34 = vld [vmem:[%s24580_s2 + $0x3ee8] sm:$0xff] }
 0x47e   : > { %13460 = vmatpush1.bf16.msra.mxu1 %v17587_v9  ;;  %v17619_v9 = vcombine.low %v2532_v44, %v2536_v47  ;;  %v2564_v44 = vld [vmem:[%s24580_s2 + $0x3f00] sm:$0xff] }
 0x47f   : > { %14116 = vmatpush1.bf16.msra.mxu0 %v17589_v17  ;;  %13461 = vmatprep.subr.bf16.mxu1 %v17596_v32  ;;  %v17621_v17 = vcombine.low %v2533_v48, %v2537_v49  ;;  %v17628_v32 = vcombine.high %v2540_v59, %v2544_v1  ;;  %v2568_v47 = vld [vmem:[%s24580_s2 + $0x3f20] sm:$0xff]  ;;  %v2565_v48 = vld [vmem:[%s24580_s2 + $0x3f08] sm:$0xff] }
 0x480   : > { %14117 = vmatprep.subr.bf16.mxu0 %v17598_v46  ;;  %v17630_v46 = vcombine.high %v2541_v2, %v2545_v5  ;;  %v2569_v49 = vld [vmem:[%s24580_s2 + $0x3f28] sm:$0xff] }
 0x482   : > { %13462 = vmatpush1.bf16.msra.mxu1 %v17595_v50  ;;  %v17627_v50 = vcombine.low %v2540_v59, %v2544_v1  ;;  %v2572_v59 = vld [vmem:[%s24580_s2 + $0x3f40] sm:$0xff] }
 0x483   : > { %14118 = vmatpush1.bf16.msra.mxu0 %v17597_v35  ;;  %13463 = vmatprep.subr.bf16.mxu1 %v17604_v27  ;;  %v17629_v35 = vcombine.low %v2541_v2, %v2545_v5  ;;  %v17636_v27 = vcombine.high %v2548_v60, %v2552_v16  ;;  %v2576_v1 = vld [vmem:[%s24580_s2 + $0x3f60] sm:$0xff]  ;;  %v2573_v2 = vld [vmem:[%s24580_s2 + $0x3f48] sm:$0xff] }
 0x484   : > { %14119 = vmatprep.subr.bf16.mxu0 %v17606_v28  ;;  %v17638_v28 = vcombine.high %v2549_v51, %v2553_v6  ;;  %v2577_v5 = vld [vmem:[%s24580_s2 + $0x3f68] sm:$0xff] }
 0x486   : > { %13464 = vmatpush1.bf16.msra.mxu1 %v17603_v37  ;;  %v17635_v37 = vcombine.low %v2548_v60, %v2552_v16  ;;  %v2580_v60 = vld [vmem:[%s24580_s2 + $0x3f80] sm:$0xff] }
 0x487   : > { %14120 = vmatpush1.bf16.msra.mxu0 %v17605_v38  ;;  %13465 = vmatprep.subr.bf16.mxu1 %v17612_v40  ;;  %v17637_v38 = vcombine.low %v2549_v51, %v2553_v6  ;;  %v17644_v40 = vcombine.high %v2556_v31, %v2560_v4  ;;  %v2584_v16 = vld [vmem:[%s24580_s2 + $0x3fa0] sm:$0xff]  ;;  %v2581_v51 = vld [vmem:[%s24580_s2 + $0x3f88] sm:$0xff] }
 0x488   : > { %14121 = vmatprep.subr.bf16.mxu0 %v17614_v41  ;;  %v17646_v41 = vcombine.high %v2557_v62, %v2561_v34  ;;  %v2585_v6 = vld [vmem:[%s24580_s2 + $0x3fa8] sm:$0xff] }
 0x48a   : > { %13466 = vmatpush1.bf16.msra.mxu1 %v17611_v53  ;;  %v17643_v53 = vcombine.low %v2556_v31, %v2560_v4  ;;  %v2588_v31 = vld [vmem:[%s24580_s2 + $0x3fc0] sm:$0xff] }
 0x48b   : > { %14122 = vmatpush1.bf16.msra.mxu0 %v17613_v55  ;;  %13467 = vmatprep.subr.bf16.mxu1 %v17620_v56  ;;  %v17645_v55 = vcombine.low %v2557_v62, %v2561_v34  ;;  %v17652_v56 = vcombine.high %v2564_v44, %v2568_v47  ;;  %v2592_v4 = vld [vmem:[%s24580_s2 + $0x3fe0] sm:$0xff]  ;;  %v2589_v62 = vld [vmem:[%s24580_s2 + $0x3fc8] sm:$0xff] }
 0x48c   : > { %14123 = vmatprep.subr.bf16.mxu0 %v17622_v58  ;;  %v17654_v58 = vcombine.high %v2565_v48, %v2569_v49  ;;  %v2593_v34 = vld [vmem:[%s24580_s2 + $0x3fe8] sm:$0xff] }
 0x48e   : > { %13468 = vmatpush1.bf16.msra.mxu1 %v17619_v9  ;;  %v17651_v9 = vcombine.low %v2564_v44, %v2568_v47  ;;  %v550_v44 = vld [vmem:[%s24580_s2 + $0x10] sm:$0xff] }
 0x48f   : > { %14124 = vmatpush1.bf16.msra.mxu0 %v17621_v17  ;;  %13469 = vmatprep.subr.bf16.mxu1 %v17628_v32  ;;  %v17653_v17 = vcombine.low %v2565_v48, %v2569_v49  ;;  %v17660_v32 = vcombine.high %v2572_v59, %v2576_v1  ;;  %v554_v47 = vld [vmem:[%s24580_s2 + $0x30] sm:$0xff]  ;;  %v551_v48 = vld [vmem:[%s24580_s2 + $0x18] sm:$0xff] }
 0x490   : > { %14125 = vmatprep.subr.bf16.mxu0 %v17630_v46  ;;  %v17662_v46 = vcombine.high %v2573_v2, %v2577_v5  ;;  %v555_v49 = vld [vmem:[%s24580_s2 + $0x38] sm:$0xff] }
 0x492   : > { %13470 = vmatpush1.bf16.msra.mxu1 %v17627_v50  ;;  %v17659_v50 = vcombine.low %v2572_v59, %v2576_v1  ;;  %v558_v59 = vld [vmem:[%s24580_s2 + $0x50] sm:$0xff] }
 0x493   : > { %14126 = vmatpush1.bf16.msra.mxu0 %v17629_v35  ;;  %13471 = vmatprep.subr.bf16.mxu1 %v17636_v27  ;;  %v17661_v35 = vcombine.low %v2573_v2, %v2577_v5  ;;  %v17668_v27 = vcombine.high %v2580_v60, %v2584_v16  ;;  %v562_v1 = vld [vmem:[%s24580_s2 + $0x70] sm:$0xff]  ;;  %v15639_v2 = vcombine.low %v550_v44, %v554_v47  ;;  %v559_v5 = vld [vmem:[%s24580_s2 + $0x58] sm:$0xff] }
 0x494   : > { %14127 = vmatprep.subr.bf16.mxu0 %v17638_v28  ;;  %v17670_v28 = vcombine.high %v2581_v51, %v2585_v6 }
 0x496   : > { %13472 = vmatpush1.bf16.msra.mxu1 %v17635_v37  ;;  %v17667_v37 = vcombine.low %v2580_v60, %v2584_v16  ;;  %v566_v60 = vld [vmem:[%s24580_s2 + $0x90] sm:$0xff] }
 0x497   : > { %14128 = vmatpush1.bf16.msra.mxu0 %v17637_v38  ;;  %13473 = vmatprep.subr.bf16.mxu1 %v17644_v40  ;;  %v17669_v38 = vcombine.low %v2581_v51, %v2585_v6  ;;  %v17676_v40 = vcombine.high %v2588_v31, %v2592_v4  ;;  %v570_v16 = vld [vmem:[%s24580_s2 + $0xb0] sm:$0xff]  ;;  %v571_v6 = vld [vmem:[%s24580_s2 + $0xb8] sm:$0xff] }
 0x498   : > { %14129 = vmatprep.subr.bf16.mxu0 %v17646_v41  ;;  %v17678_v41 = vcombine.high %v2589_v62, %v2593_v34 }
 0x49a   : > { %13474 = vmatpush1.bf16.msra.mxu1 %v17643_v53  ;;  %v17675_v53 = vcombine.low %v2588_v31, %v2592_v4  ;;  %v574_v31 = vld [vmem:[%s24580_s2 + $0xd0] sm:$0xff] }
 0x49b   : > { %14130 = vmatpush1.bf16.msra.mxu0 %v17645_v55  ;;  %13475 = vmatprep.subr.bf16.mxu1 %v17652_v56  ;;  %v17677_v55 = vcombine.low %v2589_v62, %v2593_v34  ;;  %v15640_v56 = vcombine.high %v550_v44, %v554_v47  ;;  %v578_v4 = vld [vmem:[%s24580_s2 + $0xf0] sm:$0xff]  ;;  %v575_v62 = vld [vmem:[%s24580_s2 + $0xd8] sm:$0xff] }
 0x49c   : > { %14131 = vmatprep.subr.bf16.mxu0 %v17654_v58  ;;  %v15642_v58 = vcombine.high %v551_v48, %v555_v49  ;;  %v579_v34 = vld [vmem:[%s24580_s2 + $0xf8] sm:$0xff]  ;;  %v586_v44 = vld [vmem:[%s24580_s2 + $0x130] sm:$0xff] }
 0x49d   : > { %v583_v47 = vld [vmem:[%s24580_s2 + $0x118] sm:$0xff] }
 0x49e   : > { %13476 = vmatpush1.bf16.msra.mxu1 %v17651_v9  ;;  %v563_v9 = vld [vmem:[%s24580_s2 + $0x78] sm:$0xff] }
 0x49f   : > { %14132 = vmatpush1.bf16.msra.mxu0 %v17653_v17  ;;  %13477 = vmatprep.subr.bf16.mxu1 %v17660_v32  ;;  %v21432_v17 = vpack.c.bf16 %v18645_v30, %v18645_v30  ;;  %v15641_v32 = vcombine.low %v551_v48, %v555_v49  ;;  %v15650_v51 = vcombine.high %v559_v5, %v563_v9  ;;  %v567_v30 = vld [vmem:[%s24580_s2 + $0x98] sm:$0xff] }
 0x4a0   : > { %14133 = vmatprep.subr.bf16.mxu0 %v17662_v46  ;;  %v15648_v46 = vcombine.high %v558_v59, %v562_v1  ;;  %v587_v48 = vld [vmem:[%s24580_s2 + $0x138] sm:$0xff]  ;;  %v15663_v49 = vcombine.low %v574_v31, %v578_v4 }
 0x4a2   : > { %13478 = vmatpush1.bf16.msra.mxu1 %v17659_v50  ;;  %v15647_v50 = vcombine.low %v558_v59, %v562_v1  ;;  %v594_v59 = vld [vmem:[%s24580_s2 + $0x170] sm:$0xff]  ;;  %v591_v1 = vld [vmem:[%s24580_s2 + $0x158] sm:$0xff] }
 0x4a3   : > { %14134 = vmatpush1.bf16.msra.mxu0 %v17661_v35  ;;  %13479 = vmatprep.subr.bf16.mxu1 %v17668_v27  ;;  %v15649_v35 = vcombine.low %v559_v5, %v563_v9  ;;  %v15656_v27 = vcombine.high %v566_v60, %v570_v16  ;;  %v15673_v9 = vcombine.low %v583_v47, %v587_v48 }
 0x4a4   : > { %14135 = vmatprep.subr.bf16.mxu0 %v17670_v28  ;;  %v15658_v28 = vcombine.high %v567_v30, %v571_v6 }
 0x4a6   : > { %13480 = vmatpush1.bf16.msra.mxu1 %v17667_v37  ;;  %v15657_v37 = vcombine.low %v567_v30, %v571_v6  ;;  %v603_v30 = vld [vmem:[%s24580_s2 + $0x1b8] sm:$0xff] }
 0x4a7   : > { %14136 = vmatpush1.bf16.msra.mxu0 %v17669_v38  ;;  %13481 = vmatprep.subr.bf16.mxu1 %v17676_v40  ;;  %v15664_v38 = vcombine.high %v574_v31, %v578_v4  ;;  %v15666_v40 = vcombine.high %v575_v62, %v579_v34  ;;  %v610_v31 = vld [vmem:[%s24580_s2 + $0x1f0] sm:$0xff]  ;;  %v607_v4 = vld [vmem:[%s24580_s2 + $0x1d8] sm:$0xff] }
 0x4a8   : > { %14137 = vmatprep.subr.bf16.mxu0 %v17678_v41  ;;  %v582_v41 = vld [vmem:[%s24580_s2 + $0x110] sm:$0xff] }
 0x4a9   : > { %v15671_v5 = vcombine.low %v582_v41, %v586_v44 }
 0x4aa   : > { %13482 = vmatpush1.bf16.msra.mxu1 %v17675_v53  ;;  %v15665_v53 = vcombine.low %v575_v62, %v579_v34  ;;  %v611_v62 = vld [vmem:[%s24580_s2 + $0x1f8] sm:$0xff] }
 0x4ab   : > { %14138 = vmatpush1.bf16.msra.mxu0 %v17677_v55  ;;  %14148 = vmatprep.subr.bf16.mxu1 %v15640_v56  ;;  %v15672_v55 = vcombine.high %v582_v41, %v586_v44  ;;  %v15674_v56 = vcombine.high %v583_v47, %v587_v48  ;;  %v618_v41 = vld [vmem:[%s24580_s2 + $0x230] sm:$0xff]  ;;  %v615_v44 = vld [vmem:[%s24580_s2 + $0x218] sm:$0xff] }
 0x4ac   : > { %14804 = vmatprep.subr.bf16.mxu0 %v15642_v58  ;;  %v590_v58 = vld [vmem:[%s24580_s2 + $0x150] sm:$0xff]  ;;  %v619_v47 = vld [vmem:[%s24580_s2 + $0x238] sm:$0xff] }
 0x4ad   : > { %13484 = vmatmul.mubr.bf16.vlgmr.msra.gmra.mrb[0].mxu1 %v21432_v17  ;;  %v15679_v6 = vcombine.low %v590_v58, %v594_v59 }
 0x4ae   : > { %14140 = vmatmul.mubr.bf16.vlgmr.msra.gmra.mrb[32].mxu0 %v21432_v17  ;;  %14149 = vmatpush1.bf16.msra.mxu1 %v15639_v2  ;;  %v595_v2 = vld [vmem:[%s24580_s2 + $0x178] sm:$0xff] }
 0x4af   : > { %14180 = vmatprep.mubr.bf16.mxu1 %v18312_v42  ;;  %14805 = vmatpush1.bf16.msra.mxu0 %v15641_v32  ;;  %v15680_v32 = vcombine.high %v590_v58, %v594_v59  ;;  %v626_v58 = vld [vmem:[%s24580_s2 + $0x270] sm:$0xff]  ;;  %v623_v59 = vld [vmem:[%s24580_s2 + $0x258] sm:$0xff] }
 0x4b0   : > { %14836 = vmatprep.mubr.bf16.mxu0 %v18312_v42  ;;  %14150 = vmatprep.subr.bf16.mxu1 %v15648_v46  ;;  %v15655_v42 = vcombine.low %v566_v60, %v570_v16  ;;  %v15682_v46 = vcombine.high %v591_v1, %v595_v2  ;;  %v598_v60 = vld [vmem:[%s24580_s2 + $0x190] sm:$0xff] }
 0x4b1   : > { %14806 = vmatprep.subr.bf16.mxu0 %v15650_v51  ;;  %v602_v16 = vld [vmem:[%s24580_s2 + $0x1b0] sm:$0xff]  ;;  %v599_v51 = vld [vmem:[%s24580_s2 + $0x198] sm:$0xff] }
 0x4b2   : > { %14151 = vmatpush1.bf16.msra.mxu1 %v15647_v50  ;;  %v15681_v50 = vcombine.low %v591_v1, %v595_v2  ;;  %v15687_v34 = vcombine.low %v598_v60, %v602_v16  ;;  %v627_v1 = vld [vmem:[%s24580_s2 + $0x278] sm:$0xff] }
 0x4b3   : > { %14807 = vmatpush1.bf16.msra.mxu0 %v15649_v35  ;;  %14152 = vmatprep.subr.bf16.mxu1 %v15656_v27  ;;  %v15688_v35 = vcombine.high %v598_v60, %v602_v16  ;;  %v15690_v27 = vcombine.high %v599_v51, %v603_v30  ;;  %v634_v60 = vld [vmem:[%s24580_s2 + $0x2b0] sm:$0xff]  ;;  %v631_v16 = vld [vmem:[%s24580_s2 + $0x298] sm:$0xff] }
 0x4b4   : > { %14808 = vmatprep.subr.bf16.mxu0 %v15658_v28  ;;  %v606_v28 = vld [vmem:[%s24580_s2 + $0x1d0] sm:$0xff] }
 0x4b5   : > { %v15695_v48 = vcombine.low %v606_v28, %v610_v31 }
 0x4b6   : > { %14153 = vmatpush1.bf16.msra.mxu1 %v15655_v42  ;;  %v15689_v42 = vcombine.low %v599_v51, %v603_v30  ;;  %v635_v51 = vld [vmem:[%s24580_s2 + $0x2b8] sm:$0xff] }
 0x4b7   : > { %14809 = vmatpush1.bf16.msra.mxu0 %v15657_v37  ;;  %14154 = vmatprep.subr.bf16.mxu1 %v15664_v38  ;;  %v15696_v37 = vcombine.high %v606_v28, %v610_v31  ;;  %v15698_v38 = vcombine.high %v607_v4, %v611_v62  ;;  %v642_v28 = vld [vmem:[%s24580_s2 + $0x2f0] sm:$0xff]  ;;  %v639_v31 = vld [vmem:[%s24580_s2 + $0x2d8] sm:$0xff] }
 0x4b8   : > { %14810 = vmatprep.subr.bf16.mxu0 %v15666_v40  ;;  %v614_v40 = vld [vmem:[%s24580_s2 + $0x210] sm:$0xff] }
 0x4b9   : > { %v15703_v2 = vcombine.low %v614_v40, %v618_v41 }
 0x4ba   : > { %14155 = vmatpush1.bf16.msra.mxu1 %v15663_v49  ;;  %v15697_v49 = vcombine.low %v607_v4, %v611_v62  ;;  %v643_v4 = vld [vmem:[%s24580_s2 + $0x2f8] sm:$0xff] }
 0x4bb   : > { %14811 = vmatpush1.bf16.msra.mxu0 %v15665_v53  ;;  %14156 = vmatprep.subr.bf16.mxu1 %v15672_v55  ;;  %v15704_v53 = vcombine.high %v614_v40, %v618_v41  ;;  %v15706_v55 = vcombine.high %v615_v44, %v619_v47  ;;  %v650_v40 = vld [vmem:[%s24580_s2 + $0x330] sm:$0xff]  ;;  %v647_v41 = vld [vmem:[%s24580_s2 + $0x318] sm:$0xff] }
 0x4bc   : > { %14812 = vmatprep.subr.bf16.mxu0 %v15674_v56  ;;  %v622_v56 = vld [vmem:[%s24580_s2 + $0x250] sm:$0xff] }
 0x4bd   : > { %v15711_v30 = vcombine.low %v622_v56, %v626_v58 }
 0x4be   : > { %14157 = vmatpush1.bf16.msra.mxu1 %v15671_v5  ;;  %v15705_v5 = vcombine.low %v615_v44, %v619_v47  ;;  %v651_v44 = vld [vmem:[%s24580_s2 + $0x338] sm:$0xff] }
 0x4bf   : > { %14813 = vmatpush1.bf16.msra.mxu0 %v15673_v9  ;;  %14158 = vmatprep.subr.bf16.mxu1 %v15680_v32  ;;  %v15712_v9 = vcombine.high %v622_v56, %v626_v58  ;;  %v15714_v32 = vcombine.high %v623_v59, %v627_v1  ;;  %v658_v56 = vld [vmem:[%s24580_s2 + $0x370] sm:$0xff]  ;;  %v655_v58 = vld [vmem:[%s24580_s2 + $0x358] sm:$0xff] }
 0x4c0   : > { %14814 = vmatprep.subr.bf16.mxu0 %v15682_v46  ;;  %v630_v46 = vld [vmem:[%s24580_s2 + $0x290] sm:$0xff] }
 0x4c1   : > { %v15719_v62 = vcombine.low %v630_v46, %v634_v60 }
 0x4c2   : > { %14159 = vmatpush1.bf16.msra.mxu1 %v15679_v6  ;;  %v15713_v6 = vcombine.low %v623_v59, %v627_v1  ;;  %v659_v59 = vld [vmem:[%s24580_s2 + $0x378] sm:$0xff] }
 0x4c3   : > { %14815 = vmatpush1.bf16.msra.mxu0 %v15681_v50  ;;  %14160 = vmatprep.subr.bf16.mxu1 %v15688_v35  ;;  %v15720_v50 = vcombine.high %v630_v46, %v634_v60  ;;  %v15722_v35 = vcombine.high %v631_v16, %v635_v51  ;;  %v666_v46 = vld [vmem:[%s24580_s2 + $0x3b0] sm:$0xff]  ;;  %v663_v60 = vld [vmem:[%s24580_s2 + $0x398] sm:$0xff] }
 0x4c4   : > { %14816 = vmatprep.subr.bf16.mxu0 %v15690_v27  ;;  %v638_v27 = vld [vmem:[%s24580_s2 + $0x2d0] sm:$0xff] }
 0x4c5   : > { %v15727_v47 = vcombine.low %v638_v27, %v642_v28 }
 0x4c6   : > { %14161 = vmatpush1.bf16.msra.mxu1 %v15687_v34  ;;  %v15721_v34 = vcombine.low %v631_v16, %v635_v51  ;;  %v667_v16 = vld [vmem:[%s24580_s2 + $0x3b8] sm:$0xff] }
 0x4c7   : > { %14817 = vmatpush1.bf16.msra.mxu0 %v15689_v42  ;;  %14162 = vmatprep.subr.bf16.mxu1 %v15696_v37  ;;  %v15728_v42 = vcombine.high %v638_v27, %v642_v28  ;;  %v15730_v37 = vcombine.high %v639_v31, %v643_v4  ;;  %v674_v27 = vld [vmem:[%s24580_s2 + $0x3f0] sm:$0xff]  ;;  %v671_v28 = vld [vmem:[%s24580_s2 + $0x3d8] sm:$0xff] }
 0x4c8   : > { %14818 = vmatprep.subr.bf16.mxu0 %v15698_v38  ;;  %v646_v38 = vld [vmem:[%s24580_s2 + $0x310] sm:$0xff] }
 0x4c9   : > { %v15735_v1 = vcombine.low %v646_v38, %v650_v40 }
 0x4ca   : > { %14163 = vmatpush1.bf16.msra.mxu1 %v15695_v48  ;;  %v15729_v48 = vcombine.low %v639_v31, %v643_v4  ;;  %v675_v31 = vld [vmem:[%s24580_s2 + $0x3f8] sm:$0xff] }
 0x4cb   : > { %14819 = vmatpush1.bf16.msra.mxu0 %v15697_v49  ;;  %14164 = vmatprep.subr.bf16.mxu1 %v15704_v53  ;;  %v15736_v49 = vcombine.high %v646_v38, %v650_v40  ;;  %v15738_v53 = vcombine.high %v647_v41, %v651_v44  ;;  %v682_v38 = vld [vmem:[%s24580_s2 + $0x430] sm:$0xff]  ;;  %v679_v40 = vld [vmem:[%s24580_s2 + $0x418] sm:$0xff] }
 0x4cc   : > { %14820 = vmatprep.subr.bf16.mxu0 %v15706_v55  ;;  %v654_v55 = vld [vmem:[%s24580_s2 + $0x350] sm:$0xff] }
 0x4cd   : > { %v15743_v51 = vcombine.low %v654_v55, %v658_v56 }
 0x4ce   : > { %14165 = vmatpush1.bf16.msra.mxu1 %v15703_v2  ;;  %v15737_v2 = vcombine.low %v647_v41, %v651_v44  ;;  %v683_v41 = vld [vmem:[%s24580_s2 + $0x438] sm:$0xff] }
 0x4cf   : > { %14821 = vmatpush1.bf16.msra.mxu0 %v15705_v5  ;;  %14166 = vmatprep.subr.bf16.mxu1 %v15712_v9  ;;  %v15744_v5 = vcombine.high %v654_v55, %v658_v56  ;;  %v15746_v9 = vcombine.high %v655_v58, %v659_v59  ;;  %v690_v55 = vld [vmem:[%s24580_s2 + $0x470] sm:$0xff] }
 0x4d0   : > { %14822 = vmatprep.subr.bf16.mxu0 %v15714_v32  ;;  %v662_v32 = vld [vmem:[%s24580_s2 + $0x390] sm:$0xff] }
 0x4d1   : > { %v15751_v4 = vcombine.low %v662_v32, %v666_v46 }
 0x4d2   : > { %14167 = vmatpush1.bf16.msra.mxu1 %v15711_v30  ;;  %v15745_v30 = vcombine.low %v655_v58, %v659_v59  ;;  %v687_v58 = vld [vmem:[%s24580_s2 + $0x458] sm:$0xff] }
 0x4d3   : > { %14823 = vmatpush1.bf16.msra.mxu0 %v15713_v6  ;;  %14168 = vmatprep.subr.bf16.mxu1 %v15720_v50  ;;  %v15752_v6 = vcombine.high %v662_v32, %v666_v46  ;;  %v15754_v50 = vcombine.high %v663_v60, %v667_v16  ;;  %v691_v59 = vld [vmem:[%s24580_s2 + $0x478] sm:$0xff] }
 0x4d4   : > { %14824 = vmatprep.subr.bf16.mxu0 %v15722_v35  ;;  %v670_v35 = vld [vmem:[%s24580_s2 + $0x3d0] sm:$0xff]  ;;  %v15778_v32 = vcombine.high %v687_v58, %v691_v59  ;;  %v695_v46 = vld [vmem:[%s24580_s2 + $0x498] sm:$0xff] }
 0x4d5   : > { %v15759_v44 = vcombine.low %v670_v35, %v674_v27 }
 0x4d6   : > { %14169 = vmatpush1.bf16.msra.mxu1 %v15719_v62  ;;  %v15753_v62 = vcombine.low %v663_v60, %v667_v16  ;;  %v699_v60 = vld [vmem:[%s24580_s2 + $0x4b8] sm:$0xff] }
 0x4d7   : > { %14825 = vmatpush1.bf16.msra.mxu0 %v15721_v34  ;;  %14170 = vmatprep.subr.bf16.mxu1 %v15728_v42  ;;  %v15760_v34 = vcombine.high %v670_v35, %v674_v27  ;;  %v15762_v42 = vcombine.high %v671_v28, %v675_v31  ;;  %v706_v35 = vld [vmem:[%s24580_s2 + $0x4f0] sm:$0xff]  ;;  %v707_v27 = vld [vmem:[%s24580_s2 + $0x4f8] sm:$0xff] }
 0x4d8   : > { %14826 = vmatprep.subr.bf16.mxu0 %v15730_v37  ;;  %v678_v37 = vld [vmem:[%s24580_s2 + $0x410] sm:$0xff] }
 0x4d9   : > { %v15767_v56 = vcombine.low %v678_v37, %v682_v38 }
 0x4da   : > { %14171 = vmatpush1.bf16.msra.mxu1 %v15727_v47  ;;  %v15761_v47 = vcombine.low %v671_v28, %v675_v31  ;;  %v15785_v28 = vcombine.low %v695_v46, %v699_v60 }
 0x4db   : > { %14827 = vmatpush1.bf16.msra.mxu0 %v15729_v48  ;;  %14172 = vmatprep.subr.bf16.mxu1 %v15736_v49  ;;  %v15768_v48 = vcombine.high %v678_v37, %v682_v38  ;;  %v15770_v49 = vcombine.high %v679_v40, %v683_v41  ;;  %v715_v37 = vld [vmem:[%s24580_s2 + $0x538] sm:$0xff] }
 0x4dc   : > { %14828 = vmatprep.subr.bf16.mxu0 %v15738_v53  ;;  %v686_v53 = vld [vmem:[%s24580_s2 + $0x450] sm:$0xff] }
 0x4dd   : > { %v15775_v16 = vcombine.low %v686_v53, %v690_v55 }
 0x4de   : > { %14173 = vmatpush1.bf16.msra.mxu1 %v15735_v1  ;;  %v15769_v1 = vcombine.low %v679_v40, %v683_v41 }
 0x4df   : > { %14829 = vmatpush1.bf16.msra.mxu0 %v15737_v2  ;;  %14174 = vmatprep.subr.bf16.mxu1 %v15744_v5  ;;  %v15776_v2 = vcombine.high %v686_v53, %v690_v55  ;;  %v694_v5 = vld [vmem:[%s24580_s2 + $0x490] sm:$0xff]  ;;  %v723_v53 = vld [vmem:[%s24580_s2 + $0x578] sm:$0xff] }
 0x4e0   : > { %14830 = vmatprep.subr.bf16.mxu0 %v15746_v9  ;;  %v698_v9 = vld [vmem:[%s24580_s2 + $0x4b0] sm:$0xff] }
 0x4e2   : > { %14175 = vmatpush1.bf16.msra.mxu1 %v15743_v51  ;;  %v15777_v51 = vcombine.low %v687_v58, %v691_v59 }
 0x4e3   : > { %14831 = vmatpush1.bf16.msra.mxu0 %v15745_v30  ;;  %14176 = vmatprep.subr.bf16.mxu1 %v15752_v6  ;;  %v15784_v30 = vcombine.high %v694_v5, %v698_v9  ;;  %v15786_v6 = vcombine.high %v695_v46, %v699_v60 }
 0x4e4   : > { %14832 = vmatprep.subr.bf16.mxu0 %v15754_v50  ;;  %v702_v50 = vld [vmem:[%s24580_s2 + $0x4d0] sm:$0xff] }
 0x4e5   : > { %v15792_v31 = vcombine.high %v702_v50, %v706_v35  ;;  %v15791_v38 = vcombine.low %v702_v50, %v706_v35  ;;  %v739_v50 = vld [vmem:[%s24580_s2 + $0x5f8] sm:$0xff] }
 0x4e6   : > { %14177 = vmatpush1.bf16.msra.mxu1 %v15751_v4 }
 0x4e7   : > { %14833 = vmatpush1.bf16.msra.mxu0 %v15753_v62  ;;  %14178 = vmatprep.subr.bf16.mxu1 %v15760_v34  ;;  %v710_v62 = vld [vmem:[%s24580_s2 + $0x510] sm:$0xff] }
 0x4e8   : > { %14834 = vmatprep.subr.bf16.mxu0 %v15762_v42  ;;  %v714_v34 = vld [vmem:[%s24580_s2 + $0x530] sm:$0xff]  ;;  %v711_v42 = vld [vmem:[%s24580_s2 + $0x518] sm:$0xff] }
 0x4e9   : > { %v15800_v41 = vcombine.high %v710_v62, %v714_v34  ;;  %v15799_v55 = vcombine.low %v710_v62, %v714_v34  ;;  %v747_v62 = vld [vmem:[%s24580_s2 + $0x638] sm:$0xff] }
 0x4ea   : > { %14179 = vmatpush1.bf16.msra.mxu1 %v15759_v44  ;;  %v15802_v44 = vcombine.high %v711_v42, %v715_v37 }
 0x4eb   : > { %14835 = vmatpush1.bf16.msra.mxu0 %v15761_v47  ;;  %14189 = vmatprep.subr.bf16.mxu1 %v15768_v48  ;;  %v718_v47 = vld [vmem:[%s24580_s2 + $0x550] sm:$0xff] }
 0x4ec   : > { %14845 = vmatprep.subr.bf16.mxu0 %v15770_v49  ;;  %v722_v48 = vld [vmem:[%s24580_s2 + $0x570] sm:$0xff]  ;;  %v719_v49 = vld [vmem:[%s24580_s2 + $0x558] sm:$0xff] }
 0x4ed   : > { %14181 = vmatmul.mubr.bf16.vlgmr.msra.gmra.mrb[4].mxu1 %v18314_v43  ;;  %v15808_v58 = vcombine.high %v718_v47, %v722_v48  ;;  %v15810_v59 = vcombine.high %v719_v49, %v723_v53  ;;  %v15809_v46 = vcombine.low %v719_v49, %v723_v53 }
 0x4ee   : > { %14837 = vmatmul.mubr.bf16.vlgmr.msra.gmra.mrb[36].mxu0 %v18314_v43  ;;  %14190 = vmatpush1.bf16.msra.mxu1 %v15767_v56  ;;  %v703_v43 = vld [vmem:[%s24580_s2 + $0x4d8] sm:$0xff]  ;;  %v15801_v56 = vcombine.low %v711_v42, %v715_v37 }
 0x4ef   : > { %14221 = vmatprep.mubr.bf16.mxu1 %v18334_v54  ;;  %14846 = vmatpush1.bf16.msra.mxu0 %v15769_v1  ;;  %v15794_v4 = vcombine.high %v703_v43, %v707_v27  ;;  %v15793_v40 = vcombine.low %v703_v43, %v707_v27  ;;  %v726_v1 = vld [vmem:[%s24580_s2 + $0x590] sm:$0xff] }
 0x4f0   : > { %14877 = vmatprep.mubr.bf16.mxu0 %v18334_v54  ;;  %14191 = vmatprep.subr.bf16.mxu1 %v15776_v2  ;;  %v15783_v54 = vcombine.low %v694_v5, %v698_v9  ;;  %v730_v2 = vld [vmem:[%s24580_s2 + $0x5b0] sm:$0xff]  ;;  %v727_v5 = vld [vmem:[%s24580_s2 + $0x598] sm:$0xff] }
 0x4f1   : > { %14847 = vmatprep.subr.bf16.mxu0 %v15778_v32  ;;  %v731_v9 = vld [vmem:[%s24580_s2 + $0x5b8] sm:$0xff]  ;;  %v15807_v32 = vcombine.low %v718_v47, %v722_v48  ;;  %v15816_v60 = vcombine.high %v726_v1, %v730_v2  ;;  %v15815_v35 = vcombine.low %v726_v1, %v730_v2 }
 0x4f2   : > { %14192 = vmatpush1.bf16.msra.mxu1 %v15775_v16  ;;  %v15818_v16 = vcombine.high %v727_v5, %v731_v9  ;;  %v15817_v43 = vcombine.low %v727_v5, %v731_v9  ;;  %v755_v47 = vld [vmem:[%s24580_s2 + $0x678] sm:$0xff] }
 0x4f3   : > { %14848 = vmatpush1.bf16.msra.mxu0 %v15777_v51  ;;  %14193 = vmatprep.subr.bf16.mxu1 %v15784_v30  ;;  %v734_v51 = vld [vmem:[%s24580_s2 + $0x5d0] sm:$0xff]  ;;  %v763_v1 = vld [vmem:[%s24580_s2 + $0x6b8] sm:$0xff] }
 0x4f4   : > { %14849 = vmatprep.subr.bf16.mxu0 %v15786_v6  ;;  %v738_v30 = vld [vmem:[%s24580_s2 + $0x5f0] sm:$0xff]  ;;  %v735_v6 = vld [vmem:[%s24580_s2 + $0x5d8] sm:$0xff] }
 0x4f5   : > { %v15824_v27 = vcombine.high %v734_v51, %v738_v30  ;;  %v15823_v34 = vcombine.low %v734_v51, %v738_v30  ;;  %v15825_v42 = vcombine.low %v735_v6, %v739_v50  ;;  %v771_v51 = vld [vmem:[%s24580_s2 + $0x6f8] sm:$0xff] }
 0x4f6   : > { %14194 = vmatpush1.bf16.msra.mxu1 %v15783_v54  ;;  %v15826_v54 = vcombine.high %v735_v6, %v739_v50 }
 0x4f7   : > { %14850 = vmatpush1.bf16.msra.mxu0 %v15785_v28  ;;  %14195 = vmatprep.subr.bf16.mxu1 %v15792_v31  ;;  %v742_v28 = vld [vmem:[%s24580_s2 + $0x610] sm:$0xff] }
 0x4f8   : > { %14851 = vmatprep.subr.bf16.mxu0 %v15794_v4  ;;  %v746_v31 = vld [vmem:[%s24580_s2 + $0x630] sm:$0xff]  ;;  %v743_v4 = vld [vmem:[%s24580_s2 + $0x618] sm:$0xff] }
 0x4f9   : > { %v15832_v37 = vcombine.high %v742_v28, %v746_v31  ;;  %v15831_v48 = vcombine.low %v742_v28, %v746_v31  ;;  %v15833_v49 = vcombine.low %v743_v4, %v747_v62  ;;  %v779_v28 = vld [vmem:[%s24580_s2 + $0x738] sm:$0xff] }
 0x4fa   : > { %14196 = vmatpush1.bf16.msra.mxu1 %v15791_v38  ;;  %v15834_v38 = vcombine.high %v743_v4, %v747_v62 }
 0x4fb   : > { %14852 = vmatpush1.bf16.msra.mxu0 %v15793_v40  ;;  %14197 = vmatprep.subr.bf16.mxu1 %v15800_v41  ;;  %v750_v40 = vld [vmem:[%s24580_s2 + $0x650] sm:$0xff] }
 0x4fc   : > { %14853 = vmatprep.subr.bf16.mxu0 %v15802_v44  ;;  %v754_v41 = vld [vmem:[%s24580_s2 + $0x670] sm:$0xff]  ;;  %v751_v44 = vld [vmem:[%s24580_s2 + $0x658] sm:$0xff] }
 0x4fd   : > { %v15840_v53 = vcombine.high %v750_v40, %v754_v41  ;;  %v15839_v2 = vcombine.low %v750_v40, %v754_v41  ;;  %v15841_v5 = vcombine.low %v751_v44, %v755_v47  ;;  %v787_v40 = vld [vmem:[%s24580_s2 + $0x778] sm:$0xff] }
 0x4fe   : > { %14198 = vmatpush1.bf16.msra.mxu1 %v15799_v55  ;;  %v15842_v55 = vcombine.high %v751_v44, %v755_v47 }
 0x4ff   : > { %14854 = vmatpush1.bf16.msra.mxu0 %v15801_v56  ;;  %14199 = vmatprep.subr.bf16.mxu1 %v15808_v58  ;;  %v758_v56 = vld [vmem:[%s24580_s2 + $0x690] sm:$0xff] }
 0x500   : > { %14855 = vmatprep.subr.bf16.mxu0 %v15810_v59  ;;  %v762_v58 = vld [vmem:[%s24580_s2 + $0x6b0] sm:$0xff]  ;;  %v759_v59 = vld [vmem:[%s24580_s2 + $0x698] sm:$0xff] }
 0x501   : > { %v15848_v9 = vcombine.high %v758_v56, %v762_v58  ;;  %v15847_v30 = vcombine.low %v758_v56, %v762_v58  ;;  %v15849_v6 = vcombine.low %v759_v59, %v763_v1  ;;  %v795_v56 = vld [vmem:[%s24580_s2 + $0x7b8] sm:$0xff] }
 0x502   : > { %14200 = vmatpush1.bf16.msra.mxu1 %v15807_v32  ;;  %v15850_v32 = vcombine.high %v759_v59, %v763_v1 }
 0x503   : > { %14856 = vmatpush1.bf16.msra.mxu0 %v15809_v46  ;;  %14201 = vmatprep.subr.bf16.mxu1 %v15816_v60  ;;  %v766_v46 = vld [vmem:[%s24580_s2 + $0x6d0] sm:$0xff] }
 0x504   : > { %14857 = vmatprep.subr.bf16.mxu0 %v15818_v16  ;;  %v770_v60 = vld [vmem:[%s24580_s2 + $0x6f0] sm:$0xff]  ;;  %v767_v16 = vld [vmem:[%s24580_s2 + $0x6d8] sm:$0xff] }
 0x505   : > { %v15856_v50 = vcombine.high %v766_v46, %v770_v60  ;;  %v15855_v31 = vcombine.low %v766_v46, %v770_v60  ;;  %v15857_v4 = vcombine.low %v767_v16, %v771_v51  ;;  %v803_v46 = vld [vmem:[%s24580_s2 + $0x7f8] sm:$0xff] }
 0x506   : > { %14202 = vmatpush1.bf16.msra.mxu1 %v15815_v35  ;;  %v15858_v35 = vcombine.high %v767_v16, %v771_v51 }
 0x507   : > { %14858 = vmatpush1.bf16.msra.mxu0 %v15817_v43  ;;  %14203 = vmatprep.subr.bf16.mxu1 %v15824_v27  ;;  %v774_v43 = vld [vmem:[%s24580_s2 + $0x710] sm:$0xff] }
 0x508   : > { %14859 = vmatprep.subr.bf16.mxu0 %v15826_v54  ;;  %v778_v27 = vld [vmem:[%s24580_s2 + $0x730] sm:$0xff]  ;;  %v775_v54 = vld [vmem:[%s24580_s2 + $0x718] sm:$0xff] }
 0x509   : > { %v15864_v62 = vcombine.high %v774_v43, %v778_v27  ;;  %v15863_v41 = vcombine.low %v774_v43, %v778_v27  ;;  %v15865_v44 = vcombine.low %v775_v54, %v779_v28  ;;  %v811_v43 = vld [vmem:[%s24580_s2 + $0x838] sm:$0xff] }
 0x50a   : > { %14204 = vmatpush1.bf16.msra.mxu1 %v15823_v34  ;;  %v15866_v34 = vcombine.high %v775_v54, %v779_v28 }
 0x50b   : > { %14860 = vmatpush1.bf16.msra.mxu0 %v15825_v42  ;;  %14205 = vmatprep.subr.bf16.mxu1 %v15832_v37  ;;  %v782_v42 = vld [vmem:[%s24580_s2 + $0x750] sm:$0xff] }
 0x50c   : > { %14861 = vmatprep.subr.bf16.mxu0 %v15834_v38  ;;  %v786_v37 = vld [vmem:[%s24580_s2 + $0x770] sm:$0xff]  ;;  %v783_v38 = vld [vmem:[%s24580_s2 + $0x758] sm:$0xff] }
 0x50d   : > { %v15872_v47 = vcombine.high %v782_v42, %v786_v37  ;;  %v15871_v58 = vcombine.low %v782_v42, %v786_v37  ;;  %v15873_v59 = vcombine.low %v783_v38, %v787_v40  ;;  %v815_v42 = vld [vmem:[%s24580_s2 + $0x858] sm:$0xff] }
 0x50e   : > { %14206 = vmatpush1.bf16.msra.mxu1 %v15831_v48  ;;  %v15874_v48 = vcombine.high %v783_v38, %v787_v40  ;;  %v819_v37 = vld [vmem:[%s24580_s2 + $0x878] sm:$0xff] }
 0x50f   : > { %14862 = vmatpush1.bf16.msra.mxu0 %v15833_v49  ;;  %14207 = vmatprep.subr.bf16.mxu1 %v15840_v53  ;;  %v790_v49 = vld [vmem:[%s24580_s2 + $0x790] sm:$0xff] }
 0x510   : > { %14863 = vmatprep.subr.bf16.mxu0 %v15842_v55  ;;  %v794_v53 = vld [vmem:[%s24580_s2 + $0x7b0] sm:$0xff]  ;;  %v791_v55 = vld [vmem:[%s24580_s2 + $0x798] sm:$0xff] }
 0x511   : > { %v15880_v1 = vcombine.high %v790_v49, %v794_v53  ;;  %v15879_v60 = vcombine.low %v790_v49, %v794_v53  ;;  %v15881_v16 = vcombine.low %v791_v55, %v795_v56  ;;  %v827_v49 = vld [vmem:[%s24580_s2 + $0x8b8] sm:$0xff] }
 0x512   : > { %14208 = vmatpush1.bf16.msra.mxu1 %v15839_v2  ;;  %v15882_v2 = vcombine.high %v791_v55, %v795_v56  ;;  %v15905_v55 = vcombine.low %v815_v42, %v819_v37 }
 0x513   : > { %14864 = vmatpush1.bf16.msra.mxu0 %v15841_v5  ;;  %14209 = vmatprep.subr.bf16.mxu1 %v15848_v9  ;;  %v798_v5 = vld [vmem:[%s24580_s2 + $0x7d0] sm:$0xff] }
 0x514   : > { %14865 = vmatprep.subr.bf16.mxu0 %v15850_v32  ;;  %v802_v9 = vld [vmem:[%s24580_s2 + $0x7f0] sm:$0xff]  ;;  %v799_v32 = vld [vmem:[%s24580_s2 + $0x7d8] sm:$0xff] }
 0x515   : > { %v15888_v51 = vcombine.high %v798_v5, %v802_v9  ;;  %v15887_v27 = vcombine.low %v798_v5, %v802_v9  ;;  %v15889_v54 = vcombine.low %v799_v32, %v803_v46 }
 0x516   : > { %14210 = vmatpush1.bf16.msra.mxu1 %v15847_v30  ;;  %v15890_v30 = vcombine.high %v799_v32, %v803_v46  ;;  %v838_v46 = vld [vmem:[%s24580_s2 + $0x910] sm:$0xff] }
 0x517   : > { %14866 = vmatpush1.bf16.msra.mxu0 %v15849_v6  ;;  %14211 = vmatprep.subr.bf16.mxu1 %v15856_v50  ;;  %v806_v6 = vld [vmem:[%s24580_s2 + $0x810] sm:$0xff] }
 0x518   : > { %14867 = vmatprep.subr.bf16.mxu0 %v15858_v35  ;;  %v810_v50 = vld [vmem:[%s24580_s2 + $0x830] sm:$0xff]  ;;  %v807_v35 = vld [vmem:[%s24580_s2 + $0x818] sm:$0xff] }
 0x519   : > { %v15896_v28 = vcombine.high %v806_v6, %v810_v50  ;;  %v15897_v38 = vcombine.low %v807_v35, %v811_v43 }
 0x51a   : > { %14212 = vmatpush1.bf16.msra.mxu1 %v15855_v31  ;;  %v15898_v31 = vcombine.high %v807_v35, %v811_v43  ;;  %v846_v43 = vld [vmem:[%s24580_s2 + $0x950] sm:$0xff] }
 0x51b   : > { %14868 = vmatpush1.bf16.msra.mxu0 %v15857_v4  ;;  %14213 = vmatprep.subr.bf16.mxu1 %v15864_v62  ;;  %v814_v4 = vld [vmem:[%s24580_s2 + $0x850] sm:$0xff] }
 0x51c   : > { %14869 = vmatprep.subr.bf16.mxu0 %v15866_v34  ;;  %v818_v62 = vld [vmem:[%s24580_s2 + $0x870] sm:$0xff]  ;;  %v15895_v34 = vcombine.low %v806_v6, %v810_v50 }
 0x51d   : > { %v15904_v40 = vcombine.high %v814_v4, %v818_v62  ;;  %v15903_v53 = vcombine.low %v814_v4, %v818_v62 }
 0x51e   : > { %14214 = vmatpush1.bf16.msra.mxu1 %v15863_v41  ;;  %v822_v41 = vld [vmem:[%s24580_s2 + $0x890] sm:$0xff] }
 0x51f   : > { %14870 = vmatpush1.bf16.msra.mxu0 %v15865_v44  ;;  %14215 = vmatprep.subr.bf16.mxu1 %v15872_v47  ;;  %v826_v44 = vld [vmem:[%s24580_s2 + $0x8b0] sm:$0xff]  ;;  %v15906_v47 = vcombine.high %v815_v42, %v819_v37 }
 0x520   : > { %14871 = vmatprep.subr.bf16.mxu0 %v15874_v48  ;;  %v823_v48 = vld [vmem:[%s24580_s2 + $0x898] sm:$0xff]  ;;  %v15912_v56 = vcombine.high %v822_v41, %v826_v44  ;;  %v854_v42 = vld [vmem:[%s24580_s2 + $0x990] sm:$0xff] }
 0x521   : > { %v15913_v5 = vcombine.low %v823_v48, %v827_v49  ;;  %v858_v37 = vld [vmem:[%s24580_s2 + $0x9b0] sm:$0xff] }
 0x522   : > { %14216 = vmatpush1.bf16.msra.mxu1 %v15871_v58  ;;  %v15914_v58 = vcombine.high %v823_v48, %v827_v49  ;;  %v862_v49 = vld [vmem:[%s24580_s2 + $0x9d0] sm:$0xff] }
 0x523   : > { %14872 = vmatpush1.bf16.msra.mxu0 %v15873_v59  ;;  %14217 = vmatprep.subr.bf16.mxu1 %v15880_v1  ;;  %v830_v59 = vld [vmem:[%s24580_s2 + $0x8d0] sm:$0xff] }
 0x524   : > { %14873 = vmatprep.subr.bf16.mxu0 %v15882_v2  ;;  %v834_v1 = vld [vmem:[%s24580_s2 + $0x8f0] sm:$0xff]  ;;  %v835_v2 = vld [vmem:[%s24580_s2 + $0x8f8] sm:$0xff] }
 0x525   : > { %v15920_v9 = vcombine.high %v830_v59, %v834_v1 }
 0x526   : > { %14218 = vmatpush1.bf16.msra.mxu1 %v15879_v60  ;;  %v842_v60 = vld [vmem:[%s24580_s2 + $0x930] sm:$0xff] }
 0x527   : > { %14874 = vmatpush1.bf16.msra.mxu0 %v15881_v16  ;;  %14219 = vmatprep.subr.bf16.mxu1 %v15888_v51  ;;  %v839_v16 = vld [vmem:[%s24580_s2 + $0x918] sm:$0xff]  ;;  %v15928_v50 = vcombine.high %v838_v46, %v842_v60 }
 0x528   : > { %14875 = vmatprep.subr.bf16.mxu0 %v15890_v30  ;;  %v843_v51 = vld [vmem:[%s24580_s2 + $0x938] sm:$0xff]  ;;  %v15919_v30 = vcombine.low %v830_v59, %v834_v1 }
 0x529   : > { %v15930_v35 = vcombine.high %v839_v16, %v843_v51  ;;  %v15929_v4 = vcombine.low %v839_v16, %v843_v51  ;;  %v878_v51 = vld [vmem:[%s24580_s2 + $0xa50] sm:$0xff] }
 0x52a   : > { %14220 = vmatpush1.bf16.msra.mxu1 %v15887_v27  ;;  %v850_v27 = vld [vmem:[%s24580_s2 + $0x970] sm:$0xff] }
 0x52b   : > { %14876 = vmatpush1.bf16.msra.mxu0 %v15889_v54  ;;  %14230 = vmatprep.subr.bf16.mxu1 %v15896_v28  ;;  %v847_v54 = vld [vmem:[%s24580_s2 + $0x958] sm:$0xff]  ;;  %v15936_v62 = vcombine.high %v846_v43, %v850_v27 }
 0x52c   : > { %14886 = vmatprep.subr.bf16.mxu0 %v15898_v31  ;;  %v851_v28 = vld [vmem:[%s24580_s2 + $0x978] sm:$0xff]  ;;  %v15927_v31 = vcombine.low %v838_v46, %v842_v60 }
 0x52d   : > { %14222 = vmatmul.mubr.bf16.vlgmr.msra.gmra.mrb[4].mxu1 %v18552_v13 }
 0x52e   : > { %14878 = vmatmul.mubr.bf16.vlgmr.msra.gmra.mrb[36].mxu0 %v18552_v13  ;;  %14231 = vmatpush1.bf16.msra.mxu1 %v15895_v34  ;;  %v831_v13 = vld [vmem:[%s24580_s2 + $0x8d8] sm:$0xff]  ;;  %v15938_v34 = vcombine.high %v847_v54, %v851_v28 }
 0x52f   : > { %14262 = vmatprep.mubr.bf16.mxu1 %v18572_v26  ;;  %14887 = vmatpush1.bf16.msra.mxu0 %v15897_v38  ;;  %v15922_v32 = vcombine.high %v831_v13, %v835_v2  ;;  %v15921_v6 = vcombine.low %v831_v13, %v835_v2  ;;  %v855_v38 = vld [vmem:[%s24580_s2 + $0x998] sm:$0xff]  ;;  %v870_v2 = vld [vmem:[%s24580_s2 + $0xa10] sm:$0xff] }
 0x530   : > { %14918 = vmatprep.mubr.bf16.mxu0 %v18572_v26  ;;  %14232 = vmatprep.subr.bf16.mxu1 %v15904_v40  ;;  %v15911_v26 = vcombine.low %v822_v41, %v826_v44  ;;  %v859_v40 = vld [vmem:[%s24580_s2 + $0x9b8] sm:$0xff]  ;;  %v15935_v41 = vcombine.low %v846_v43, %v850_v27  ;;  %v15937_v44 = vcombine.low %v847_v54, %v851_v28  ;;  %v886_v28 = vld [vmem:[%s24580_s2 + $0xa90] sm:$0xff] }
 0x531   : > { %14888 = vmatprep.subr.bf16.mxu0 %v15906_v47  ;;  %v15944_v47 = vcombine.high %v854_v42, %v858_v37  ;;  %v15946_v48 = vcombine.high %v855_v38, %v859_v40  ;;  %v15945_v59 = vcombine.low %v855_v38, %v859_v40  ;;  %v894_v40 = vld [vmem:[%s24580_s2 + $0xad0] sm:$0xff] }
 0x532   : > { %14233 = vmatpush1.bf16.msra.mxu1 %v15903_v53  ;;  %v866_v53 = vld [vmem:[%s24580_s2 + $0x9f0] sm:$0xff] }
 0x533   : > { %14889 = vmatpush1.bf16.msra.mxu0 %v15905_v55  ;;  %14234 = vmatprep.subr.bf16.mxu1 %v15912_v56  ;;  %v863_v55 = vld [vmem:[%s24580_s2 + $0x9d8] sm:$0xff]  ;;  %v15952_v1 = vcombine.high %v862_v49, %v866_v53 }
 0x534   : > { %14890 = vmatprep.subr.bf16.mxu0 %v15914_v58  ;;  %v867_v56 = vld [vmem:[%s24580_s2 + $0x9f8] sm:$0xff]  ;;  %v15943_v58 = vcombine.low %v854_v42, %v858_v37 }
 0x535   : > { %v15954_v13 = vcombine.high %v863_v55, %v867_v56  ;;  %v15953_v46 = vcombine.low %v863_v55, %v867_v56  ;;  %v902_v56 = vld [vmem:[%s24580_s2 + $0xb10] sm:$0xff] }
 0x536   : > { %14235 = vmatpush1.bf16.msra.mxu1 %v15911_v26  ;;  %v874_v26 = vld [vmem:[%s24580_s2 + $0xa30] sm:$0xff] }
 0x537   : > { %14891 = vmatpush1.bf16.msra.mxu0 %v15913_v5  ;;  %14236 = vmatprep.subr.bf16.mxu1 %v15920_v9  ;;  %v871_v5 = vld [vmem:[%s24580_s2 + $0xa18] sm:$0xff]  ;;  %v15960_v60 = vcombine.high %v870_v2, %v874_v26 }
 0x538   : > { %14892 = vmatprep.subr.bf16.mxu0 %v15922_v32  ;;  %v875_v9 = vld [vmem:[%s24580_s2 + $0xa38] sm:$0xff]  ;;  %v15951_v32 = vcombine.low %v862_v49, %v866_v53 }
 0x539   : > { %v15962_v16 = vcombine.high %v871_v5, %v875_v9  ;;  %v15961_v43 = vcombine.low %v871_v5, %v875_v9  ;;  %v910_v9 = vld [vmem:[%s24580_s2 + $0xb50] sm:$0xff] }
 0x53a   : > { %14237 = vmatpush1.bf16.msra.mxu1 %v15919_v30  ;;  %v882_v30 = vld [vmem:[%s24580_s2 + $0xa70] sm:$0xff] }
 0x53b   : > { %14893 = vmatpush1.bf16.msra.mxu0 %v15921_v6  ;;  %14238 = vmatprep.subr.bf16.mxu1 %v15928_v50  ;;  %v879_v6 = vld [vmem:[%s24580_s2 + $0xa58] sm:$0xff]  ;;  %v15968_v27 = vcombine.high %v878_v51, %v882_v30 }
 0x53c   : > { %14894 = vmatprep.subr.bf16.mxu0 %v15930_v35  ;;  %v883_v50 = vld [vmem:[%s24580_s2 + $0xa78] sm:$0xff]  ;;  %v15959_v35 = vcombine.low %v870_v2, %v874_v26 }
 0x53d   : > { %v15970_v54 = vcombine.high %v879_v6, %v883_v50  ;;  %v15969_v42 = vcombine.low %v879_v6, %v883_v50  ;;  %v918_v50 = vld [vmem:[%s24580_s2 + $0xb90] sm:$0xff] }
 0x53e   : > { %14239 = vmatpush1.bf16.msra.mxu1 %v15927_v31  ;;  %v890_v31 = vld [vmem:[%s24580_s2 + $0xab0] sm:$0xff] }
 0x53f   : > { %14895 = vmatpush1.bf16.msra.mxu0 %v15929_v4  ;;  %14240 = vmatprep.subr.bf16.mxu1 %v15936_v62  ;;  %v887_v4 = vld [vmem:[%s24580_s2 + $0xa98] sm:$0xff]  ;;  %v15976_v37 = vcombine.high %v886_v28, %v890_v31 }
 0x540   : > { %14896 = vmatprep.subr.bf16.mxu0 %v15938_v34  ;;  %v891_v62 = vld [vmem:[%s24580_s2 + $0xab8] sm:$0xff]  ;;  %v15967_v34 = vcombine.low %v878_v51, %v882_v30 }
 0x541   : > { %v15978_v38 = vcombine.high %v887_v4, %v891_v62  ;;  %v15977_v49 = vcombine.low %v887_v4, %v891_v62  ;;  %v926_v62 = vld [vmem:[%s24580_s2 + $0xbd0] sm:$0xff] }
 0x542   : > { %14241 = vmatpush1.bf16.msra.mxu1 %v15935_v41  ;;  %v898_v41 = vld [vmem:[%s24580_s2 + $0xaf0] sm:$0xff] }
 0x543   : > { %14897 = vmatpush1.bf16.msra.mxu0 %v15937_v44  ;;  %14242 = vmatprep.subr.bf16.mxu1 %v15944_v47  ;;  %v895_v44 = vld [vmem:[%s24580_s2 + $0xad8] sm:$0xff]  ;;  %v15984_v53 = vcombine.high %v894_v40, %v898_v41 }
 0x544   : > { %14898 = vmatprep.subr.bf16.mxu0 %v15946_v48  ;;  %v899_v47 = vld [vmem:[%s24580_s2 + $0xaf8] sm:$0xff]  ;;  %v15975_v48 = vcombine.low %v886_v28, %v890_v31 }
 0x545   : > { %v15986_v55 = vcombine.high %v895_v44, %v899_v47  ;;  %v15985_v2 = vcombine.low %v895_v44, %v899_v47  ;;  %v934_v47 = vld [vmem:[%s24580_s2 + $0xc10] sm:$0xff] }
 0x546   : > { %14243 = vmatpush1.bf16.msra.mxu1 %v15943_v58  ;;  %v906_v58 = vld [vmem:[%s24580_s2 + $0xb30] sm:$0xff] }
 0x547   : > { %14899 = vmatpush1.bf16.msra.mxu0 %v15945_v59  ;;  %14244 = vmatprep.subr.bf16.mxu1 %v15952_v1  ;;  %v903_v59 = vld [vmem:[%s24580_s2 + $0xb18] sm:$0xff]  ;;  %v15992_v26 = vcombine.high %v902_v56, %v906_v58 }
 0x548   : > { %14900 = vmatprep.subr.bf16.mxu0 %v15954_v13  ;;  %v907_v1 = vld [vmem:[%s24580_s2 + $0xb38] sm:$0xff]  ;;  %v15983_v13 = vcombine.low %v894_v40, %v898_v41 }
 0x549   : > { %v15994_v5 = vcombine.high %v903_v59, %v907_v1  ;;  %v15993_v51 = vcombine.low %v903_v59, %v907_v1  ;;  %v942_v1 = vld [vmem:[%s24580_s2 + $0xc50] sm:$0xff] }
 0x54a   : > { %14245 = vmatpush1.bf16.msra.mxu1 %v15951_v32  ;;  %v914_v32 = vld [vmem:[%s24580_s2 + $0xb70] sm:$0xff] }
 0x54b   : > { %14901 = vmatpush1.bf16.msra.mxu0 %v15953_v46  ;;  %14246 = vmatprep.subr.bf16.mxu1 %v15960_v60  ;;  %v911_v46 = vld [vmem:[%s24580_s2 + $0xb58] sm:$0xff]  ;;  %v16000_v30 = vcombine.high %v910_v9, %v914_v32 }
 0x54c   : > { %14902 = vmatprep.subr.bf16.mxu0 %v15962_v16  ;;  %v915_v60 = vld [vmem:[%s24580_s2 + $0xb78] sm:$0xff]  ;;  %v15991_v16 = vcombine.low %v902_v56, %v906_v58 }
 0x54d   : > { %v16002_v6 = vcombine.high %v911_v46, %v915_v60  ;;  %v16001_v28 = vcombine.low %v911_v46, %v915_v60  ;;  %v950_v46 = vld [vmem:[%s24580_s2 + $0xc90] sm:$0xff] }
 0x54e   : > { %14247 = vmatpush1.bf16.msra.mxu1 %v15959_v35  ;;  %v922_v35 = vld [vmem:[%s24580_s2 + $0xbb0] sm:$0xff] }
 0x54f   : > { %14903 = vmatpush1.bf16.msra.mxu0 %v15961_v43  ;;  %14248 = vmatprep.subr.bf16.mxu1 %v15968_v27  ;;  %v919_v43 = vld [vmem:[%s24580_s2 + $0xb98] sm:$0xff]  ;;  %v16008_v31 = vcombine.high %v918_v50, %v922_v35  ;;  %v954_v60 = vld [vmem:[%s24580_s2 + $0xcb0] sm:$0xff] }
 0x550   : > { %14904 = vmatprep.subr.bf16.mxu0 %v15970_v54  ;;  %v923_v27 = vld [vmem:[%s24580_s2 + $0xbb8] sm:$0xff]  ;;  %v15999_v54 = vcombine.low %v910_v9, %v914_v32 }
 0x551   : > { %v16010_v4 = vcombine.high %v919_v43, %v923_v27  ;;  %v16009_v40 = vcombine.low %v919_v43, %v923_v27  ;;  %v958_v27 = vld [vmem:[%s24580_s2 + $0xcd0] sm:$0xff] }
 0x552   : > { %14249 = vmatpush1.bf16.msra.mxu1 %v15967_v34  ;;  %v930_v34 = vld [vmem:[%s24580_s2 + $0xbf0] sm:$0xff] }
 0x553   : > { %14905 = vmatpush1.bf16.msra.mxu0 %v15969_v42  ;;  %14250 = vmatprep.subr.bf16.mxu1 %v15976_v37  ;;  %v927_v42 = vld [vmem:[%s24580_s2 + $0xbd8] sm:$0xff]  ;;  %v16016_v41 = vcombine.high %v926_v62, %v930_v34 }
 0x554   : > { %14906 = vmatprep.subr.bf16.mxu0 %v15978_v38  ;;  %v931_v37 = vld [vmem:[%s24580_s2 + $0xbf8] sm:$0xff]  ;;  %v16007_v38 = vcombine.low %v918_v50, %v922_v35  ;;  %v16040_v35 = vcombine.high %v950_v46, %v954_v60 }
 0x555   : > { %v16018_v44 = vcombine.high %v927_v42, %v931_v37  ;;  %v16017_v56 = vcombine.low %v927_v42, %v931_v37  ;;  %v970_v42 = vld [vmem:[%s24580_s2 + $0xd30] sm:$0xff]  ;;  %v967_v37 = vld [vmem:[%s24580_s2 + $0xd18] sm:$0xff] }
 0x556   : > { %14251 = vmatpush1.bf16.msra.mxu1 %v15975_v48  ;;  %v938_v48 = vld [vmem:[%s24580_s2 + $0xc30] sm:$0xff] }
 0x557   : > { %14907 = vmatpush1.bf16.msra.mxu0 %v15977_v49  ;;  %14252 = vmatprep.subr.bf16.mxu1 %v15984_v53  ;;  %v935_v49 = vld [vmem:[%s24580_s2 + $0xc18] sm:$0xff]  ;;  %v16024_v58 = vcombine.high %v934_v47, %v938_v48 }
 0x558   : > { %14908 = vmatprep.subr.bf16.mxu0 %v15986_v55  ;;  %v939_v53 = vld [vmem:[%s24580_s2 + $0xc38] sm:$0xff]  ;;  %v16015_v55 = vcombine.low %v926_v62, %v930_v34  ;;  %v966_v34 = vld [vmem:[%s24580_s2 + $0xd10] sm:$0xff] }
 0x559   : > { %v16026_v59 = vcombine.high %v935_v49, %v939_v53  ;;  %v16025_v9 = vcombine.low %v935_v49, %v939_v53  ;;  %v978_v49 = vld [vmem:[%s24580_s2 + $0xd70] sm:$0xff]  ;;  %v975_v53 = vld [vmem:[%s24580_s2 + $0xd58] sm:$0xff] }
 0x55a   : > { %14253 = vmatpush1.bf16.msra.mxu1 %v15983_v13  ;;  %v946_v13 = vld [vmem:[%s24580_s2 + $0xc70] sm:$0xff] }
 0x55b   : > { %14909 = vmatpush1.bf16.msra.mxu0 %v15985_v2  ;;  %14254 = vmatprep.subr.bf16.mxu1 %v15992_v26  ;;  %v16023_v2 = vcombine.low %v934_v47, %v938_v48  ;;  %v943_v26 = vld [vmem:[%s24580_s2 + $0xc58] sm:$0xff]  ;;  %v16032_v32 = vcombine.high %v942_v1, %v946_v13  ;;  %v974_v48 = vld [vmem:[%s24580_s2 + $0xd50] sm:$0xff] }
 0x55c   : > { %14910 = vmatprep.subr.bf16.mxu0 %v15994_v5  ;;  %v947_v5 = vld [vmem:[%s24580_s2 + $0xc78] sm:$0xff] }
 0x55d   : > { %v16033_v50 = vcombine.low %v943_v26, %v947_v5 }
 0x55e   : > { %14255 = vmatpush1.bf16.msra.mxu1 %v15991_v16  ;;  %v16034_v16 = vcombine.high %v943_v26, %v947_v5  ;;  %v983_v26 = vld [vmem:[%s24580_s2 + $0xd98] sm:$0xff] }
 0x55f   : > { %14911 = vmatpush1.bf16.msra.mxu0 %v15993_v51  ;;  %14256 = vmatprep.subr.bf16.mxu1 %v16000_v30  ;;  %v951_v51 = vld [vmem:[%s24580_s2 + $0xc98] sm:$0xff] }
 0x560   : > { %14912 = vmatprep.subr.bf16.mxu0 %v16002_v6  ;;  %v955_v30 = vld [vmem:[%s24580_s2 + $0xcb8] sm:$0xff]  ;;  %v16031_v6 = vcombine.low %v942_v1, %v946_v13  ;;  %v982_v13 = vld [vmem:[%s24580_s2 + $0xd90] sm:$0xff] }
 0x561   : > { %v16042_v43 = vcombine.high %v951_v51, %v955_v30  ;;  %v987_v5 = vld [vmem:[%s24580_s2 + $0xdb8] sm:$0xff] }
 0x562   : > { %14257 = vmatpush1.bf16.msra.mxu1 %v15999_v54  ;;  %v962_v54 = vld [vmem:[%s24580_s2 + $0xcf0] sm:$0xff] }
 0x563   : > { %14913 = vmatpush1.bf16.msra.mxu0 %v16001_v28  ;;  %14258 = vmatprep.subr.bf16.mxu1 %v16008_v31  ;;  %v963_v28 = vld [vmem:[%s24580_s2 + $0xcf8] sm:$0xff]  ;;  %v16041_v31 = vcombine.low %v951_v51, %v955_v30  ;;  %v990_v51 = vld [vmem:[%s24580_s2 + $0xdd0] sm:$0xff] }
 0x564   : > { %14914 = vmatprep.subr.bf16.mxu0 %v16010_v4  ;;  %v16048_v4 = vcombine.high %v958_v27, %v962_v54  ;;  %v994_v30 = vld [vmem:[%s24580_s2 + $0xdf0] sm:$0xff] }
 0x566   : > { %14259 = vmatpush1.bf16.msra.mxu1 %v16007_v38  ;;  %v971_v38 = vld [vmem:[%s24580_s2 + $0xd38] sm:$0xff] }
 0x567   : > { %14915 = vmatpush1.bf16.msra.mxu0 %v16009_v40  ;;  %14260 = vmatprep.subr.bf16.mxu1 %v16016_v41  ;;  %v16047_v40 = vcombine.low %v958_v27, %v962_v54  ;;  %v16058_v47 = vcombine.high %v967_v37, %v971_v38 }
 0x568   : > { %14916 = vmatprep.subr.bf16.mxu0 %v16018_v44  ;;  %v16056_v44 = vcombine.high %v966_v34, %v970_v42 }
 0x56a   : > { %14261 = vmatpush1.bf16.msra.mxu1 %v16015_v55  ;;  %v979_v55 = vld [vmem:[%s24580_s2 + $0xd78] sm:$0xff] }
 0x56b   : > { %14917 = vmatpush1.bf16.msra.mxu0 %v16017_v56  ;;  %14271 = vmatprep.subr.bf16.mxu1 %v16024_v58  ;;  %v16055_v56 = vcombine.low %v966_v34, %v970_v42  ;;  %v16057_v58 = vcombine.low %v967_v37, %v971_v38  ;;  %v16066_v1 = vcombine.high %v975_v53, %v979_v55  ;;  %v998_v38 = vld [vmem:[%s24580_s2 + $0xe10] sm:$0xff] }
 0x56c   : > { %14927 = vmatprep.subr.bf16.mxu0 %v16026_v59  ;;  %v16064_v59 = vcombine.high %v974_v48, %v978_v49 }
 0x56d   : > { %14263 = vmatmul.mubr.bf16.vlgmr.msra.gmra.mrb[4].mxu1 %v18780_v7 }
 0x56e   : > { %14919 = vmatmul.mubr.bf16.vlgmr.msra.gmra.mrb[36].mxu0 %v18780_v7  ;;  %14272 = vmatpush1.bf16.msra.mxu1 %v16023_v2  ;;  %v959_v7 = vld [vmem:[%s24580_s2 + $0xcd8] sm:$0xff]  ;;  %v986_v2 = vld [vmem:[%s24580_s2 + $0xdb0] sm:$0xff] }
 0x56f   : > { %14303 = vmatprep.mubr.bf16.mxu1 %v18796_v23  ;;  %14928 = vmatpush1.bf16.msra.mxu0 %v16025_v9  ;;  %v16050_v62 = vcombine.high %v959_v7, %v963_v28  ;;  %v16049_v41 = vcombine.low %v959_v7, %v963_v28  ;;  %v16063_v9 = vcombine.low %v974_v48, %v978_v49 }
 0x570   : > { %14959 = vmatprep.mubr.bf16.mxu0 %v18796_v23  ;;  %14273 = vmatprep.subr.bf16.mxu1 %v16032_v32  ;;  %v16039_v23 = vcombine.low %v950_v46, %v954_v60  ;;  %v16065_v32 = vcombine.low %v975_v53, %v979_v55  ;;  %v16072_v46 = vcombine.high %v982_v13, %v986_v2 }
 0x571   : > { %14929 = vmatprep.subr.bf16.mxu0 %v16034_v16  ;;  %v16074_v16 = vcombine.high %v983_v26, %v987_v5  ;;  %v16071_v28 = vcombine.low %v982_v13, %v986_v2  ;;  %v16079_v48 = vcombine.low %v990_v51, %v994_v30 }
 0x572   : > { %14274 = vmatpush1.bf16.msra.mxu1 %v16031_v6 }
 0x573   : > { %14930 = vmatpush1.bf16.msra.mxu0 %v16033_v50  ;;  %14275 = vmatprep.subr.bf16.mxu1 %v16040_v35  ;;  %v991_v35 = vld [vmem:[%s24580_s2 + $0xdd8] sm:$0xff] }
 0x574   : > { %14931 = vmatprep.subr.bf16.mxu0 %v16042_v43  ;;  %v995_v43 = vld [vmem:[%s24580_s2 + $0xdf8] sm:$0xff] }
 0x575   : > { %v16082_v37 = vcombine.high %v991_v35, %v995_v43  ;;  %v16081_v49 = vcombine.low %v991_v35, %v995_v43 }
 0x576   : > { %14276 = vmatpush1.bf16.msra.mxu1 %v16039_v23 }
 0x577   : > { %14932 = vmatpush1.bf16.msra.mxu0 %v16041_v31  ;;  %14277 = vmatprep.subr.bf16.mxu1 %v16048_v4  ;;  %v16073_v4 = vcombine.low %v983_v26, %v987_v5 }
 0x578   : > { %14933 = vmatprep.subr.bf16.mxu0 %v16050_v62  ;;  %v16080_v62 = vcombine.high %v990_v51, %v994_v30 }
 0x57a   : > { %14278 = vmatpush1.bf16.msra.mxu1 %v16047_v40  ;;  %v1002_v40 = vld [vmem:[%s24580_s2 + $0xe30] sm:$0xff] }
 0x57b   : > { %14934 = vmatpush1.bf16.msra.mxu0 %v16049_v41  ;;  %14279 = vmatprep.subr.bf16.mxu1 %v16056_v44  ;;  %v999_v41 = vld [vmem:[%s24580_s2 + $0xe18] sm:$0xff]  ;;  %v16088_v53 = vcombine.high %v998_v38, %v1002_v40  ;;  %v16087_v13 = vcombine.low %v998_v38, %v1002_v40 }
 0x57c   : > { %14935 = vmatprep.subr.bf16.mxu0 %v16058_v47  ;;  %v1003_v44 = vld [vmem:[%s24580_s2 + $0xe38] sm:$0xff] }
 0x57d   : > { %v16090_v55 = vcombine.high %v999_v41, %v1003_v44  ;;  %v16089_v2 = vcombine.low %v999_v41, %v1003_v44  ;;  %v1031_v38 = vld [vmem:[%s24580_s2 + $0xf18] sm:$0xff] }
 0x57e   : > { %14280 = vmatpush1.bf16.msra.mxu1 %v16055_v56  ;;  %v1006_v56 = vld [vmem:[%s24580_s2 + $0xe50] sm:$0xff]  ;;  %v1035_v40 = vld [vmem:[%s24580_s2 + $0xf38] sm:$0xff] }
 0x57f   : > { %14936 = vmatpush1.bf16.msra.mxu0 %v16057_v58  ;;  %14281 = vmatprep.subr.bf16.mxu1 %v16064_v59  ;;  %v1010_v58 = vld [vmem:[%s24580_s2 + $0xe70] sm:$0xff]  ;;  %v1007_v59 = vld [vmem:[%s24580_s2 + $0xe58] sm:$0xff] }
 0x580   : > { %v22086_v60 = vpop.f32.mrb[0].mxu1  ;;  %14937 = vmatprep.subr.bf16.mxu0 %v16066_v1  ;;  %v1011_v1 = vld [vmem:[%s24580_s2 + $0xe78] sm:$0xff]  ;;  %v16096_v26 = vcombine.high %v1006_v56, %v1010_v58  ;;  %v16095_v51 = vcombine.low %v1006_v56, %v1010_v58 }
 0x581   : > { %v22094_v6 = vpop.f32.mrb[32].mxu0  ;;  %v22096_v50 = vpop.f32.mrb[1].mxu1  ;;  %v16098_v5 = vcombine.high %v1007_v59, %v1011_v1  ;;  %v16097_v30 = vcombine.low %v1007_v59, %v1011_v1  ;;  %v1039_v56 = vld [vmem:[%s24580_s2 + $0xf58] sm:$0xff]  ;;  %v16121_v1 = vcombine.low %v1031_v38, %v1035_v40 }
 0x582   : > { %v15460_v27 = vadd.f32 %v22096_v50, %v22086_v60  ;;  %v22106_v54 = vpop.f32.mrb[33].mxu0  ;;  %v13489_v7 = vpop.f32.mrb[2].mxu1  ;;  %14282 = vmatpush1.bf16.msra.mxu1 %v16063_v9  ;;  %v1014_v9 = vld [vmem:[%s24580_s2 + $0xe90] sm:$0xff]  ;;  %v1043_v58 = vld [vmem:[%s24580_s2 + $0xf78] sm:$0xff] }
 0x583   : > { %v14145_v23 = vpop.f32.mrb[34].mxu0  ;;  %14938 = vmatpush1.bf16.msra.mxu0 %v16065_v32  ;;  %v13490_v31 = vpop.f32.mrb[3].mxu1  ;;  %14283 = vmatprep.subr.bf16.mxu1 %v16072_v46  ;;  %v1018_v32 = vld [vmem:[%s24580_s2 + $0xeb0] sm:$0xff]  ;;  %v1015_v46 = vld [vmem:[%s24580_s2 + $0xe98] sm:$0xff] }
 0x584   : > { %v15461_v34 = vadd.f32 %v15460_v27, %v22094_v6  ;;  %v14146_v42 = vpop.f32.mrb[35].mxu0  ;;  %14939 = vmatprep.subr.bf16.mxu0 %v16074_v16  ;;  %v1019_v16 = vld [vmem:[%s24580_s2 + $0xeb8] sm:$0xff]  ;;  %v16104_v35 = vcombine.high %v1014_v9, %v1018_v32  ;;  %v1022_v27 = vld [vmem:[%s24580_s2 + $0xed0] sm:$0xff]  ;;  %v16103_v31 = vcombine.low %v1014_v9, %v1018_v32 }
 0x585   : > { %v16106_v43 = vcombine.high %v1015_v46, %v1019_v16  ;;  %v1026_v7 = vld [vmem:[%s24580_s2 + $0xef0] sm:$0xff]  ;;  %v1027_v23 = vld [vmem:[%s24580_s2 + $0xef8] sm:$0xff] }
 0x586   : > { %v22122_v47 = vadd.f32 %v15461_v34, %v22106_v54  ;;  %14284 = vmatpush1.bf16.msra.mxu1 %v16071_v28  ;;  %v1023_v28 = vld [vmem:[%s24580_s2 + $0xed8] sm:$0xff]  ;;  %v1030_v42 = vld [vmem:[%s24580_s2 + $0xf10] sm:$0xff]  ;;  %v16111_v41 = vcombine.low %v1022_v27, %v1026_v7 }
 0x587   : > { %14940 = vmatpush1.bf16.msra.mxu0 %v16073_v4  ;;  %14285 = vmatprep.subr.bf16.mxu1 %v16080_v62  ;;  %v16105_v4 = vcombine.low %v1015_v46, %v1019_v16  ;;  %v16112_v62 = vcombine.high %v1022_v27, %v1026_v7  ;;  %v16114_v34 = vcombine.high %v1023_v28, %v1027_v23  ;;  %v1047_v9 = vld [vmem:[%s24580_s2 + $0xf98] sm:$0xff] }
 0x588   : > { %14941 = vmatprep.subr.bf16.mxu0 %v16082_v37  ;;  %v1034_v37 = vld [vmem:[%s24580_s2 + $0xf30] sm:$0xff]  ;;  %v16113_v44 = vcombine.low %v1023_v28, %v1027_v23  ;;  %v1051_v32 = vld [vmem:[%s24580_s2 + $0xfb8] sm:$0xff]  ;;  %v16129_v16 = vcombine.low %v1039_v56, %v1043_v58 }
 0x589   : > { %v16119_v59 = vcombine.low %v1030_v42, %v1034_v37  ;;  %v1055_v27 = vld [vmem:[%s24580_s2 + $0xfd8] sm:$0xff]  ;;  %v16137_v23 = vcombine.low %v1047_v9, %v1051_v32 }
 0x58a   : > { %14286 = vmatpush1.bf16.msra.mxu1 %v16079_v48  ;;  %v16120_v48 = vcombine.high %v1030_v42, %v1034_v37  ;;  %v1059_v7 = vld [vmem:[%s24580_s2 + $0xff8] sm:$0xff] }
 0x58b   : > { %14942 = vmatpush1.bf16.msra.mxu0 %v16081_v49  ;;  %14287 = vmatprep.subr.bf16.mxu1 %v16088_v53  ;;  %v16122_v49 = vcombine.high %v1031_v38, %v1035_v40  ;;  %v1038_v53 = vld [vmem:[%s24580_s2 + $0xf50] sm:$0xff]  ;;  %v1063_v42 = vld [vmem:[%s24580_s2 + $0x1018] sm:$0xff]  ;;  %v16145_v40 = vcombine.low %v1055_v27, %v1059_v7 }
 0x58c   : > { %14943 = vmatprep.subr.bf16.mxu0 %v16090_v55  ;;  %v1042_v55 = vld [vmem:[%s24580_s2 + $0xf70] sm:$0xff]  ;;  %v1067_v37 = vld [vmem:[%s24580_s2 + $0x1038] sm:$0xff] }
 0x58d   : > { %v16127_v46 = vcombine.low %v1038_v53, %v1042_v55 }
 0x58e   : > { %14288 = vmatpush1.bf16.msra.mxu1 %v16087_v13  ;;  %v16128_v13 = vcombine.high %v1038_v53, %v1042_v55  ;;  %v1071_v55 = vld [vmem:[%s24580_s2 + $0x1058] sm:$0xff] }
 0x58f   : > { %14944 = vmatpush1.bf16.msra.mxu0 %v16089_v2  ;;  %14289 = vmatprep.subr.bf16.mxu1 %v16096_v26  ;;  %v16130_v2 = vcombine.high %v1039_v56, %v1043_v58  ;;  %v1046_v26 = vld [vmem:[%s24580_s2 + $0xf90] sm:$0xff]  ;;  %v1075_v56 = vld [vmem:[%s24580_s2 + $0x1078] sm:$0xff]  ;;  %v16153_v58 = vcombine.low %v1063_v42, %v1067_v37 }
 0x590   : > { %14945 = vmatprep.subr.bf16.mxu0 %v16098_v5  ;;  %v1050_v5 = vld [vmem:[%s24580_s2 + $0xfb0] sm:$0xff] }
 0x591   : > { %v16135_v28 = vcombine.low %v1046_v26, %v1050_v5 }
 0x592   : > { %14290 = vmatpush1.bf16.msra.mxu1 %v16095_v51  ;;  %v16136_v51 = vcombine.high %v1046_v26, %v1050_v5  ;;  %v1079_v26 = vld [vmem:[%s24580_s2 + $0x1098] sm:$0xff] }
 0x593   : > { %14946 = vmatpush1.bf16.msra.mxu0 %v16097_v30  ;;  %14291 = vmatprep.subr.bf16.mxu1 %v16104_v35  ;;  %v16138_v30 = vcombine.high %v1047_v9, %v1051_v32  ;;  %v1054_v35 = vld [vmem:[%s24580_s2 + $0xfd0] sm:$0xff]  ;;  %v1083_v5 = vld [vmem:[%s24580_s2 + $0x10b8] sm:$0xff]  ;;  %v16161_v32 = vcombine.low %v1071_v55, %v1075_v56 }
 0x594   : > { %14947 = vmatprep.subr.bf16.mxu0 %v16106_v43  ;;  %v1058_v43 = vld [vmem:[%s24580_s2 + $0xff0] sm:$0xff] }
 0x595   : > { %v16143_v38 = vcombine.low %v1054_v35, %v1058_v43 }
 0x596   : > { %14292 = vmatpush1.bf16.msra.mxu1 %v16103_v31  ;;  %v16144_v31 = vcombine.high %v1054_v35, %v1058_v43  ;;  %v1091_v35 = vld [vmem:[%s24580_s2 + $0x10f8] sm:$0xff]  ;;  %v16169_v43 = vcombine.low %v1079_v26, %v1083_v5 }
 0x597   : > { %14948 = vmatpush1.bf16.msra.mxu0 %v16105_v4  ;;  %14293 = vmatprep.subr.bf16.mxu1 %v16112_v62  ;;  %v16146_v4 = vcombine.high %v1055_v27, %v1059_v7  ;;  %v1062_v62 = vld [vmem:[%s24580_s2 + $0x1010] sm:$0xff] }
 0x598   : > { %14949 = vmatprep.subr.bf16.mxu0 %v16114_v34  ;;  %v1066_v34 = vld [vmem:[%s24580_s2 + $0x1030] sm:$0xff] }
 0x599   : > { %v16151_v53 = vcombine.low %v1062_v62, %v1066_v34 }
 0x59a   : > { %14294 = vmatpush1.bf16.msra.mxu1 %v16111_v41  ;;  %v16152_v41 = vcombine.high %v1062_v62, %v1066_v34 }
 0x59b   : > { %14950 = vmatpush1.bf16.msra.mxu0 %v16113_v44  ;;  %14295 = vmatprep.subr.bf16.mxu1 %v16120_v48  ;;  %v16154_v44 = vcombine.high %v1063_v42, %v1067_v37  ;;  %v1070_v48 = vld [vmem:[%s24580_s2 + $0x1050] sm:$0xff] }
 0x59c   : > { %14951 = vmatprep.subr.bf16.mxu0 %v16122_v49  ;;  %v1074_v49 = vld [vmem:[%s24580_s2 + $0x1070] sm:$0xff] }
 0x59d   : > { %v16159_v9 = vcombine.low %v1070_v48, %v1074_v49 }
 0x59e   : > { %14296 = vmatpush1.bf16.msra.mxu1 %v16119_v59  ;;  %v16160_v59 = vcombine.high %v1070_v48, %v1074_v49 }
 0x59f   : > { %14952 = vmatpush1.bf16.msra.mxu0 %v16121_v1  ;;  %14297 = vmatprep.subr.bf16.mxu1 %v16128_v13  ;;  %v1078_v1 = vld [vmem:[%s24580_s2 + $0x1090] sm:$0xff] }
 0x5a0   : > { %14953 = vmatprep.subr.bf16.mxu0 %v16130_v2  ;;  %v1082_v13 = vld [vmem:[%s24580_s2 + $0x10b0] sm:$0xff]  ;;  %v16162_v2 = vcombine.high %v1071_v55, %v1075_v56 }
 0x5a1   : > { %v1110_v56 = vld [vmem:[%s24580_s2 + $0x1190] sm:$0xff] }
 0x5a2   : > { %14298 = vmatpush1.bf16.msra.mxu1 %v16127_v46  ;;  %v16168_v46 = vcombine.high %v1078_v1, %v1082_v13 }
 0x5a3   : > { %14954 = vmatpush1.bf16.msra.mxu0 %v16129_v16  ;;  %14299 = vmatprep.subr.bf16.mxu1 %v16136_v51  ;;  %v16170_v16 = vcombine.high %v1079_v26, %v1083_v5  ;;  %v1086_v51 = vld [vmem:[%s24580_s2 + $0x10d0] sm:$0xff] }
 0x5a4   : > { %14955 = vmatprep.subr.bf16.mxu0 %v16138_v30  ;;  %v1090_v30 = vld [vmem:[%s24580_s2 + $0x10f0] sm:$0xff] }
 0x5a5   : > { %v16176_v27 = vcombine.high %v1086_v51, %v1090_v30  ;;  %v16175_v62 = vcombine.low %v1086_v51, %v1090_v30 }
 0x5a6   : > { %14300 = vmatpush1.bf16.msra.mxu1 %v16135_v28  ;;  %v1094_v28 = vld [vmem:[%s24580_s2 + $0x1110] sm:$0xff] }
 0x5a7   : > { %14956 = vmatpush1.bf16.msra.mxu0 %v16137_v23  ;;  %14301 = vmatprep.subr.bf16.mxu1 %v16144_v31  ;;  %v1098_v23 = vld [vmem:[%s24580_s2 + $0x1130] sm:$0xff]  ;;  %v1095_v31 = vld [vmem:[%s24580_s2 + $0x1118] sm:$0xff] }
 0x5a8   : > { %14957 = vmatprep.subr.bf16.mxu0 %v16146_v4  ;;  %v1099_v4 = vld [vmem:[%s24580_s2 + $0x1138] sm:$0xff]  ;;  %v16184_v42 = vcombine.high %v1094_v28, %v1098_v23  ;;  %v16183_v48 = vcombine.low %v1094_v28, %v1098_v23 }
 0x5a9   : > { %v16186_v37 = vcombine.high %v1095_v31, %v1099_v4  ;;  %v16185_v49 = vcombine.low %v1095_v31, %v1099_v4 }
 0x5aa   : > { %14302 = vmatpush1.bf16.msra.mxu1 %v16143_v38  ;;  %v1102_v38 = vld [vmem:[%s24580_s2 + $0x1150] sm:$0xff] }
 0x5ab   : > { %14958 = vmatpush1.bf16.msra.mxu0 %v16145_v40  ;;  %14312 = vmatprep.subr.bf16.mxu1 %v16152_v41  ;;  %v1106_v40 = vld [vmem:[%s24580_s2 + $0x1170] sm:$0xff]  ;;  %v1103_v41 = vld [vmem:[%s24580_s2 + $0x1158] sm:$0xff] }
 0x5ac   : > { %14968 = vmatprep.subr.bf16.mxu0 %v16154_v44  ;;  %v1107_v44 = vld [vmem:[%s24580_s2 + $0x1178] sm:$0xff] }
 0x5ad   : > { %14304 = vmatmul.mubr.bf16.vlgmr.msra.gmra.mrb[4].mxu1 %v18984_v11  ;;  %v16194_v55 = vcombine.high %v1103_v41, %v1107_v44 }
 0x5ae   : > { %14960 = vmatmul.mubr.bf16.vlgmr.msra.gmra.mrb[36].mxu0 %v18984_v11  ;;  %14313 = vmatpush1.bf16.msra.mxu1 %v16151_v53  ;;  %v1087_v11 = vld [vmem:[%s24580_s2 + $0x10d8] sm:$0xff]  ;;  %v16192_v53 = vcombine.high %v1102_v38, %v1106_v40 }
 0x5af   : > { %14344 = vmatprep.mubr.bf16.mxu1 %v18988_v15  ;;  %14969 = vmatpush1.bf16.msra.mxu0 %v16153_v58  ;;  %v16178_v7 = vcombine.high %v1087_v11, %v1091_v35  ;;  %v16177_v34 = vcombine.low %v1087_v11, %v1091_v35  ;;  %v1114_v58 = vld [vmem:[%s24580_s2 + $0x11b0] sm:$0xff] }
 0x5b0   : > { %15000 = vmatprep.mubr.bf16.mxu0 %v18988_v15  ;;  %14314 = vmatprep.subr.bf16.mxu1 %v16160_v59  ;;  %v16167_v15 = vcombine.low %v1078_v1, %v1082_v13  ;;  %v1111_v59 = vld [vmem:[%s24580_s2 + $0x1198] sm:$0xff]  ;;  %v16191_v13 = vcombine.low %v1102_v38, %v1106_v40  ;;  %v16200_v26 = vcombine.high %v1110_v56, %v1114_v58 }
 0x5b1   : > { %14970 = vmatprep.subr.bf16.mxu0 %v16162_v2  ;;  %v1115_v1 = vld [vmem:[%s24580_s2 + $0x11b8] sm:$0xff]  ;;  %v16193_v2 = vcombine.low %v1103_v41, %v1107_v44  ;;  %v16199_v51 = vcombine.low %v1110_v56, %v1114_v58 }
 0x5b2   : > { %14315 = vmatpush1.bf16.msra.mxu1 %v16159_v9  ;;  %v16202_v5 = vcombine.high %v1111_v59, %v1115_v1  ;;  %v1118_v9 = vld [vmem:[%s24580_s2 + $0x11d0] sm:$0xff]  ;;  %v16201_v30 = vcombine.low %v1111_v59, %v1115_v1 }
 0x5b3   : > { %14971 = vmatpush1.bf16.msra.mxu0 %v16161_v32  ;;  %14316 = vmatprep.subr.bf16.mxu1 %v16168_v46  ;;  %v1122_v32 = vld [vmem:[%s24580_s2 + $0x11f0] sm:$0xff]  ;;  %v1119_v46 = vld [vmem:[%s24580_s2 + $0x11d8] sm:$0xff] }
 0x5b4   : > { %14972 = vmatprep.subr.bf16.mxu0 %v16170_v16  ;;  %v1123_v16 = vld [vmem:[%s24580_s2 + $0x11f8] sm:$0xff]  ;;  %v16208_v11 = vcombine.high %v1118_v9, %v1122_v32  ;;  %v16207_v28 = vcombine.low %v1118_v9, %v1122_v32 }
 0x5b5   : > { %v16210_v35 = vcombine.high %v1119_v46, %v1123_v16  ;;  %v16209_v23 = vcombine.low %v1119_v46, %v1123_v16 }
 0x5b6   : > { %14317 = vmatpush1.bf16.msra.mxu1 %v16167_v15  ;;  %v1126_v15 = vld [vmem:[%s24580_s2 + $0x1210] sm:$0xff] }
 0x5b7   : > { %14973 = vmatpush1.bf16.msra.mxu0 %v16169_v43  ;;  %14318 = vmatprep.subr.bf16.mxu1 %v16176_v27  ;;  %v1130_v43 = vld [vmem:[%s24580_s2 + $0x1230] sm:$0xff]  ;;  %v1127_v27 = vld [vmem:[%s24580_s2 + $0x1218] sm:$0xff] }
 0x5b8   : > { %14974 = vmatprep.subr.bf16.mxu0 %v16178_v7  ;;  %v1131_v7 = vld [vmem:[%s24580_s2 + $0x1238] sm:$0xff]  ;;  %v16216_v31 = vcombine.high %v1126_v15, %v1130_v43  ;;  %v16215_v38 = vcombine.low %v1126_v15, %v1130_v43 }
 0x5b9   : > { %v16218_v4 = vcombine.high %v1127_v27, %v1131_v7  ;;  %v16217_v40 = vcombine.low %v1127_v27, %v1131_v7 }
 0x5ba   : > { %14319 = vmatpush1.bf16.msra.mxu1 %v16175_v62  ;;  %v1134_v62 = vld [vmem:[%s24580_s2 + $0x1250] sm:$0xff] }
 0x5bb   : > { %14975 = vmatpush1.bf16.msra.mxu0 %v16177_v34  ;;  %14320 = vmatprep.subr.bf16.mxu1 %v16184_v42  ;;  %v1138_v34 = vld [vmem:[%s24580_s2 + $0x1270] sm:$0xff]  ;;  %v1135_v42 = vld [vmem:[%s24580_s2 + $0x1258] sm:$0xff] }
 0x5bc   : > { %14976 = vmatprep.subr.bf16.mxu0 %v16186_v37  ;;  %v1139_v37 = vld [vmem:[%s24580_s2 + $0x1278] sm:$0xff]  ;;  %v16224_v41 = vcombine.high %v1134_v62, %v1138_v34  ;;  %v16223_v56 = vcombine.low %v1134_v62, %v1138_v34 }
 0x5bd   : > { %v16226_v44 = vcombine.high %v1135_v42, %v1139_v37  ;;  %v16225_v58 = vcombine.low %v1135_v42, %v1139_v37 }
 0x5be   : > { %14321 = vmatpush1.bf16.msra.mxu1 %v16183_v48  ;;  %v1142_v48 = vld [vmem:[%s24580_s2 + $0x1290] sm:$0xff] }
 0x5bf   : > { %14977 = vmatpush1.bf16.msra.mxu0 %v16185_v49  ;;  %14322 = vmatprep.subr.bf16.mxu1 %v16192_v53  ;;  %v1146_v49 = vld [vmem:[%s24580_s2 + $0x12b0] sm:$0xff]  ;;  %v1143_v53 = vld [vmem:[%s24580_s2 + $0x1298] sm:$0xff] }
 0x5c0   : > { %14978 = vmatprep.subr.bf16.mxu0 %v16194_v55  ;;  %v1147_v55 = vld [vmem:[%s24580_s2 + $0x12b8] sm:$0xff]  ;;  %v16232_v59 = vcombine.high %v1142_v48, %v1146_v49  ;;  %v16231_v9 = vcombine.low %v1142_v48, %v1146_v49 }
 0x5c1   : > { %v16234_v1 = vcombine.high %v1143_v53, %v1147_v55  ;;  %v16233_v32 = vcombine.low %v1143_v53, %v1147_v55 }
 0x5c2   : > { %14323 = vmatpush1.bf16.msra.mxu1 %v16191_v13  ;;  %v1150_v13 = vld [vmem:[%s24580_s2 + $0x12d0] sm:$0xff] }
 0x5c3   : > { %14979 = vmatpush1.bf16.msra.mxu0 %v16193_v2  ;;  %14324 = vmatprep.subr.bf16.mxu1 %v16200_v26  ;;  %v1154_v2 = vld [vmem:[%s24580_s2 + $0x12f0] sm:$0xff]  ;;  %v1151_v26 = vld [vmem:[%s24580_s2 + $0x12d8] sm:$0xff] }
 0x5c4   : > { %14980 = vmatprep.subr.bf16.mxu0 %v16202_v5  ;;  %v1155_v5 = vld [vmem:[%s24580_s2 + $0x12f8] sm:$0xff]  ;;  %v16240_v46 = vcombine.high %v1150_v13, %v1154_v2  ;;  %v16239_v15 = vcombine.low %v1150_v13, %v1154_v2 }
 0x5c5   : > { %v16242_v16 = vcombine.high %v1151_v26, %v1155_v5  ;;  %v16241_v43 = vcombine.low %v1151_v26, %v1155_v5 }
 0x5c6   : > { %14325 = vmatpush1.bf16.msra.mxu1 %v16199_v51  ;;  %v1158_v51 = vld [vmem:[%s24580_s2 + $0x1310] sm:$0xff] }
 0x5c7   : > { %14981 = vmatpush1.bf16.msra.mxu0 %v16201_v30  ;;  %14326 = vmatprep.subr.bf16.mxu1 %v16208_v11  ;;  %v1162_v30 = vld [vmem:[%s24580_s2 + $0x1330] sm:$0xff]  ;;  %v1159_v11 = vld [vmem:[%s24580_s2 + $0x1318] sm:$0xff] }
 0x5c8   : > { %14982 = vmatprep.subr.bf16.mxu0 %v16210_v35  ;;  %v1163_v35 = vld [vmem:[%s24580_s2 + $0x1338] sm:$0xff]  ;;  %v16248_v27 = vcombine.high %v1158_v51, %v1162_v30  ;;  %v16247_v62 = vcombine.low %v1158_v51, %v1162_v30 }
 0x5c9   : > { %v16250_v7 = vcombine.high %v1159_v11, %v1163_v35  ;;  %v16249_v34 = vcombine.low %v1159_v11, %v1163_v35 }
 0x5ca   : > { %14327 = vmatpush1.bf16.msra.mxu1 %v16207_v28  ;;  %v1166_v28 = vld [vmem:[%s24580_s2 + $0x1350] sm:$0xff] }
 0x5cb   : > { %14983 = vmatpush1.bf16.msra.mxu0 %v16209_v23  ;;  %14328 = vmatprep.subr.bf16.mxu1 %v16216_v31  ;;  %v1170_v23 = vld [vmem:[%s24580_s2 + $0x1370] sm:$0xff]  ;;  %v1167_v31 = vld [vmem:[%s24580_s2 + $0x1358] sm:$0xff] }
 0x5cc   : > { %14984 = vmatprep.subr.bf16.mxu0 %v16218_v4  ;;  %v1171_v4 = vld [vmem:[%s24580_s2 + $0x1378] sm:$0xff]  ;;  %v16256_v42 = vcombine.high %v1166_v28, %v1170_v23  ;;  %v16255_v48 = vcombine.low %v1166_v28, %v1170_v23 }
 0x5cd   : > { %v16258_v37 = vcombine.high %v1167_v31, %v1171_v4  ;;  %v16257_v49 = vcombine.low %v1167_v31, %v1171_v4  ;;  %v1203_v28 = vld [vmem:[%s24580_s2 + $0x1478] sm:$0xff]  ;;  %v1206_v4 = vld [vmem:[%s24580_s2 + $0x1490] sm:$0xff] }
 0x5ce   : > { %14329 = vmatpush1.bf16.msra.mxu1 %v16215_v38  ;;  %v1174_v38 = vld [vmem:[%s24580_s2 + $0x1390] sm:$0xff] }
 0x5cf   : > { %14985 = vmatpush1.bf16.msra.mxu0 %v16217_v40  ;;  %14330 = vmatprep.subr.bf16.mxu1 %v16224_v41  ;;  %v1178_v40 = vld [vmem:[%s24580_s2 + $0x13b0] sm:$0xff]  ;;  %v1175_v41 = vld [vmem:[%s24580_s2 + $0x1398] sm:$0xff] }
 0x5d0   : > { %14986 = vmatprep.subr.bf16.mxu0 %v16226_v44  ;;  %v1179_v44 = vld [vmem:[%s24580_s2 + $0x13b8] sm:$0xff]  ;;  %v16264_v53 = vcombine.high %v1174_v38, %v1178_v40  ;;  %v16263_v13 = vcombine.low %v1174_v38, %v1178_v40 }
 0x5d1   : > { %v16266_v55 = vcombine.high %v1175_v41, %v1179_v44  ;;  %v16265_v2 = vcombine.low %v1175_v41, %v1179_v44 }
 0x5d2   : > { %14331 = vmatpush1.bf16.msra.mxu1 %v16223_v56  ;;  %v1182_v56 = vld [vmem:[%s24580_s2 + $0x13d0] sm:$0xff] }
 0x5d3   : > { %14987 = vmatpush1.bf16.msra.mxu0 %v16225_v58  ;;  %14332 = vmatprep.subr.bf16.mxu1 %v16232_v59  ;;  %v1186_v58 = vld [vmem:[%s24580_s2 + $0x13f0] sm:$0xff]  ;;  %v1183_v59 = vld [vmem:[%s24580_s2 + $0x13d8] sm:$0xff] }
 0x5d4   : > { %14988 = vmatprep.subr.bf16.mxu0 %v16234_v1  ;;  %v1187_v1 = vld [vmem:[%s24580_s2 + $0x13f8] sm:$0xff]  ;;  %v16272_v26 = vcombine.high %v1182_v56, %v1186_v58  ;;  %v16271_v51 = vcombine.low %v1182_v56, %v1186_v58 }
 0x5d5   : > { %v16274_v5 = vcombine.high %v1183_v59, %v1187_v1  ;;  %v16273_v30 = vcombine.low %v1183_v59, %v1187_v1  ;;  %v1222_v59 = vld [vmem:[%s24580_s2 + $0x1510] sm:$0xff] }
 0x5d6   : > { %14333 = vmatpush1.bf16.msra.mxu1 %v16231_v9  ;;  %v1190_v9 = vld [vmem:[%s24580_s2 + $0x1410] sm:$0xff] }
 0x5d7   : > { %14989 = vmatpush1.bf16.msra.mxu0 %v16233_v32  ;;  %14334 = vmatprep.subr.bf16.mxu1 %v16240_v46  ;;  %v1194_v32 = vld [vmem:[%s24580_s2 + $0x1430] sm:$0xff]  ;;  %v1191_v46 = vld [vmem:[%s24580_s2 + $0x1418] sm:$0xff] }
 0x5d8   : > { %14990 = vmatprep.subr.bf16.mxu0 %v16242_v16  ;;  %v1195_v16 = vld [vmem:[%s24580_s2 + $0x1438] sm:$0xff]  ;;  %v16280_v11 = vcombine.high %v1190_v9, %v1194_v32  ;;  %v1226_v1 = vld [vmem:[%s24580_s2 + $0x1530] sm:$0xff] }
 0x5d9   : > { %v16282_v35 = vcombine.high %v1191_v46, %v1195_v16  ;;  %v16281_v23 = vcombine.low %v1191_v46, %v1195_v16  ;;  %v1230_v46 = vld [vmem:[%s24580_s2 + $0x1550] sm:$0xff] }
 0x5da   : > { %14335 = vmatpush1.bf16.msra.mxu1 %v16239_v15  ;;  %v1198_v15 = vld [vmem:[%s24580_s2 + $0x1450] sm:$0xff] }
 0x5db   : > { %14991 = vmatpush1.bf16.msra.mxu0 %v16241_v43  ;;  %14336 = vmatprep.subr.bf16.mxu1 %v16248_v27  ;;  %v1202_v43 = vld [vmem:[%s24580_s2 + $0x1470] sm:$0xff]  ;;  %v16279_v27 = vcombine.low %v1190_v9, %v1194_v32  ;;  %v16312_v9 = vcombine.high %v1222_v59, %v1226_v1 }
 0x5dc   : > { %14992 = vmatprep.subr.bf16.mxu0 %v16250_v7  ;;  %v1199_v7 = vld [vmem:[%s24580_s2 + $0x1458] sm:$0xff]  ;;  %v16288_v31 = vcombine.high %v1198_v15, %v1202_v43  ;;  %v16287_v38 = vcombine.low %v1198_v15, %v1202_v43  ;;  %v1234_v16 = vld [vmem:[%s24580_s2 + $0x1570] sm:$0xff] }
 0x5dd   : > { %v16289_v40 = vcombine.low %v1199_v7, %v1203_v28  ;;  %v16320_v15 = vcombine.high %v1230_v46, %v1234_v16 }
 0x5de   : > { %14337 = vmatpush1.bf16.msra.mxu1 %v16247_v62  ;;  %v1210_v62 = vld [vmem:[%s24580_s2 + $0x14b0] sm:$0xff] }
 0x5df   : > { %14993 = vmatpush1.bf16.msra.mxu0 %v16249_v34  ;;  %14338 = vmatprep.subr.bf16.mxu1 %v16256_v42  ;;  %v16290_v34 = vcombine.high %v1199_v7, %v1203_v28  ;;  %v1207_v42 = vld [vmem:[%s24580_s2 + $0x1498] sm:$0xff]  ;;  %v16296_v41 = vcombine.high %v1206_v4, %v1210_v62  ;;  %v1242_v7 = vld [vmem:[%s24580_s2 + $0x15b0] sm:$0xff] }
 0x5e0   : > { %14994 = vmatprep.subr.bf16.mxu0 %v16258_v37  ;;  %v1211_v37 = vld [vmem:[%s24580_s2 + $0x14b8] sm:$0xff] }
 0x5e1   : > { %v16298_v44 = vcombine.high %v1207_v42, %v1211_v37  ;;  %v1239_v28 = vld [vmem:[%s24580_s2 + $0x1598] sm:$0xff] }
 0x5e2   : > { %14339 = vmatpush1.bf16.msra.mxu1 %v16255_v48  ;;  %v1214_v48 = vld [vmem:[%s24580_s2 + $0x14d0] sm:$0xff] }
 0x5e3   : > { %14995 = vmatpush1.bf16.msra.mxu0 %v16257_v49  ;;  %14340 = vmatprep.subr.bf16.mxu1 %v16264_v53  ;;  %v1218_v49 = vld [vmem:[%s24580_s2 + $0x14f0] sm:$0xff]  ;;  %v1219_v53 = vld [vmem:[%s24580_s2 + $0x14f8] sm:$0xff] }
 0x5e4   : > { %14996 = vmatprep.subr.bf16.mxu0 %v16266_v55  ;;  %v16297_v55 = vcombine.low %v1207_v42, %v1211_v37  ;;  %v16304_v56 = vcombine.high %v1214_v48, %v1218_v49  ;;  %v1246_v42 = vld [vmem:[%s24580_s2 + $0x15d0] sm:$0xff] }
 0x5e5   : > { %v1250_v37 = vld [vmem:[%s24580_s2 + $0x15f0] sm:$0xff] }
 0x5e6   : > { %14341 = vmatpush1.bf16.msra.mxu1 %v16263_v13  ;;  %v1223_v13 = vld [vmem:[%s24580_s2 + $0x1518] sm:$0xff] }
 0x5e7   : > { %14997 = vmatpush1.bf16.msra.mxu0 %v16265_v2  ;;  %14342 = vmatprep.subr.bf16.mxu1 %v16272_v26  ;;  %v1227_v2 = vld [vmem:[%s24580_s2 + $0x1538] sm:$0xff]  ;;  %v16303_v26 = vcombine.low %v1214_v48, %v1218_v49  ;;  %v16336_v48 = vcombine.high %v1246_v42, %v1250_v37 }
 0x5e8   : > { %14998 = vmatprep.subr.bf16.mxu0 %v16274_v5  ;;  %v16314_v32 = vcombine.high %v1223_v13, %v1227_v2 }
 0x5ea   : > { %14343 = vmatpush1.bf16.msra.mxu1 %v16271_v51  ;;  %v1231_v51 = vld [vmem:[%s24580_s2 + $0x1558] sm:$0xff] }
 0x5eb   : > { %14999 = vmatpush1.bf16.msra.mxu0 %v16273_v30  ;;  %14353 = vmatprep.subr.bf16.mxu1 %v16280_v11  ;;  %v1235_v30 = vld [vmem:[%s24580_s2 + $0x1578] sm:$0xff]  ;;  %v16311_v11 = vcombine.low %v1222_v59, %v1226_v1 }
 0x5ec   : > { %15009 = vmatprep.subr.bf16.mxu0 %v16282_v35  ;;  %v16313_v35 = vcombine.low %v1223_v13, %v1227_v2  ;;  %v16322_v43 = vcombine.high %v1231_v51, %v1235_v30  ;;  %v1262_v13 = vld [vmem:[%s24580_s2 + $0x1650] sm:$0xff] }
 0x5ed   : > { %14345 = vmatmul.mubr.bf16.vlgmr.msra.gmra.mrb[4].mxu1 %v19188_v12  ;;  %v1266_v2 = vld [vmem:[%s24580_s2 + $0x1670] sm:$0xff] }
 0x5ee   : > { %15001 = vmatmul.mubr.bf16.vlgmr.msra.gmra.mrb[36].mxu0 %v19188_v12  ;;  %14354 = vmatpush1.bf16.msra.mxu1 %v16279_v27  ;;  %v1215_v12 = vld [vmem:[%s24580_s2 + $0x14d8] sm:$0xff]  ;;  %v1238_v27 = vld [vmem:[%s24580_s2 + $0x1590] sm:$0xff] }
 0x5ef   : > { %14385 = vmatprep.mubr.bf16.mxu1 %v19198_v63  ;;  %15010 = vmatpush1.bf16.msra.mxu0 %v16281_v23  ;;  %v16306_v58 = vcombine.high %v1215_v12, %v1219_v53  ;;  %v16305_v5 = vcombine.low %v1215_v12, %v1219_v53  ;;  %v1243_v23 = vld [vmem:[%s24580_s2 + $0x15b8] sm:$0xff]  ;;  %v1254_v12 = vld [vmem:[%s24580_s2 + $0x1610] sm:$0xff] }
 0x5f0   : > { %15041 = vmatprep.mubr.bf16.mxu0 %v19198_v63  ;;  %14355 = vmatprep.subr.bf16.mxu1 %v16288_v31  ;;  %v16295_v63 = vcombine.low %v1206_v4, %v1210_v62  ;;  %v16319_v31 = vcombine.low %v1230_v46, %v1234_v16  ;;  %v16321_v4 = vcombine.low %v1231_v51, %v1235_v30  ;;  %v1258_v53 = vld [vmem:[%s24580_s2 + $0x1630] sm:$0xff] }
 0x5f1   : > { %15011 = vmatprep.subr.bf16.mxu0 %v16290_v34  ;;  %v16328_v62 = vcombine.high %v1238_v27, %v1242_v7  ;;  %v16330_v34 = vcombine.high %v1239_v28, %v1243_v23  ;;  %v16344_v59 = vcombine.high %v1254_v12, %v1258_v53  ;;  %v16352_v46 = vcombine.high %v1262_v13, %v1266_v2  ;;  %v1270_v51 = vld [vmem:[%s24580_s2 + $0x1690] sm:$0xff] }
 0x5f2   : > { %14356 = vmatpush1.bf16.msra.mxu1 %v16287_v38  ;;  %v1247_v38 = vld [vmem:[%s24580_s2 + $0x15d8] sm:$0xff]  ;;  %v1274_v30 = vld [vmem:[%s24580_s2 + $0x16b0] sm:$0xff] }
 0x5f3   : > { %15012 = vmatpush1.bf16.msra.mxu0 %v16289_v40  ;;  %14357 = vmatprep.subr.bf16.mxu1 %v16296_v41  ;;  %v1251_v40 = vld [vmem:[%s24580_s2 + $0x15f8] sm:$0xff]  ;;  %v16327_v41 = vcombine.low %v1238_v27, %v1242_v7  ;;  %v16360_v27 = vcombine.high %v1270_v51, %v1274_v30 }
 0x5f4   : > { %15013 = vmatprep.subr.bf16.mxu0 %v16298_v44  ;;  %v16329_v44 = vcombine.low %v1239_v28, %v1243_v23  ;;  %v16338_v49 = vcombine.high %v1247_v38, %v1251_v40  ;;  %v1278_v28 = vld [vmem:[%s24580_s2 + $0x16d0] sm:$0xff] }
 0x5f5   : > { %v1282_v23 = vld [vmem:[%s24580_s2 + $0x16f0] sm:$0xff] }
 0x5f6   : > { %14358 = vmatpush1.bf16.msra.mxu1 %v16295_v63  ;;  %v1255_v63 = vld [vmem:[%s24580_s2 + $0x1618] sm:$0xff] }
 0x5f7   : > { %15014 = vmatpush1.bf16.msra.mxu0 %v16297_v55  ;;  %14359 = vmatprep.subr.bf16.mxu1 %v16304_v56  ;;  %v1259_v55 = vld [vmem:[%s24580_s2 + $0x1638] sm:$0xff]  ;;  %v16335_v56 = vcombine.low %v1246_v42, %v1250_v37  ;;  %v16368_v42 = vcombine.high %v1278_v28, %v1282_v23 }
 0x5f8   : > { %15015 = vmatprep.subr.bf16.mxu0 %v16306_v58  ;;  %v16337_v58 = vcombine.low %v1247_v38, %v1251_v40  ;;  %v16346_v1 = vcombine.high %v1255_v63, %v1259_v55  ;;  %v1286_v38 = vld [vmem:[%s24580_s2 + $0x1710] sm:$0xff] }
 0x5f9   : > { %v1290_v40 = vld [vmem:[%s24580_s2 + $0x1730] sm:$0xff] }
 0x5fa   : > { %14360 = vmatpush1.bf16.msra.mxu1 %v16303_v26  ;;  %v1263_v26 = vld [vmem:[%s24580_s2 + $0x1658] sm:$0xff] }
 0x5fb   : > { %15016 = vmatpush1.bf16.msra.mxu0 %v16305_v5  ;;  %14361 = vmatprep.subr.bf16.mxu1 %v16312_v9  ;;  %v1267_v5 = vld [vmem:[%s24580_s2 + $0x1678] sm:$0xff]  ;;  %v16343_v9 = vcombine.low %v1254_v12, %v1258_v53  ;;  %v16376_v12 = vcombine.high %v1286_v38, %v1290_v40 }
 0x5fc   : > { %15017 = vmatprep.subr.bf16.mxu0 %v16314_v32  ;;  %v16345_v32 = vcombine.low %v1255_v63, %v1259_v55  ;;  %v16354_v16 = vcombine.high %v1263_v26, %v1267_v5  ;;  %v1294_v63 = vld [vmem:[%s24580_s2 + $0x1750] sm:$0xff] }
 0x5fd   : > { %v1298_v55 = vld [vmem:[%s24580_s2 + $0x1770] sm:$0xff] }
 0x5fe   : > { %14362 = vmatpush1.bf16.msra.mxu1 %v16311_v11  ;;  %v1271_v11 = vld [vmem:[%s24580_s2 + $0x1698] sm:$0xff] }
 0x5ff   : > { %15018 = vmatpush1.bf16.msra.mxu0 %v16313_v35  ;;  %14363 = vmatprep.subr.bf16.mxu1 %v16320_v15  ;;  %v1275_v35 = vld [vmem:[%s24580_s2 + $0x16b8] sm:$0xff]  ;;  %v16351_v15 = vcombine.low %v1262_v13, %v1266_v2  ;;  %v16384_v13 = vcombine.high %v1294_v63, %v1298_v55 }
 0x600   : > { %15019 = vmatprep.subr.bf16.mxu0 %v16322_v43  ;;  %v16353_v43 = vcombine.low %v1263_v26, %v1267_v5  ;;  %v16362_v7 = vcombine.high %v1271_v11, %v1275_v35  ;;  %v1302_v26 = vld [vmem:[%s24580_s2 + $0x1790] sm:$0xff] }
 0x601   : > { %v1306_v5 = vld [vmem:[%s24580_s2 + $0x17b0] sm:$0xff] }
 0x602   : > { %14364 = vmatpush1.bf16.msra.mxu1 %v16319_v31  ;;  %v1279_v31 = vld [vmem:[%s24580_s2 + $0x16d8] sm:$0xff] }
 0x603   : > { %15020 = vmatpush1.bf16.msra.mxu0 %v16321_v4  ;;  %14365 = vmatprep.subr.bf16.mxu1 %v16328_v62  ;;  %v1283_v4 = vld [vmem:[%s24580_s2 + $0x16f8] sm:$0xff]  ;;  %v16359_v62 = vcombine.low %v1270_v51, %v1274_v30  ;;  %v16392_v51 = vcombine.high %v1302_v26, %v1306_v5 }
 0x604   : > { %15021 = vmatprep.subr.bf16.mxu0 %v16330_v34  ;;  %v16361_v34 = vcombine.low %v1271_v11, %v1275_v35  ;;  %v16370_v37 = vcombine.high %v1279_v31, %v1283_v4  ;;  %v1310_v11 = vld [vmem:[%s24580_s2 + $0x17d0] sm:$0xff] }
 0x605   : > { %v1314_v35 = vld [vmem:[%s24580_s2 + $0x17f0] sm:$0xff] }
 0x606   : > { %14366 = vmatpush1.bf16.msra.mxu1 %v16327_v41  ;;  %v1287_v41 = vld [vmem:[%s24580_s2 + $0x1718] sm:$0xff] }
 0x607   : > { %15022 = vmatpush1.bf16.msra.mxu0 %v16329_v44  ;;  %14367 = vmatprep.subr.bf16.mxu1 %v16336_v48  ;;  %v1291_v44 = vld [vmem:[%s24580_s2 + $0x1738] sm:$0xff]  ;;  %v16367_v48 = vcombine.low %v1278_v28, %v1282_v23  ;;  %v16400_v28 = vcombine.high %v1310_v11, %v1314_v35 }
 0x608   : > { %15023 = vmatprep.subr.bf16.mxu0 %v16338_v49  ;;  %v16369_v49 = vcombine.low %v1279_v31, %v1283_v4  ;;  %v16378_v53 = vcombine.high %v1287_v41, %v1291_v44  ;;  %v1318_v31 = vld [vmem:[%s24580_s2 + $0x1810] sm:$0xff] }
 0x609   : > { %v1322_v4 = vld [vmem:[%s24580_s2 + $0x1830] sm:$0xff] }
 0x60a   : > { %14368 = vmatpush1.bf16.msra.mxu1 %v16335_v56  ;;  %v1295_v56 = vld [vmem:[%s24580_s2 + $0x1758] sm:$0xff] }
 0x60b   : > { %15024 = vmatpush1.bf16.msra.mxu0 %v16337_v58  ;;  %14369 = vmatprep.subr.bf16.mxu1 %v16344_v59  ;;  %v1299_v58 = vld [vmem:[%s24580_s2 + $0x1778] sm:$0xff]  ;;  %v16375_v59 = vcombine.low %v1286_v38, %v1290_v40  ;;  %v16408_v38 = vcombine.high %v1318_v31, %v1322_v4 }
 0x60c   : > { %15025 = vmatprep.subr.bf16.mxu0 %v16346_v1  ;;  %v16377_v1 = vcombine.low %v1287_v41, %v1291_v44  ;;  %v16386_v2 = vcombine.high %v1295_v56, %v1299_v58  ;;  %v1326_v41 = vld [vmem:[%s24580_s2 + $0x1850] sm:$0xff] }
 0x60d   : > { %v1330_v44 = vld [vmem:[%s24580_s2 + $0x1870] sm:$0xff] }
 0x60e   : > { %14370 = vmatpush1.bf16.msra.mxu1 %v16343_v9  ;;  %v1303_v9 = vld [vmem:[%s24580_s2 + $0x1798] sm:$0xff] }
 0x60f   : > { %15026 = vmatpush1.bf16.msra.mxu0 %v16345_v32  ;;  %14371 = vmatprep.subr.bf16.mxu1 %v16352_v46  ;;  %v1307_v32 = vld [vmem:[%s24580_s2 + $0x17b8] sm:$0xff]  ;;  %v16383_v46 = vcombine.low %v1294_v63, %v1298_v55  ;;  %v16416_v63 = vcombine.high %v1326_v41, %v1330_v44  ;;  %v1334_v55 = vld [vmem:[%s24580_s2 + $0x1890] sm:$0xff] }
 0x610   : > { %15027 = vmatprep.subr.bf16.mxu0 %v16354_v16  ;;  %v16385_v16 = vcombine.low %v1295_v56, %v1299_v58  ;;  %v16394_v30 = vcombine.high %v1303_v9, %v1307_v32  ;;  %v1338_v56 = vld [vmem:[%s24580_s2 + $0x18b0] sm:$0xff] }
 0x612   : > { %14372 = vmatpush1.bf16.msra.mxu1 %v16351_v15  ;;  %v1311_v15 = vld [vmem:[%s24580_s2 + $0x17d8] sm:$0xff] }
 0x613   : > { %15028 = vmatpush1.bf16.msra.mxu0 %v16353_v43  ;;  %14373 = vmatprep.subr.bf16.mxu1 %v16360_v27  ;;  %v1315_v43 = vld [vmem:[%s24580_s2 + $0x17f8] sm:$0xff]  ;;  %v16391_v27 = vcombine.low %v1302_v26, %v1306_v5  ;;  %v16424_v26 = vcombine.high %v1334_v55, %v1338_v56 }
 0x614   : > { %15029 = vmatprep.subr.bf16.mxu0 %v16362_v7  ;;  %v16393_v7 = vcombine.low %v1303_v9, %v1307_v32  ;;  %v16402_v23 = vcombine.high %v1311_v15, %v1315_v43  ;;  %v1342_v9 = vld [vmem:[%s24580_s2 + $0x18d0] sm:$0xff] }
 0x615   : > { %v1346_v32 = vld [vmem:[%s24580_s2 + $0x18f0] sm:$0xff] }
 0x616   : > { %14374 = vmatpush1.bf16.msra.mxu1 %v16359_v62  ;;  %v1319_v62 = vld [vmem:[%s24580_s2 + $0x1818] sm:$0xff] }
 0x617   : > { %15030 = vmatpush1.bf16.msra.mxu0 %v16361_v34  ;;  %14375 = vmatprep.subr.bf16.mxu1 %v16368_v42  ;;  %v1323_v34 = vld [vmem:[%s24580_s2 + $0x1838] sm:$0xff]  ;;  %v16399_v42 = vcombine.low %v1310_v11, %v1314_v35  ;;  %v1350_v11 = vld [vmem:[%s24580_s2 + $0x1910] sm:$0xff] }
 0x618   : > { %15031 = vmatprep.subr.bf16.mxu0 %v16370_v37  ;;  %v16401_v37 = vcombine.low %v1311_v15, %v1315_v43  ;;  %v16410_v40 = vcombine.high %v1319_v62, %v1323_v34  ;;  %v1354_v35 = vld [vmem:[%s24580_s2 + $0x1930] sm:$0xff]  ;;  %v1351_v15 = vld [vmem:[%s24580_s2 + $0x1918] sm:$0xff] }
 0x619   : > { %v1355_v43 = vld [vmem:[%s24580_s2 + $0x1938] sm:$0xff] }
 0x61a   : > { %14376 = vmatpush1.bf16.msra.mxu1 %v16367_v48  ;;  %v16407_v48 = vcombine.low %v1318_v31, %v1322_v4  ;;  %v1358_v31 = vld [vmem:[%s24580_s2 + $0x1950] sm:$0xff] }
 0x61b   : > { %15032 = vmatpush1.bf16.msra.mxu0 %v16369_v49  ;;  %14377 = vmatprep.subr.bf16.mxu1 %v16376_v12  ;;  %v1327_v49 = vld [vmem:[%s24580_s2 + $0x1858] sm:$0xff]  ;;  %v1362_v4 = vld [vmem:[%s24580_s2 + $0x1970] sm:$0xff] }
 0x61c   : > { %15033 = vmatprep.subr.bf16.mxu0 %v16378_v53  ;;  %v1331_v12 = vld [vmem:[%s24580_s2 + $0x1878] sm:$0xff]  ;;  %v16409_v53 = vcombine.low %v1319_v62, %v1323_v34 }
 0x61d   : > { %v16418_v58 = vcombine.high %v1327_v49, %v1331_v12  ;;  %v1359_v62 = vld [vmem:[%s24580_s2 + $0x1958] sm:$0xff] }
 0x61e   : > { %14378 = vmatpush1.bf16.msra.mxu1 %v16375_v59  ;;  %v1335_v59 = vld [vmem:[%s24580_s2 + $0x1898] sm:$0xff] }
 0x61f   : > { %15034 = vmatpush1.bf16.msra.mxu0 %v16377_v1  ;;  %14379 = vmatprep.subr.bf16.mxu1 %v16384_v13  ;;  %v1339_v1 = vld [vmem:[%s24580_s2 + $0x18b8] sm:$0xff]  ;;  %v16415_v13 = vcombine.low %v1326_v41, %v1330_v44  ;;  %v1366_v41 = vld [vmem:[%s24580_s2 + $0x1990] sm:$0xff] }
 0x620   : > { %15035 = vmatprep.subr.bf16.mxu0 %v16386_v2  ;;  %v16417_v2 = vcombine.low %v1327_v49, %v1331_v12  ;;  %v16426_v5 = vcombine.high %v1335_v59, %v1339_v1  ;;  %v1363_v34 = vld [vmem:[%s24580_s2 + $0x1978] sm:$0xff]  ;;  %v1370_v44 = vld [vmem:[%s24580_s2 + $0x19b0] sm:$0xff]  ;;  %v16447_v12 = vcombine.low %v1358_v31, %v1362_v4 }
 0x621   : > { %v1371_v49 = vld [vmem:[%s24580_s2 + $0x19b8] sm:$0xff] }
 0x622   : > { %14380 = vmatpush1.bf16.msra.mxu1 %v16383_v46  ;;  %v1347_v46 = vld [vmem:[%s24580_s2 + $0x18f8] sm:$0xff] }
 0x623   : > { %15036 = vmatpush1.bf16.msra.mxu0 %v16385_v16  ;;  %14381 = vmatprep.subr.bf16.mxu1 %v16392_v51  ;;  %v16425_v16 = vcombine.low %v1335_v59, %v1339_v1  ;;  %v16432_v51 = vcombine.high %v1342_v9, %v1346_v32  ;;  %v1375_v59 = vld [vmem:[%s24580_s2 + $0x19d8] sm:$0xff] }
 0x624   : > { %15037 = vmatprep.subr.bf16.mxu0 %v16394_v30  ;;  %v1379_v1 = vld [vmem:[%s24580_s2 + $0x19f8] sm:$0xff] }
 0x626   : > { %14382 = vmatpush1.bf16.msra.mxu1 %v16391_v27  ;;  %v16431_v27 = vcombine.low %v1342_v9, %v1346_v32  ;;  %v1382_v9 = vld [vmem:[%s24580_s2 + $0x1a10] sm:$0xff] }
 0x627   : > { %15038 = vmatpush1.bf16.msra.mxu0 %v16393_v7  ;;  %14383 = vmatprep.subr.bf16.mxu1 %v16400_v28  ;;  %v16440_v28 = vcombine.high %v1350_v11, %v1354_v35  ;;  %v1386_v32 = vld [vmem:[%s24580_s2 + $0x1a30] sm:$0xff] }
 0x628   : > { %15039 = vmatprep.subr.bf16.mxu0 %v16402_v23  ;;  %v16442_v23 = vcombine.high %v1351_v15, %v1355_v43 }
 0x62a   : > { %14384 = vmatpush1.bf16.msra.mxu1 %v16399_v42  ;;  %v16439_v42 = vcombine.low %v1350_v11, %v1354_v35  ;;  %v1390_v11 = vld [vmem:[%s24580_s2 + $0x1a50] sm:$0xff] }
 0x62b   : > { %15040 = vmatpush1.bf16.msra.mxu0 %v16401_v37  ;;  %14394 = vmatprep.subr.bf16.mxu1 %v16408_v38  ;;  %v16441_v37 = vcombine.low %v1351_v15, %v1355_v43  ;;  %v16448_v38 = vcombine.high %v1358_v31, %v1362_v4  ;;  %v1394_v35 = vld [vmem:[%s24580_s2 + $0x1a70] sm:$0xff]  ;;  %v1391_v15 = vld [vmem:[%s24580_s2 + $0x1a58] sm:$0xff] }
 0x62c   : > { %15050 = vmatprep.subr.bf16.mxu0 %v16410_v40  ;;  %v16450_v40 = vcombine.high %v1359_v62, %v1363_v34  ;;  %v1395_v43 = vld [vmem:[%s24580_s2 + $0x1a78] sm:$0xff]  ;;  %v1398_v31 = vld [vmem:[%s24580_s2 + $0x1a90] sm:$0xff] }
 0x62d   : > { %14386 = vmatmul.mubr.bf16.vlgmr.msra.gmra.mrb[4].mxu1 %v19392_v18  ;;  %v1402_v4 = vld [vmem:[%s24580_s2 + $0x1ab0] sm:$0xff] }
 0x62e   : > { %15042 = vmatmul.mubr.bf16.vlgmr.msra.gmra.mrb[36].mxu0 %v19392_v18  ;;  %14395 = vmatpush1.bf16.msra.mxu1 %v16407_v48  ;;  %v1343_v18 = vld [vmem:[%s24580_s2 + $0x18d8] sm:$0xff] }
 0x62f   : > { %14426 = vmatprep.mubr.bf16.mxu1 %v19402_v14  ;;  %15051 = vmatpush1.bf16.msra.mxu0 %v16409_v53  ;;  %v16434_v30 = vcombine.high %v1343_v18, %v1347_v46  ;;  %v16433_v7 = vcombine.low %v1343_v18, %v1347_v46  ;;  %v1367_v48 = vld [vmem:[%s24580_s2 + $0x1998] sm:$0xff]  ;;  %v16449_v53 = vcombine.low %v1359_v62, %v1363_v34 }
 0x630   : > { %15082 = vmatprep.mubr.bf16.mxu0 %v19402_v14  ;;  %14396 = vmatprep.subr.bf16.mxu1 %v16416_v63  ;;  %v16423_v14 = vcombine.low %v1334_v55, %v1338_v56  ;;  %v16456_v63 = vcombine.high %v1366_v41, %v1370_v44  ;;  %v16458_v55 = vcombine.high %v1367_v48, %v1371_v49  ;;  %v1374_v56 = vld [vmem:[%s24580_s2 + $0x19d0] sm:$0xff]  ;;  %v1383_v18 = vld [vmem:[%s24580_s2 + $0x1a18] sm:$0xff] }
 0x631   : > { %15052 = vmatprep.subr.bf16.mxu0 %v16418_v58  ;;  %v1378_v58 = vld [vmem:[%s24580_s2 + $0x19f0] sm:$0xff]  ;;  %v1387_v46 = vld [vmem:[%s24580_s2 + $0x1a38] sm:$0xff] }
 0x632   : > { %14397 = vmatpush1.bf16.msra.mxu1 %v16415_v13  ;;  %v16455_v13 = vcombine.low %v1366_v41, %v1370_v44  ;;  %v1399_v62 = vld [vmem:[%s24580_s2 + $0x1a98] sm:$0xff]  ;;  %v1406_v41 = vld [vmem:[%s24580_s2 + $0x1ad0] sm:$0xff] }
 0x633   : > { %15053 = vmatpush1.bf16.msra.mxu0 %v16417_v2  ;;  %14398 = vmatprep.subr.bf16.mxu1 %v16424_v26  ;;  %v16457_v2 = vcombine.low %v1367_v48, %v1371_v49  ;;  %v16464_v26 = vcombine.high %v1374_v56, %v1378_v58  ;;  %v1403_v34 = vld [vmem:[%s24580_s2 + $0x1ab8] sm:$0xff]  ;;  %v1410_v44 = vld [vmem:[%s24580_s2 + $0x1af0] sm:$0xff] }
 0x634   : > { %15054 = vmatprep.subr.bf16.mxu0 %v16426_v5  ;;  %v16466_v5 = vcombine.high %v1375_v59, %v1379_v1  ;;  %v1407_v48 = vld [vmem:[%s24580_s2 + $0x1ad8] sm:$0xff] }
 0x635   : > { %v1411_v49 = vld [vmem:[%s24580_s2 + $0x1af8] sm:$0xff] }
 0x636   : > { %14399 = vmatpush1.bf16.msra.mxu1 %v16423_v14  ;;  %v16463_v14 = vcombine.low %v1374_v56, %v1378_v58  ;;  %v1414_v56 = vld [vmem:[%s24580_s2 + $0x1b10] sm:$0xff] }
 0x637   : > { %15055 = vmatpush1.bf16.msra.mxu0 %v16425_v16  ;;  %14400 = vmatprep.subr.bf16.mxu1 %v16432_v51  ;;  %v16465_v16 = vcombine.low %v1375_v59, %v1379_v1  ;;  %v16472_v51 = vcombine.high %v1382_v9, %v1386_v32  ;;  %v1418_v58 = vld [vmem:[%s24580_s2 + $0x1b30] sm:$0xff]  ;;  %v1415_v59 = vld [vmem:[%s24580_s2 + $0x1b18] sm:$0xff] }
 0x638   : > { %15056 = vmatprep.subr.bf16.mxu0 %v16434_v30  ;;  %v16474_v30 = vcombine.high %v1383_v18, %v1387_v46  ;;  %v1419_v1 = vld [vmem:[%s24580_s2 + $0x1b38] sm:$0xff] }
 0x63a   : > { %14401 = vmatpush1.bf16.msra.mxu1 %v16431_v27  ;;  %v16471_v27 = vcombine.low %v1382_v9, %v1386_v32  ;;  %v1422_v9 = vld [vmem:[%s24580_s2 + $0x1b50] sm:$0xff] }
 0x63b   : > { %15057 = vmatpush1.bf16.msra.mxu0 %v16433_v7  ;;  %14402 = vmatprep.subr.bf16.mxu1 %v16440_v28  ;;  %v16473_v7 = vcombine.low %v1383_v18, %v1387_v46  ;;  %v16480_v28 = vcombine.high %v1390_v11, %v1394_v35  ;;  %v1426_v32 = vld [vmem:[%s24580_s2 + $0x1b70] sm:$0xff]  ;;  %v1423_v18 = vld [vmem:[%s24580_s2 + $0x1b58] sm:$0xff] }
 0x63c   : > { %15058 = vmatprep.subr.bf16.mxu0 %v16442_v23  ;;  %v16482_v23 = vcombine.high %v1391_v15, %v1395_v43  ;;  %v1427_v46 = vld [vmem:[%s24580_s2 + $0x1b78] sm:$0xff] }
 0x63e   : > { %14403 = vmatpush1.bf16.msra.mxu1 %v16439_v42  ;;  %v16479_v42 = vcombine.low %v1390_v11, %v1394_v35  ;;  %v1430_v11 = vld [vmem:[%s24580_s2 + $0x1b90] sm:$0xff] }
 0x63f   : > { %15059 = vmatpush1.bf16.msra.mxu0 %v16441_v37  ;;  %14404 = vmatprep.subr.bf16.mxu1 %v16448_v38  ;;  %v16481_v37 = vcombine.low %v1391_v15, %v1395_v43  ;;  %v16488_v38 = vcombine.high %v1398_v31, %v1402_v4  ;;  %v1434_v35 = vld [vmem:[%s24580_s2 + $0x1bb0] sm:$0xff]  ;;  %v1431_v15 = vld [vmem:[%s24580_s2 + $0x1b98] sm:$0xff] }
 0x640   : > { %15060 = vmatprep.subr.bf16.mxu0 %v16450_v40  ;;  %v16490_v40 = vcombine.high %v1399_v62, %v1403_v34  ;;  %v1435_v43 = vld [vmem:[%s24580_s2 + $0x1bb8] sm:$0xff] }
 0x642   : > { %14405 = vmatpush1.bf16.msra.mxu1 %v16447_v12  ;;  %v16487_v12 = vcombine.low %v1398_v31, %v1402_v4  ;;  %v1438_v31 = vld [vmem:[%s24580_s2 + $0x1bd0] sm:$0xff] }
 0x643   : > { %15061 = vmatpush1.bf16.msra.mxu0 %v16449_v53  ;;  %14406 = vmatprep.subr.bf16.mxu1 %v16456_v63  ;;  %v16489_v53 = vcombine.low %v1399_v62, %v1403_v34  ;;  %v16496_v63 = vcombine.high %v1406_v41, %v1410_v44  ;;  %v1442_v4 = vld [vmem:[%s24580_s2 + $0x1bf0] sm:$0xff]  ;;  %v1439_v62 = vld [vmem:[%s24580_s2 + $0x1bd8] sm:$0xff] }
 0x644   : > { %15062 = vmatprep.subr.bf16.mxu0 %v16458_v55  ;;  %v16498_v55 = vcombine.high %v1407_v48, %v1411_v49  ;;  %v1443_v34 = vld [vmem:[%s24580_s2 + $0x1bf8] sm:$0xff] }
 0x646   : > { %14407 = vmatpush1.bf16.msra.mxu1 %v16455_v13  ;;  %v16495_v13 = vcombine.low %v1406_v41, %v1410_v44  ;;  %v1446_v41 = vld [vmem:[%s24580_s2 + $0x1c10] sm:$0xff] }
 0x647   : > { %15063 = vmatpush1.bf16.msra.mxu0 %v16457_v2  ;;  %14408 = vmatprep.subr.bf16.mxu1 %v16464_v26  ;;  %v16497_v2 = vcombine.low %v1407_v48, %v1411_v49  ;;  %v16504_v26 = vcombine.high %v1414_v56, %v1418_v58  ;;  %v1450_v44 = vld [vmem:[%s24580_s2 + $0x1c30] sm:$0xff]  ;;  %v1447_v48 = vld [vmem:[%s24580_s2 + $0x1c18] sm:$0xff] }
 0x648   : > { %15064 = vmatprep.subr.bf16.mxu0 %v16466_v5  ;;  %v16506_v5 = vcombine.high %v1415_v59, %v1419_v1  ;;  %v1451_v49 = vld [vmem:[%s24580_s2 + $0x1c38] sm:$0xff] }
 0x64a   : > { %14409 = vmatpush1.bf16.msra.mxu1 %v16463_v14  ;;  %v16503_v14 = vcombine.low %v1414_v56, %v1418_v58  ;;  %v1454_v56 = vld [vmem:[%s24580_s2 + $0x1c50] sm:$0xff] }
 0x64b   : > { %15065 = vmatpush1.bf16.msra.mxu0 %v16465_v16  ;;  %14410 = vmatprep.subr.bf16.mxu1 %v16472_v51  ;;  %v16505_v16 = vcombine.low %v1415_v59, %v1419_v1  ;;  %v16512_v51 = vcombine.high %v1422_v9, %v1426_v32  ;;  %v1458_v58 = vld [vmem:[%s24580_s2 + $0x1c70] sm:$0xff]  ;;  %v16535_v59 = vcombine.low %v1446_v41, %v1450_v44  ;;  %v1455_v1 = vld [vmem:[%s24580_s2 + $0x1c58] sm:$0xff] }
 0x64c   : > { %15066 = vmatprep.subr.bf16.mxu0 %v16474_v30  ;;  %v16514_v30 = vcombine.high %v1423_v18, %v1427_v46 }
 0x64e   : > { %14411 = vmatpush1.bf16.msra.mxu1 %v16471_v27  ;;  %v16511_v27 = vcombine.low %v1422_v9, %v1426_v32  ;;  %v1466_v9 = vld [vmem:[%s24580_s2 + $0x1cb0] sm:$0xff] }
 0x64f   : > { %15067 = vmatpush1.bf16.msra.mxu0 %v16473_v7  ;;  %14412 = vmatprep.subr.bf16.mxu1 %v16480_v28  ;;  %v16513_v7 = vcombine.low %v1423_v18, %v1427_v46  ;;  %v16520_v28 = vcombine.high %v1430_v11, %v1434_v35  ;;  %v1463_v18 = vld [vmem:[%s24580_s2 + $0x1c98] sm:$0xff] }
 0x650   : > { %15068 = vmatprep.subr.bf16.mxu0 %v16482_v23  ;;  %v16522_v23 = vcombine.high %v1431_v15, %v1435_v43  ;;  %v1467_v46 = vld [vmem:[%s24580_s2 + $0x1cb8] sm:$0xff] }
 0x652   : > { %14413 = vmatpush1.bf16.msra.mxu1 %v16479_v42  ;;  %v16519_v42 = vcombine.low %v1430_v11, %v1434_v35  ;;  %v1470_v11 = vld [vmem:[%s24580_s2 + $0x1cd0] sm:$0xff] }
 0x653   : > { %15069 = vmatpush1.bf16.msra.mxu0 %v16481_v37  ;;  %14414 = vmatprep.subr.bf16.mxu1 %v16488_v38  ;;  %v16521_v37 = vcombine.low %v1431_v15, %v1435_v43  ;;  %v16528_v38 = vcombine.high %v1438_v31, %v1442_v4  ;;  %v1474_v35 = vld [vmem:[%s24580_s2 + $0x1cf0] sm:$0xff]  ;;  %v1475_v15 = vld [vmem:[%s24580_s2 + $0x1cf8] sm:$0xff]  ;;  %v16553_v43 = vcombine.low %v1463_v18, %v1467_v46 }
 0x654   : > { %15070 = vmatprep.subr.bf16.mxu0 %v16490_v40  ;;  %v16530_v40 = vcombine.high %v1439_v62, %v1443_v34 }
 0x656   : > { %14415 = vmatpush1.bf16.msra.mxu1 %v16487_v12  ;;  %v16527_v12 = vcombine.low %v1438_v31, %v1442_v4  ;;  %v1479_v31 = vld [vmem:[%s24580_s2 + $0x1d18] sm:$0xff] }
 0x657   : > { %15071 = vmatpush1.bf16.msra.mxu0 %v16489_v53  ;;  %14416 = vmatprep.subr.bf16.mxu1 %v16496_v63  ;;  %v16529_v53 = vcombine.low %v1439_v62, %v1443_v34  ;;  %v16536_v63 = vcombine.high %v1446_v41, %v1450_v44  ;;  %v1483_v4 = vld [vmem:[%s24580_s2 + $0x1d38] sm:$0xff]  ;;  %v16559_v62 = vcombine.low %v1470_v11, %v1474_v35 }
 0x658   : > { %15072 = vmatprep.subr.bf16.mxu0 %v16498_v55  ;;  %v16538_v55 = vcombine.high %v1447_v48, %v1451_v49  ;;  %v1487_v41 = vld [vmem:[%s24580_s2 + $0x1d58] sm:$0xff] }
 0x659   : > { %v1491_v44 = vld [vmem:[%s24580_s2 + $0x1d78] sm:$0xff] }
 0x65a   : > { %14417 = vmatpush1.bf16.msra.mxu1 %v16495_v13  ;;  %v1459_v13 = vld [vmem:[%s24580_s2 + $0x1c78] sm:$0xff] }
 0x65b   : > { %15073 = vmatpush1.bf16.msra.mxu0 %v16497_v2  ;;  %14418 = vmatprep.subr.bf16.mxu1 %v16504_v26  ;;  %v16537_v2 = vcombine.low %v1447_v48, %v1451_v49  ;;  %v16544_v26 = vcombine.high %v1454_v56, %v1458_v58  ;;  %v16546_v32 = vcombine.high %v1455_v1, %v1459_v13 }
 0x65c   : > { %15074 = vmatprep.subr.bf16.mxu0 %v16506_v5  ;;  %v1462_v5 = vld [vmem:[%s24580_s2 + $0x1c90] sm:$0xff]  ;;  %v16569_v49 = vcombine.low %v1479_v31, %v1483_v4 }
 0x65e   : > { %14419 = vmatpush1.bf16.msra.mxu1 %v16503_v14  ;;  %v16543_v14 = vcombine.low %v1454_v56, %v1458_v58  ;;  %v1495_v56 = vld [vmem:[%s24580_s2 + $0x1d98] sm:$0xff] }
 0x65f   : > { %15075 = vmatpush1.bf16.msra.mxu0 %v16505_v16  ;;  %14420 = vmatprep.subr.bf16.mxu1 %v16512_v51  ;;  %v16545_v16 = vcombine.low %v1455_v1, %v1459_v13  ;;  %v16552_v51 = vcombine.high %v1462_v5, %v1466_v9  ;;  %v1499_v58 = vld [vmem:[%s24580_s2 + $0x1db8] sm:$0xff]  ;;  %v16577_v1 = vcombine.low %v1487_v41, %v1491_v44 }
 0x660   : > { %15076 = vmatprep.subr.bf16.mxu0 %v16514_v30  ;;  %v16554_v30 = vcombine.high %v1463_v18, %v1467_v46  ;;  %v16585_v46 = vcombine.low %v1495_v56, %v1499_v58 }
 0x662   : > { %14421 = vmatpush1.bf16.msra.mxu1 %v16511_v27  ;;  %v16560_v27 = vcombine.high %v1470_v11, %v1474_v35  ;;  %v1511_v11 = vld [vmem:[%s24580_s2 + $0x1e18] sm:$0xff] }
 0x663   : > { %15077 = vmatpush1.bf16.msra.mxu0 %v16513_v7  ;;  %14422 = vmatprep.subr.bf16.mxu1 %v16520_v28  ;;  %v1478_v28 = vld [vmem:[%s24580_s2 + $0x1d10] sm:$0xff]  ;;  %v1515_v35 = vld [vmem:[%s24580_s2 + $0x1e38] sm:$0xff] }
 0x664   : > { %15078 = vmatprep.subr.bf16.mxu0 %v16522_v23  ;;  %v1482_v23 = vld [vmem:[%s24580_s2 + $0x1d30] sm:$0xff] }
 0x665   : > { %v16567_v48 = vcombine.low %v1478_v28, %v1482_v23 }
 0x666   : > { %14423 = vmatpush1.bf16.msra.mxu1 %v16519_v42  ;;  %v16568_v42 = vcombine.high %v1478_v28, %v1482_v23  ;;  %v1519_v28 = vld [vmem:[%s24580_s2 + $0x1e58] sm:$0xff] }
 0x667   : > { %15079 = vmatpush1.bf16.msra.mxu0 %v16521_v37  ;;  %14424 = vmatprep.subr.bf16.mxu1 %v16528_v38  ;;  %v16570_v37 = vcombine.high %v1479_v31, %v1483_v4  ;;  %v1486_v38 = vld [vmem:[%s24580_s2 + $0x1d50] sm:$0xff]  ;;  %v1523_v23 = vld [vmem:[%s24580_s2 + $0x1e78] sm:$0xff]  ;;  %v16601_v4 = vcombine.low %v1511_v11, %v1515_v35 }
 0x668   : > { %15080 = vmatprep.subr.bf16.mxu0 %v16530_v40  ;;  %v1490_v40 = vld [vmem:[%s24580_s2 + $0x1d70] sm:$0xff] }
 0x66a   : > { %14425 = vmatpush1.bf16.msra.mxu1 %v16527_v12  ;;  %v16576_v12 = vcombine.high %v1486_v38, %v1490_v40 }
 0x66b   : > { %15081 = vmatpush1.bf16.msra.mxu0 %v16529_v53  ;;  %14435 = vmatprep.subr.bf16.mxu1 %v16536_v63  ;;  %v16578_v53 = vcombine.high %v1487_v41, %v1491_v44  ;;  %v1494_v63 = vld [vmem:[%s24580_s2 + $0x1d90] sm:$0xff]  ;;  %v16609_v44 = vcombine.low %v1519_v28, %v1523_v23 }
 0x66c   : > { %15091 = vmatprep.subr.bf16.mxu0 %v16538_v55  ;;  %v1498_v55 = vld [vmem:[%s24580_s2 + $0x1db0] sm:$0xff] }
 0x66d   : > { %14427 = vmatmul.mubr.bf16.vlgmr.msra.gmra.mrb[4].mxu1 %v19596_v19  ;;  %v16584_v13 = vcombine.high %v1494_v63, %v1498_v55  ;;  %v16583_v18 = vcombine.low %v1494_v63, %v1498_v55  ;;  %v1535_v63 = vld [vmem:[%s24580_s2 + $0x1ed8] sm:$0xff] }
 0x66e   : > { %15083 = vmatmul.mubr.bf16.vlgmr.msra.gmra.mrb[36].mxu0 %v19596_v19  ;;  %14436 = vmatpush1.bf16.msra.mxu1 %v16535_v59  ;;  %v1471_v19 = vld [vmem:[%s24580_s2 + $0x1cd8] sm:$0xff]  ;;  %v16575_v59 = vcombine.low %v1486_v38, %v1490_v40 }
 0x66f   : > { %14467 = vmatprep.mubr.bf16.mxu1 %v19606_v25  ;;  %15092 = vmatpush1.bf16.msra.mxu0 %v16537_v2  ;;  %v16562_v7 = vcombine.high %v1471_v19, %v1475_v15  ;;  %v16561_v34 = vcombine.low %v1471_v19, %v1475_v15  ;;  %v16586_v2 = vcombine.high %v1495_v56, %v1499_v58  ;;  %v1527_v38 = vld [vmem:[%s24580_s2 + $0x1e98] sm:$0xff] }
 0x670   : > { %15123 = vmatprep.mubr.bf16.mxu0 %v19606_v25  ;;  %14437 = vmatprep.subr.bf16.mxu1 %v16544_v26  ;;  %v16551_v25 = vcombine.low %v1462_v5, %v1466_v9  ;;  %v1502_v26 = vld [vmem:[%s24580_s2 + $0x1dd0] sm:$0xff]  ;;  %v1503_v9 = vld [vmem:[%s24580_s2 + $0x1dd8] sm:$0xff] }
 0x671   : > { %15093 = vmatprep.subr.bf16.mxu0 %v16546_v32  ;;  %v1506_v5 = vld [vmem:[%s24580_s2 + $0x1df0] sm:$0xff]  ;;  %v1507_v32 = vld [vmem:[%s24580_s2 + $0x1df8] sm:$0xff] }
 0x672   : > { %14438 = vmatpush1.bf16.msra.mxu1 %v16543_v14  ;;  %v16592_v14 = vcombine.high %v1502_v26, %v1506_v5  ;;  %v16591_v19 = vcombine.low %v1502_v26, %v1506_v5  ;;  %v16593_v15 = vcombine.low %v1503_v9, %v1507_v32  ;;  %v1531_v40 = vld [vmem:[%s24580_s2 + $0x1eb8] sm:$0xff] }
 0x673   : > { %15094 = vmatpush1.bf16.msra.mxu0 %v16545_v16  ;;  %14439 = vmatprep.subr.bf16.mxu1 %v16552_v51  ;;  %v16594_v16 = vcombine.high %v1503_v9, %v1507_v32  ;;  %v1510_v51 = vld [vmem:[%s24580_s2 + $0x1e10] sm:$0xff]  ;;  %v1539_v55 = vld [vmem:[%s24580_s2 + $0x1ef8] sm:$0xff]  ;;  %v16617_v58 = vcombine.low %v1527_v38, %v1531_v40 }
 0x674   : > { %15095 = vmatprep.subr.bf16.mxu0 %v16554_v30  ;;  %v1514_v30 = vld [vmem:[%s24580_s2 + $0x1e30] sm:$0xff]  ;;  %v1543_v26 = vld [vmem:[%s24580_s2 + $0x1f18] sm:$0xff]  ;;  %v16625_v32 = vcombine.low %v1535_v63, %v1539_v55 }
 0x675   : > { %v16599_v31 = vcombine.low %v1510_v51, %v1514_v30  ;;  %v1547_v5 = vld [vmem:[%s24580_s2 + $0x1f38] sm:$0xff] }
 0x676   : > { %14440 = vmatpush1.bf16.msra.mxu1 %v16551_v25  ;;  %v16600_v25 = vcombine.high %v1510_v51, %v1514_v30  ;;  %v1551_v51 = vld [vmem:[%s24580_s2 + $0x1f58] sm:$0xff] }
 0x677   : > { %15096 = vmatpush1.bf16.msra.mxu0 %v16553_v43  ;;  %14441 = vmatprep.subr.bf16.mxu1 %v16560_v27  ;;  %v16602_v43 = vcombine.high %v1511_v11, %v1515_v35  ;;  %v1518_v27 = vld [vmem:[%s24580_s2 + $0x1e50] sm:$0xff]  ;;  %v1555_v30 = vld [vmem:[%s24580_s2 + $0x1f78] sm:$0xff]  ;;  %v16633_v35 = vcombine.low %v1543_v26, %v1547_v5 }
 0x678   : > { %15097 = vmatprep.subr.bf16.mxu0 %v16562_v7  ;;  %v1522_v7 = vld [vmem:[%s24580_s2 + $0x1e70] sm:$0xff] }
 0x679   : > { %v16607_v41 = vcombine.low %v1518_v27, %v1522_v7 }
 0x67a   : > { %14442 = vmatpush1.bf16.msra.mxu1 %v16559_v62  ;;  %v16608_v62 = vcombine.high %v1518_v27, %v1522_v7  ;;  %v1559_v27 = vld [vmem:[%s24580_s2 + $0x1f98] sm:$0xff] }
 0x67b   : > { %15098 = vmatpush1.bf16.msra.mxu0 %v16561_v34  ;;  %14443 = vmatprep.subr.bf16.mxu1 %v16568_v42  ;;  %v16610_v34 = vcombine.high %v1519_v28, %v1523_v23  ;;  %v1526_v42 = vld [vmem:[%s24580_s2 + $0x1e90] sm:$0xff]  ;;  %v1563_v7 = vld [vmem:[%s24580_s2 + $0x1fb8] sm:$0xff]  ;;  %v16641_v23 = vcombine.low %v1551_v51, %v1555_v30 }
 0x67c   : > { %15099 = vmatprep.subr.bf16.mxu0 %v16570_v37  ;;  %v1530_v37 = vld [vmem:[%s24580_s2 + $0x1eb0] sm:$0xff] }
 0x67d   : > { %v16615_v56 = vcombine.low %v1526_v42, %v1530_v37 }
 0x67e   : > { %14444 = vmatpush1.bf16.msra.mxu1 %v16567_v48  ;;  %v16616_v48 = vcombine.high %v1526_v42, %v1530_v37  ;;  %v1567_v42 = vld [vmem:[%s24580_s2 + $0x1fd8] sm:$0xff] }
 0x67f   : > { %15100 = vmatpush1.bf16.msra.mxu0 %v16569_v49  ;;  %14445 = vmatprep.subr.bf16.mxu1 %v16576_v12  ;;  %v16618_v49 = vcombine.high %v1527_v38, %v1531_v40  ;;  %v1534_v12 = vld [vmem:[%s24580_s2 + $0x1ed0] sm:$0xff]  ;;  %v1571_v37 = vld [vmem:[%s24580_s2 + $0x1ff8] sm:$0xff]  ;;  %v16649_v40 = vcombine.low %v1559_v27, %v1563_v7 }
 0x680   : > { %15101 = vmatprep.subr.bf16.mxu0 %v16578_v53  ;;  %v1538_v53 = vld [vmem:[%s24580_s2 + $0x1ef0] sm:$0xff] }
 0x681   : > { %v16623_v9 = vcombine.low %v1534_v12, %v1538_v53 }
 0x682   : > { %14446 = vmatpush1.bf16.msra.mxu1 %v16575_v59  ;;  %v16624_v59 = vcombine.high %v1534_v12, %v1538_v53  ;;  %v1575_v12 = vld [vmem:[%s24580_s2 + $0x2018] sm:$0xff] }
 0x683   : > { %15102 = vmatpush1.bf16.msra.mxu0 %v16577_v1  ;;  %14447 = vmatprep.subr.bf16.mxu1 %v16584_v13  ;;  %v16626_v1 = vcombine.high %v1535_v63, %v1539_v55  ;;  %v1542_v13 = vld [vmem:[%s24580_s2 + $0x1f10] sm:$0xff]  ;;  %v1579_v53 = vld [vmem:[%s24580_s2 + $0x2038] sm:$0xff]  ;;  %v16657_v55 = vcombine.low %v1567_v42, %v1571_v37 }
 0x684   : > { %15103 = vmatprep.subr.bf16.mxu0 %v16586_v2  ;;  %v1546_v2 = vld [vmem:[%s24580_s2 + $0x1f30] sm:$0xff] }
 0x685   : > { %v16631_v11 = vcombine.low %v1542_v13, %v1546_v2 }
 0x686   : > { %14448 = vmatpush1.bf16.msra.mxu1 %v16583_v18  ;;  %v16632_v18 = vcombine.high %v1542_v13, %v1546_v2  ;;  %v1583_v2 = vld [vmem:[%s24580_s2 + $0x2058] sm:$0xff] }
 0x687   : > { %15104 = vmatpush1.bf16.msra.mxu0 %v16585_v46  ;;  %14449 = vmatprep.subr.bf16.mxu1 %v16592_v14  ;;  %v16634_v46 = vcombine.high %v1543_v26, %v1547_v5  ;;  %v1550_v14 = vld [vmem:[%s24580_s2 + $0x1f50] sm:$0xff]  ;;  %v1587_v26 = vld [vmem:[%s24580_s2 + $0x2078] sm:$0xff]  ;;  %v16665_v5 = vcombine.low %v1575_v12, %v1579_v53 }
 0x688   : > { %15105 = vmatprep.subr.bf16.mxu0 %v16594_v16  ;;  %v1554_v16 = vld [vmem:[%s24580_s2 + $0x1f70] sm:$0xff] }
 0x689   : > { %v16639_v28 = vcombine.low %v1550_v14, %v1554_v16 }
 0x68a   : > { %14450 = vmatpush1.bf16.msra.mxu1 %v16591_v19  ;;  %v16640_v19 = vcombine.high %v1550_v14, %v1554_v16  ;;  %v1591_v14 = vld [vmem:[%s24580_s2 + $0x2098] sm:$0xff] }
 0x68b   : > { %15106 = vmatpush1.bf16.msra.mxu0 %v16593_v15  ;;  %14451 = vmatprep.subr.bf16.mxu1 %v16600_v25  ;;  %v16642_v15 = vcombine.high %v1551_v51, %v1555_v30  ;;  %v1558_v25 = vld [vmem:[%s24580_s2 + $0x1f90] sm:$0xff]  ;;  %v1595_v16 = vld [vmem:[%s24580_s2 + $0x20b8] sm:$0xff]  ;;  %v16673_v30 = vcombine.low %v1583_v2, %v1587_v26 }
 0x68c   : > { %15107 = vmatprep.subr.bf16.mxu0 %v16602_v43  ;;  %v1562_v43 = vld [vmem:[%s24580_s2 + $0x1fb0] sm:$0xff] }
 0x68d   : > { %v16647_v38 = vcombine.low %v1558_v25, %v1562_v43 }
 0x68e   : > { %14452 = vmatpush1.bf16.msra.mxu1 %v16599_v31  ;;  %v16648_v31 = vcombine.high %v1558_v25, %v1562_v43  ;;  %v1603_v25 = vld [vmem:[%s24580_s2 + $0x20f8] sm:$0xff]  ;;  %v16681_v43 = vcombine.low %v1591_v14, %v1595_v16 }
 0x68f   : > { %15108 = vmatpush1.bf16.msra.mxu0 %v16601_v4  ;;  %14453 = vmatprep.subr.bf16.mxu1 %v16608_v62  ;;  %v16650_v4 = vcombine.high %v1559_v27, %v1563_v7  ;;  %v1566_v62 = vld [vmem:[%s24580_s2 + $0x1fd0] sm:$0xff] }
 0x690   : > { %15109 = vmatprep.subr.bf16.mxu0 %v16610_v34  ;;  %v1570_v34 = vld [vmem:[%s24580_s2 + $0x1ff0] sm:$0xff] }
 0x691   : > { %v16655_v63 = vcombine.low %v1566_v62, %v1570_v34 }
 0x692   : > { %14454 = vmatpush1.bf16.msra.mxu1 %v16607_v41  ;;  %v16656_v41 = vcombine.high %v1566_v62, %v1570_v34 }
 0x693   : > { %15110 = vmatpush1.bf16.msra.mxu0 %v16609_v44  ;;  %14455 = vmatprep.subr.bf16.mxu1 %v16616_v48  ;;  %v16658_v44 = vcombine.high %v1567_v42, %v1571_v37  ;;  %v1574_v48 = vld [vmem:[%s24580_s2 + $0x2010] sm:$0xff] }
 0x694   : > { %15111 = vmatprep.subr.bf16.mxu0 %v16618_v49  ;;  %v1578_v49 = vld [vmem:[%s24580_s2 + $0x2030] sm:$0xff] }
 0x695   : > { %v16663_v13 = vcombine.low %v1574_v48, %v1578_v49 }
 0x696   : > { %14456 = vmatpush1.bf16.msra.mxu1 %v16615_v56  ;;  %v16664_v56 = vcombine.high %v1574_v48, %v1578_v49 }
 0x697   : > { %15112 = vmatpush1.bf16.msra.mxu0 %v16617_v58  ;;  %14457 = vmatprep.subr.bf16.mxu1 %v16624_v59  ;;  %v16666_v58 = vcombine.high %v1575_v12, %v1579_v53  ;;  %v1582_v59 = vld [vmem:[%s24580_s2 + $0x2050] sm:$0xff] }
 0x698   : > { %15113 = vmatprep.subr.bf16.mxu0 %v16626_v1  ;;  %v1586_v1 = vld [vmem:[%s24580_s2 + $0x2070] sm:$0xff] }
 0x699   : > { %v16671_v51 = vcombine.low %v1582_v59, %v1586_v1 }
 0x69a   : > { %14458 = vmatpush1.bf16.msra.mxu1 %v16623_v9  ;;  %v16672_v9 = vcombine.high %v1582_v59, %v1586_v1 }
 0x69b   : > { %15114 = vmatpush1.bf16.msra.mxu0 %v16625_v32  ;;  %14459 = vmatprep.subr.bf16.mxu1 %v16632_v18  ;;  %v1590_v32 = vld [vmem:[%s24580_s2 + $0x2090] sm:$0xff] }
 0x69c   : > { %15115 = vmatprep.subr.bf16.mxu0 %v16634_v46  ;;  %v1594_v18 = vld [vmem:[%s24580_s2 + $0x20b0] sm:$0xff]  ;;  %v16674_v46 = vcombine.high %v1583_v2, %v1587_v26 }
 0x69d   : > { %v1630_v26 = vld [vmem:[%s24580_s2 + $0x21d0] sm:$0xff] }
 0x69e   : > { %14460 = vmatpush1.bf16.msra.mxu1 %v16631_v11  ;;  %v16680_v11 = vcombine.high %v1590_v32, %v1594_v18 }
 0x69f   : > { %15116 = vmatpush1.bf16.msra.mxu0 %v16633_v35  ;;  %14461 = vmatprep.subr.bf16.mxu1 %v16640_v19  ;;  %v16682_v35 = vcombine.high %v1591_v14, %v1595_v16  ;;  %v1598_v19 = vld [vmem:[%s24580_s2 + $0x20d0] sm:$0xff] }
 0x6a0   : > { %15117 = vmatprep.subr.bf16.mxu0 %v16642_v15  ;;  %v1602_v15 = vld [vmem:[%s24580_s2 + $0x20f0] sm:$0xff] }
 0x6a1   : > { %v16688_v27 = vcombine.high %v1598_v19, %v1602_v15  ;;  %v16687_v62 = vcombine.low %v1598_v19, %v1602_v15 }
 0x6a2   : > { %14462 = vmatpush1.bf16.msra.mxu1 %v16639_v28  ;;  %v1606_v28 = vld [vmem:[%s24580_s2 + $0x2110] sm:$0xff] }
 0x6a3   : > { %15118 = vmatpush1.bf16.msra.mxu0 %v16641_v23  ;;  %14463 = vmatprep.subr.bf16.mxu1 %v16648_v31  ;;  %v1610_v23 = vld [vmem:[%s24580_s2 + $0x2130] sm:$0xff]  ;;  %v1607_v31 = vld [vmem:[%s24580_s2 + $0x2118] sm:$0xff] }
 0x6a4   : > { %15119 = vmatprep.subr.bf16.mxu0 %v16650_v4  ;;  %v1611_v4 = vld [vmem:[%s24580_s2 + $0x2138] sm:$0xff]  ;;  %v16696_v42 = vcombine.high %v1606_v28, %v1610_v23  ;;  %v16695_v48 = vcombine.low %v1606_v28, %v1610_v23 }
 0x6a5   : > { %v16698_v37 = vcombine.high %v1607_v31, %v1611_v4  ;;  %v16697_v49 = vcombine.low %v1607_v31, %v1611_v4 }
 0x6a6   : > { %14464 = vmatpush1.bf16.msra.mxu1 %v16647_v38  ;;  %v1614_v38 = vld [vmem:[%s24580_s2 + $0x2150] sm:$0xff] }
 0x6a7   : > { %15120 = vmatpush1.bf16.msra.mxu0 %v16649_v40  ;;  %14465 = vmatprep.subr.bf16.mxu1 %v16656_v41  ;;  %v1618_v40 = vld [vmem:[%s24580_s2 + $0x2170] sm:$0xff]  ;;  %v1615_v41 = vld [vmem:[%s24580_s2 + $0x2158] sm:$0xff] }
 0x6a8   : > { %15121 = vmatprep.subr.bf16.mxu0 %v16658_v44  ;;  %v1619_v44 = vld [vmem:[%s24580_s2 + $0x2178] sm:$0xff]  ;;  %v16704_v12 = vcombine.high %v1614_v38, %v1618_v40  ;;  %v16703_v59 = vcombine.low %v1614_v38, %v1618_v40 }
 0x6a9   : > { %v16706_v53 = vcombine.high %v1615_v41, %v1619_v44  ;;  %v16705_v1 = vcombine.low %v1615_v41, %v1619_v44 }
 0x6aa   : > { %14466 = vmatpush1.bf16.msra.mxu1 %v16655_v63  ;;  %v1622_v63 = vld [vmem:[%s24580_s2 + $0x2190] sm:$0xff] }
 0x6ab   : > { %15122 = vmatpush1.bf16.msra.mxu0 %v16657_v55  ;;  %14476 = vmatprep.subr.bf16.mxu1 %v16664_v56  ;;  %v1626_v55 = vld [vmem:[%s24580_s2 + $0x21b0] sm:$0xff]  ;;  %v1623_v56 = vld [vmem:[%s24580_s2 + $0x2198] sm:$0xff] }
 0x6ac   : > { %15132 = vmatprep.subr.bf16.mxu0 %v16666_v58  ;;  %v1627_v58 = vld [vmem:[%s24580_s2 + $0x21b8] sm:$0xff] }
 0x6ad   : > { %14468 = vmatmul.mubr.bf16.vlgmr.msra.gmra.mrb[4].mxu1 %v19800_v61  ;;  %v16714_v2 = vcombine.high %v1623_v56, %v1627_v58 }
 0x6ae   : > { %15124 = vmatmul.mubr.bf16.vlgmr.msra.gmra.mrb[36].mxu0 %v19800_v61  ;;  %14477 = vmatpush1.bf16.msra.mxu1 %v16663_v13  ;;  %v1599_v61 = vld [vmem:[%s24580_s2 + $0x20d8] sm:$0xff]  ;;  %v16712_v13 = vcombine.high %v1622_v63, %v1626_v55 }
 0x6af   : > { %14508 = vmatprep.mubr.bf16.mxu1 %v19810_v0  ;;  %15133 = vmatpush1.bf16.msra.mxu0 %v16665_v5  ;;  %v16690_v7 = vcombine.high %v1599_v61, %v1603_v25  ;;  %v16689_v34 = vcombine.low %v1599_v61, %v1603_v25  ;;  %v1634_v5 = vld [vmem:[%s24580_s2 + $0x21f0] sm:$0xff] }
 0x6b0   : > { %15164 = vmatprep.mubr.bf16.mxu0 %v19810_v0  ;;  %14478 = vmatprep.subr.bf16.mxu1 %v16672_v9  ;;  %v16679_v0 = vcombine.low %v1590_v32, %v1594_v18  ;;  %v1631_v9 = vld [vmem:[%s24580_s2 + $0x21d8] sm:$0xff]  ;;  %v16711_v18 = vcombine.low %v1622_v63, %v1626_v55  ;;  %v16720_v14 = vcombine.high %v1630_v26, %v1634_v5 }
 0x6b1   : > { %15134 = vmatprep.subr.bf16.mxu0 %v16674_v46  ;;  %v1635_v32 = vld [vmem:[%s24580_s2 + $0x21f8] sm:$0xff]  ;;  %v16713_v46 = vcombine.low %v1623_v56, %v1627_v58  ;;  %v16719_v19 = vcombine.low %v1630_v26, %v1634_v5 }
 0x6b2   : > { %14479 = vmatpush1.bf16.msra.mxu1 %v16671_v51  ;;  %v16722_v16 = vcombine.high %v1631_v9, %v1635_v32  ;;  %v1638_v51 = vld [vmem:[%s24580_s2 + $0x2210] sm:$0xff]  ;;  %v16721_v15 = vcombine.low %v1631_v9, %v1635_v32 }
 0x6b3   : > { %15135 = vmatpush1.bf16.msra.mxu0 %v16673_v30  ;;  %14480 = vmatprep.subr.bf16.mxu1 %v16680_v11  ;;  %v1642_v30 = vld [vmem:[%s24580_s2 + $0x2230] sm:$0xff]  ;;  %v1639_v11 = vld [vmem:[%s24580_s2 + $0x2218] sm:$0xff] }
 0x6b4   : > { %15136 = vmatprep.subr.bf16.mxu0 %v16682_v35  ;;  %v1643_v35 = vld [vmem:[%s24580_s2 + $0x2238] sm:$0xff]  ;;  %v16728_v61 = vcombine.high %v1638_v51, %v1642_v30  ;;  %v16727_v28 = vcombine.low %v1638_v51, %v1642_v30 }
 0x6b5   : > { %v16730_v25 = vcombine.high %v1639_v11, %v1643_v35  ;;  %v16729_v23 = vcombine.low %v1639_v11, %v1643_v35 }
 0x6b6   : > { %14481 = vmatpush1.bf16.msra.mxu1 %v16679_v0  ;;  %v1646_v0 = vld [vmem:[%s24580_s2 + $0x2250] sm:$0xff] }
 0x6b7   : > { %15137 = vmatpush1.bf16.msra.mxu0 %v16681_v43  ;;  %14482 = vmatprep.subr.bf16.mxu1 %v16688_v27  ;;  %v1650_v43 = vld [vmem:[%s24580_s2 + $0x2270] sm:$0xff]  ;;  %v1647_v27 = vld [vmem:[%s24580_s2 + $0x2258] sm:$0xff] }
 0x6b8   : > { %15138 = vmatprep.subr.bf16.mxu0 %v16690_v7  ;;  %v1651_v7 = vld [vmem:[%s24580_s2 + $0x2278] sm:$0xff]  ;;  %v16736_v31 = vcombine.high %v1646_v0, %v1650_v43  ;;  %v16735_v38 = vcombine.low %v1646_v0, %v1650_v43 }
 0x6b9   : > { %v16738_v4 = vcombine.high %v1647_v27, %v1651_v7  ;;  %v16737_v40 = vcombine.low %v1647_v27, %v1651_v7 }
 0x6ba   : > { %14483 = vmatpush1.bf16.msra.mxu1 %v16687_v62  ;;  %v1654_v62 = vld [vmem:[%s24580_s2 + $0x2290] sm:$0xff] }
 0x6bb   : > { %15139 = vmatpush1.bf16.msra.mxu0 %v16689_v34  ;;  %14484 = vmatprep.subr.bf16.mxu1 %v16696_v42  ;;  %v1658_v34 = vld [vmem:[%s24580_s2 + $0x22b0] sm:$0xff]  ;;  %v1655_v42 = vld [vmem:[%s24580_s2 + $0x2298] sm:$0xff] }
 0x6bc   : > { %15140 = vmatprep.subr.bf16.mxu0 %v16698_v37  ;;  %v1659_v37 = vld [vmem:[%s24580_s2 + $0x22b8] sm:$0xff]  ;;  %v16744_v41 = vcombine.high %v1654_v62, %v1658_v34  ;;  %v16743_v63 = vcombine.low %v1654_v62, %v1658_v34 }
 0x6bd   : > { %v16746_v44 = vcombine.high %v1655_v42, %v1659_v37  ;;  %v16745_v55 = vcombine.low %v1655_v42, %v1659_v37 }
 0x6be   : > { %14485 = vmatpush1.bf16.msra.mxu1 %v16695_v48  ;;  %v1662_v48 = vld [vmem:[%s24580_s2 + $0x22d0] sm:$0xff] }
 0x6bf   : > { %15141 = vmatpush1.bf16.msra.mxu0 %v16697_v49  ;;  %14486 = vmatprep.subr.bf16.mxu1 %v16704_v12  ;;  %v1666_v49 = vld [vmem:[%s24580_s2 + $0x22f0] sm:$0xff]  ;;  %v1663_v12 = vld [vmem:[%s24580_s2 + $0x22d8] sm:$0xff] }
 0x6c0   : > { %15142 = vmatprep.subr.bf16.mxu0 %v16706_v53  ;;  %v1667_v53 = vld [vmem:[%s24580_s2 + $0x22f8] sm:$0xff]  ;;  %v16752_v56 = vcombine.high %v1662_v48, %v1666_v49  ;;  %v16751_v26 = vcombine.low %v1662_v48, %v1666_v49 }
 0x6c1   : > { %v16754_v58 = vcombine.high %v1663_v12, %v1667_v53  ;;  %v16753_v5 = vcombine.low %v1663_v12, %v1667_v53 }
 0x6c2   : > { %14487 = vmatpush1.bf16.msra.mxu1 %v16703_v59  ;;  %v1670_v59 = vld [vmem:[%s24580_s2 + $0x2310] sm:$0xff] }
 0x6c3   : > { %15143 = vmatpush1.bf16.msra.mxu0 %v16705_v1  ;;  %14488 = vmatprep.subr.bf16.mxu1 %v16712_v13  ;;  %v1674_v1 = vld [vmem:[%s24580_s2 + $0x2330] sm:$0xff]  ;;  %v1671_v13 = vld [vmem:[%s24580_s2 + $0x2318] sm:$0xff] }
 0x6c4   : > { %15144 = vmatprep.subr.bf16.mxu0 %v16714_v2  ;;  %v1675_v2 = vld [vmem:[%s24580_s2 + $0x2338] sm:$0xff]  ;;  %v16760_v9 = vcombine.high %v1670_v59, %v1674_v1  ;;  %v16759_v51 = vcombine.low %v1670_v59, %v1674_v1 }
 0x6c5   : > { %v16762_v32 = vcombine.high %v1671_v13, %v1675_v2  ;;  %v16761_v30 = vcombine.low %v1671_v13, %v1675_v2  ;;  %v1715_v59 = vld [vmem:[%s24580_s2 + $0x2478] sm:$0xff]  ;;  %v1718_v2 = vld [vmem:[%s24580_s2 + $0x2490] sm:$0xff] }
 0x6c6   : > { %14489 = vmatpush1.bf16.msra.mxu1 %v16711_v18  ;;  %v1678_v18 = vld [vmem:[%s24580_s2 + $0x2350] sm:$0xff] }
 0x6c7   : > { %15145 = vmatpush1.bf16.msra.mxu0 %v16713_v46  ;;  %14490 = vmatprep.subr.bf16.mxu1 %v16720_v14  ;;  %v1682_v46 = vld [vmem:[%s24580_s2 + $0x2370] sm:$0xff]  ;;  %v1679_v14 = vld [vmem:[%s24580_s2 + $0x2358] sm:$0xff] }
 0x6c8   : > { %15146 = vmatprep.subr.bf16.mxu0 %v16722_v16  ;;  %v1683_v16 = vld [vmem:[%s24580_s2 + $0x2378] sm:$0xff]  ;;  %v16768_v11 = vcombine.high %v1678_v18, %v1682_v46  ;;  %v16767_v0 = vcombine.low %v1678_v18, %v1682_v46 }
 0x6c9   : > { %v16770_v35 = vcombine.high %v1679_v14, %v1683_v16  ;;  %v16769_v43 = vcombine.low %v1679_v14, %v1683_v16 }
 0x6ca   : > { %14491 = vmatpush1.bf16.msra.mxu1 %v16719_v19  ;;  %v1686_v19 = vld [vmem:[%s24580_s2 + $0x2390] sm:$0xff] }
 0x6cb   : > { %15147 = vmatpush1.bf16.msra.mxu0 %v16721_v15  ;;  %14492 = vmatprep.subr.bf16.mxu1 %v16728_v61  ;;  %v1690_v15 = vld [vmem:[%s24580_s2 + $0x23b0] sm:$0xff]  ;;  %v1687_v61 = vld [vmem:[%s24580_s2 + $0x2398] sm:$0xff] }
 0x6cc   : > { %15148 = vmatprep.subr.bf16.mxu0 %v16730_v25  ;;  %v1691_v25 = vld [vmem:[%s24580_s2 + $0x23b8] sm:$0xff]  ;;  %v16776_v27 = vcombine.high %v1686_v19, %v1690_v15  ;;  %v16775_v62 = vcombine.low %v1686_v19, %v1690_v15 }
 0x6cd   : > { %v16778_v7 = vcombine.high %v1687_v61, %v1691_v25  ;;  %v16777_v34 = vcombine.low %v1687_v61, %v1691_v25  ;;  %v1734_v61 = vld [vmem:[%s24580_s2 + $0x2510] sm:$0xff] }
 0x6ce   : > { %14493 = vmatpush1.bf16.msra.mxu1 %v16727_v28  ;;  %v1694_v28 = vld [vmem:[%s24580_s2 + $0x23d0] sm:$0xff] }
 0x6cf   : > { %15149 = vmatpush1.bf16.msra.mxu0 %v16729_v23  ;;  %14494 = vmatprep.subr.bf16.mxu1 %v16736_v31  ;;  %v1698_v23 = vld [vmem:[%s24580_s2 + $0x23f0] sm:$0xff]  ;;  %v1695_v31 = vld [vmem:[%s24580_s2 + $0x23d8] sm:$0xff] }
 0x6d0   : > { %15150 = vmatprep.subr.bf16.mxu0 %v16738_v4  ;;  %v1699_v4 = vld [vmem:[%s24580_s2 + $0x23f8] sm:$0xff]  ;;  %v16784_v42 = vcombine.high %v1694_v28, %v1698_v23  ;;  %v16783_v48 = vcombine.low %v1694_v28, %v1698_v23  ;;  %v1738_v25 = vld [vmem:[%s24580_s2 + $0x2530] sm:$0xff] }
 0x6d1   : > { %v16786_v37 = vcombine.high %v1695_v31, %v1699_v4  ;;  %v16785_v49 = vcombine.low %v1695_v31, %v1699_v4  ;;  %v16824_v28 = vcombine.high %v1734_v61, %v1738_v25  ;;  %v1742_v31 = vld [vmem:[%s24580_s2 + $0x2550] sm:$0xff] }
 0x6d2   : > { %14495 = vmatpush1.bf16.msra.mxu1 %v16735_v38  ;;  %v1702_v38 = vld [vmem:[%s24580_s2 + $0x2410] sm:$0xff] }
 0x6d3   : > { %15151 = vmatpush1.bf16.msra.mxu0 %v16737_v40  ;;  %14496 = vmatprep.subr.bf16.mxu1 %v16744_v41  ;;  %v1706_v40 = vld [vmem:[%s24580_s2 + $0x2430] sm:$0xff]  ;;  %v1703_v41 = vld [vmem:[%s24580_s2 + $0x2418] sm:$0xff] }
 0x6d4   : > { %15152 = vmatprep.subr.bf16.mxu0 %v16746_v44  ;;  %v1707_v44 = vld [vmem:[%s24580_s2 + $0x2438] sm:$0xff]  ;;  %v16792_v12 = vcombine.high %v1702_v38, %v1706_v40  ;;  %v1746_v4 = vld [vmem:[%s24580_s2 + $0x2570] sm:$0xff] }
 0x6d5   : > { %v16794_v53 = vcombine.high %v1703_v41, %v1707_v44  ;;  %v16793_v1 = vcombine.low %v1703_v41, %v1707_v44  ;;  %v1750_v41 = vld [vmem:[%s24580_s2 + $0x2590] sm:$0xff] }
 0x6d6   : > { %14497 = vmatpush1.bf16.msra.mxu1 %v16743_v63  ;;  %v1710_v63 = vld [vmem:[%s24580_s2 + $0x2450] sm:$0xff] }
 0x6d7   : > { %15153 = vmatpush1.bf16.msra.mxu0 %v16745_v55  ;;  %14498 = vmatprep.subr.bf16.mxu1 %v16752_v56  ;;  %v1714_v55 = vld [vmem:[%s24580_s2 + $0x2470] sm:$0xff]  ;;  %v16791_v56 = vcombine.low %v1702_v38, %v1706_v40  ;;  %v16832_v38 = vcombine.high %v1742_v31, %v1746_v4 }
 0x6d8   : > { %15154 = vmatprep.subr.bf16.mxu0 %v16754_v58  ;;  %v1711_v58 = vld [vmem:[%s24580_s2 + $0x2458] sm:$0xff]  ;;  %v16800_v13 = vcombine.high %v1710_v63, %v1714_v55  ;;  %v16799_v18 = vcombine.low %v1710_v63, %v1714_v55  ;;  %v1754_v44 = vld [vmem:[%s24580_s2 + $0x25b0] sm:$0xff] }
 0x6d9   : > { %v16801_v46 = vcombine.low %v1711_v58, %v1715_v59  ;;  %v16840_v63 = vcombine.high %v1750_v41, %v1754_v44 }
 0x6da   : > { %14499 = vmatpush1.bf16.msra.mxu1 %v16751_v26  ;;  %v1722_v26 = vld [vmem:[%s24580_s2 + $0x24b0] sm:$0xff] }
 0x6db   : > { %15155 = vmatpush1.bf16.msra.mxu0 %v16753_v5  ;;  %14500 = vmatprep.subr.bf16.mxu1 %v16760_v9  ;;  %v16802_v5 = vcombine.high %v1711_v58, %v1715_v59  ;;  %v1719_v9 = vld [vmem:[%s24580_s2 + $0x2498] sm:$0xff]  ;;  %v16808_v14 = vcombine.high %v1718_v2, %v1722_v26  ;;  %v1762_v58 = vld [vmem:[%s24580_s2 + $0x25f0] sm:$0xff] }
 0x6dc   : > { %15156 = vmatprep.subr.bf16.mxu0 %v16762_v32  ;;  %v1723_v32 = vld [vmem:[%s24580_s2 + $0x24b8] sm:$0xff] }
 0x6dd   : > { %v16810_v16 = vcombine.high %v1719_v9, %v1723_v32  ;;  %v1759_v59 = vld [vmem:[%s24580_s2 + $0x25d8] sm:$0xff] }
 0x6de   : > { %14501 = vmatpush1.bf16.msra.mxu1 %v16759_v51  ;;  %v1726_v51 = vld [vmem:[%s24580_s2 + $0x24d0] sm:$0xff] }
 0x6df   : > { %15157 = vmatpush1.bf16.msra.mxu0 %v16761_v30  ;;  %14502 = vmatprep.subr.bf16.mxu1 %v16768_v11  ;;  %v1730_v30 = vld [vmem:[%s24580_s2 + $0x24f0] sm:$0xff]  ;;  %v1731_v11 = vld [vmem:[%s24580_s2 + $0x24f8] sm:$0xff] }
 0x6e0   : > { %15158 = vmatprep.subr.bf16.mxu0 %v16770_v35  ;;  %v16809_v35 = vcombine.low %v1719_v9, %v1723_v32  ;;  %v16816_v19 = vcombine.high %v1726_v51, %v1730_v30  ;;  %v1766_v9 = vld [vmem:[%s24580_s2 + $0x2610] sm:$0xff] }
 0x6e1   : > { %v1770_v32 = vld [vmem:[%s24580_s2 + $0x2630] sm:$0xff] }
 0x6e2   : > { %14503 = vmatpush1.bf16.msra.mxu1 %v16767_v0  ;;  %v1735_v0 = vld [vmem:[%s24580_s2 + $0x2518] sm:$0xff] }
 0x6e3   : > { %15159 = vmatpush1.bf16.msra.mxu0 %v16769_v43  ;;  %14504 = vmatprep.subr.bf16.mxu1 %v16776_v27  ;;  %v1739_v43 = vld [vmem:[%s24580_s2 + $0x2538] sm:$0xff]  ;;  %v16815_v27 = vcombine.low %v1726_v51, %v1730_v30  ;;  %v16856_v51 = vcombine.high %v1766_v9, %v1770_v32 }
 0x6e4   : > { %15160 = vmatprep.subr.bf16.mxu0 %v16778_v7  ;;  %v16826_v23 = vcombine.high %v1735_v0, %v1739_v43 }
 0x6e6   : > { %14505 = vmatpush1.bf16.msra.mxu1 %v16775_v62  ;;  %v1743_v62 = vld [vmem:[%s24580_s2 + $0x2558] sm:$0xff] }
 0x6e7   : > { %15161 = vmatpush1.bf16.msra.mxu0 %v16777_v34  ;;  %14506 = vmatprep.subr.bf16.mxu1 %v16784_v42  ;;  %v1747_v34 = vld [vmem:[%s24580_s2 + $0x2578] sm:$0xff]  ;;  %v16823_v42 = vcombine.low %v1734_v61, %v1738_v25 }
 0x6e8   : > { %15162 = vmatprep.subr.bf16.mxu0 %v16786_v37  ;;  %v16825_v37 = vcombine.low %v1735_v0, %v1739_v43  ;;  %v16834_v40 = vcombine.high %v1743_v62, %v1747_v34  ;;  %v1782_v0 = vld [vmem:[%s24580_s2 + $0x2690] sm:$0xff] }
 0x6e9   : > { %v1786_v43 = vld [vmem:[%s24580_s2 + $0x26b0] sm:$0xff] }
 0x6ea   : > { %14507 = vmatpush1.bf16.msra.mxu1 %v16783_v48  ;;  %v1751_v48 = vld [vmem:[%s24580_s2 + $0x2598] sm:$0xff] }
 0x6eb   : > { %15163 = vmatpush1.bf16.msra.mxu0 %v16785_v49  ;;  %14517 = vmatprep.subr.bf16.mxu1 %v16792_v12  ;;  %v1755_v49 = vld [vmem:[%s24580_s2 + $0x25b8] sm:$0xff]  ;;  %v16831_v12 = vcombine.low %v1742_v31, %v1746_v4  ;;  %v16872_v31 = vcombine.high %v1782_v0, %v1786_v43 }
 0x6ec   : > { %15173 = vmatprep.subr.bf16.mxu0 %v16794_v53  ;;  %v16833_v53 = vcombine.low %v1743_v62, %v1747_v34  ;;  %v16842_v55 = vcombine.high %v1751_v48, %v1755_v49  ;;  %v1790_v62 = vld [vmem:[%s24580_s2 + $0x26d0] sm:$0xff] }
 0x6ed   : > { %14509 = vmatmul.mubr.bf16.vlgmr.msra.gmra.mrb[4].mxu1 %v20004_v21  ;;  %v1794_v34 = vld [vmem:[%s24580_s2 + $0x26f0] sm:$0xff] }
 0x6ee   : > { %15165 = vmatmul.mubr.bf16.vlgmr.msra.gmra.mrb[36].mxu0 %v20004_v21  ;;  %14518 = vmatpush1.bf16.msra.mxu1 %v16791_v56  ;;  %v1727_v21 = vld [vmem:[%s24580_s2 + $0x24d8] sm:$0xff]  ;;  %v1758_v56 = vld [vmem:[%s24580_s2 + $0x25d0] sm:$0xff] }
 0x6ef   : > { %14549 = vmatprep.mubr.bf16.mxu1 %v20014_v24  ;;  %15174 = vmatpush1.bf16.msra.mxu0 %v16793_v1  ;;  %v16818_v15 = vcombine.high %v1727_v21, %v1731_v11  ;;  %v16817_v7 = vcombine.low %v1727_v21, %v1731_v11  ;;  %v1763_v1 = vld [vmem:[%s24580_s2 + $0x25f8] sm:$0xff]  ;;  %v1774_v21 = vld [vmem:[%s24580_s2 + $0x2650] sm:$0xff] }
 0x6f0   : > { %15205 = vmatprep.mubr.bf16.mxu0 %v20014_v24  ;;  %14519 = vmatprep.subr.bf16.mxu1 %v16800_v13  ;;  %v16807_v24 = vcombine.low %v1718_v2, %v1722_v26  ;;  %v16839_v13 = vcombine.low %v1750_v41, %v1754_v44  ;;  %v16841_v2 = vcombine.low %v1751_v48, %v1755_v49  ;;  %v1778_v11 = vld [vmem:[%s24580_s2 + $0x2670] sm:$0xff] }
 0x6f1   : > { %15175 = vmatprep.subr.bf16.mxu0 %v16802_v5  ;;  %v16848_v26 = vcombine.high %v1758_v56, %v1762_v58  ;;  %v16850_v5 = vcombine.high %v1759_v59, %v1763_v1  ;;  %v16864_v61 = vcombine.high %v1774_v21, %v1778_v11  ;;  %v16880_v41 = vcombine.high %v1790_v62, %v1794_v34  ;;  %v1798_v48 = vld [vmem:[%s24580_s2 + $0x2710] sm:$0xff] }
 0x6f2   : > { %14520 = vmatpush1.bf16.msra.mxu1 %v16799_v18  ;;  %v1767_v18 = vld [vmem:[%s24580_s2 + $0x2618] sm:$0xff]  ;;  %v1802_v49 = vld [vmem:[%s24580_s2 + $0x2730] sm:$0xff] }
 0x6f3   : > { %15176 = vmatpush1.bf16.msra.mxu0 %v16801_v46  ;;  %14521 = vmatprep.subr.bf16.mxu1 %v16808_v14  ;;  %v1771_v46 = vld [vmem:[%s24580_s2 + $0x2638] sm:$0xff]  ;;  %v16847_v14 = vcombine.low %v1758_v56, %v1762_v58  ;;  %v16888_v56 = vcombine.high %v1798_v48, %v1802_v49 }
 0x6f4   : > { %15177 = vmatprep.subr.bf16.mxu0 %v16810_v16  ;;  %v16849_v16 = vcombine.low %v1759_v59, %v1763_v1  ;;  %v16858_v30 = vcombine.high %v1767_v18, %v1771_v46  ;;  %v1806_v59 = vld [vmem:[%s24580_s2 + $0x2750] sm:$0xff] }
 0x6f5   : > { %v1810_v1 = vld [vmem:[%s24580_s2 + $0x2770] sm:$0xff] }
 0x6f6   : > { %14522 = vmatpush1.bf16.msra.mxu1 %v16807_v24  ;;  %v1775_v24 = vld [vmem:[%s24580_s2 + $0x2658] sm:$0xff] }
 0x6f7   : > { %15178 = vmatpush1.bf16.msra.mxu0 %v16809_v35  ;;  %14523 = vmatprep.subr.bf16.mxu1 %v16816_v19  ;;  %v1779_v35 = vld [vmem:[%s24580_s2 + $0x2678] sm:$0xff]  ;;  %v16855_v19 = vcombine.low %v1766_v9, %v1770_v32  ;;  %v16896_v9 = vcombine.high %v1806_v59, %v1810_v1 }
 0x6f8   : > { %15179 = vmatprep.subr.bf16.mxu0 %v16818_v15  ;;  %v16857_v15 = vcombine.low %v1767_v18, %v1771_v46  ;;  %v16866_v25 = vcombine.high %v1775_v24, %v1779_v35  ;;  %v1814_v18 = vld [vmem:[%s24580_s2 + $0x2790] sm:$0xff] }
 0x6f9   : > { %v1818_v46 = vld [vmem:[%s24580_s2 + $0x27b0] sm:$0xff] }
 0x6fa   : > { %14524 = vmatpush1.bf16.msra.mxu1 %v16815_v27  ;;  %v1783_v27 = vld [vmem:[%s24580_s2 + $0x2698] sm:$0xff] }
 0x6fb   : > { %15180 = vmatpush1.bf16.msra.mxu0 %v16817_v7  ;;  %14525 = vmatprep.subr.bf16.mxu1 %v16824_v28  ;;  %v1787_v7 = vld [vmem:[%s24580_s2 + $0x26b8] sm:$0xff]  ;;  %v16863_v28 = vcombine.low %v1774_v21, %v1778_v11  ;;  %v16904_v21 = vcombine.high %v1814_v18, %v1818_v46 }
 0x6fc   : > { %15181 = vmatprep.subr.bf16.mxu0 %v16826_v23  ;;  %v16865_v23 = vcombine.low %v1775_v24, %v1779_v35  ;;  %v16874_v4 = vcombine.high %v1783_v27, %v1787_v7  ;;  %v1822_v24 = vld [vmem:[%s24580_s2 + $0x27d0] sm:$0xff] }
 0x6fd   : > { %v1826_v35 = vld [vmem:[%s24580_s2 + $0x27f0] sm:$0xff] }
 0x6fe   : > { %14526 = vmatpush1.bf16.msra.mxu1 %v16823_v42  ;;  %v1791_v42 = vld [vmem:[%s24580_s2 + $0x26d8] sm:$0xff] }
 0x6ff   : > { %15182 = vmatpush1.bf16.msra.mxu0 %v16825_v37  ;;  %14527 = vmatprep.subr.bf16.mxu1 %v16832_v38  ;;  %v1795_v37 = vld [vmem:[%s24580_s2 + $0x26f8] sm:$0xff]  ;;  %v16871_v38 = vcombine.low %v1782_v0, %v1786_v43  ;;  %v16912_v0 = vcombine.high %v1822_v24, %v1826_v35 }
 0x700   : > { %15183 = vmatprep.subr.bf16.mxu0 %v16834_v40  ;;  %v16873_v40 = vcombine.low %v1783_v27, %v1787_v7  ;;  %v16882_v44 = vcombine.high %v1791_v42, %v1795_v37  ;;  %v1830_v27 = vld [vmem:[%s24580_s2 + $0x2810] sm:$0xff] }
 0x701   : > { %v1834_v7 = vld [vmem:[%s24580_s2 + $0x2830] sm:$0xff] }
 0x702   : > { %14528 = vmatpush1.bf16.msra.mxu1 %v16831_v12  ;;  %v1799_v12 = vld [vmem:[%s24580_s2 + $0x2718] sm:$0xff] }
 0x703   : > { %15184 = vmatpush1.bf16.msra.mxu0 %v16833_v53  ;;  %14529 = vmatprep.subr.bf16.mxu1 %v16840_v63  ;;  %v1803_v53 = vld [vmem:[%s24580_s2 + $0x2738] sm:$0xff]  ;;  %v16879_v63 = vcombine.low %v1790_v62, %v1794_v34  ;;  %v16920_v62 = vcombine.high %v1830_v27, %v1834_v7 }
 0x704   : > { %15185 = vmatprep.subr.bf16.mxu0 %v16842_v55  ;;  %v16881_v55 = vcombine.low %v1791_v42, %v1795_v37  ;;  %v16890_v58 = vcombine.high %v1799_v12, %v1803_v53  ;;  %v1838_v42 = vld [vmem:[%s24580_s2 + $0x2850] sm:$0xff] }
 0x705   : > { %v1842_v37 = vld [vmem:[%s24580_s2 + $0x2870] sm:$0xff] }
 0x706   : > { %14530 = vmatpush1.bf16.msra.mxu1 %v16839_v13  ;;  %v1807_v13 = vld [vmem:[%s24580_s2 + $0x2758] sm:$0xff] }
 0x707   : > { %15186 = vmatpush1.bf16.msra.mxu0 %v16841_v2  ;;  %14531 = vmatprep.subr.bf16.mxu1 %v16848_v26  ;;  %v1811_v2 = vld [vmem:[%s24580_s2 + $0x2778] sm:$0xff]  ;;  %v16887_v26 = vcombine.low %v1798_v48, %v1802_v49  ;;  %v16928_v48 = vcombine.high %v1838_v42, %v1842_v37  ;;  %v1846_v49 = vld [vmem:[%s24580_s2 + $0x2890] sm:$0xff] }
 0x708   : > { %15187 = vmatprep.subr.bf16.mxu0 %v16850_v5  ;;  %v16889_v5 = vcombine.low %v1799_v12, %v1803_v53  ;;  %v16898_v32 = vcombine.high %v1807_v13, %v1811_v2  ;;  %v1850_v12 = vld [vmem:[%s24580_s2 + $0x28b0] sm:$0xff] }
 0x70a   : > { %14532 = vmatpush1.bf16.msra.mxu1 %v16847_v14  ;;  %v1815_v14 = vld [vmem:[%s24580_s2 + $0x2798] sm:$0xff] }
 0x70b   : > { %15188 = vmatpush1.bf16.msra.mxu0 %v16849_v16  ;;  %14533 = vmatprep.subr.bf16.mxu1 %v16856_v51  ;;  %v1819_v16 = vld [vmem:[%s24580_s2 + $0x27b8] sm:$0xff]  ;;  %v16895_v51 = vcombine.low %v1806_v59, %v1810_v1  ;;  %v16936_v59 = vcombine.high %v1846_v49, %v1850_v12 }
 0x70c   : > { %15189 = vmatprep.subr.bf16.mxu0 %v16858_v30  ;;  %v16897_v30 = vcombine.low %v1807_v13, %v1811_v2  ;;  %v16906_v11 = vcombine.high %v1815_v14, %v1819_v16  ;;  %v1854_v13 = vld [vmem:[%s24580_s2 + $0x28d0] sm:$0xff] }
 0x70d   : > { %v1858_v2 = vld [vmem:[%s24580_s2 + $0x28f0] sm:$0xff] }
 0x70e   : > { %14534 = vmatpush1.bf16.msra.mxu1 %v16855_v19  ;;  %v1823_v19 = vld [vmem:[%s24580_s2 + $0x27d8] sm:$0xff] }
 0x70f   : > { %15190 = vmatpush1.bf16.msra.mxu0 %v16857_v15  ;;  %14535 = vmatprep.subr.bf16.mxu1 %v16864_v61  ;;  %v1827_v15 = vld [vmem:[%s24580_s2 + $0x27f8] sm:$0xff]  ;;  %v16903_v61 = vcombine.low %v1814_v18, %v1818_v46  ;;  %v1862_v18 = vld [vmem:[%s24580_s2 + $0x2910] sm:$0xff] }
 0x710   : > { %15191 = vmatprep.subr.bf16.mxu0 %v16866_v25  ;;  %v16905_v25 = vcombine.low %v1815_v14, %v1819_v16  ;;  %v16914_v43 = vcombine.high %v1823_v19, %v1827_v15  ;;  %v1866_v46 = vld [vmem:[%s24580_s2 + $0x2930] sm:$0xff]  ;;  %v1863_v14 = vld [vmem:[%s24580_s2 + $0x2918] sm:$0xff] }
 0x711   : > { %v1867_v16 = vld [vmem:[%s24580_s2 + $0x2938] sm:$0xff] }
 0x712   : > { %14536 = vmatpush1.bf16.msra.mxu1 %v16863_v28  ;;  %v1831_v28 = vld [vmem:[%s24580_s2 + $0x2818] sm:$0xff] }
 0x713   : > { %15192 = vmatpush1.bf16.msra.mxu0 %v16865_v23  ;;  %14537 = vmatprep.subr.bf16.mxu1 %v16872_v31  ;;  %v1835_v23 = vld [vmem:[%s24580_s2 + $0x2838] sm:$0xff]  ;;  %v16911_v31 = vcombine.low %v1822_v24, %v1826_v35  ;;  %v1870_v24 = vld [vmem:[%s24580_s2 + $0x2950] sm:$0xff] }
 0x714   : > { %15193 = vmatprep.subr.bf16.mxu0 %v16874_v4  ;;  %v16913_v4 = vcombine.low %v1823_v19, %v1827_v15  ;;  %v16922_v34 = vcombine.high %v1831_v28, %v1835_v23  ;;  %v1874_v35 = vld [vmem:[%s24580_s2 + $0x2970] sm:$0xff]  ;;  %v1871_v19 = vld [vmem:[%s24580_s2 + $0x2958] sm:$0xff] }
 0x715   : > { %v1875_v15 = vld [vmem:[%s24580_s2 + $0x2978] sm:$0xff] }
 0x716   : > { %14538 = vmatpush1.bf16.msra.mxu1 %v16871_v38  ;;  %v16919_v38 = vcombine.low %v1830_v27, %v1834_v7  ;;  %v1878_v27 = vld [vmem:[%s24580_s2 + $0x2990] sm:$0xff] }
 0x717   : > { %15194 = vmatpush1.bf16.msra.mxu0 %v16873_v40  ;;  %14539 = vmatprep.subr.bf16.mxu1 %v16880_v41  ;;  %v1839_v40 = vld [vmem:[%s24580_s2 + $0x2858] sm:$0xff]  ;;  %v1882_v7 = vld [vmem:[%s24580_s2 + $0x29b0] sm:$0xff] }
 0x718   : > { %15195 = vmatprep.subr.bf16.mxu0 %v16882_v44  ;;  %v1843_v41 = vld [vmem:[%s24580_s2 + $0x2878] sm:$0xff]  ;;  %v16921_v44 = vcombine.low %v1831_v28, %v1835_v23 }
 0x719   : > { %v16930_v53 = vcombine.high %v1839_v40, %v1843_v41  ;;  %v1879_v28 = vld [vmem:[%s24580_s2 + $0x2998] sm:$0xff] }
 0x71a   : > { %14540 = vmatpush1.bf16.msra.mxu1 %v16879_v63  ;;  %v1847_v63 = vld [vmem:[%s24580_s2 + $0x2898] sm:$0xff] }
 0x71b   : > { %15196 = vmatpush1.bf16.msra.mxu0 %v16881_v55  ;;  %14541 = vmatprep.subr.bf16.mxu1 %v16888_v56  ;;  %v1851_v55 = vld [vmem:[%s24580_s2 + $0x28b8] sm:$0xff]  ;;  %v16927_v56 = vcombine.low %v1838_v42, %v1842_v37  ;;  %v1886_v42 = vld [vmem:[%s24580_s2 + $0x29d0] sm:$0xff] }
 0x71c   : > { %15197 = vmatprep.subr.bf16.mxu0 %v16890_v58  ;;  %v16929_v58 = vcombine.low %v1839_v40, %v1843_v41  ;;  %v16938_v1 = vcombine.high %v1847_v63, %v1851_v55  ;;  %v1883_v23 = vld [vmem:[%s24580_s2 + $0x29b8] sm:$0xff]  ;;  %v1890_v37 = vld [vmem:[%s24580_s2 + $0x29f0] sm:$0xff]  ;;  %v16967_v41 = vcombine.low %v1878_v27, %v1882_v7 }
 0x71d   : > { %v1891_v40 = vld [vmem:[%s24580_s2 + $0x29f8] sm:$0xff] }
 0x71e   : > { %14542 = vmatpush1.bf16.msra.mxu1 %v16887_v26  ;;  %v1859_v26 = vld [vmem:[%s24580_s2 + $0x28f8] sm:$0xff] }
 0x71f   : > { %15198 = vmatpush1.bf16.msra.mxu0 %v16889_v5  ;;  %14543 = vmatprep.subr.bf16.mxu1 %v16896_v9  ;;  %v16937_v5 = vcombine.low %v1847_v63, %v1851_v55  ;;  %v16944_v9 = vcombine.high %v1854_v13, %v1858_v2  ;;  %v1895_v63 = vld [vmem:[%s24580_s2 + $0x2a18] sm:$0xff] }
 0x720   : > { %15199 = vmatprep.subr.bf16.mxu0 %v16898_v32  ;;  %v1899_v55 = vld [vmem:[%s24580_s2 + $0x2a38] sm:$0xff] }
 0x722   : > { %14544 = vmatpush1.bf16.msra.mxu1 %v16895_v51  ;;  %v16943_v51 = vcombine.low %v1854_v13, %v1858_v2  ;;  %v1902_v13 = vld [vmem:[%s24580_s2 + $0x2a50] sm:$0xff] }
 0x723   : > { %15200 = vmatpush1.bf16.msra.mxu0 %v16897_v30  ;;  %14545 = vmatprep.subr.bf16.mxu1 %v16904_v21  ;;  %v16952_v21 = vcombine.high %v1862_v18, %v1866_v46  ;;  %v1906_v2 = vld [vmem:[%s24580_s2 + $0x2a70] sm:$0xff] }
 0x724   : > { %15201 = vmatprep.subr.bf16.mxu0 %v16906_v11  ;;  %v16954_v11 = vcombine.high %v1863_v14, %v1867_v16 }
 0x726   : > { %14546 = vmatpush1.bf16.msra.mxu1 %v16903_v61  ;;  %v16951_v61 = vcombine.low %v1862_v18, %v1866_v46  ;;  %v1910_v18 = vld [vmem:[%s24580_s2 + $0x2a90] sm:$0xff] }
 0x727   : > { %15202 = vmatpush1.bf16.msra.mxu0 %v16905_v25  ;;  %14547 = vmatprep.subr.bf16.mxu1 %v16912_v0  ;;  %v16953_v25 = vcombine.low %v1863_v14, %v1867_v16  ;;  %v16960_v0 = vcombine.high %v1870_v24, %v1874_v35  ;;  %v1914_v46 = vld [vmem:[%s24580_s2 + $0x2ab0] sm:$0xff]  ;;  %v1911_v14 = vld [vmem:[%s24580_s2 + $0x2a98] sm:$0xff] }
 0x728   : > { %15203 = vmatprep.subr.bf16.mxu0 %v16914_v43  ;;  %v16962_v43 = vcombine.high %v1871_v19, %v1875_v15  ;;  %v1915_v16 = vld [vmem:[%s24580_s2 + $0x2ab8] sm:$0xff] }
 0x72a   : > { %14548 = vmatpush1.bf16.msra.mxu1 %v16911_v31  ;;  %v16959_v31 = vcombine.low %v1870_v24, %v1874_v35  ;;  %v1918_v24 = vld [vmem:[%s24580_s2 + $0x2ad0] sm:$0xff] }
 0x72b   : > { %15204 = vmatpush1.bf16.msra.mxu0 %v16913_v4  ;;  %14558 = vmatprep.subr.bf16.mxu1 %v16920_v62  ;;  %v16961_v4 = vcombine.low %v1871_v19, %v1875_v15  ;;  %v16968_v62 = vcombine.high %v1878_v27, %v1882_v7  ;;  %v1922_v35 = vld [vmem:[%s24580_s2 + $0x2af0] sm:$0xff]  ;;  %v1919_v19 = vld [vmem:[%s24580_s2 + $0x2ad8] sm:$0xff] }
 0x72c   : > { %15214 = vmatprep.subr.bf16.mxu0 %v16922_v34  ;;  %v16970_v34 = vcombine.high %v1879_v28, %v1883_v23  ;;  %v1923_v15 = vld [vmem:[%s24580_s2 + $0x2af8] sm:$0xff]  ;;  %v1926_v27 = vld [vmem:[%s24580_s2 + $0x2b10] sm:$0xff] }
 0x72d   : > { %14550 = vmatmul.mubr.bf16.vlgmr.msra.gmra.mrb[4].mxu1 %v20208_v10  ;;  %v1930_v7 = vld [vmem:[%s24580_s2 + $0x2b30] sm:$0xff] }
 0x72e   : > { %15206 = vmatmul.mubr.bf16.vlgmr.msra.gmra.mrb[36].mxu0 %v20208_v10  ;;  %14559 = vmatpush1.bf16.msra.mxu1 %v16919_v38  ;;  %v1855_v10 = vld [vmem:[%s24580_s2 + $0x28d8] sm:$0xff] }
 0x72f   : > { %14590 = vmatprep.mubr.bf16.mxu1 %v20218_v33  ;;  %15215 = vmatpush1.bf16.msra.mxu0 %v16921_v44  ;;  %v16946_v32 = vcombine.high %v1855_v10, %v1859_v26  ;;  %v16945_v30 = vcombine.low %v1855_v10, %v1859_v26  ;;  %v1887_v38 = vld [vmem:[%s24580_s2 + $0x29d8] sm:$0xff]  ;;  %v16969_v44 = vcombine.low %v1879_v28, %v1883_v23 }
 0x730   : > { %15246 = vmatprep.mubr.bf16.mxu0 %v20218_v33  ;;  %14560 = vmatprep.subr.bf16.mxu1 %v16928_v48  ;;  %v16935_v33 = vcombine.low %v1846_v49, %v1850_v12  ;;  %v16976_v48 = vcombine.high %v1886_v42, %v1890_v37  ;;  %v16978_v49 = vcombine.high %v1887_v38, %v1891_v40  ;;  %v1894_v12 = vld [vmem:[%s24580_s2 + $0x2a10] sm:$0xff]  ;;  %v1903_v10 = vld [vmem:[%s24580_s2 + $0x2a58] sm:$0xff] }
 0x731   : > { %15216 = vmatprep.subr.bf16.mxu0 %v16930_v53  ;;  %v1898_v53 = vld [vmem:[%s24580_s2 + $0x2a30] sm:$0xff]  ;;  %v1907_v26 = vld [vmem:[%s24580_s2 + $0x2a78] sm:$0xff] }
 0x732   : > { %14561 = vmatpush1.bf16.msra.mxu1 %v16927_v56  ;;  %v16975_v56 = vcombine.low %v1886_v42, %v1890_v37  ;;  %v1927_v28 = vld [vmem:[%s24580_s2 + $0x2b18] sm:$0xff]  ;;  %v1934_v42 = vld [vmem:[%s24580_s2 + $0x2b50] sm:$0xff] }
 0x733   : > { %15217 = vmatpush1.bf16.msra.mxu0 %v16929_v58  ;;  %14562 = vmatprep.subr.bf16.mxu1 %v16936_v59  ;;  %v16977_v58 = vcombine.low %v1887_v38, %v1891_v40  ;;  %v16984_v59 = vcombine.high %v1894_v12, %v1898_v53  ;;  %v1931_v23 = vld [vmem:[%s24580_s2 + $0x2b38] sm:$0xff]  ;;  %v1938_v37 = vld [vmem:[%s24580_s2 + $0x2b70] sm:$0xff] }
 0x734   : > { %15218 = vmatprep.subr.bf16.mxu0 %v16938_v1  ;;  %v16986_v1 = vcombine.high %v1895_v63, %v1899_v55  ;;  %v1935_v38 = vld [vmem:[%s24580_s2 + $0x2b58] sm:$0xff] }
 0x735   : > { %v1939_v40 = vld [vmem:[%s24580_s2 + $0x2b78] sm:$0xff] }
 0x736   : > { %14563 = vmatpush1.bf16.msra.mxu1 %v16935_v33  ;;  %v16983_v33 = vcombine.low %v1894_v12, %v1898_v53  ;;  %v1942_v12 = vld [vmem:[%s24580_s2 + $0x2b90] sm:$0xff] }
 0x737   : > { %15219 = vmatpush1.bf16.msra.mxu0 %v16937_v5  ;;  %14564 = vmatprep.subr.bf16.mxu1 %v16944_v9  ;;  %v16985_v5 = vcombine.low %v1895_v63, %v1899_v55  ;;  %v16992_v9 = vcombine.high %v1902_v13, %v1906_v2  ;;  %v1946_v53 = vld [vmem:[%s24580_s2 + $0x2bb0] sm:$0xff]  ;;  %v1943_v63 = vld [vmem:[%s24580_s2 + $0x2b98] sm:$0xff] }
 0x738   : > { %15220 = vmatprep.subr.bf16.mxu0 %v16946_v32  ;;  %v16994_v32 = vcombine.high %v1903_v10, %v1907_v26  ;;  %v1947_v55 = vld [vmem:[%s24580_s2 + $0x2bb8] sm:$0xff] }
 0x73a   : > { %14565 = vmatpush1.bf16.msra.mxu1 %v16943_v51  ;;  %v16991_v51 = vcombine.low %v1902_v13, %v1906_v2  ;;  %v1950_v13 = vld [vmem:[%s24580_s2 + $0x2bd0] sm:$0xff] }
 0x73b   : > { %15221 = vmatpush1.bf16.msra.mxu0 %v16945_v30  ;;  %14566 = vmatprep.subr.bf16.mxu1 %v16952_v21  ;;  %v16993_v30 = vcombine.low %v1903_v10, %v1907_v26  ;;  %v17000_v21 = vcombine.high %v1910_v18, %v1914_v46  ;;  %v1954_v2 = vld [vmem:[%s24580_s2 + $0x2bf0] sm:$0xff]  ;;  %v1951_v10 = vld [vmem:[%s24580_s2 + $0x2bd8] sm:$0xff] }
 0x73c   : > { %15222 = vmatprep.subr.bf16.mxu0 %v16954_v11  ;;  %v17002_v11 = vcombine.high %v1911_v14, %v1915_v16  ;;  %v1955_v26 = vld [vmem:[%s24580_s2 + $0x2bf8] sm:$0xff] }
 0x73e   : > { %14567 = vmatpush1.bf16.msra.mxu1 %v16951_v61  ;;  %v16999_v61 = vcombine.low %v1910_v18, %v1914_v46  ;;  %v1958_v18 = vld [vmem:[%s24580_s2 + $0x2c10] sm:$0xff] }
 0x73f   : > { %15223 = vmatpush1.bf16.msra.mxu0 %v16953_v25  ;;  %14568 = vmatprep.subr.bf16.mxu1 %v16960_v0  ;;  %v17001_v25 = vcombine.low %v1911_v14, %v1915_v16  ;;  %v17008_v0 = vcombine.high %v1918_v24, %v1922_v35  ;;  %v1962_v46 = vld [vmem:[%s24580_s2 + $0x2c30] sm:$0xff]  ;;  %v1959_v14 = vld [vmem:[%s24580_s2 + $0x2c18] sm:$0xff] }
 0x740   : > { %15224 = vmatprep.subr.bf16.mxu0 %v16962_v43  ;;  %v17010_v43 = vcombine.high %v1919_v19, %v1923_v15  ;;  %v1963_v16 = vld [vmem:[%s24580_s2 + $0x2c38] sm:$0xff] }
 0x742   : > { %14569 = vmatpush1.bf16.msra.mxu1 %v16959_v31  ;;  %v17007_v31 = vcombine.low %v1918_v24, %v1922_v35  ;;  %v1966_v24 = vld [vmem:[%s24580_s2 + $0x2c50] sm:$0xff] }
 0x743   : > { %15225 = vmatpush1.bf16.msra.mxu0 %v16961_v4  ;;  %14570 = vmatprep.subr.bf16.mxu1 %v16968_v62  ;;  %v17009_v4 = vcombine.low %v1919_v19, %v1923_v15  ;;  %v17016_v62 = vcombine.high %v1926_v27, %v1930_v7  ;;  %v1970_v35 = vld [vmem:[%s24580_s2 + $0x2c70] sm:$0xff]  ;;  %v17047_v19 = vcombine.low %v1958_v18, %v1962_v46  ;;  %v1967_v15 = vld [vmem:[%s24580_s2 + $0x2c58] sm:$0xff] }
 0x744   : > { %15226 = vmatprep.subr.bf16.mxu0 %v16970_v34  ;;  %v17018_v34 = vcombine.high %v1927_v28, %v1931_v23 }
 0x746   : > { %14571 = vmatpush1.bf16.msra.mxu1 %v16967_v41  ;;  %v17015_v41 = vcombine.low %v1926_v27, %v1930_v7  ;;  %v1978_v27 = vld [vmem:[%s24580_s2 + $0x2cb0] sm:$0xff] }
 0x747   : > { %15227 = vmatpush1.bf16.msra.mxu0 %v16969_v44  ;;  %14572 = vmatprep.subr.bf16.mxu1 %v16976_v48  ;;  %v17017_v44 = vcombine.low %v1927_v28, %v1931_v23  ;;  %v17024_v48 = vcombine.high %v1934_v42, %v1938_v37  ;;  %v1975_v28 = vld [vmem:[%s24580_s2 + $0x2c98] sm:$0xff] }
 0x748   : > { %15228 = vmatprep.subr.bf16.mxu0 %v16978_v49  ;;  %v17026_v49 = vcombine.high %v1935_v38, %v1939_v40  ;;  %v1979_v23 = vld [vmem:[%s24580_s2 + $0x2cb8] sm:$0xff] }
 0x74a   : > { %14573 = vmatpush1.bf16.msra.mxu1 %v16975_v56  ;;  %v17023_v56 = vcombine.low %v1934_v42, %v1938_v37  ;;  %v1982_v42 = vld [vmem:[%s24580_s2 + $0x2cd0] sm:$0xff] }
 0x74b   : > { %15229 = vmatpush1.bf16.msra.mxu0 %v16977_v58  ;;  %14574 = vmatprep.subr.bf16.mxu1 %v16984_v59  ;;  %v17025_v58 = vcombine.low %v1935_v38, %v1939_v40  ;;  %v17032_v59 = vcombine.high %v1942_v12, %v1946_v53  ;;  %v1986_v37 = vld [vmem:[%s24580_s2 + $0x2cf0] sm:$0xff]  ;;  %v1987_v38 = vld [vmem:[%s24580_s2 + $0x2cf8] sm:$0xff]  ;;  %v17065_v40 = vcombine.low %v1975_v28, %v1979_v23 }
 0x74c   : > { %15230 = vmatprep.subr.bf16.mxu0 %v16986_v1  ;;  %v17034_v1 = vcombine.high %v1943_v63, %v1947_v55 }
 0x74e   : > { %14575 = vmatpush1.bf16.msra.mxu1 %v16983_v33  ;;  %v17031_v33 = vcombine.low %v1942_v12, %v1946_v53  ;;  %v1991_v12 = vld [vmem:[%s24580_s2 + $0x2d18] sm:$0xff] }
 0x74f   : > { %15231 = vmatpush1.bf16.msra.mxu0 %v16985_v5  ;;  %14576 = vmatprep.subr.bf16.mxu1 %v16992_v9  ;;  %v17033_v5 = vcombine.low %v1943_v63, %v1947_v55  ;;  %v17040_v9 = vcombine.high %v1950_v13, %v1954_v2  ;;  %v1995_v53 = vld [vmem:[%s24580_s2 + $0x2d38] sm:$0xff]  ;;  %v17071_v63 = vcombine.low %v1982_v42, %v1986_v37 }
 0x750   : > { %15232 = vmatprep.subr.bf16.mxu0 %v16994_v32  ;;  %v17042_v32 = vcombine.high %v1951_v10, %v1955_v26 }
 0x752   : > { %14577 = vmatpush1.bf16.msra.mxu1 %v16991_v51  ;;  %v17039_v51 = vcombine.low %v1950_v13, %v1954_v2  ;;  %v1999_v13 = vld [vmem:[%s24580_s2 + $0x2d58] sm:$0xff] }
 0x753   : > { %15233 = vmatpush1.bf16.msra.mxu0 %v16993_v30  ;;  %14578 = vmatprep.subr.bf16.mxu1 %v17000_v21  ;;  %v17041_v30 = vcombine.low %v1951_v10, %v1955_v26  ;;  %v17048_v21 = vcombine.high %v1958_v18, %v1962_v46  ;;  %v2003_v2 = vld [vmem:[%s24580_s2 + $0x2d78] sm:$0xff]  ;;  %v17081_v26 = vcombine.low %v1991_v12, %v1995_v53 }
 0x754   : > { %15234 = vmatprep.subr.bf16.mxu0 %v17002_v11  ;;  %v17050_v11 = vcombine.high %v1959_v14, %v1963_v16  ;;  %v2007_v18 = vld [vmem:[%s24580_s2 + $0x2d98] sm:$0xff] }
 0x755   : > { %v2011_v46 = vld [vmem:[%s24580_s2 + $0x2db8] sm:$0xff] }
 0x756   : > { %14579 = vmatpush1.bf16.msra.mxu1 %v16999_v61  ;;  %v1971_v61 = vld [vmem:[%s24580_s2 + $0x2c78] sm:$0xff] }
 0x757   : > { %15235 = vmatpush1.bf16.msra.mxu0 %v17001_v25  ;;  %14580 = vmatprep.subr.bf16.mxu1 %v17008_v0  ;;  %v17049_v25 = vcombine.low %v1959_v14, %v1963_v16  ;;  %v17056_v0 = vcombine.high %v1966_v24, %v1970_v35  ;;  %v17058_v7 = vcombine.high %v1967_v15, %v1971_v61 }
 0x758   : > { %15236 = vmatprep.subr.bf16.mxu0 %v17010_v43  ;;  %v1974_v43 = vld [vmem:[%s24580_s2 + $0x2c90] sm:$0xff]  ;;  %v17089_v16 = vcombine.low %v1999_v13, %v2003_v2 }
 0x75a   : > { %14581 = vmatpush1.bf16.msra.mxu1 %v17007_v31  ;;  %v17055_v31 = vcombine.low %v1966_v24, %v1970_v35  ;;  %v2015_v24 = vld [vmem:[%s24580_s2 + $0x2dd8] sm:$0xff] }
 0x75b   : > { %15237 = vmatpush1.bf16.msra.mxu0 %v17009_v4  ;;  %14582 = vmatprep.subr.bf16.mxu1 %v17016_v62  ;;  %v17057_v4 = vcombine.low %v1967_v15, %v1971_v61  ;;  %v17064_v62 = vcombine.high %v1974_v43, %v1978_v27  ;;  %v2019_v35 = vld [vmem:[%s24580_s2 + $0x2df8] sm:$0xff]  ;;  %v17097_v15 = vcombine.low %v2007_v18, %v2011_v46 }
 0x75c   : > { %15238 = vmatprep.subr.bf16.mxu0 %v17018_v34  ;;  %v17066_v34 = vcombine.high %v1975_v28, %v1979_v23  ;;  %v17105_v23 = vcombine.low %v2015_v24, %v2019_v35 }
 0x75e   : > { %14583 = vmatpush1.bf16.msra.mxu1 %v17015_v41  ;;  %v17072_v41 = vcombine.high %v1982_v42, %v1986_v37  ;;  %v2031_v42 = vld [vmem:[%s24580_s2 + $0x2e58] sm:$0xff] }
 0x75f   : > { %15239 = vmatpush1.bf16.msra.mxu0 %v17017_v44  ;;  %14584 = vmatprep.subr.bf16.mxu1 %v17024_v48  ;;  %v1990_v48 = vld [vmem:[%s24580_s2 + $0x2d10] sm:$0xff]  ;;  %v2035_v37 = vld [vmem:[%s24580_s2 + $0x2e78] sm:$0xff] }
 0x760   : > { %15240 = vmatprep.subr.bf16.mxu0 %v17026_v49  ;;  %v1994_v49 = vld [vmem:[%s24580_s2 + $0x2d30] sm:$0xff] }
 0x761   : > { %v17079_v10 = vcombine.low %v1990_v48, %v1994_v49 }
 0x762   : > { %14585 = vmatpush1.bf16.msra.mxu1 %v17023_v56  ;;  %v17080_v56 = vcombine.high %v1990_v48, %v1994_v49  ;;  %v2039_v48 = vld [vmem:[%s24580_s2 + $0x2e98] sm:$0xff] }
 0x763   : > { %15241 = vmatpush1.bf16.msra.mxu0 %v17025_v58  ;;  %14586 = vmatprep.subr.bf16.mxu1 %v17032_v59  ;;  %v17082_v58 = vcombine.high %v1991_v12, %v1995_v53  ;;  %v1998_v59 = vld [vmem:[%s24580_s2 + $0x2d50] sm:$0xff]  ;;  %v2043_v49 = vld [vmem:[%s24580_s2 + $0x2eb8] sm:$0xff]  ;;  %v17121_v53 = vcombine.low %v2031_v42, %v2035_v37 }
 0x764   : > { %15242 = vmatprep.subr.bf16.mxu0 %v17034_v1  ;;  %v2002_v1 = vld [vmem:[%s24580_s2 + $0x2d70] sm:$0xff] }
 0x765   : > { %v17087_v14 = vcombine.low %v1998_v59, %v2002_v1 }
 0x766   : > { %14587 = vmatpush1.bf16.msra.mxu1 %v17031_v33  ;;  %v17088_v33 = vcombine.high %v1998_v59, %v2002_v1  ;;  %v2047_v59 = vld [vmem:[%s24580_s2 + $0x2ed8] sm:$0xff] }
 0x767   : > { %15243 = vmatpush1.bf16.msra.mxu0 %v17033_v5  ;;  %14588 = vmatprep.subr.bf16.mxu1 %v17040_v9  ;;  %v17090_v5 = vcombine.high %v1999_v13, %v2003_v2  ;;  %v2006_v9 = vld [vmem:[%s24580_s2 + $0x2d90] sm:$0xff]  ;;  %v2051_v1 = vld [vmem:[%s24580_s2 + $0x2ef8] sm:$0xff]  ;;  %v17129_v2 = vcombine.low %v2039_v48, %v2043_v49 }
 0x768   : > { %15244 = vmatprep.subr.bf16.mxu0 %v17042_v32  ;;  %v2010_v32 = vld [vmem:[%s24580_s2 + $0x2db0] sm:$0xff] }
 0x76a   : > { %14589 = vmatpush1.bf16.msra.mxu1 %v17039_v51  ;;  %v17096_v51 = vcombine.high %v2006_v9, %v2010_v32 }
 0x76b   : > { %15245 = vmatpush1.bf16.msra.mxu0 %v17041_v30  ;;  %14599 = vmatprep.subr.bf16.mxu1 %v17048_v21  ;;  %v17098_v30 = vcombine.high %v2007_v18, %v2011_v46  ;;  %v2014_v21 = vld [vmem:[%s24580_s2 + $0x2dd0] sm:$0xff]  ;;  %v17137_v46 = vcombine.low %v2047_v59, %v2051_v1 }
 0x76c   : > { %15255 = vmatprep.subr.bf16.mxu0 %v17050_v11  ;;  %v2018_v11 = vld [vmem:[%s24580_s2 + $0x2df0] sm:$0xff] }
 0x76d   : > { %14591 = vmatmul.mubr.bf16.vlgmr.msra.gmra.mrb[4].mxu1 %v20412_v20  ;;  %v17104_v61 = vcombine.high %v2014_v21, %v2018_v11  ;;  %v17103_v28 = vcombine.low %v2014_v21, %v2018_v11  ;;  %v2063_v21 = vld [vmem:[%s24580_s2 + $0x2f58] sm:$0xff] }
 0x76e   : > { %15247 = vmatmul.mubr.bf16.vlgmr.msra.gmra.mrb[36].mxu0 %v20412_v20  ;;  %14600 = vmatpush1.bf16.msra.mxu1 %v17047_v19  ;;  %v1983_v20 = vld [vmem:[%s24580_s2 + $0x2cd8] sm:$0xff]  ;;  %v17095_v19 = vcombine.low %v2006_v9, %v2010_v32 }
 0x76f   : > { %14631 = vmatprep.mubr.bf16.mxu1 %v20422_v45  ;;  %15256 = vmatpush1.bf16.msra.mxu0 %v17049_v25  ;;  %v17074_v44 = vcombine.high %v1983_v20, %v1987_v38  ;;  %v17073_v55 = vcombine.low %v1983_v20, %v1987_v38  ;;  %v17106_v25 = vcombine.high %v2015_v24, %v2019_v35  ;;  %v2055_v9 = vld [vmem:[%s24580_s2 + $0x2f18] sm:$0xff] }
 0x770   : > { %15287 = vmatprep.mubr.bf16.mxu0 %v20422_v45  ;;  %14601 = vmatprep.subr.bf16.mxu1 %v17056_v0  ;;  %v17063_v45 = vcombine.low %v1974_v43, %v1978_v27  ;;  %v2022_v0 = vld [vmem:[%s24580_s2 + $0x2e10] sm:$0xff]  ;;  %v2023_v27 = vld [vmem:[%s24580_s2 + $0x2e18] sm:$0xff] }
 0x771   : > { %15257 = vmatprep.subr.bf16.mxu0 %v17058_v7  ;;  %v2026_v43 = vld [vmem:[%s24580_s2 + $0x2e30] sm:$0xff]  ;;  %v2027_v7 = vld [vmem:[%s24580_s2 + $0x2e38] sm:$0xff] }
 0x772   : > { %14602 = vmatpush1.bf16.msra.mxu1 %v17055_v31  ;;  %v17112_v31 = vcombine.high %v2022_v0, %v2026_v43  ;;  %v17111_v20 = vcombine.low %v2022_v0, %v2026_v43  ;;  %v17113_v38 = vcombine.low %v2023_v27, %v2027_v7  ;;  %v2059_v32 = vld [vmem:[%s24580_s2 + $0x2f38] sm:$0xff] }
 0x773   : > { %15258 = vmatpush1.bf16.msra.mxu0 %v17057_v4  ;;  %14603 = vmatprep.subr.bf16.mxu1 %v17064_v62  ;;  %v17114_v4 = vcombine.high %v2023_v27, %v2027_v7  ;;  %v2030_v62 = vld [vmem:[%s24580_s2 + $0x2e50] sm:$0xff]  ;;  %v2067_v11 = vld [vmem:[%s24580_s2 + $0x2f78] sm:$0xff]  ;;  %v17145_v35 = vcombine.low %v2055_v9, %v2059_v32 }
 0x774   : > { %15259 = vmatprep.subr.bf16.mxu0 %v17066_v34  ;;  %v2034_v34 = vld [vmem:[%s24580_s2 + $0x2e70] sm:$0xff]  ;;  %v2071_v0 = vld [vmem:[%s24580_s2 + $0x2f98] sm:$0xff]  ;;  %v17153_v7 = vcombine.low %v2063_v21, %v2067_v11 }
 0x775   : > { %v17119_v12 = vcombine.low %v2030_v62, %v2034_v34  ;;  %v2075_v43 = vld [vmem:[%s24580_s2 + $0x2fb8] sm:$0xff] }
 0x776   : > { %14604 = vmatpush1.bf16.msra.mxu1 %v17063_v45  ;;  %v17120_v45 = vcombine.high %v2030_v62, %v2034_v34  ;;  %v2079_v62 = vld [vmem:[%s24580_s2 + $0x2fd8] sm:$0xff] }
 0x777   : > { %15260 = vmatpush1.bf16.msra.mxu0 %v17065_v40  ;;  %14605 = vmatprep.subr.bf16.mxu1 %v17072_v41  ;;  %v17122_v40 = vcombine.high %v2031_v42, %v2035_v37  ;;  %v2038_v41 = vld [vmem:[%s24580_s2 + $0x2e90] sm:$0xff]  ;;  %v2083_v34 = vld [vmem:[%s24580_s2 + $0x2ff8] sm:$0xff]  ;;  %v17161_v37 = vcombine.low %v2071_v0, %v2075_v43 }
 0x778   : > { %15261 = vmatprep.subr.bf16.mxu0 %v17074_v44  ;;  %v2042_v44 = vld [vmem:[%s24580_s2 + $0x2eb0] sm:$0xff] }
 0x779   : > { %v17127_v13 = vcombine.low %v2038_v41, %v2042_v44 }
 0x77a   : > { %14606 = vmatpush1.bf16.msra.mxu1 %v17071_v63  ;;  %v17128_v63 = vcombine.high %v2038_v41, %v2042_v44  ;;  %v2087_v41 = vld [vmem:[%s24580_s2 + $0x3018] sm:$0xff] }
 0x77b   : > { %15262 = vmatpush1.bf16.msra.mxu0 %v17073_v55  ;;  %14607 = vmatprep.subr.bf16.mxu1 %v17080_v56  ;;  %v17130_v55 = vcombine.high %v2039_v48, %v2043_v49  ;;  %v2046_v56 = vld [vmem:[%s24580_s2 + $0x2ed0] sm:$0xff]  ;;  %v2091_v44 = vld [vmem:[%s24580_s2 + $0x3038] sm:$0xff]  ;;  %v17169_v49 = vcombine.low %v2079_v62, %v2083_v34 }
 0x77c   : > { %15263 = vmatprep.subr.bf16.mxu0 %v17082_v58  ;;  %v2050_v58 = vld [vmem:[%s24580_s2 + $0x2ef0] sm:$0xff] }
 0x77d   : > { %v17135_v18 = vcombine.low %v2046_v56, %v2050_v58 }
 0x77e   : > { %14608 = vmatpush1.bf16.msra.mxu1 %v17079_v10  ;;  %v17136_v10 = vcombine.high %v2046_v56, %v2050_v58  ;;  %v2095_v58 = vld [vmem:[%s24580_s2 + $0x3058] sm:$0xff] }
 0x77f   : > { %15264 = vmatpush1.bf16.msra.mxu0 %v17081_v26  ;;  %14609 = vmatprep.subr.bf16.mxu1 %v17088_v33  ;;  %v17138_v26 = vcombine.high %v2047_v59, %v2051_v1  ;;  %v2054_v33 = vld [vmem:[%s24580_s2 + $0x2f10] sm:$0xff]  ;;  %v2099_v59 = vld [vmem:[%s24580_s2 + $0x3078] sm:$0xff]  ;;  %v17177_v1 = vcombine.low %v2087_v41, %v2091_v44 }
 0x780   : > { %15265 = vmatprep.subr.bf16.mxu0 %v17090_v5  ;;  %v2058_v5 = vld [vmem:[%s24580_s2 + $0x2f30] sm:$0xff] }
 0x781   : > { %v17143_v24 = vcombine.low %v2054_v33, %v2058_v5 }
 0x782   : > { %14610 = vmatpush1.bf16.msra.mxu1 %v17087_v14  ;;  %v17144_v14 = vcombine.high %v2054_v33, %v2058_v5  ;;  %v2103_v33 = vld [vmem:[%s24580_s2 + $0x3098] sm:$0xff] }
 0x783   : > { %15266 = vmatpush1.bf16.msra.mxu0 %v17089_v16  ;;  %14611 = vmatprep.subr.bf16.mxu1 %v17096_v51  ;;  %v17146_v16 = vcombine.high %v2055_v9, %v2059_v32  ;;  %v2062_v51 = vld [vmem:[%s24580_s2 + $0x2f50] sm:$0xff]  ;;  %v2107_v5 = vld [vmem:[%s24580_s2 + $0x30b8] sm:$0xff]  ;;  %v17185_v32 = vcombine.low %v2095_v58, %v2099_v59 }
 0x784   : > { %15267 = vmatprep.subr.bf16.mxu0 %v17098_v30  ;;  %v2066_v30 = vld [vmem:[%s24580_s2 + $0x2f70] sm:$0xff] }
 0x785   : > { %v17151_v27 = vcombine.low %v2062_v51, %v2066_v30 }
 0x786   : > { %14612 = vmatpush1.bf16.msra.mxu1 %v17095_v19  ;;  %v17152_v19 = vcombine.high %v2062_v51, %v2066_v30  ;;  %v2115_v51 = vld [vmem:[%s24580_s2 + $0x30f8] sm:$0xff]  ;;  %v17193_v30 = vcombine.low %v2103_v33, %v2107_v5 }
 0x787   : > { %15268 = vmatpush1.bf16.msra.mxu0 %v17097_v15  ;;  %14613 = vmatprep.subr.bf16.mxu1 %v17104_v61  ;;  %v17154_v15 = vcombine.high %v2063_v21, %v2067_v11  ;;  %v2070_v61 = vld [vmem:[%s24580_s2 + $0x2f90] sm:$0xff] }
 0x788   : > { %15269 = vmatprep.subr.bf16.mxu0 %v17106_v25  ;;  %v2074_v25 = vld [vmem:[%s24580_s2 + $0x2fb0] sm:$0xff] }
 0x789   : > { %v17159_v42 = vcombine.low %v2070_v61, %v2074_v25 }
 0x78a   : > { %14614 = vmatpush1.bf16.msra.mxu1 %v17103_v28  ;;  %v17160_v28 = vcombine.high %v2070_v61, %v2074_v25 }
 0x78b   : > { %15270 = vmatpush1.bf16.msra.mxu0 %v17105_v23  ;;  %14615 = vmatprep.subr.bf16.mxu1 %v17112_v31  ;;  %v17162_v23 = vcombine.high %v2071_v0, %v2075_v43  ;;  %v2078_v31 = vld [vmem:[%s24580_s2 + $0x2fd0] sm:$0xff] }
 0x78c   : > { %15271 = vmatprep.subr.bf16.mxu0 %v17114_v4  ;;  %v2082_v4 = vld [vmem:[%s24580_s2 + $0x2ff0] sm:$0xff] }
 0x78d   : > { %v17167_v48 = vcombine.low %v2078_v31, %v2082_v4 }
 0x78e   : > { %14616 = vmatpush1.bf16.msra.mxu1 %v17111_v20  ;;  %v17168_v20 = vcombine.high %v2078_v31, %v2082_v4 }
 0x78f   : > { %15272 = vmatpush1.bf16.msra.mxu0 %v17113_v38  ;;  %14617 = vmatprep.subr.bf16.mxu1 %v17120_v45  ;;  %v17170_v38 = vcombine.high %v2079_v62, %v2083_v34  ;;  %v2086_v45 = vld [vmem:[%s24580_s2 + $0x3010] sm:$0xff] }
 0x790   : > { %15273 = vmatprep.subr.bf16.mxu0 %v17122_v40  ;;  %v2090_v40 = vld [vmem:[%s24580_s2 + $0x3030] sm:$0xff] }
 0x791   : > { %v17175_v56 = vcombine.low %v2086_v45, %v2090_v40 }
 0x792   : > { %14618 = vmatpush1.bf16.msra.mxu1 %v17119_v12  ;;  %v17176_v12 = vcombine.high %v2086_v45, %v2090_v40 }
 0x793   : > { %15274 = vmatpush1.bf16.msra.mxu0 %v17121_v53  ;;  %14619 = vmatprep.subr.bf16.mxu1 %v17128_v63  ;;  %v17178_v53 = vcombine.high %v2087_v41, %v2091_v44  ;;  %v2094_v63 = vld [vmem:[%s24580_s2 + $0x3050] sm:$0xff] }
 0x794   : > { %15275 = vmatprep.subr.bf16.mxu0 %v17130_v55  ;;  %v2098_v55 = vld [vmem:[%s24580_s2 + $0x3070] sm:$0xff] }
 0x795   : > { %v17183_v9 = vcombine.low %v2094_v63, %v2098_v55 }
 0x796   : > { %14620 = vmatpush1.bf16.msra.mxu1 %v17127_v13  ;;  %v17184_v13 = vcombine.high %v2094_v63, %v2098_v55 }
 0x797   : > { %15276 = vmatpush1.bf16.msra.mxu0 %v17129_v2  ;;  %14621 = vmatprep.subr.bf16.mxu1 %v17136_v10  ;;  %v2102_v2 = vld [vmem:[%s24580_s2 + $0x3090] sm:$0xff] }
 0x798   : > { %15277 = vmatprep.subr.bf16.mxu0 %v17138_v26  ;;  %v2106_v10 = vld [vmem:[%s24580_s2 + $0x30b0] sm:$0xff]  ;;  %v17186_v26 = vcombine.high %v2095_v58, %v2099_v59 }
 0x799   : > { %v2150_v59 = vld [vmem:[%s24580_s2 + $0x3210] sm:$0xff] }
 0x79a   : > { %14622 = vmatpush1.bf16.msra.mxu1 %v17135_v18  ;;  %v17192_v18 = vcombine.high %v2102_v2, %v2106_v10 }
 0x79b   : > { %15278 = vmatpush1.bf16.msra.mxu0 %v17137_v46  ;;  %14623 = vmatprep.subr.bf16.mxu1 %v17144_v14  ;;  %v17194_v46 = vcombine.high %v2103_v33, %v2107_v5  ;;  %v2110_v14 = vld [vmem:[%s24580_s2 + $0x30d0] sm:$0xff] }
 0x79c   : > { %15279 = vmatprep.subr.bf16.mxu0 %v17146_v16  ;;  %v2114_v16 = vld [vmem:[%s24580_s2 + $0x30f0] sm:$0xff] }
 0x79d   : > { %v17200_v21 = vcombine.high %v2110_v14, %v2114_v16  ;;  %v17199_v61 = vcombine.low %v2110_v14, %v2114_v16 }
 0x79e   : > { %14624 = vmatpush1.bf16.msra.mxu1 %v17143_v24  ;;  %v2118_v24 = vld [vmem:[%s24580_s2 + $0x3110] sm:$0xff] }
 0x79f   : > { %15280 = vmatpush1.bf16.msra.mxu0 %v17145_v35  ;;  %14625 = vmatprep.subr.bf16.mxu1 %v17152_v19  ;;  %v2122_v35 = vld [vmem:[%s24580_s2 + $0x3130] sm:$0xff]  ;;  %v2119_v19 = vld [vmem:[%s24580_s2 + $0x3118] sm:$0xff] }
 0x7a0   : > { %15281 = vmatprep.subr.bf16.mxu0 %v17154_v15  ;;  %v2123_v15 = vld [vmem:[%s24580_s2 + $0x3138] sm:$0xff]  ;;  %v17208_v0 = vcombine.high %v2118_v24, %v2122_v35  ;;  %v17207_v31 = vcombine.low %v2118_v24, %v2122_v35 }
 0x7a1   : > { %v17210_v43 = vcombine.high %v2119_v19, %v2123_v15  ;;  %v17209_v4 = vcombine.low %v2119_v19, %v2123_v15 }
 0x7a2   : > { %14626 = vmatpush1.bf16.msra.mxu1 %v17151_v27  ;;  %v2126_v27 = vld [vmem:[%s24580_s2 + $0x3150] sm:$0xff] }
 0x7a3   : > { %15282 = vmatpush1.bf16.msra.mxu0 %v17153_v7  ;;  %14627 = vmatprep.subr.bf16.mxu1 %v17160_v28  ;;  %v2130_v7 = vld [vmem:[%s24580_s2 + $0x3170] sm:$0xff]  ;;  %v2127_v28 = vld [vmem:[%s24580_s2 + $0x3158] sm:$0xff] }
 0x7a4   : > { %15283 = vmatprep.subr.bf16.mxu0 %v17162_v23  ;;  %v2131_v23 = vld [vmem:[%s24580_s2 + $0x3178] sm:$0xff]  ;;  %v17216_v62 = vcombine.high %v2126_v27, %v2130_v7  ;;  %v17215_v45 = vcombine.low %v2126_v27, %v2130_v7 }
 0x7a5   : > { %v17218_v34 = vcombine.high %v2127_v28, %v2131_v23  ;;  %v17217_v40 = vcombine.low %v2127_v28, %v2131_v23 }
 0x7a6   : > { %14628 = vmatpush1.bf16.msra.mxu1 %v17159_v42  ;;  %v2134_v42 = vld [vmem:[%s24580_s2 + $0x3190] sm:$0xff] }
 0x7a7   : > { %15284 = vmatpush1.bf16.msra.mxu0 %v17161_v37  ;;  %14629 = vmatprep.subr.bf16.mxu1 %v17168_v20  ;;  %v2138_v37 = vld [vmem:[%s24580_s2 + $0x31b0] sm:$0xff]  ;;  %v2135_v20 = vld [vmem:[%s24580_s2 + $0x3198] sm:$0xff] }
 0x7a8   : > { %15285 = vmatprep.subr.bf16.mxu0 %v17170_v38  ;;  %v2139_v38 = vld [vmem:[%s24580_s2 + $0x31b8] sm:$0xff]  ;;  %v17224_v41 = vcombine.high %v2134_v42, %v2138_v37  ;;  %v17223_v63 = vcombine.low %v2134_v42, %v2138_v37 }
 0x7a9   : > { %v17226_v44 = vcombine.high %v2135_v20, %v2139_v38  ;;  %v17225_v55 = vcombine.low %v2135_v20, %v2139_v38 }
 0x7aa   : > { %14630 = vmatpush1.bf16.msra.mxu1 %v17167_v48  ;;  %v2142_v48 = vld [vmem:[%s24580_s2 + $0x31d0] sm:$0xff] }
 0x7ab   : > { %15286 = vmatpush1.bf16.msra.mxu0 %v17169_v49  ;;  %14640 = vmatprep.subr.bf16.mxu1 %v17176_v12  ;;  %v2146_v49 = vld [vmem:[%s24580_s2 + $0x31f0] sm:$0xff]  ;;  %v2143_v12 = vld [vmem:[%s24580_s2 + $0x31d8] sm:$0xff] }
 0x7ac   : > { %15296 = vmatprep.subr.bf16.mxu0 %v17178_v53  ;;  %v2147_v53 = vld [vmem:[%s24580_s2 + $0x31f8] sm:$0xff] }
 0x7ad   : > { %14632 = vmatmul.mubr.bf16.vlgmr.msra.gmra.mrb[4].mxu1 %v20616_v29  ;;  %v17234_v58 = vcombine.high %v2143_v12, %v2147_v53 }
 0x7ae   : > { %15288 = vmatmul.mubr.bf16.vlgmr.msra.gmra.mrb[36].mxu0 %v20616_v29  ;;  %14641 = vmatpush1.bf16.msra.mxu1 %v17175_v56  ;;  %v2111_v29 = vld [vmem:[%s24580_s2 + $0x30d8] sm:$0xff]  ;;  %v17232_v56 = vcombine.high %v2142_v48, %v2146_v49 }
 0x7af   : > { %14672 = vmatprep.mubr.bf16.mxu1 %v20626_v57  ;;  %15297 = vmatpush1.bf16.msra.mxu0 %v17177_v1  ;;  %v17202_v11 = vcombine.high %v2111_v29, %v2115_v51  ;;  %v17201_v25 = vcombine.low %v2111_v29, %v2115_v51  ;;  %v2154_v1 = vld [vmem:[%s24580_s2 + $0x3230] sm:$0xff] }
 0x7b0   : > { %15328 = vmatprep.mubr.bf16.mxu0 %v20626_v57  ;;  %14642 = vmatprep.subr.bf16.mxu1 %v17184_v13  ;;  %v17191_v57 = vcombine.low %v2102_v2, %v2106_v10  ;;  %v2151_v13 = vld [vmem:[%s24580_s2 + $0x3218] sm:$0xff]  ;;  %v17231_v10 = vcombine.low %v2142_v48, %v2146_v49  ;;  %v17240_v33 = vcombine.high %v2150_v59, %v2154_v1 }
 0x7b1   : > { %15298 = vmatprep.subr.bf16.mxu0 %v17186_v26  ;;  %v2155_v2 = vld [vmem:[%s24580_s2 + $0x3238] sm:$0xff]  ;;  %v17233_v26 = vcombine.low %v2143_v12, %v2147_v53  ;;  %v17239_v14 = vcombine.low %v2150_v59, %v2154_v1 }
 0x7b2   : > { %14643 = vmatpush1.bf16.msra.mxu1 %v17183_v9  ;;  %v17242_v5 = vcombine.high %v2151_v13, %v2155_v2  ;;  %v2158_v9 = vld [vmem:[%s24580_s2 + $0x3250] sm:$0xff]  ;;  %v17241_v16 = vcombine.low %v2151_v13, %v2155_v2 }
 0x7b3   : > { %15299 = vmatpush1.bf16.msra.mxu0 %v17185_v32  ;;  %14644 = vmatprep.subr.bf16.mxu1 %v17192_v18  ;;  %v2162_v32 = vld [vmem:[%s24580_s2 + $0x3270] sm:$0xff]  ;;  %v2159_v18 = vld [vmem:[%s24580_s2 + $0x3258] sm:$0xff] }
 0x7b4   : > { %15300 = vmatprep.subr.bf16.mxu0 %v17194_v46  ;;  %v2163_v46 = vld [vmem:[%s24580_s2 + $0x3278] sm:$0xff]  ;;  %v17248_v29 = vcombine.high %v2158_v9, %v2162_v32  ;;  %v17247_v24 = vcombine.low %v2158_v9, %v2162_v32 }
 0x7b5   : > { %v17250_v51 = vcombine.high %v2159_v18, %v2163_v46  ;;  %v17249_v35 = vcombine.low %v2159_v18, %v2163_v46 }
 0x7b6   : > { %14645 = vmatpush1.bf16.msra.mxu1 %v17191_v57  ;;  %v2166_v57 = vld [vmem:[%s24580_s2 + $0x3290] sm:$0xff] }
 0x7b7   : > { %15301 = vmatpush1.bf16.msra.mxu0 %v17193_v30  ;;  %14646 = vmatprep.subr.bf16.mxu1 %v17200_v21  ;;  %v2170_v30 = vld [vmem:[%s24580_s2 + $0x32b0] sm:$0xff]  ;;  %v2167_v21 = vld [vmem:[%s24580_s2 + $0x3298] sm:$0xff] }
 0x7b8   : > { %15302 = vmatprep.subr.bf16.mxu0 %v17202_v11  ;;  %v2171_v11 = vld [vmem:[%s24580_s2 + $0x32b8] sm:$0xff]  ;;  %v17256_v19 = vcombine.high %v2166_v57, %v2170_v30  ;;  %v17255_v27 = vcombine.low %v2166_v57, %v2170_v30 }
 0x7b9   : > { %v17258_v15 = vcombine.high %v2167_v21, %v2171_v11  ;;  %v17257_v7 = vcombine.low %v2167_v21, %v2171_v11 }
 0x7ba   : > { %14647 = vmatpush1.bf16.msra.mxu1 %v17199_v61  ;;  %v2174_v61 = vld [vmem:[%s24580_s2 + $0x32d0] sm:$0xff] }
 0x7bb   : > { %15303 = vmatpush1.bf16.msra.mxu0 %v17201_v25  ;;  %14648 = vmatprep.subr.bf16.mxu1 %v17208_v0  ;;  %v2178_v25 = vld [vmem:[%s24580_s2 + $0x32f0] sm:$0xff]  ;;  %v2175_v0 = vld [vmem:[%s24580_s2 + $0x32d8] sm:$0xff] }
 0x7bc   : > { %15304 = vmatprep.subr.bf16.mxu0 %v17210_v43  ;;  %v2179_v43 = vld [vmem:[%s24580_s2 + $0x32f8] sm:$0xff]  ;;  %v17264_v28 = vcombine.high %v2174_v61, %v2178_v25  ;;  %v17263_v42 = vcombine.low %v2174_v61, %v2178_v25 }
 0x7bd   : > { %v17266_v23 = vcombine.high %v2175_v0, %v2179_v43  ;;  %v17265_v37 = vcombine.low %v2175_v0, %v2179_v43  ;;  %v2227_v61 = vld [vmem:[%s24580_s2 + $0x3478] sm:$0xff]  ;;  %v2230_v43 = vld [vmem:[%s24580_s2 + $0x3490] sm:$0xff] }
 0x7be   : > { %14649 = vmatpush1.bf16.msra.mxu1 %v17207_v31  ;;  %v2182_v31 = vld [vmem:[%s24580_s2 + $0x3310] sm:$0xff] }
 0x7bf   : > { %15305 = vmatpush1.bf16.msra.mxu0 %v17209_v4  ;;  %14650 = vmatprep.subr.bf16.mxu1 %v17216_v62  ;;  %v2186_v4 = vld [vmem:[%s24580_s2 + $0x3330] sm:$0xff]  ;;  %v2183_v62 = vld [vmem:[%s24580_s2 + $0x3318] sm:$0xff] }
 0x7c0   : > { %15306 = vmatprep.subr.bf16.mxu0 %v17218_v34  ;;  %v2187_v34 = vld [vmem:[%s24580_s2 + $0x3338] sm:$0xff]  ;;  %v17272_v20 = vcombine.high %v2182_v31, %v2186_v4  ;;  %v17271_v48 = vcombine.low %v2182_v31, %v2186_v4 }
 0x7c1   : > { %v17274_v38 = vcombine.high %v2183_v62, %v2187_v34  ;;  %v17273_v49 = vcombine.low %v2183_v62, %v2187_v34 }
 0x7c2   : > { %14651 = vmatpush1.bf16.msra.mxu1 %v17215_v45  ;;  %v2190_v45 = vld [vmem:[%s24580_s2 + $0x3350] sm:$0xff] }
 0x7c3   : > { %15307 = vmatpush1.bf16.msra.mxu0 %v17217_v40  ;;  %14652 = vmatprep.subr.bf16.mxu1 %v17224_v41  ;;  %v2194_v40 = vld [vmem:[%s24580_s2 + $0x3370] sm:$0xff]  ;;  %v2191_v41 = vld [vmem:[%s24580_s2 + $0x3358] sm:$0xff] }
 0x7c4   : > { %15308 = vmatprep.subr.bf16.mxu0 %v17226_v44  ;;  %v2195_v44 = vld [vmem:[%s24580_s2 + $0x3378] sm:$0xff]  ;;  %v17280_v12 = vcombine.high %v2190_v45, %v2194_v40  ;;  %v17279_v59 = vcombine.low %v2190_v45, %v2194_v40 }
 0x7c5   : > { %v17282_v53 = vcombine.high %v2191_v41, %v2195_v44  ;;  %v17281_v1 = vcombine.low %v2191_v41, %v2195_v44  ;;  %v2246_v41 = vld [vmem:[%s24580_s2 + $0x3510] sm:$0xff] }
 0x7c6   : > { %14653 = vmatpush1.bf16.msra.mxu1 %v17223_v63  ;;  %v2198_v63 = vld [vmem:[%s24580_s2 + $0x3390] sm:$0xff] }
 0x7c7   : > { %15309 = vmatpush1.bf16.msra.mxu0 %v17225_v55  ;;  %14654 = vmatprep.subr.bf16.mxu1 %v17232_v56  ;;  %v2202_v55 = vld [vmem:[%s24580_s2 + $0x33b0] sm:$0xff]  ;;  %v2199_v56 = vld [vmem:[%s24580_s2 + $0x3398] sm:$0xff] }
 0x7c8   : > { %15310 = vmatprep.subr.bf16.mxu0 %v17234_v58  ;;  %v2203_v58 = vld [vmem:[%s24580_s2 + $0x33b8] sm:$0xff]  ;;  %v17288_v13 = vcombine.high %v2198_v63, %v2202_v55  ;;  %v17287_v9 = vcombine.low %v2198_v63, %v2202_v55  ;;  %v2250_v44 = vld [vmem:[%s24580_s2 + $0x3530] sm:$0xff] }
 0x7c9   : > { %v17290_v2 = vcombine.high %v2199_v56, %v2203_v58  ;;  %v17289_v32 = vcombine.low %v2199_v56, %v2203_v58  ;;  %v17336_v63 = vcombine.high %v2246_v41, %v2250_v44  ;;  %v2254_v56 = vld [vmem:[%s24580_s2 + $0x3550] sm:$0xff] }
 0x7ca   : > { %14655 = vmatpush1.bf16.msra.mxu1 %v17231_v10  ;;  %v2206_v10 = vld [vmem:[%s24580_s2 + $0x33d0] sm:$0xff] }
 0x7cb   : > { %15311 = vmatpush1.bf16.msra.mxu0 %v17233_v26  ;;  %14656 = vmatprep.subr.bf16.mxu1 %v17240_v33  ;;  %v2210_v26 = vld [vmem:[%s24580_s2 + $0x33f0] sm:$0xff]  ;;  %v2207_v33 = vld [vmem:[%s24580_s2 + $0x33d8] sm:$0xff] }
 0x7cc   : > { %15312 = vmatprep.subr.bf16.mxu0 %v17242_v5  ;;  %v2211_v5 = vld [vmem:[%s24580_s2 + $0x33f8] sm:$0xff]  ;;  %v17296_v18 = vcombine.high %v2206_v10, %v2210_v26  ;;  %v17295_v57 = vcombine.low %v2206_v10, %v2210_v26  ;;  %v2258_v58 = vld [vmem:[%s24580_s2 + $0x3570] sm:$0xff] }
 0x7cd   : > { %v17298_v46 = vcombine.high %v2207_v33, %v2211_v5  ;;  %v17297_v30 = vcombine.low %v2207_v33, %v2211_v5  ;;  %v17344_v10 = vcombine.high %v2254_v56, %v2258_v58  ;;  %v2262_v33 = vld [vmem:[%s24580_s2 + $0x3590] sm:$0xff] }
 0x7ce   : > { %14657 = vmatpush1.bf16.msra.mxu1 %v17239_v14  ;;  %v2214_v14 = vld [vmem:[%s24580_s2 + $0x3410] sm:$0xff] }
 0x7cf   : > { %15313 = vmatpush1.bf16.msra.mxu0 %v17241_v16  ;;  %14658 = vmatprep.subr.bf16.mxu1 %v17248_v29  ;;  %v2218_v16 = vld [vmem:[%s24580_s2 + $0x3430] sm:$0xff]  ;;  %v2215_v29 = vld [vmem:[%s24580_s2 + $0x3418] sm:$0xff] }
 0x7d0   : > { %15314 = vmatprep.subr.bf16.mxu0 %v17250_v51  ;;  %v2219_v51 = vld [vmem:[%s24580_s2 + $0x3438] sm:$0xff]  ;;  %v17304_v21 = vcombine.high %v2214_v14, %v2218_v16  ;;  %v2266_v5 = vld [vmem:[%s24580_s2 + $0x35b0] sm:$0xff] }
 0x7d1   : > { %v17306_v11 = vcombine.high %v2215_v29, %v2219_v51  ;;  %v17305_v25 = vcombine.low %v2215_v29, %v2219_v51  ;;  %v2270_v29 = vld [vmem:[%s24580_s2 + $0x35d0] sm:$0xff] }
 0x7d2   : > { %14659 = vmatpush1.bf16.msra.mxu1 %v17247_v24  ;;  %v2222_v24 = vld [vmem:[%s24580_s2 + $0x3450] sm:$0xff] }
 0x7d3   : > { %15315 = vmatpush1.bf16.msra.mxu0 %v17249_v35  ;;  %14660 = vmatprep.subr.bf16.mxu1 %v17256_v19  ;;  %v2226_v35 = vld [vmem:[%s24580_s2 + $0x3470] sm:$0xff]  ;;  %v17303_v19 = vcombine.low %v2214_v14, %v2218_v16  ;;  %v17352_v14 = vcombine.high %v2262_v33, %v2266_v5 }
 0x7d4   : > { %15316 = vmatprep.subr.bf16.mxu0 %v17258_v15  ;;  %v2223_v15 = vld [vmem:[%s24580_s2 + $0x3458] sm:$0xff]  ;;  %v17312_v0 = vcombine.high %v2222_v24, %v2226_v35  ;;  %v17311_v31 = vcombine.low %v2222_v24, %v2226_v35  ;;  %v2274_v51 = vld [vmem:[%s24580_s2 + $0x35f0] sm:$0xff] }
 0x7d5   : > { %v17313_v4 = vcombine.low %v2223_v15, %v2227_v61  ;;  %v17360_v24 = vcombine.high %v2270_v29, %v2274_v51 }
 0x7d6   : > { %14661 = vmatpush1.bf16.msra.mxu1 %v17255_v27  ;;  %v2234_v27 = vld [vmem:[%s24580_s2 + $0x34b0] sm:$0xff] }
 0x7d7   : > { %15317 = vmatpush1.bf16.msra.mxu0 %v17257_v7  ;;  %14662 = vmatprep.subr.bf16.mxu1 %v17264_v28  ;;  %v17314_v7 = vcombine.high %v2223_v15, %v2227_v61  ;;  %v2231_v28 = vld [vmem:[%s24580_s2 + $0x3498] sm:$0xff]  ;;  %v17320_v62 = vcombine.high %v2230_v43, %v2234_v27  ;;  %v2282_v15 = vld [vmem:[%s24580_s2 + $0x3630] sm:$0xff] }
 0x7d8   : > { %15318 = vmatprep.subr.bf16.mxu0 %v17266_v23  ;;  %v2235_v23 = vld [vmem:[%s24580_s2 + $0x34b8] sm:$0xff] }
 0x7d9   : > { %v17322_v34 = vcombine.high %v2231_v28, %v2235_v23  ;;  %v2279_v61 = vld [vmem:[%s24580_s2 + $0x3618] sm:$0xff] }
 0x7da   : > { %14663 = vmatpush1.bf16.msra.mxu1 %v17263_v42  ;;  %v2238_v42 = vld [vmem:[%s24580_s2 + $0x34d0] sm:$0xff] }
 0x7db   : > { %15319 = vmatpush1.bf16.msra.mxu0 %v17265_v37  ;;  %14664 = vmatprep.subr.bf16.mxu1 %v17272_v20  ;;  %v2242_v37 = vld [vmem:[%s24580_s2 + $0x34f0] sm:$0xff]  ;;  %v2243_v20 = vld [vmem:[%s24580_s2 + $0x34f8] sm:$0xff] }
 0x7dc   : > { %15320 = vmatprep.subr.bf16.mxu0 %v17274_v38  ;;  %v17321_v38 = vcombine.low %v2231_v28, %v2235_v23  ;;  %v17328_v45 = vcombine.high %v2238_v42, %v2242_v37  ;;  %v2286_v28 = vld [vmem:[%s24580_s2 + $0x3650] sm:$0xff] }
 0x7dd   : > { %v2290_v23 = vld [vmem:[%s24580_s2 + $0x3670] sm:$0xff] }
 0x7de   : > { %14665 = vmatpush1.bf16.msra.mxu1 %v17271_v48  ;;  %v2247_v48 = vld [vmem:[%s24580_s2 + $0x3518] sm:$0xff] }
 0x7df   : > { %15321 = vmatpush1.bf16.msra.mxu0 %v17273_v49  ;;  %14666 = vmatprep.subr.bf16.mxu1 %v17280_v12  ;;  %v2251_v49 = vld [vmem:[%s24580_s2 + $0x3538] sm:$0xff]  ;;  %v17327_v12 = vcombine.low %v2238_v42, %v2242_v37  ;;  %v17376_v42 = vcombine.high %v2286_v28, %v2290_v23 }
 0x7e0   : > { %15322 = vmatprep.subr.bf16.mxu0 %v17282_v53  ;;  %v17338_v55 = vcombine.high %v2247_v48, %v2251_v49 }
 0x7e2   : > { %14667 = vmatpush1.bf16.msra.mxu1 %v17279_v59  ;;  %v2255_v59 = vld [vmem:[%s24580_s2 + $0x3558] sm:$0xff] }
 0x7e3   : > { %15323 = vmatpush1.bf16.msra.mxu0 %v17281_v1  ;;  %14668 = vmatprep.subr.bf16.mxu1 %v17288_v13  ;;  %v2259_v1 = vld [vmem:[%s24580_s2 + $0x3578] sm:$0xff]  ;;  %v17335_v13 = vcombine.low %v2246_v41, %v2250_v44 }
 0x7e4   : > { %15324 = vmatprep.subr.bf16.mxu0 %v17290_v2  ;;  %v17337_v2 = vcombine.low %v2247_v48, %v2251_v49  ;;  %v17346_v26 = vcombine.high %v2255_v59, %v2259_v1  ;;  %v2302_v48 = vld [vmem:[%s24580_s2 + $0x36d0] sm:$0xff] }
 0x7e5   : > { %v2306_v49 = vld [vmem:[%s24580_s2 + $0x36f0] sm:$0xff] }
 0x7e6   : > { %14669 = vmatpush1.bf16.msra.mxu1 %v17287_v9  ;;  %v2263_v9 = vld [vmem:[%s24580_s2 + $0x3598] sm:$0xff] }
 0x7e7   : > { %15325 = vmatpush1.bf16.msra.mxu0 %v17289_v32  ;;  %14670 = vmatprep.subr.bf16.mxu1 %v17296_v18  ;;  %v2267_v32 = vld [vmem:[%s24580_s2 + $0x35b8] sm:$0xff]  ;;  %v17343_v18 = vcombine.low %v2254_v56, %v2258_v58  ;;  %v17392_v56 = vcombine.high %v2302_v48, %v2306_v49 }
 0x7e8   : > { %15326 = vmatprep.subr.bf16.mxu0 %v17298_v46  ;;  %v17345_v46 = vcombine.low %v2255_v59, %v2259_v1  ;;  %v17354_v16 = vcombine.high %v2263_v9, %v2267_v32  ;;  %v2310_v59 = vld [vmem:[%s24580_s2 + $0x3710] sm:$0xff] }
 0x7e9   : > { %v2314_v1 = vld [vmem:[%s24580_s2 + $0x3730] sm:$0xff] }
 0x7ea   : > { %14671 = vmatpush1.bf16.msra.mxu1 %v17295_v57  ;;  %v2271_v57 = vld [vmem:[%s24580_s2 + $0x35d8] sm:$0xff] }
 0x7eb   : > { %15327 = vmatpush1.bf16.msra.mxu0 %v17297_v30  ;;  %14681 = vmatprep.subr.bf16.mxu1 %v17304_v21  ;;  %v2275_v30 = vld [vmem:[%s24580_s2 + $0x35f8] sm:$0xff]  ;;  %v17351_v21 = vcombine.low %v2262_v33, %v2266_v5  ;;  %v17400_v33 = vcombine.high %v2310_v59, %v2314_v1 }
 0x7ec   : > { %15337 = vmatprep.subr.bf16.mxu0 %v17306_v11  ;;  %v17353_v11 = vcombine.low %v2263_v9, %v2267_v32  ;;  %v17362_v35 = vcombine.high %v2271_v57, %v2275_v30  ;;  %v2318_v9 = vld [vmem:[%s24580_s2 + $0x3750] sm:$0xff] }
 0x7ed   : > { %14673 = vmatmul.mubr.bf16.vlgmr.msra.gmra.mrb[4].mxu1 %v20820_v39  ;;  %v2322_v32 = vld [vmem:[%s24580_s2 + $0x3770] sm:$0xff] }
 0x7ee   : > { %15329 = vmatmul.mubr.bf16.vlgmr.msra.gmra.mrb[36].mxu0 %v20820_v39  ;;  %14682 = vmatpush1.bf16.msra.mxu1 %v17303_v19  ;;  %v2239_v39 = vld [vmem:[%s24580_s2 + $0x34d8] sm:$0xff]  ;;  %v2278_v19 = vld [vmem:[%s24580_s2 + $0x3610] sm:$0xff] }
 0x7ef   : > { %14713 = vmatprep.mubr.bf16.mxu1 %v20830_v8  ;;  %15338 = vmatpush1.bf16.msra.mxu0 %v17305_v25  ;;  %v17330_v40 = vcombine.high %v2239_v39, %v2243_v20  ;;  %v17329_v53 = vcombine.low %v2239_v39, %v2243_v20  ;;  %v2283_v25 = vld [vmem:[%s24580_s2 + $0x3638] sm:$0xff]  ;;  %v2294_v39 = vld [vmem:[%s24580_s2 + $0x3690] sm:$0xff] }
 0x7f0   : > { %15369 = vmatprep.mubr.bf16.mxu0 %v20830_v8  ;;  %14683 = vmatprep.subr.bf16.mxu1 %v17312_v0  ;;  %v17319_v8 = vcombine.low %v2230_v43, %v2234_v27  ;;  %v17359_v0 = vcombine.low %v2270_v29, %v2274_v51  ;;  %v17361_v43 = vcombine.low %v2271_v57, %v2275_v30  ;;  %v2298_v20 = vld [vmem:[%s24580_s2 + $0x36b0] sm:$0xff] }
 0x7f1   : > { %15339 = vmatprep.subr.bf16.mxu0 %v17314_v7  ;;  %v17368_v27 = vcombine.high %v2278_v19, %v2282_v15  ;;  %v17370_v7 = vcombine.high %v2279_v61, %v2283_v25  ;;  %v17384_v41 = vcombine.high %v2294_v39, %v2298_v20  ;;  %v17408_v29 = vcombine.high %v2318_v9, %v2322_v32  ;;  %v2326_v57 = vld [vmem:[%s24580_s2 + $0x3790] sm:$0xff] }
 0x7f2   : > { %14684 = vmatpush1.bf16.msra.mxu1 %v17311_v31  ;;  %v2287_v31 = vld [vmem:[%s24580_s2 + $0x3658] sm:$0xff]  ;;  %v2330_v30 = vld [vmem:[%s24580_s2 + $0x37b0] sm:$0xff] }
 0x7f3   : > { %15340 = vmatpush1.bf16.msra.mxu0 %v17313_v4  ;;  %14685 = vmatprep.subr.bf16.mxu1 %v17320_v62  ;;  %v2291_v4 = vld [vmem:[%s24580_s2 + $0x3678] sm:$0xff]  ;;  %v17367_v62 = vcombine.low %v2278_v19, %v2282_v15  ;;  %v17416_v19 = vcombine.high %v2326_v57, %v2330_v30 }
 0x7f4   : > { %15341 = vmatprep.subr.bf16.mxu0 %v17322_v34  ;;  %v17369_v34 = vcombine.low %v2279_v61, %v2283_v25  ;;  %v17378_v37 = vcombine.high %v2287_v31, %v2291_v4  ;;  %v2334_v61 = vld [vmem:[%s24580_s2 + $0x37d0] sm:$0xff] }
 0x7f5   : > { %v2338_v25 = vld [vmem:[%s24580_s2 + $0x37f0] sm:$0xff] }
 0x7f6   : > { %14686 = vmatpush1.bf16.msra.mxu1 %v17319_v8  ;;  %v2295_v8 = vld [vmem:[%s24580_s2 + $0x3698] sm:$0xff] }
 0x7f7   : > { %15342 = vmatpush1.bf16.msra.mxu0 %v17321_v38  ;;  %14687 = vmatprep.subr.bf16.mxu1 %v17328_v45  ;;  %v2299_v38 = vld [vmem:[%s24580_s2 + $0x36b8] sm:$0xff]  ;;  %v17375_v45 = vcombine.low %v2286_v28, %v2290_v23  ;;  %v17424_v28 = vcombine.high %v2334_v61, %v2338_v25 }
 0x7f8   : > { %15343 = vmatprep.subr.bf16.mxu0 %v17330_v40  ;;  %v17377_v40 = vcombine.low %v2287_v31, %v2291_v4  ;;  %v17386_v44 = vcombine.high %v2295_v8, %v2299_v38  ;;  %v2342_v31 = vld [vmem:[%s24580_s2 + $0x3810] sm:$0xff] }
 0x7f9   : > { %v2346_v4 = vld [vmem:[%s24580_s2 + $0x3830] sm:$0xff] }
 0x7fa   : > { %14688 = vmatpush1.bf16.msra.mxu1 %v17327_v12  ;;  %v2303_v12 = vld [vmem:[%s24580_s2 + $0x36d8] sm:$0xff] }
 0x7fb   : > { %15344 = vmatpush1.bf16.msra.mxu0 %v17329_v53  ;;  %14689 = vmatprep.subr.bf16.mxu1 %v17336_v63  ;;  %v2307_v53 = vld [vmem:[%s24580_s2 + $0x36f8] sm:$0xff]  ;;  %v17383_v63 = vcombine.low %v2294_v39, %v2298_v20  ;;  %v17432_v39 = vcombine.high %v2342_v31, %v2346_v4 }
 0x7fc   : > { %15345 = vmatprep.subr.bf16.mxu0 %v17338_v55  ;;  %v17385_v55 = vcombine.low %v2295_v8, %v2299_v38  ;;  %v17394_v58 = vcombine.high %v2303_v12, %v2307_v53  ;;  %v2350_v8 = vld [vmem:[%s24580_s2 + $0x3850] sm:$0xff] }
 0x7fd   : > { %v2354_v38 = vld [vmem:[%s24580_s2 + $0x3870] sm:$0xff] }
 0x7fe   : > { %14690 = vmatpush1.bf16.msra.mxu1 %v17335_v13  ;;  %v2311_v13 = vld [vmem:[%s24580_s2 + $0x3718] sm:$0xff] }
 0x7ff   : > { %15346 = vmatpush1.bf16.msra.mxu0 %v17337_v2  ;;  %14691 = vmatprep.subr.bf16.mxu1 %v17344_v10  ;;  %v2315_v2 = vld [vmem:[%s24580_s2 + $0x3738] sm:$0xff]  ;;  %v17391_v10 = vcombine.low %v2302_v48, %v2306_v49  ;;  %v17440_v48 = vcombine.high %v2350_v8, %v2354_v38  ;;  %v2358_v49 = vld [vmem:[%s24580_s2 + $0x3890] sm:$0xff] }
 0x800   : > { %15347 = vmatprep.subr.bf16.mxu0 %v17346_v26  ;;  %v17393_v26 = vcombine.low %v2303_v12, %v2307_v53  ;;  %v17402_v5 = vcombine.high %v2311_v13, %v2315_v2  ;;  %v2362_v12 = vld [vmem:[%s24580_s2 + $0x38b0] sm:$0xff] }
 0x802   : > { %14692 = vmatpush1.bf16.msra.mxu1 %v17343_v18  ;;  %v2319_v18 = vld [vmem:[%s24580_s2 + $0x3758] sm:$0xff] }
 0x803   : > { %15348 = vmatpush1.bf16.msra.mxu0 %v17345_v46  ;;  %14693 = vmatprep.subr.bf16.mxu1 %v17352_v14  ;;  %v2323_v46 = vld [vmem:[%s24580_s2 + $0x3778] sm:$0xff]  ;;  %v17399_v14 = vcombine.low %v2310_v59, %v2314_v1  ;;  %v17448_v59 = vcombine.high %v2358_v49, %v2362_v12 }
 0x804   : > { %15349 = vmatprep.subr.bf16.mxu0 %v17354_v16  ;;  %v17401_v16 = vcombine.low %v2311_v13, %v2315_v2  ;;  %v17410_v51 = vcombine.high %v2319_v18, %v2323_v46  ;;  %v2366_v13 = vld [vmem:[%s24580_s2 + $0x38d0] sm:$0xff] }
 0x805   : > { %v2370_v2 = vld [vmem:[%s24580_s2 + $0x38f0] sm:$0xff] }
 0x806   : > { %14694 = vmatpush1.bf16.msra.mxu1 %v17351_v21  ;;  %v2327_v21 = vld [vmem:[%s24580_s2 + $0x3798] sm:$0xff] }
 0x807   : > { %15350 = vmatpush1.bf16.msra.mxu0 %v17353_v11  ;;  %14695 = vmatprep.subr.bf16.mxu1 %v17360_v24  ;;  %v2331_v11 = vld [vmem:[%s24580_s2 + $0x37b8] sm:$0xff]  ;;  %v17407_v24 = vcombine.low %v2318_v9, %v2322_v32  ;;  %v2374_v9 = vld [vmem:[%s24580_s2 + $0x3910] sm:$0xff] }
 0x808   : > { %15351 = vmatprep.subr.bf16.mxu0 %v17362_v35  ;;  %v17409_v35 = vcombine.low %v2319_v18, %v2323_v46  ;;  %v17418_v15 = vcombine.high %v2327_v21, %v2331_v11  ;;  %v2378_v32 = vld [vmem:[%s24580_s2 + $0x3930] sm:$0xff]  ;;  %v2375_v18 = vld [vmem:[%s24580_s2 + $0x3918] sm:$0xff] }
 0x809   : > { %v2379_v46 = vld [vmem:[%s24580_s2 + $0x3938] sm:$0xff] }
 0x80a   : > { %14696 = vmatpush1.bf16.msra.mxu1 %v17359_v0  ;;  %v2335_v0 = vld [vmem:[%s24580_s2 + $0x37d8] sm:$0xff] }
 0x80b   : > { %15352 = vmatpush1.bf16.msra.mxu0 %v17361_v43  ;;  %14697 = vmatprep.subr.bf16.mxu1 %v17368_v27  ;;  %v2339_v43 = vld [vmem:[%s24580_s2 + $0x37f8] sm:$0xff]  ;;  %v17415_v27 = vcombine.low %v2326_v57, %v2330_v30  ;;  %v2382_v57 = vld [vmem:[%s24580_s2 + $0x3950] sm:$0xff] }
 0x80c   : > { %15353 = vmatprep.subr.bf16.mxu0 %v17370_v7  ;;  %v17417_v7 = vcombine.low %v2327_v21, %v2331_v11  ;;  %v17426_v23 = vcombine.high %v2335_v0, %v2339_v43  ;;  %v2386_v30 = vld [vmem:[%s24580_s2 + $0x3970] sm:$0xff]  ;;  %v2383_v21 = vld [vmem:[%s24580_s2 + $0x3958] sm:$0xff] }
 0x80d   : > { %v2387_v11 = vld [vmem:[%s24580_s2 + $0x3978] sm:$0xff] }
 0x80e   : > { %14698 = vmatpush1.bf16.msra.mxu1 %v17367_v62  ;;  %v2343_v62 = vld [vmem:[%s24580_s2 + $0x3818] sm:$0xff] }
 0x80f   : > { %15354 = vmatpush1.bf16.msra.mxu0 %v17369_v34  ;;  %14699 = vmatprep.subr.bf16.mxu1 %v17376_v42  ;;  %v2347_v34 = vld [vmem:[%s24580_s2 + $0x3838] sm:$0xff]  ;;  %v17423_v42 = vcombine.low %v2334_v61, %v2338_v25  ;;  %v2390_v61 = vld [vmem:[%s24580_s2 + $0x3990] sm:$0xff] }
 0x810   : > { %15355 = vmatprep.subr.bf16.mxu0 %v17378_v37  ;;  %v17425_v37 = vcombine.low %v2335_v0, %v2339_v43  ;;  %v17434_v20 = vcombine.high %v2343_v62, %v2347_v34  ;;  %v2394_v25 = vld [vmem:[%s24580_s2 + $0x39b0] sm:$0xff]  ;;  %v2391_v0 = vld [vmem:[%s24580_s2 + $0x3998] sm:$0xff] }
 0x811   : > { %v2395_v43 = vld [vmem:[%s24580_s2 + $0x39b8] sm:$0xff] }
 0x812   : > { %14700 = vmatpush1.bf16.msra.mxu1 %v17375_v45  ;;  %v17431_v45 = vcombine.low %v2342_v31, %v2346_v4  ;;  %v2398_v31 = vld [vmem:[%s24580_s2 + $0x39d0] sm:$0xff] }
 0x813   : > { %15356 = vmatpush1.bf16.msra.mxu0 %v17377_v40  ;;  %14701 = vmatprep.subr.bf16.mxu1 %v17384_v41  ;;  %v2351_v40 = vld [vmem:[%s24580_s2 + $0x3858] sm:$0xff]  ;;  %v2402_v4 = vld [vmem:[%s24580_s2 + $0x39f0] sm:$0xff] }
 0x814   : > { %15357 = vmatprep.subr.bf16.mxu0 %v17386_v44  ;;  %v2355_v41 = vld [vmem:[%s24580_s2 + $0x3878] sm:$0xff]  ;;  %v17433_v44 = vcombine.low %v2343_v62, %v2347_v34 }
 0x815   : > { %v17442_v53 = vcombine.high %v2351_v40, %v2355_v41  ;;  %v2399_v62 = vld [vmem:[%s24580_s2 + $0x39d8] sm:$0xff] }
 0x816   : > { %14702 = vmatpush1.bf16.msra.mxu1 %v17383_v63  ;;  %v2359_v63 = vld [vmem:[%s24580_s2 + $0x3898] sm:$0xff] }
 0x817   : > { %15358 = vmatpush1.bf16.msra.mxu0 %v17385_v55  ;;  %14703 = vmatprep.subr.bf16.mxu1 %v17392_v56  ;;  %v2363_v55 = vld [vmem:[%s24580_s2 + $0x38b8] sm:$0xff]  ;;  %v17439_v56 = vcombine.low %v2350_v8, %v2354_v38  ;;  %v2406_v8 = vld [vmem:[%s24580_s2 + $0x3a10] sm:$0xff] }
 0x818   : > { %15359 = vmatprep.subr.bf16.mxu0 %v17394_v58  ;;  %v17441_v58 = vcombine.low %v2351_v40, %v2355_v41  ;;  %v17450_v1 = vcombine.high %v2359_v63, %v2363_v55  ;;  %v2403_v34 = vld [vmem:[%s24580_s2 + $0x39f8] sm:$0xff]  ;;  %v2410_v38 = vld [vmem:[%s24580_s2 + $0x3a30] sm:$0xff]  ;;  %v17487_v41 = vcombine.low %v2398_v31, %v2402_v4 }
 0x819   : > { %v2411_v40 = vld [vmem:[%s24580_s2 + $0x3a38] sm:$0xff] }
 0x81a   : > { %14704 = vmatpush1.bf16.msra.mxu1 %v17391_v10  ;;  %v2371_v10 = vld [vmem:[%s24580_s2 + $0x38f8] sm:$0xff] }
 0x81b   : > { %15360 = vmatpush1.bf16.msra.mxu0 %v17393_v26  ;;  %14705 = vmatprep.subr.bf16.mxu1 %v17400_v33  ;;  %v17449_v26 = vcombine.low %v2359_v63, %v2363_v55  ;;  %v17456_v33 = vcombine.high %v2366_v13, %v2370_v2  ;;  %v2415_v63 = vld [vmem:[%s24580_s2 + $0x3a58] sm:$0xff] }
 0x81c   : > { %15361 = vmatprep.subr.bf16.mxu0 %v17402_v5  ;;  %v2419_v55 = vld [vmem:[%s24580_s2 + $0x3a78] sm:$0xff] }
 0x81e   : > { %14706 = vmatpush1.bf16.msra.mxu1 %v17399_v14  ;;  %v17455_v14 = vcombine.low %v2366_v13, %v2370_v2  ;;  %v2422_v13 = vld [vmem:[%s24580_s2 + $0x3a90] sm:$0xff] }
 0x81f   : > { %15362 = vmatpush1.bf16.msra.mxu0 %v17401_v16  ;;  %14707 = vmatprep.subr.bf16.mxu1 %v17408_v29  ;;  %v17464_v29 = vcombine.high %v2374_v9, %v2378_v32  ;;  %v2426_v2 = vld [vmem:[%s24580_s2 + $0x3ab0] sm:$0xff] }
 0x820   : > { %15363 = vmatprep.subr.bf16.mxu0 %v17410_v51  ;;  %v17466_v51 = vcombine.high %v2375_v18, %v2379_v46 }
 0x822   : > { %14708 = vmatpush1.bf16.msra.mxu1 %v17407_v24  ;;  %v17463_v24 = vcombine.low %v2374_v9, %v2378_v32  ;;  %v2430_v9 = vld [vmem:[%s24580_s2 + $0x3ad0] sm:$0xff] }
 0x823   : > { %15364 = vmatpush1.bf16.msra.mxu0 %v17409_v35  ;;  %14709 = vmatprep.subr.bf16.mxu1 %v17416_v19  ;;  %v17465_v35 = vcombine.low %v2375_v18, %v2379_v46  ;;  %v17472_v19 = vcombine.high %v2382_v57, %v2386_v30  ;;  %v2434_v32 = vld [vmem:[%s24580_s2 + $0x3af0] sm:$0xff]  ;;  %v2431_v18 = vld [vmem:[%s24580_s2 + $0x3ad8] sm:$0xff] }
 0x824   : > { %15365 = vmatprep.subr.bf16.mxu0 %v17418_v15  ;;  %v17474_v15 = vcombine.high %v2383_v21, %v2387_v11  ;;  %v2435_v46 = vld [vmem:[%s24580_s2 + $0x3af8] sm:$0xff] }
 0x826   : > { %14710 = vmatpush1.bf16.msra.mxu1 %v17415_v27  ;;  %v17471_v27 = vcombine.low %v2382_v57, %v2386_v30  ;;  %v2438_v57 = vld [vmem:[%s24580_s2 + $0x3b10] sm:$0xff] }
 0x827   : > { %15366 = vmatpush1.bf16.msra.mxu0 %v17417_v7  ;;  %14711 = vmatprep.subr.bf16.mxu1 %v17424_v28  ;;  %v17473_v7 = vcombine.low %v2383_v21, %v2387_v11  ;;  %v17480_v28 = vcombine.high %v2390_v61, %v2394_v25  ;;  %v2442_v30 = vld [vmem:[%s24580_s2 + $0x3b30] sm:$0xff]  ;;  %v2439_v21 = vld [vmem:[%s24580_s2 + $0x3b18] sm:$0xff] }
 0x828   : > { %15367 = vmatprep.subr.bf16.mxu0 %v17426_v23  ;;  %v17482_v23 = vcombine.high %v2391_v0, %v2395_v43  ;;  %v2443_v11 = vld [vmem:[%s24580_s2 + $0x3b38] sm:$0xff] }
 0x82a   : > { %14712 = vmatpush1.bf16.msra.mxu1 %v17423_v42  ;;  %v17479_v42 = vcombine.low %v2390_v61, %v2394_v25  ;;  %v2446_v61 = vld [vmem:[%s24580_s2 + $0x3b50] sm:$0xff] }
 0x82b   : > { %15368 = vmatpush1.bf16.msra.mxu0 %v17425_v37  ;;  %14722 = vmatprep.subr.bf16.mxu1 %v17432_v39  ;;  %v17481_v37 = vcombine.low %v2391_v0, %v2395_v43  ;;  %v17488_v39 = vcombine.high %v2398_v31, %v2402_v4  ;;  %v2450_v25 = vld [vmem:[%s24580_s2 + $0x3b70] sm:$0xff]  ;;  %v2447_v0 = vld [vmem:[%s24580_s2 + $0x3b58] sm:$0xff] }
 0x82c   : > { %15378 = vmatprep.subr.bf16.mxu0 %v17434_v20  ;;  %v17490_v20 = vcombine.high %v2399_v62, %v2403_v34  ;;  %v2451_v43 = vld [vmem:[%s24580_s2 + $0x3b78] sm:$0xff]  ;;  %v2454_v31 = vld [vmem:[%s24580_s2 + $0x3b90] sm:$0xff] }
 0x82d   : > { %14714 = vmatmul.mubr.bf16.vlgmr.msra.gmra.mrb[4].mxu1 %v21024_v52  ;;  %v2458_v4 = vld [vmem:[%s24580_s2 + $0x3bb0] sm:$0xff] }
 0x82e   : > { %15370 = vmatmul.mubr.bf16.vlgmr.msra.gmra.mrb[36].mxu0 %v21024_v52  ;;  %14723 = vmatpush1.bf16.msra.mxu1 %v17431_v45  ;;  %v2367_v52 = vld [vmem:[%s24580_s2 + $0x38d8] sm:$0xff] }
 0x82f   : > { %14754 = vmatprep.mubr.bf16.mxu1 %v21034_v22  ;;  %15379 = vmatpush1.bf16.msra.mxu0 %v17433_v44  ;;  %v17458_v5 = vcombine.high %v2367_v52, %v2371_v10  ;;  %v17457_v16 = vcombine.low %v2367_v52, %v2371_v10  ;;  %v2407_v45 = vld [vmem:[%s24580_s2 + $0x3a18] sm:$0xff]  ;;  %v17489_v44 = vcombine.low %v2399_v62, %v2403_v34 }
 0x830   : > { %15410 = vmatprep.mubr.bf16.mxu0 %v21034_v22  ;;  %14724 = vmatprep.subr.bf16.mxu1 %v17440_v48  ;;  %v17447_v22 = vcombine.low %v2358_v49, %v2362_v12  ;;  %v17496_v48 = vcombine.high %v2406_v8, %v2410_v38  ;;  %v17498_v49 = vcombine.high %v2407_v45, %v2411_v40  ;;  %v2414_v12 = vld [vmem:[%s24580_s2 + $0x3a50] sm:$0xff]  ;;  %v2423_v52 = vld [vmem:[%s24580_s2 + $0x3a98] sm:$0xff] }
 0x831   : > { %15380 = vmatprep.subr.bf16.mxu0 %v17442_v53  ;;  %v2418_v53 = vld [vmem:[%s24580_s2 + $0x3a70] sm:$0xff]  ;;  %v2427_v10 = vld [vmem:[%s24580_s2 + $0x3ab8] sm:$0xff] }
 0x832   : > { %14725 = vmatpush1.bf16.msra.mxu1 %v17439_v56  ;;  %v17495_v56 = vcombine.low %v2406_v8, %v2410_v38  ;;  %v2455_v62 = vld [vmem:[%s24580_s2 + $0x3b98] sm:$0xff]  ;;  %v2462_v8 = vld [vmem:[%s24580_s2 + $0x3bd0] sm:$0xff] }
 0x833   : > { %15381 = vmatpush1.bf16.msra.mxu0 %v17441_v58  ;;  %14726 = vmatprep.subr.bf16.mxu1 %v17448_v59  ;;  %v17497_v58 = vcombine.low %v2407_v45, %v2411_v40  ;;  %v17504_v59 = vcombine.high %v2414_v12, %v2418_v53  ;;  %v2459_v34 = vld [vmem:[%s24580_s2 + $0x3bb8] sm:$0xff]  ;;  %v2466_v38 = vld [vmem:[%s24580_s2 + $0x3bf0] sm:$0xff] }
 0x834   : > { %15382 = vmatprep.subr.bf16.mxu0 %v17450_v1  ;;  %v17506_v1 = vcombine.high %v2415_v63, %v2419_v55  ;;  %v2463_v45 = vld [vmem:[%s24580_s2 + $0x3bd8] sm:$0xff] }
 0x835   : > { %v2467_v40 = vld [vmem:[%s24580_s2 + $0x3bf8] sm:$0xff] }
 0x836   : > { %14727 = vmatpush1.bf16.msra.mxu1 %v17447_v22  ;;  %v17503_v22 = vcombine.low %v2414_v12, %v2418_v53  ;;  %v2470_v12 = vld [vmem:[%s24580_s2 + $0x3c10] sm:$0xff] }
 0x837   : > { %15383 = vmatpush1.bf16.msra.mxu0 %v17449_v26  ;;  %14728 = vmatprep.subr.bf16.mxu1 %v17456_v33  ;;  %v17505_v26 = vcombine.low %v2415_v63, %v2419_v55  ;;  %v17512_v33 = vcombine.high %v2422_v13, %v2426_v2  ;;  %v2474_v53 = vld [vmem:[%s24580_s2 + $0x3c30] sm:$0xff]  ;;  %v2471_v63 = vld [vmem:[%s24580_s2 + $0x3c18] sm:$0xff] }
 0x838   : > { %15384 = vmatprep.subr.bf16.mxu0 %v17458_v5  ;;  %v17514_v5 = vcombine.high %v2423_v52, %v2427_v10  ;;  %v2475_v55 = vld [vmem:[%s24580_s2 + $0x3c38] sm:$0xff] }
 0x83a   : > { %14729 = vmatpush1.bf16.msra.mxu1 %v17455_v14  ;;  %v17511_v14 = vcombine.low %v2422_v13, %v2426_v2  ;;  %v2478_v13 = vld [vmem:[%s24580_s2 + $0x3c50] sm:$0xff] }
 0x83b   : > { %15385 = vmatpush1.bf16.msra.mxu0 %v17457_v16  ;;  %14730 = vmatprep.subr.bf16.mxu1 %v17464_v29  ;;  %v17513_v16 = vcombine.low %v2423_v52, %v2427_v10  ;;  %v17520_v29 = vcombine.high %v2430_v9, %v2434_v32  ;;  %v2482_v2 = vld [vmem:[%s24580_s2 + $0x3c70] sm:$0xff]  ;;  %v17559_v52 = vcombine.low %v2470_v12, %v2474_v53  ;;  %v2479_v10 = vld [vmem:[%s24580_s2 + $0x3c58] sm:$0xff] }
 0x83c   : > { %15386 = vmatprep.subr.bf16.mxu0 %v17466_v51  ;;  %v17522_v51 = vcombine.high %v2431_v18, %v2435_v46 }
 0x83e   : > { %14731 = vmatpush1.bf16.msra.mxu1 %v17463_v24  ;;  %v17519_v24 = vcombine.low %v2430_v9, %v2434_v32  ;;  %v2490_v9 = vld [vmem:[%s24580_s2 + $0x3cb0] sm:$0xff] }
 0x83f   : > { %15387 = vmatpush1.bf16.msra.mxu0 %v17465_v35  ;;  %14732 = vmatprep.subr.bf16.mxu1 %v17472_v19  ;;  %v17521_v35 = vcombine.low %v2431_v18, %v2435_v46  ;;  %v17528_v19 = vcombine.high %v2438_v57, %v2442_v30  ;;  %v2487_v18 = vld [vmem:[%s24580_s2 + $0x3c98] sm:$0xff] }
 0x840   : > { %15388 = vmatprep.subr.bf16.mxu0 %v17474_v15  ;;  %v17530_v15 = vcombine.high %v2439_v21, %v2443_v11  ;;  %v2491_v46 = vld [vmem:[%s24580_s2 + $0x3cb8] sm:$0xff] }
 0x842   : > { %14733 = vmatpush1.bf16.msra.mxu1 %v17471_v27  ;;  %v17527_v27 = vcombine.low %v2438_v57, %v2442_v30  ;;  %v2494_v57 = vld [vmem:[%s24580_s2 + $0x3cd0] sm:$0xff] }
 0x843   : > { %15389 = vmatpush1.bf16.msra.mxu0 %v17473_v7  ;;  %14734 = vmatprep.subr.bf16.mxu1 %v17480_v28  ;;  %v17529_v7 = vcombine.low %v2439_v21, %v2443_v11  ;;  %v17536_v28 = vcombine.high %v2446_v61, %v2450_v25  ;;  %v2498_v30 = vld [vmem:[%s24580_s2 + $0x3cf0] sm:$0xff]  ;;  %v2499_v21 = vld [vmem:[%s24580_s2 + $0x3cf8] sm:$0xff]  ;;  %v17577_v11 = vcombine.low %v2487_v18, %v2491_v46 }
 0x844   : > { %15390 = vmatprep.subr.bf16.mxu0 %v17482_v23  ;;  %v17538_v23 = vcombine.high %v2447_v0, %v2451_v43 }
 0x846   : > { %14735 = vmatpush1.bf16.msra.mxu1 %v17479_v42  ;;  %v17535_v42 = vcombine.low %v2446_v61, %v2450_v25  ;;  %v2503_v61 = vld [vmem:[%s24580_s2 + $0x3d18] sm:$0xff] }
 0x847   : > { %15391 = vmatpush1.bf16.msra.mxu0 %v17481_v37  ;;  %14736 = vmatprep.subr.bf16.mxu1 %v17488_v39  ;;  %v17537_v37 = vcombine.low %v2447_v0, %v2451_v43  ;;  %v17544_v39 = vcombine.high %v2454_v31, %v2458_v4  ;;  %v2507_v25 = vld [vmem:[%s24580_s2 + $0x3d38] sm:$0xff]  ;;  %v17583_v0 = vcombine.low %v2494_v57, %v2498_v30 }
 0x848   : > { %15392 = vmatprep.subr.bf16.mxu0 %v17490_v20  ;;  %v17546_v20 = vcombine.high %v2455_v62, %v2459_v34 }
 0x84a   : > { %14737 = vmatpush1.bf16.msra.mxu1 %v17487_v41  ;;  %v17543_v41 = vcombine.low %v2454_v31, %v2458_v4  ;;  %v2511_v31 = vld [vmem:[%s24580_s2 + $0x3d58] sm:$0xff] }
 0x84b   : > { %15393 = vmatpush1.bf16.msra.mxu0 %v17489_v44  ;;  %14738 = vmatprep.subr.bf16.mxu1 %v17496_v48  ;;  %v17545_v44 = vcombine.low %v2455_v62, %v2459_v34  ;;  %v17552_v48 = vcombine.high %v2462_v8, %v2466_v38  ;;  %v2515_v4 = vld [vmem:[%s24580_s2 + $0x3d78] sm:$0xff]  ;;  %v17593_v34 = vcombine.low %v2503_v61, %v2507_v25 }
 0x84c   : > { %15394 = vmatprep.subr.bf16.mxu0 %v17498_v49  ;;  %v17554_v49 = vcombine.high %v2463_v45, %v2467_v40 }
 0x84e   : > { %14739 = vmatpush1.bf16.msra.mxu1 %v17495_v56  ;;  %v17551_v56 = vcombine.low %v2462_v8, %v2466_v38  ;;  %v2519_v8 = vld [vmem:[%s24580_s2 + $0x3d98] sm:$0xff] }
 0x84f   : > { %15395 = vmatpush1.bf16.msra.mxu0 %v17497_v58  ;;  %14740 = vmatprep.subr.bf16.mxu1 %v17504_v59  ;;  %v17553_v58 = vcombine.low %v2463_v45, %v2467_v40  ;;  %v17560_v59 = vcombine.high %v2470_v12, %v2474_v53  ;;  %v2523_v38 = vld [vmem:[%s24580_s2 + $0x3db8] sm:$0xff]  ;;  %v17601_v40 = vcombine.low %v2511_v31, %v2515_v4 }
 0x850   : > { %15396 = vmatprep.subr.bf16.mxu0 %v17506_v1  ;;  %v17562_v1 = vcombine.high %v2471_v63, %v2475_v55  ;;  %v2527_v12 = vld [vmem:[%s24580_s2 + $0x3dd8] sm:$0xff] }
 0x851   : > { %v2531_v53 = vld [vmem:[%s24580_s2 + $0x3df8] sm:$0xff] }
 0x852   : > { %14741 = vmatpush1.bf16.msra.mxu1 %v17503_v22  ;;  %v2483_v22 = vld [vmem:[%s24580_s2 + $0x3c78] sm:$0xff] }
 0x853   : > { %15397 = vmatpush1.bf16.msra.mxu0 %v17505_v26  ;;  %14742 = vmatprep.subr.bf16.mxu1 %v17512_v33  ;;  %v17561_v26 = vcombine.low %v2471_v63, %v2475_v55  ;;  %v17568_v33 = vcombine.high %v2478_v13, %v2482_v2  ;;  %v17570_v32 = vcombine.high %v2479_v10, %v2483_v22 }
 0x854   : > { %15398 = vmatprep.subr.bf16.mxu0 %v17514_v5  ;;  %v2486_v5 = vld [vmem:[%s24580_s2 + $0x3c90] sm:$0xff]  ;;  %v17609_v55 = vcombine.low %v2519_v8, %v2523_v38 }
 0x856   : > { %14743 = vmatpush1.bf16.msra.mxu1 %v17511_v14  ;;  %v17567_v14 = vcombine.low %v2478_v13, %v2482_v2  ;;  %v2535_v13 = vld [vmem:[%s24580_s2 + $0x3e18] sm:$0xff] }
 0x857   : > { %15399 = vmatpush1.bf16.msra.mxu0 %v17513_v16  ;;  %14744 = vmatprep.subr.bf16.mxu1 %v17520_v29  ;;  %v17569_v16 = vcombine.low %v2479_v10, %v2483_v22  ;;  %v17576_v29 = vcombine.high %v2486_v5, %v2490_v9  ;;  %v2539_v2 = vld [vmem:[%s24580_s2 + $0x3e38] sm:$0xff]  ;;  %v17617_v10 = vcombine.low %v2527_v12, %v2531_v53 }
 0x858   : > { %15400 = vmatprep.subr.bf16.mxu0 %v17522_v51  ;;  %v17578_v51 = vcombine.high %v2487_v18, %v2491_v46  ;;  %v17625_v46 = vcombine.low %v2535_v13, %v2539_v2 }
 0x85a   : > { %14745 = vmatpush1.bf16.msra.mxu1 %v17519_v24  ;;  %v17584_v24 = vcombine.high %v2494_v57, %v2498_v30  ;;  %v2551_v57 = vld [vmem:[%s24580_s2 + $0x3e98] sm:$0xff] }
 0x85b   : > { %15401 = vmatpush1.bf16.msra.mxu0 %v17521_v35  ;;  %14746 = vmatprep.subr.bf16.mxu1 %v17528_v19  ;;  %v2502_v19 = vld [vmem:[%s24580_s2 + $0x3d10] sm:$0xff]  ;;  %v2555_v30 = vld [vmem:[%s24580_s2 + $0x3eb8] sm:$0xff] }
 0x85c   : > { %15402 = vmatprep.subr.bf16.mxu0 %v17530_v15  ;;  %v2506_v15 = vld [vmem:[%s24580_s2 + $0x3d30] sm:$0xff] }
 0x85d   : > { %v17591_v62 = vcombine.low %v2502_v19, %v2506_v15 }
 0x85e   : > { %14747 = vmatpush1.bf16.msra.mxu1 %v17527_v27  ;;  %v17592_v27 = vcombine.high %v2502_v19, %v2506_v15  ;;  %v2559_v19 = vld [vmem:[%s24580_s2 + $0x3ed8] sm:$0xff] }
 0x85f   : > { %15403 = vmatpush1.bf16.msra.mxu0 %v17529_v7  ;;  %14748 = vmatprep.subr.bf16.mxu1 %v17536_v28  ;;  %v17594_v7 = vcombine.high %v2503_v61, %v2507_v25  ;;  %v2510_v28 = vld [vmem:[%s24580_s2 + $0x3d50] sm:$0xff]  ;;  %v2563_v15 = vld [vmem:[%s24580_s2 + $0x3ef8] sm:$0xff]  ;;  %v17641_v25 = vcombine.low %v2551_v57, %v2555_v30 }
 0x860   : > { %15404 = vmatprep.subr.bf16.mxu0 %v17538_v23  ;;  %v2514_v23 = vld [vmem:[%s24580_s2 + $0x3d70] sm:$0xff] }
 0x861   : > { %v17599_v45 = vcombine.low %v2510_v28, %v2514_v23 }
 0x862   : > { %14749 = vmatpush1.bf16.msra.mxu1 %v17535_v42  ;;  %v17600_v42 = vcombine.high %v2510_v28, %v2514_v23  ;;  %v2567_v28 = vld [vmem:[%s24580_s2 + $0x3f18] sm:$0xff] }
 0x863   : > { %15405 = vmatpush1.bf16.msra.mxu0 %v17537_v37  ;;  %14750 = vmatprep.subr.bf16.mxu1 %v17544_v39  ;;  %v17602_v37 = vcombine.high %v2511_v31, %v2515_v4  ;;  %v2518_v39 = vld [vmem:[%s24580_s2 + $0x3d90] sm:$0xff]  ;;  %v2571_v23 = vld [vmem:[%s24580_s2 + $0x3f38] sm:$0xff]  ;;  %v17649_v4 = vcombine.low %v2559_v19, %v2563_v15 }
 0x864   : > { %15406 = vmatprep.subr.bf16.mxu0 %v17546_v20  ;;  %v2522_v20 = vld [vmem:[%s24580_s2 + $0x3db0] sm:$0xff] }
 0x865   : > { %v17607_v63 = vcombine.low %v2518_v39, %v2522_v20 }
 0x866   : > { %14751 = vmatpush1.bf16.msra.mxu1 %v17543_v41  ;;  %v17608_v41 = vcombine.high %v2518_v39, %v2522_v20  ;;  %v2575_v39 = vld [vmem:[%s24580_s2 + $0x3f58] sm:$0xff] }
 0x867   : > { %15407 = vmatpush1.bf16.msra.mxu0 %v17545_v44  ;;  %14752 = vmatprep.subr.bf16.mxu1 %v17552_v48  ;;  %v17610_v44 = vcombine.high %v2519_v8, %v2523_v38  ;;  %v2526_v48 = vld [vmem:[%s24580_s2 + $0x3dd0] sm:$0xff]  ;;  %v2579_v20 = vld [vmem:[%s24580_s2 + $0x3f78] sm:$0xff]  ;;  %v17657_v38 = vcombine.low %v2567_v28, %v2571_v23 }
 0x868   : > { %15408 = vmatprep.subr.bf16.mxu0 %v17554_v49  ;;  %v2530_v49 = vld [vmem:[%s24580_s2 + $0x3df0] sm:$0xff] }
 0x86a   : > { %14753 = vmatpush1.bf16.msra.mxu1 %v17551_v56  ;;  %v17616_v56 = vcombine.high %v2526_v48, %v2530_v49 }
 0x86b   : > { %15409 = vmatpush1.bf16.msra.mxu0 %v17553_v58  ;;  %14763 = vmatprep.subr.bf16.mxu1 %v17560_v59  ;;  %v17618_v58 = vcombine.high %v2527_v12, %v2531_v53  ;;  %v2534_v59 = vld [vmem:[%s24580_s2 + $0x3e10] sm:$0xff]  ;;  %v17665_v53 = vcombine.low %v2575_v39, %v2579_v20 }
 0x86c   : > { %15419 = vmatprep.subr.bf16.mxu0 %v17562_v1  ;;  %v2538_v1 = vld [vmem:[%s24580_s2 + $0x3e30] sm:$0xff] }
 0x86d   : > { %14755 = vmatmul.mubr.bf16.vlgmr.msra.gmra.mrb[4].mxu1 %v21228_v3  ;;  %v17624_v22 = vcombine.high %v2534_v59, %v2538_v1  ;;  %v17623_v18 = vcombine.low %v2534_v59, %v2538_v1  ;;  %v2591_v59 = vld [vmem:[%s24580_s2 + $0x3fd8] sm:$0xff] }
 0x86e   : > { %15411 = vmatmul.mubr.bf16.vlgmr.msra.gmra.mrb[36].mxu0 %v21228_v3  ;;  %14764 = vmatpush1.bf16.msra.mxu1 %v17559_v52  ;;  %v2495_v3 = vld [vmem:[%s24580_s2 + $0x3cd8] sm:$0xff]  ;;  %v17615_v52 = vcombine.low %v2526_v48, %v2530_v49 }
 0x86f   : > { %14795 = vmatprep.mubr.bf16.mxu1 %v21238_v36  ;;  %15420 = vmatpush1.bf16.msra.mxu0 %v17561_v26  ;;  %v17586_v35 = vcombine.high %v2495_v3, %v2499_v21  ;;  %v17585_v43 = vcombine.low %v2495_v3, %v2499_v21  ;;  %v17626_v26 = vcombine.high %v2535_v13, %v2539_v2  ;;  %v2583_v48 = vld [vmem:[%s24580_s2 + $0x3f98] sm:$0xff] }
 0x870   : > { %15451 = vmatprep.mubr.bf16.mxu0 %v21238_v36  ;;  %14765 = vmatprep.subr.bf16.mxu1 %v17568_v33  ;;  %v17575_v36 = vcombine.low %v2486_v5, %v2490_v9  ;;  %v2542_v33 = vld [vmem:[%s24580_s2 + $0x3e50] sm:$0xff]  ;;  %v2543_v9 = vld [vmem:[%s24580_s2 + $0x3e58] sm:$0xff] }
 0x871   : > { %15421 = vmatprep.subr.bf16.mxu0 %v17570_v32  ;;  %v2546_v5 = vld [vmem:[%s24580_s2 + $0x3e70] sm:$0xff]  ;;  %v2547_v32 = vld [vmem:[%s24580_s2 + $0x3e78] sm:$0xff] }
 0x872   : > { %14766 = vmatpush1.bf16.msra.mxu1 %v17567_v14  ;;  %v17632_v14 = vcombine.high %v2542_v33, %v2546_v5  ;;  %v17631_v3 = vcombine.low %v2542_v33, %v2546_v5  ;;  %v17633_v21 = vcombine.low %v2543_v9, %v2547_v32  ;;  %v2587_v49 = vld [vmem:[%s24580_s2 + $0x3fb8] sm:$0xff] }
 0x873   : > { %15422 = vmatpush1.bf16.msra.mxu0 %v17569_v16  ;;  %14767 = vmatprep.subr.bf16.mxu1 %v17576_v29  ;;  %v17634_v16 = vcombine.high %v2543_v9, %v2547_v32  ;;  %v2550_v29 = vld [vmem:[%s24580_s2 + $0x3e90] sm:$0xff]  ;;  %v2595_v1 = vld [vmem:[%s24580_s2 + $0x3ff8] sm:$0xff]  ;;  %v17673_v2 = vcombine.low %v2583_v48, %v2587_v49 }
 0x874   : > { %15423 = vmatprep.subr.bf16.mxu0 %v17578_v51  ;;  %v2554_v51 = vld [vmem:[%s24580_s2 + $0x3eb0] sm:$0xff] }
 0x875   : > { %v17639_v61 = vcombine.low %v2550_v29, %v2554_v51 }
 0x876   : > { %14768 = vmatpush1.bf16.msra.mxu1 %v17575_v36  ;;  %v17640_v36 = vcombine.high %v2550_v29, %v2554_v51 }
 0x877   : > { %15424 = vmatpush1.bf16.msra.mxu0 %v17577_v11  ;;  %14769 = vmatprep.subr.bf16.mxu1 %v17584_v24  ;;  %v17642_v11 = vcombine.high %v2551_v57, %v2555_v30  ;;  %v2558_v24 = vld [vmem:[%s24580_s2 + $0x3ed0] sm:$0xff] }
 0x878   : > { %15425 = vmatprep.subr.bf16.mxu0 %v17586_v35  ;;  %v2562_v35 = vld [vmem:[%s24580_s2 + $0x3ef0] sm:$0xff] }
 0x879   : > { %v17647_v31 = vcombine.low %v2558_v24, %v2562_v35 }
 0x87a   : > { %14770 = vmatpush1.bf16.msra.mxu1 %v17583_v0  ;;  %v17648_v0 = vcombine.high %v2558_v24, %v2562_v35 }
 0x87b   : > { %15426 = vmatpush1.bf16.msra.mxu0 %v17585_v43  ;;  %14771 = vmatprep.subr.bf16.mxu1 %v17592_v27  ;;  %v17650_v43 = vcombine.high %v2559_v19, %v2563_v15  ;;  %v2566_v27 = vld [vmem:[%s24580_s2 + $0x3f10] sm:$0xff] }
 0x87c   : > { %15427 = vmatprep.subr.bf16.mxu0 %v17594_v7  ;;  %v2570_v7 = vld [vmem:[%s24580_s2 + $0x3f30] sm:$0xff] }
 0x87d   : > { %v17655_v8 = vcombine.low %v2566_v27, %v2570_v7 }
 0x87e   : > { %14772 = vmatpush1.bf16.msra.mxu1 %v17591_v62  ;;  %v17656_v62 = vcombine.high %v2566_v27, %v2570_v7 }
 0x87f   : > { %15428 = vmatpush1.bf16.msra.mxu0 %v17593_v34  ;;  %14773 = vmatprep.subr.bf16.mxu1 %v17600_v42  ;;  %v17658_v34 = vcombine.high %v2567_v28, %v2571_v23  ;;  %v2574_v42 = vld [vmem:[%s24580_s2 + $0x3f50] sm:$0xff] }
 0x880   : > { %15429 = vmatprep.subr.bf16.mxu0 %v17602_v37  ;;  %v2578_v37 = vld [vmem:[%s24580_s2 + $0x3f70] sm:$0xff] }
 0x881   : > { %v17663_v12 = vcombine.low %v2574_v42, %v2578_v37 }
 0x882   : > { %14774 = vmatpush1.bf16.msra.mxu1 %v17599_v45  ;;  %v17664_v45 = vcombine.high %v2574_v42, %v2578_v37 }
 0x883   : > { %15430 = vmatpush1.bf16.msra.mxu0 %v17601_v40  ;;  %14775 = vmatprep.subr.bf16.mxu1 %v17608_v41  ;;  %v17666_v40 = vcombine.high %v2575_v39, %v2579_v20  ;;  %v2582_v41 = vld [vmem:[%s24580_s2 + $0x3f90] sm:$0xff] }
 0x884   : > { %15431 = vmatprep.subr.bf16.mxu0 %v17610_v44  ;;  %v2586_v44 = vld [vmem:[%s24580_s2 + $0x3fb0] sm:$0xff] }
 0x885   : > { %v17671_v13 = vcombine.low %v2582_v41, %v2586_v44 }
 0x886   : > { %14776 = vmatpush1.bf16.msra.mxu1 %v17607_v63  ;;  %v17672_v63 = vcombine.high %v2582_v41, %v2586_v44 }
 0x887   : > { %15432 = vmatpush1.bf16.msra.mxu0 %v17609_v55  ;;  %14777 = vmatprep.subr.bf16.mxu1 %v17616_v56  ;;  %v17674_v55 = vcombine.high %v2583_v48, %v2587_v49  ;;  %v2590_v56 = vld [vmem:[%s24580_s2 + $0x3fd0] sm:$0xff] }
 0x888   : > { %15433 = vmatprep.subr.bf16.mxu0 %v17618_v58  ;;  %v2594_v58 = vld [vmem:[%s24580_s2 + $0x3ff0] sm:$0xff] }
 0x88a   : > { %14778 = vmatpush1.bf16.msra.mxu1 %v17615_v52  ;;  %v17680_v52 = vcombine.high %v2590_v56, %v2594_v58 }
 0x88b   : > { %15434 = vmatpush1.bf16.msra.mxu0 %v17617_v10  ;;  %14779 = vmatprep.subr.bf16.mxu1 %v17624_v22  ;;  %v17682_v10 = vcombine.high %v2591_v59, %v2595_v1  ;;  %v17679_v22 = vcombine.low %v2590_v56, %v2594_v58 }
 0x88c   : > { %15435 = vmatprep.subr.bf16.mxu0 %v17626_v26  ;;  %v17681_v26 = vcombine.low %v2591_v59, %v2595_v1 }
 0x88e   : > { %14780 = vmatpush1.bf16.msra.mxu1 %v17623_v18 }
 0x88f   : > { %15436 = vmatpush1.bf16.msra.mxu0 %v17625_v46  ;;  %14781 = vmatprep.subr.bf16.mxu1 %v17632_v14 }
 0x890   : > { %15437 = vmatprep.subr.bf16.mxu0 %v17634_v16 }
 0x892   : > { %14782 = vmatpush1.bf16.msra.mxu1 %v17631_v3 }
 0x893   : > { %15438 = vmatpush1.bf16.msra.mxu0 %v17633_v21  ;;  %14783 = vmatprep.subr.bf16.mxu1 %v17640_v36 }
 0x894   : > { %15439 = vmatprep.subr.bf16.mxu0 %v17642_v11 }
 0x896   : > { %14784 = vmatpush1.bf16.msra.mxu1 %v17639_v61 }
 0x897   : > { %15440 = vmatpush1.bf16.msra.mxu0 %v17641_v25  ;;  %14785 = vmatprep.subr.bf16.mxu1 %v17648_v0 }
 0x898   : > { %15441 = vmatprep.subr.bf16.mxu0 %v17650_v43 }
 0x89a   : > { %14786 = vmatpush1.bf16.msra.mxu1 %v17647_v31 }
 0x89b   : > { %15442 = vmatpush1.bf16.msra.mxu0 %v17649_v4  ;;  %14787 = vmatprep.subr.bf16.mxu1 %v17656_v62 }
 0x89c   : > { %15443 = vmatprep.subr.bf16.mxu0 %v17658_v34 }
 0x89e   : > { %14788 = vmatpush1.bf16.msra.mxu1 %v17655_v8 }
 0x89f   : > { %15444 = vmatpush1.bf16.msra.mxu0 %v17657_v38  ;;  %14789 = vmatprep.subr.bf16.mxu1 %v17664_v45 }
 0x8a0   : > { %15445 = vmatprep.subr.bf16.mxu0 %v17666_v40 }
 0x8a2   : > { %14790 = vmatpush1.bf16.msra.mxu1 %v17663_v12 }
 0x8a3   : > { %15446 = vmatpush1.bf16.msra.mxu0 %v17665_v53  ;;  %14791 = vmatprep.subr.bf16.mxu1 %v17672_v63 }
 0x8a4   : > { %15447 = vmatprep.subr.bf16.mxu0 %v17674_v55 }
 0x8a6   : > { %14792 = vmatpush1.bf16.msra.mxu1 %v17671_v13 }
 0x8a7   : > { %15448 = vmatpush1.bf16.msra.mxu0 %v17673_v2  ;;  %14793 = vmatprep.subr.bf16.mxu1 %v17680_v52 }
 0x8a8   : > { %15449 = vmatprep.subr.bf16.mxu0 %v17682_v10 }
 0x8aa   : > { %14794 = vmatpush1.bf16.msra.mxu1 %v17679_v22 }
 0x8ab   : > { %15450 = vmatpush1.bf16.msra.mxu0 %v17681_v26 }
 0x8ad   : > { %14796 = vmatmul.mubr.bf16.vlgmr.msra.gmra.mrb[4].mxu1 %v21432_v17 }
 0x8ae   : > { %15452 = vmatmul.mubr.bf16.vlgmr.msra.gmra.mrb[36].mxu0 %v21432_v17 }
 0x980   : > { %v14797_v33 = vpop.f32.mrb[4].mxu1 }
 0x981   : > { %v15463_v5 = vadd.f32 %v22122_v47, %v14797_v33  ;;  %v15453_v9 = vpop.f32.mrb[36].mxu0  ;;  %v14799_v32 = vpop.f32.mrb[5].mxu1 }
 0x982   : > { %v15455_v18 = vpop.f32.mrb[37].mxu0  ;;  %v14801_v46 = vpop.f32.mrb[6].mxu1 }
 0x983   : > { %v15464_v14 = vadd.f32 %v15463_v5, %v14799_v32  ;;  %v15457_v16 = vpop.f32.mrb[38].mxu0  ;;  %v14802_v29 = vpop.f32.mrb[7].mxu1 }
 0x984   : > { %v15458_v51 = vpop.f32.mrb[39].mxu0 }
 0x985   : > { %v15465_v57 = vadd.f32 %v15464_v14, %v15453_v9 }
 0x987   : > { %v15466_v30 = vadd.f32 %v15465_v57, %v15455_v18 }
 0x989   : > { %15467 = vadd.xlane.f32.xlu0 %v15466_v30 }
 0xa16   : > { %v15468_v3 = vpop.xlane.xlu0 %15467 }
 0xa17   : > { %v15470_v21 = vmul.f32 0.0009765625, %v15468_v3 }
 0xa19   : > { %v15471_v36 = vsub.f32 %v22086_v60, %v15470_v21  ;;  %v15472_v17 = vsub.f32 %v22096_v50, %v15470_v21  ;;  %v15473_v11 = vsub.f32 %v22094_v6, %v15470_v21  ;;  %v15474_v47 = vsub.f32 %v22106_v54, %v15470_v21 }
 0xa1a   : > { %v15475_v19 = vsub.f32 %v14797_v33, %v15470_v21  ;;  %v15476_v25 = vsub.f32 %v14799_v32, %v15470_v21  ;;  %v15477_v27 = vsub.f32 %v15453_v9, %v15470_v21  ;;  %v15478_v23 = vsub.f32 %v15455_v18, %v15470_v21 }
 0xa1b   : > { %v15479_v24 = vmul.f32 %v15471_v36, %v15471_v36  ;;  %v15480_v35 = vmul.f32 %v15472_v17, %v15472_v17  ;;  %v15481_v15 = vmul.f32 %v15473_v11, %v15473_v11  ;;  %v15482_v0 = vmul.f32 %v15474_v47, %v15474_v47 }
 0xa1c   : > { %v15483_v7 = vmul.f32 %v15475_v19, %v15475_v19  ;;  %v15484_v31 = vmul.f32 %v15476_v25, %v15476_v25  ;;  %v15485_v4 = vmul.f32 %v15477_v27, %v15477_v27  ;;  %v15486_v62 = vmul.f32 %v15478_v23, %v15478_v23 }
 0xa1d   : > { %v15487_v61 = vadd.f32 %v15480_v35, %v15479_v24 }
 0xa1f   : > { %v15488_v43 = vadd.f32 %v15487_v61, %v15481_v15 }
 0xa21   : > { %v15489_v28 = vadd.f32 %v15488_v43, %v15482_v0 }
 0xa23   : > { %v15490_v60 = vadd.f32 %v15489_v28, %v15483_v7 }
 0xa25   : > { %v15491_v50 = vadd.f32 %v15490_v60, %v15484_v31 }
 0xa27   : > { %v15492_v6 = vadd.f32 %v15491_v50, %v15485_v4 }
 0xa29   : > { %v15493_v34 = vadd.f32 %v15492_v6, %v15486_v62 }
 0xa2b   : > { %15494 = vadd.xlane.f32.xlu0 %v15493_v34 }
 0xab8   : > { %v15495_v54 = vpop.xlane.xlu0 %15494 }
 0xab9   : > { %v15496_v42 = vmul.f32 0.0009765625, %v15495_v54 }
 0xabb   : > { %v15497_v37 = vadd.f32 1e-05, %v15496_v42 }
 0xabd   : > { %17938 = vrsqrt.f32 %v15497_v37 }
 0xac7   : > { %v17939_v39 = vpop.eup %17938 }
 0xac8   : > { %v15499_v20 = vmul.f32 %v17939_v39, %v15471_v36  ;;  %v15500_v8 = vmul.f32 %v17939_v39, %v15472_v17  ;;  %v15501_v38 = vmul.f32 %v17939_v39, %v15473_v11  ;;  %v15502_v45 = vmul.f32 %v17939_v39, %v15474_v47 }
 0xac9   : > { %v15503_v40 = vmul.f32 %v17939_v39, %v15475_v19  ;;  %v15504_v41 = vmul.f32 %v17939_v39, %v15476_v25  ;;  %v15505_v44 = vmul.f32 %v17939_v39, %v15477_v27  ;;  %v15506_v48 = vmul.f32 %v17939_v39, %v15478_v23 }
 0xaca   : > { %v15507_v49 = vmax.f32 %v15499_v20, 0.0  ;;  %v15508_v12 = vmax.f32 %v15500_v8, 0.0  ;;  %v15509_v53 = vmax.f32 %v15501_v38, 0.0  ;;  %v15510_v63 = vmax.f32 %v15502_v45, 0.0 }
 0xacb   : > { %v15511_v55 = vmax.f32 %v15503_v40, 0.0  ;;  %v15512_v56 = vmax.f32 %v15504_v41, 0.0  ;;  %v15513_v58 = vmax.f32 %v15505_v44, 0.0  ;;  %v15514_v59 = vmax.f32 %v15506_v48, 0.0 }
 0xacc   : > { %15515 = vst [vmem:[%s18040_s30] sm:$0xff] %v15507_v49  ;;  %15516 = vst [vmem:[%s18040_s30 + $0x8] sm:$0xff] %v15508_v12 }
 0xacd   : > { %15517 = vst [vmem:[%s18040_s30 + $0x10] sm:$0xff] %v15509_v53  ;;  %15518 = vst [vmem:[%s18040_s30 + $0x18] sm:$0xff] %v15510_v63 }
 0xace   : > { %15519 = vst [vmem:[%s18040_s30 + $0x20] sm:$0xff] %v15511_v55  ;;  %15520 = vst [vmem:[%s18040_s30 + $0x28] sm:$0xff] %v15512_v56 }
 0xacf   : > { %15521 = vst [vmem:[%s18040_s30 + $0x30] sm:$0xff] %v15513_v58  ;;  %15522 = vst [vmem:[%s18040_s30 + $0x38] sm:$0xff] %v15514_v59 }
 0xad0 PF: > { %s14_s15 = sadd.s32 1, %s17946_s15  }
 0xad1   : > { %p11_p4 = scmp.ge.s32.totalorder %s14_s15, 4  }
 0xad3   :  { %13 = sbr.rel (!%p11_p4) target bundleno = 1 (0x1), region = 69 }

</bundles_post_ra>
